<compile_context>
chip_gen: v6e
topology: v6e:2x2x1
jax: 0.10.0
libtpu: 0.0.40
codegen_flags: <defaults>
</compile_context>

<pallas_src>
import jax
import jax.numpy as jnp
from jax.experimental import pallas as pl
from jax.experimental.pallas import tpu as pltpu

ACT_DTYPE = jnp.bfloat16          # streaming dtype for activations/weights
_BN_EPS = 1e-5
_TM_MAX = 512


# ------------------------- TPU-generation aware config -------------------------

def _tpu_defaults():
    try:
        kind = jax.devices()[0].device_kind.lower()
    except Exception:
        kind = ""
    if "v7" in kind or "tpu7" in kind:
        # 2 TensorCores, 64 MiB VMEM per core -> smaller tiles, >=4 grid steps
        return {"vmem_limit": 40 << 20, "gemm_budget": 6 << 20, "min_steps": 4}
    if ("v6" in kind) or ("v5e" in kind) or ("v5 lite" in kind) or ("v5litepod" in kind):
        # 1 TensorCore, 128 MiB VMEM -> big tiles, no forced splitting
        return {"vmem_limit": 96 << 20, "gemm_budget": 16 << 20, "min_steps": 1}
    # unknown chip: conservative
    return {"vmem_limit": 48 << 20, "gemm_budget": 8 << 20, "min_steps": 2}


def _pick_tm(M, K, N, cfg):
    """Row tile for the flat GEMM: as large as the VMEM block budget allows,
    split further only when the chip has multiple TensorCores."""
    budget = cfg["gemm_budget"]
    tm = _TM_MAX
    while tm > 8 and 2 * (2 * tm * (K + 2 * N) + K * N) > budget:
        tm //= 2
    if M <= tm:
        if cfg["min_steps"] > 1 and M >= 256 and M % (8 * cfg["min_steps"]) == 0:
            return M // cfg["min_steps"]
        return max(M, 1)
    while cfg["min_steps"] > 1 and tm > 256 and pl.cdiv(M, tm) < cfg["min_steps"]:
        tm //= 2
    return tm


def _pick_tap_tm(HW, N):
    """Row tile for the tap conv: keep the f32 accumulator modest and
    prefer a tile that divides H*W (no ragged output)."""
    tm = min(_TM_MAX, max(HW, 1))
    while tm > 8 and tm * N * 4 > (2 << 20):
        tm //= 2
    if HW % tm == 0:
        return tm
    t = tm - (tm % 8)
    while t >= 8:
        if HW % t == 0:
            return t
        t -= 8
    return max(tm - (tm % 8), 8)


# ------------------------- Pallas kernels -------------------------

def _apply_act(x, act):
    if act == "sigmoid":
        # numerically safe sigmoid on the EUP: 0.5*(tanh(x/2)+1) in [0,1]
        return 0.5 * (jnp.tanh(0.5 * x) + 1.0)
    return x


def _make_gemm_kernel(with_res, with_stats, act):
    def kernel(*refs):
        if with_res:
            a_ref, w_ref, b_ref, r_ref = refs[0], refs[1], refs[2], refs[3]
            outs = refs[4:]
        else:
            a_ref, w_ref, b_ref = refs[0], refs[1], refs[2]
            r_ref = None
            outs = refs[3:]
        o_ref = outs[0]
        acc = jnp.dot(a_ref[...], w_ref[...], preferred_element_type=jnp.float32)
        acc = acc + b_ref[...]
        if with_res:
            acc = acc + r_ref[...].astype(jnp.float32)
        if with_stats:
            st_ref = outs[1]
            st_ref[0, 0:1, :] = jnp.sum(acc, axis=0, keepdims=True)
            st_ref[0, 1:2, :] = jnp.sum(acc * acc, axis=0, keepdims=True)
        o_ref[...] = _apply_act(acc, act).astype(o_ref.dtype)
    return kernel


def _make_tap_kernel(W, act):
    """3x3 stride-1 'same' conv over a flattened H-padded image.

    a_ref : (1, Mp, C)  whole padded image (resident per batch element)
    w_ref : (9, C, N)   tap-major weights
    b_ref : (1, N)      bias (f32)
    o_ref : (1, tm, N)  output rows [q0, q0+tm) of the flat (H*W, N) output.
    Row offset for tap (i, j): q + (i+1)*W + (j-1)  (top pad = 2 rows).
    Left/right taps are masked where the window crosses the image width.
    """
    def kernel(a_ref, w_ref, b_ref, o_ref):
        tm = o_ref.shape[1]
        n = o_ref.shape[2]
        q0 = pl.program_id(1) * tm
        col = (q0 + jax.lax.broadcasted_iota(jnp.int32, (tm, 1), 0)) % W
        acc = jnp.zeros((tm, n), jnp.float32)
        for t in range(9):
            i, j = t // 3, t % 3
            if W == 1 and j != 1:          # side taps are fully masked
                continue
            start = q0 + (i + 1) * W + (j - 1)
            a = a_ref[0, pl.ds(start, tm), :]
            c = jnp.dot(a, w_ref[t], preferred_element_type=jnp.float32)
            if j == 0:
                c = jnp.where(col != 0, c, 0.0)
            elif j == 2:
                c = jnp.where(col != W - 1, c, 0.0)
            acc = acc + c
        acc = acc + b_ref[...]
        o_ref[0, :, :] = _apply_act(acc, act).astype(o_ref.dtype)
    return kernel


def _scale_shift_relu_kernel(x_ref, s_ref, t_ref, o_ref):
    x = x_ref[...].astype(jnp.float32)
    o_ref[...] = jnp.maximum(x * s_ref[...] + t_ref[...], 0.0).astype(o_ref.dtype)


# ------------------------- Pallas wrappers -------------------------

def flat_gemm(a, w, bias, residual=None, act=None, want_stats=False,
              out_dtype=None, compute_dtype=ACT_DTYPE, cfg=None):
    """out = act(a @ w + bias (+ residual)); optionally also emits per-tile
    partial (sum, sumsq) of the f32 accumulator for fused BN statistics."""
    if cfg is None:
        cfg = _tpu_defaults()
    M, K = a.shape
    N = w.shape[-1]
    out_dtype = out_dtype or compute_dtype
    a = a.astype(compute_dtype)
    w = w.astype(compute_dtype)
    b2 = bias.reshape(1, N).astype(jnp.float32)

    tm = _pick_tm(M, K, N, cfg)
    emit_stats = want_stats
    if emit_stats and M % tm != 0:
        t = tm - (tm % 8)
        while t >= 8 and M % t != 0:
            t -= 8
        if t >= 8:
            tm = t
        else:
            emit_stats = False
    steps = pl.cdiv(M, tm)

    in_specs = [pl.BlockSpec((tm, K), lambda i: (i, 0)),
                pl.BlockSpec((K, N), lambda i: (0, 0)),
                pl.BlockSpec((1, N), lambda i: (0, 0))]
    args = [a, w, b2]
    if residual is not None:
        in_specs.append(pl.BlockSpec((tm, N), lambda i: (i, 0)))
        args.append(residual.astype(compute_dtype))

    main_shape = jax.ShapeDtypeStruct((M, N), out_dtype)
    main_spec = pl.BlockSpec((tm, N), lambda i: (i, 0))
    if emit_stats:
        out_shape = (main_shape, jax.ShapeDtypeStruct((steps, 2, N), jnp.float32))
        out_specs = [main_spec, pl.BlockSpec((1, 2, N), lambda i: (i, 0, 0))]
    else:
        out_shape = main_shape
        out_specs = main_spec

    out = pl.pallas_call(
        _make_gemm_kernel(residual is not None, emit_stats, act),
        out_shape=out_shape,
        grid=(steps,),
        in_specs=in_specs,
        out_specs=out_specs,
        compiler_params=pltpu.CompilerParams(
            dimension_semantics=("parallel",),
            vmem_limit_bytes=cfg["vmem_limit"]),
    )(*args)

    if want_stats:
        return (out[0], out[1]) if emit_stats else (out, None)
    return out


def tap_conv3x3(x, w9, bias, act=None, out_dtype=None,
                compute_dtype=ACT_DTYPE, cfg=None):
    """3x3 stride-1 padding-1 convolution via in-kernel tap accumulation.
    x: (B,H,W,C) NHWC, w9: (9, C, N) tap-major, bias: (1, N) or (N,)."""
    if cfg is None:
        cfg = _tpu_defaults()
    B, H, W, C = x.shape
    N = w9.shape[-1]
    HW = H * W
    out_dtype = out_dtype or compute_dtype

    tm = _pick_tap_tm(HW, N)
    n_m = pl.cdiv(HW, tm)

    # H padding: 2 zero rows on top (so all tap row offsets are >= 0) and
    # enough zero rows at the bottom to cover the last tile's reach.
    rows_needed = n_m * tm + 3 * W + 1
    pad_top = 2
    pad_bottom = max(1, -(-(rows_needed - (H + pad_top) * W) // W))
    xp = jnp.pad(x.astype(compute_dtype),
                 ((0, 0), (pad_top, pad_bottom), (0, 0), (0, 0)))
    Mp = (H + pad_top + pad_bottom) * W
    a = xp.reshape(B, Mp, C)
    w9 = w9.astype(compute_dtype)
    b2 = bias.reshape(1, N).astype(jnp.float32)

    out = pl.pallas_call(
        _make_tap_kernel(W, act),
        out_shape=jax.ShapeDtypeStruct((B, n_m * tm, N), out_dtype),
        grid=(B, n_m),
        in_specs=[pl.BlockSpec((1, Mp, C), lambda b, m: (b, 0, 0)),
                  pl.BlockSpec((9, C, N), lambda b, m: (0, 0, 0)),
                  pl.BlockSpec((1, N), lambda b, m: (0, 0))],
        out_specs=pl.BlockSpec((1, tm, N), lambda b, m: (b, m, 0)),
        compiler_params=pltpu.CompilerParams(
            dimension_semantics=("parallel", "parallel"),
            vmem_limit_bytes=cfg["vmem_limit"]),
    )(a, w9, b2)

    if n_m * tm != HW:
        out = out[:, :HW, :]
    return out.reshape(B, H, W, N)


def scale_shift_relu(x, scale, shift, out_dtype, cfg):
    """relu(x * scale + shift), per-channel; x:(M,C).  Small-C layers are
    regrouped so the stored last dim is a multiple of 128 (lane-dense)."""
    M, C = x.shape
    g = 1
    if C < 128 and 128 % C == 0 and M % (128 // C) == 0:
        g = 128 // C
    xg = x.reshape(M // g, g * C)
    sg = jnp.tile(scale.astype(jnp.float32), g).reshape(1, g * C)
    tg = jnp.tile(shift.astype(jnp.float32), g).reshape(1, g * C)
    Mg, Cg = xg.shape
    tm = Mg if Mg <= 1024 else 512
    steps = pl.cdiv(Mg, tm)
    out = pl.pallas_call(
        _scale_shift_relu_kernel,
        out_shape=jax.ShapeDtypeStruct((Mg, Cg), out_dtype),
        grid=(steps,),
        in_specs=[pl.BlockSpec((tm, Cg), lambda i: (i, 0)),
                  pl.BlockSpec((1, Cg), lambda i: (0, 0)),
                  pl.BlockSpec((1, Cg), lambda i: (0, 0))],
        out_specs=pl.BlockSpec((tm, Cg), lambda i: (i, 0)),
        compiler_params=pltpu.CompilerParams(
            dimension_semantics=("parallel",),
            vmem_limit_bytes=cfg["vmem_limit"]),
    )(xg, sg, tg)
    return out.reshape(M, C)


# ------------------------- conv glue -------------------------

def im2col_conv3x3_s2(x, wim, bias, compute_dtype, cfg):
    """3x3 stride-2 padding-1 conv via im2col + flat GEMM (encoder only)."""
    B, H, W, C = x.shape
    xp = jnp.pad(x, ((0, 0), (1, 1), (1, 1), (0, 0)))
    Ho = (H - 1) // 2 + 1
    Wo = (W - 1) // 2 + 1
    cols = []
    for i in range(3):
        for j in range(3):
            cols.append(xp[:, i:i + 2 * (Ho - 1) + 1:2,
                            j:j + 2 * (Wo - 1) + 1:2, :])
    A = jnp.concatenate(cols, axis=-1).reshape(B * Ho * Wo, 9 * C)
    out = flat_gemm(A, wim, bias, compute_dtype=compute_dtype, cfg=cfg)
    return out.reshape(B, Ho, Wo, -1)


def _depth_to_space2(y, cout):
    B, H, W, _ = y.shape
    y = y.reshape(B, H, W, 2, 2, cout)
    y = jnp.transpose(y, (0, 1, 3, 2, 4, 5))
    return y.reshape(B, 2 * H, 2 * W, cout)


def _merge_convT_s2_weight(w_flip):
    """w_flip: (4,4,cin,cout) HWIO of the flipped ConvTranspose kernel.
    Returns the merged sub-pixel 3x3 weight (9, cin, 4*cout): one pad-1 conv
    produces all four (dr,dc) sub-pixel outputs at once."""
    cin, cout = w_flip.shape[2], w_flip.shape[3]
    wm = jnp.zeros((3, 3, cin, 4, cout), w_flip.dtype)
    for dr in (0, 1):
        for dc in (0, 1):
            for s in range(3):
                for t in range(3):
                    if 0 <= s - dr <= 1 and 0 <= t - dc <= 1:
                        wm = wm.at[s, t, :, dr * 2 + dc, :].set(
                            w_flip[2 * s - dr, 2 * t - dc])
    return wm.reshape(9, cin, 4 * cout)


# ------------------------- parameters (pre-packed) + static config ------

class _KeyGen:
    def __init__(self, key):
        self._key = key

    def __call__(self):
        self._key, sub = jax.random.split(self._key)
        return sub


def _winit(kg, shape, fan_in):
    std = (2.0 / float(max(fan_in, 1))) ** 0.5
    return std * jax.random.normal(kg(), shape, jnp.float32)


def _pack_conv(kg, cin, cout, k, bias=True):
    # PyTorch Conv2d weight OIHW; round to bf16 once so both paths share values.
    w = _winit(kg, (cout, cin, k, k), cin * k * k)
    w = w.astype(jnp.bfloat16).astype(jnp.float32)
    b = (0.01 * jax.random.normal(kg(), (cout,), jnp.float32) if bias
         else jnp.zeros((cout,), jnp.float32))
    w_hwio = jnp.transpose(w, (2, 3, 1, 0))
    d = {"w_hwio": w_hwio, "b": b.reshape(1, cout)}
    if k == 1:
        d["w"] = w_hwio.reshape(cin, cout).astype(jnp.bfloat16)
    else:
        d["w9"] = w_hwio.reshape(k * k, cin, cout).astype(jnp.bfloat16)
        d["wim"] = w_hwio.reshape(k * k * cin, cout).astype(jnp.bfloat16)
    return d


def _pack_convT(kg, cin, cout, k, stride):
    # PyTorch ConvTranspose2d weight IOHW -> flipped HWIO conv kernel.
    w = _winit(kg, (cin, cout, k, k), cin * k * k)
    w = w.astype(jnp.bfloat16).astype(jnp.float32)
    b = 0.01 * jax.random.normal(kg(), (cout,), jnp.float32)
    w_flip = jnp.transpose(jnp.flip(w, axis=(2, 3)), (2, 3, 0, 1))
    d = {"w_hwio": w_flip, "b": b.reshape(1, cout)}
    if stride == 1:
        d["w9"] = w_flip.reshape(9, cin, cout).astype(jnp.bfloat16)
    else:
        d["w9m"] = _merge_convT_s2_weight(w_flip).astype(jnp.bfloat16)
        d["b4"] = jnp.tile(b, 4).reshape(1, 4 * cout)
    return d


def _bn_param(kg, c):
    gamma = 1.0 + 0.1 * jax.random.normal(kg(), (c,), jnp.float32)
    beta = 0.1 * jax.random.normal(kg(), (c,), jnp.float32)
    return gamma, beta


def make_model(key, size=8, channel=3):
    kg = _KeyGen(key)
    params, config = {}, {"tpu": _tpu_defaults()}
    params["block0"] = _pack_conv(kg, 3, size, 3, bias=False)

    res_cfg = [
        (size, size * 2, 2), (size * 2, size * 2, 1),
        (size * 2, size * 4, 2), (size * 4, size * 4, 1),
        (size * 4, size * 8, 2), (size * 8, size * 8, 1),
        (size * 8, size * 16, 2), (size * 16, size * 16, 1),
        (size * 16, size * 32, 2), (size * 32, size * 32, 1),
    ]
    blocks, strides = [], []
    for cin, planes, stride in res_cfg:
        d = {"c1": _pack_conv(kg, cin, planes // 2, 1),
             "c2": _pack_conv(kg, planes // 2, planes // 2, 3),
             "c3": _pack_conv(kg, planes // 2, planes, 1),
             "bn": _bn_param(kg, planes)}
        if stride == 2:
            d["sc"] = _pack_conv(kg, cin, planes, 1)
        blocks.append(d)
        strides.append(stride)          # static int, NOT traced
    params["blocks"] = blocks
    config["blocks"] = strides

    up_cfg = [
        (size * 32, size * 32, 3, 1), (size * 32, size * 16, 4, 2),
        (size * 16, size * 16, 3, 1), (size * 16, size * 16, 3, 1),
        (size * 16, size * 8, 4, 2), (size * 8, size * 8, 3, 1),
        (size * 8, size * 8, 3, 1), (size * 8, size * 4, 4, 2),
        (size * 4, size * 4, 3, 1), (size * 4, size * 4, 3, 1),
        (size * 4, size * 2, 4, 2), (size * 2, size * 2, 3, 1),
        (size * 2, size, 4, 2), (size, size, 3, 1),
        (size, channel, 3, 1), (channel, channel, 3, 1),
        (channel, channel, 3, 1),
    ]
    ups, upc = [], []
    for cin, cout, k, stride in up_cfg:
        ups.append(_pack_convT(kg, cin, cout, k, stride))
        upc.append((k, stride))         # static (k, stride)
    params["ups"] = ups
    config["ups"] = upc
    return params, config


# ------------------------- forward -------------------------

def _res_block(x, p, stride, compute_dtype, cfg):
    # NOTE: the PyTorch code compares NCHW width with out_planes, but for
    # stride==1 the shortcut branch is Identity either way, so shortcut==x;
    # `stride != 1` reproduces the semantics exactly for this model.
    B, H, W, C = x.shape
    planes = p["bn"][0].shape[0]
    half = p["c1"]["b"].shape[-1]
    if stride != 1:
        xs = x[:, ::2, ::2, :]
        Ho, Wo = xs.shape[1], xs.shape[2]
        res = flat_gemm(xs.reshape(B * Ho * Wo, C), p["sc"]["w"], p["sc"]["b"],
                        compute_dtype=compute_dtype, cfg=cfg)
    else:
        Ho, Wo = H, W
        res = x.reshape(B * H * W, C)

    h1 = flat_gemm(x.reshape(B * H * W, C), p["c1"]["w"], p["c1"]["b"],
                   compute_dtype=compute_dtype, cfg=cfg).reshape(B, H, W, half)
    if stride == 1:
        h2 = tap_conv3x3(h1, p["c2"]["w9"], p["c2"]["b"],
                         compute_dtype=compute_dtype, cfg=cfg)
    else:
        h2 = im2col_conv3x3_s2(h1, p["c2"]["wim"], p["c2"]["b"],
                               compute_dtype=compute_dtype, cfg=cfg)

    Mo = B * Ho * Wo
    y, stats = flat_gemm(h2.reshape(Mo, half), p["c3"]["w"], p["c3"]["b"],
                         residual=res, want_stats=True,
                         compute_dtype=compute_dtype, cfg=cfg)
    if stats is not None:
        mean = stats[:, 0, :].sum(axis=0) / Mo
        ex2 = stats[:, 1, :].sum(axis=0) / Mo
        var = jnp.maximum(ex2 - mean * mean, 0.0)
    else:
        yf = y.astype(jnp.float32)
        mean = jnp.mean(yf, axis=0)
        var = jnp.var(yf, axis=0)

    gamma, beta = p["bn"]
    scale = gamma * jax.lax.rsqrt(var + _BN_EPS)
    shift = beta - mean * scale
    out = scale_shift_relu(y, scale, shift, out_dtype=compute_dtype, cfg=cfg)
    return out.reshape(B, Ho, Wo, planes)


def resfcn256_forward(params, x_nchw, config, compute_dtype=ACT_DTYPE):
    cfg = config["tpu"]
    x = jnp.transpose(x_nchw, (0, 2, 3, 1)).astype(compute_dtype)

    p0 = params["block0"]
    se = tap_conv3x3(x, p0["w9"], p0["b"], compute_dtype=compute_dtype, cfg=cfg)
    for p, stride in zip(params["blocks"], config["blocks"]):
        se = _res_block(se, p, stride, compute_dtype, cfg)

    pd = se
    nup = len(params["ups"])
    for idx, (p, (k, stride)) in enumerate(zip(params["ups"], config["ups"])):
        last = idx == nup - 1
        act = "sigmoid" if last else None
        od = jnp.float32 if last else compute_dtype
        if stride == 1:
            pd = tap_conv3x3(pd, p["w9"], p["b"], act=act, out_dtype=od,
                             compute_dtype=compute_dtype, cfg=cfg)
        else:
            cout = p["b"].shape[-1]
            y = tap_conv3x3(pd, p["w9m"], p["b4"], act=act, out_dtype=od,
                            compute_dtype=compute_dtype, cfg=cfg)
            pd = _depth_to_space2(y, cout)

    return jnp.transpose(pd, (0, 3, 1, 2))


# ------------------------- numeric self-checks (f32 streaming) ------------

def _ref_conv(x, w_hwio, b, stride, pad):
    y = jax.lax.conv_general_dilated(
        x, w_hwio, (stride, stride), ((pad, pad), (pad, pad)),
        dimension_numbers=("NHWC", "HWIO", "NHWC"),
        precision=jax.lax.Precision.HIGHEST)
    return y + b.reshape(1, 1, 1, -1)


def _ref_res_block(x, p, stride):
    sc = x if stride == 1 else _ref_conv(x, p["sc"]["w_hwio"], p["sc"]["b"], stride, 0)
    y = _ref_conv(x, p["c1"]["w_hwio"], p["c1"]["b"], 1, 0)
    y = _ref_conv(y, p["c2"]["w_hwio"], p["c2"]["b"], stride, 1)
    y = _ref_conv(y, p["c3"]["w_hwio"], p["c3"]["b"], 1, 0) + sc
    gamma, beta = p["bn"]
    mean = jnp.mean(y, axis=(0, 1, 2))
    var = jnp.var(y, axis=(0, 1, 2))
    y = (y - mean) * (gamma * jax.lax.rsqrt(var + _BN_EPS)) + beta
    return jnp.maximum(y, 0.0)


def _assert_close(a, b, rel=2e-2):
    err = float(jnp.max(jnp.abs(a.astype(jnp.float32) - b.astype(jnp.float32))))
    tol = rel * (float(jnp.max(jnp.abs(b))) + 1.0)
    assert err < tol, ("self-check failed", err, tol)


def _check_tap_conv(key, cfg):
    k1, k2, k3 = jax.random.split(key, 3)
    B, H, W, C, N = 2, 32, 32, 8, 16
    x = jax.random.normal(k1, (B, H, W, C), jnp.float32)
    w = 0.2 * jax.random.normal(k2, (3, 3, C, N), jnp.float32)
    b = 0.1 * jax.random.normal(k3, (N,), jnp.float32)
    out = tap_conv3x3(x, w.reshape(9, C, N), b.reshape(1, N),
                      compute_dtype=jnp.float32, out_dtype=jnp.float32, cfg=cfg)
    ref = jax.lax.conv_general_dilated(
        x, w, (1, 1), ((1, 1), (1, 1)),
        dimension_numbers=("NHWC", "HWIO", "NHWC"),
        precision=jax.lax.Precision.HIGHEST) + b
    _assert_close(out, ref)


def _check_convT_s2(key, cfg):
    k1, k2, k3 = jax.random.split(key, 3)
    B, H, W, cin, cout = 2, 8, 8, 8, 16
    x = jax.random.normal(k1, (B, H, W, cin), jnp.float32)
    wT = 0.2 * jax.random.normal(k2, (cin, cout, 4, 4), jnp.float32)
    b = 0.1 * jax.random.normal(k3, (cout,), jnp.float32)
    w_flip = jnp.transpose(jnp.flip(wT, axis=(2, 3)), (2, 3, 0, 1))
    w9m = _merge_convT_s2_weight(w_flip)
    b4 = jnp.tile(b, 4).reshape(1, 4 * cout)
    y = tap_conv3x3(x, w9m, b4, compute_dtype=jnp.float32,
                    out_dtype=jnp.float32, cfg=cfg)
    y = _depth_to_space2(y, cout)
    ref = jax.lax.conv_general_dilated(
        x, w_flip, (1, 1), ((2, 2), (2, 2)), lhs_dilation=(2, 2),
        dimension_numbers=("NHWC", "HWIO", "NHWC"),
        precision=jax.lax.Precision.HIGHEST) + b
    _assert_close(y, ref)


def _check_res_block(key, cfg):
    kg = _KeyGen(key)
    for stride, cin, planes in ((1, 32, 32), (2, 16, 32)):
        p = {"c1": _pack_conv(kg, cin, planes // 2, 1),
             "c2": _pack_conv(kg, planes // 2, planes // 2, 3),
             "c3": _pack_conv(kg, planes // 2, planes, 1),
             "bn": _bn_param(kg, planes)}
        if stride == 2:
            p["sc"] = _pack_conv(kg, cin, planes, 1)
        x = jax.random.normal(kg(), (2, 8, 8, cin), jnp.float32)
        out = _res_block(x, p, stride, jnp.float32, cfg)
        ref = _ref_res_block(x, p, stride)
        _assert_close(out, ref)


# ------------------------- main -------------------------

if __name__ == "__main__":
    key = jax.random.PRNGKey(0)
    k_params, k_x, k_chk = jax.random.split(key, 3)

    SIZE = 8        # small "size" hyper-parameter (module default is 16)
    CHANNEL = 3     # block0 expects 3 input channels
    RES = 32        # smallest spatial resolution divisible by 2**5

    params, config = make_model(k_params, size=SIZE, channel=CHANNEL)
    cfg = config["tpu"]

    # numeric self-checks of the Pallas building blocks (f32 streaming)
    _check_tap_conv(k_chk, cfg)
    _check_convT_s2(jax.random.fold_in(k_chk, 1), cfg)
    _check_res_block(jax.random.fold_in(k_chk, 2), cfg)

    x = jax.random.normal(k_x, (2, CHANNEL, RES, RES), jnp.float32)  # NCHW
    fwd = jax.jit(lambda p, xin: resfcn256_forward(p, xin, config, ACT_DTYPE))
    pos = jax.block_until_ready(fwd(params, x))

    assert pos.shape == (2, CHANNEL, RES, RES), pos.shape
    assert bool(jnp.all(jnp.isfinite(pos)))
    assert bool(jnp.all((pos >= 0.0) & (pos <= 1.0)))
    print("KERNEL_OK")
</pallas_src>

<mosaic_0001>
module attributes {stable_mosaic.version = 11 : i64} {
  func.func @kernel(%arg0: i32, %arg1: i32, %arg2: memref<1x1152x8xf32, #tpu.memory_space<vmem>>, %arg3: memref<9x8x16xf32, #tpu.memory_space<vmem>>, %arg4: memref<1x16xf32, #tpu.memory_space<vmem>>, %arg5: memref<1x512x16xf32, #tpu.memory_space<vmem>>) attributes {dimension_semantics = [#tpu.dimension_semantics<parallel>, #tpu.dimension_semantics<parallel>], iteration_bounds = array<i64: 2, 2>, scalar_prefetch = 0 : i64, scratch_operands = 0 : i64, tpu.core_type = #tpu.core_type<tc>, window_params = [{transform_indices = @transform_0, window_bounds = array<i64: 1, 1152, 8>}, {pipeline_mode = #tpu.pipeline_mode<synchronous>, transform_indices = @transform_1, window_bounds = array<i64: 9, 8, 16>}, {pipeline_mode = #tpu.pipeline_mode<synchronous>, transform_indices = @transform_2, window_bounds = array<i64: 1, 16>}, {transform_indices = @transform_3, window_bounds = array<i64: 1, 512, 16>}]} {
    %c512_i32 = arith.constant 512 : i32
    %0 = arith.muli %arg1, %c512_i32 : i32
    %1 = tpu.iota {dimensions = array<i32: 0>} : vector<512x1xi32>
    %2 = vector.broadcast %0 : i32 to vector<512x1xi32>
    %3 = arith.addi %2, %1 : vector<512x1xi32>
    %c32_i32 = arith.constant 32 : i32
    %c0_i32 = arith.constant 0 : i32
    %4 = arith.cmpi eq, %c32_i32, %c0_i32 : i32
    %c1_i32 = arith.constant 1 : i32
    %5 = arith.select %4, %c1_i32, %c32_i32 : i32
    %6 = vector.broadcast %5 : i32 to vector<512x1xi32>
    %7 = arith.remsi %3, %6 : vector<512x1xi32>
    %c0_i32_0 = arith.constant 0 : i32
    %8 = vector.broadcast %c0_i32_0 : i32 to vector<512x1xi32>
    %9 = arith.cmpi ne, %7, %8 : vector<512x1xi32>
    %c0_i32_1 = arith.constant 0 : i32
    %10 = vector.broadcast %c0_i32_1 : i32 to vector<512x1xi32>
    %11 = arith.cmpi slt, %7, %10 : vector<512x1xi32>
    %c0_i32_2 = arith.constant 0 : i32
    %12 = arith.cmpi slt, %5, %c0_i32_2 : i32
    %13 = vector.broadcast %12 : i1 to vector<512x1xi1>
    %14 = vector.broadcast %13 : vector<512x1xi1> to vector<512x1xi1>
    %15 = arith.xori %11, %14 : vector<512x1xi1>
    %16 = arith.andi %15, %9 : vector<512x1xi1>
    %17 = vector.broadcast %5 : i32 to vector<512x1xi32>
    %18 = arith.addi %7, %17 : vector<512x1xi32>
    %19 = arith.select %16, %18, %7 : vector<512x1xi1>, vector<512x1xi32>
    %cst = arith.constant 0.000000e+00 : f32
    %20 = vector.broadcast %cst : f32 to vector<512x16xf32>
    %c32_i32_3 = arith.constant 32 : i32
    %21 = arith.addi %0, %c32_i32_3 : i32
    %c-1_i32 = arith.constant -1 : i32
    %22 = arith.addi %21, %c-1_i32 : i32
    %c0 = arith.constant 0 : index
    %23 = arith.index_cast %22 : i32 to index
    %c0_4 = arith.constant 0 : index
    %24 = vector.load %arg2[%c0, %23, %c0_4] : memref<1x1152x8xf32, #tpu.memory_space<vmem>>, vector<1x512x8xf32>
    %25 = vector.shape_cast %24 : vector<1x512x8xf32> to vector<512x8xf32>
    %c0_5 = arith.constant 0 : index
    %c0_6 = arith.constant 0 : index
    %c0_7 = arith.constant 0 : index
    %26 = vector.load %arg3[%c0_5, %c0_6, %c0_7] : memref<9x8x16xf32, #tpu.memory_space<vmem>>, vector<1x8x16xf32>
    %27 = vector.shape_cast %26 : vector<1x8x16xf32> to vector<8x16xf32>
    %cst_8 = arith.constant dense<0.000000e+00> : vector<512x16xf32>
    %28 = tpu.matmul %25, %27, %cst_8 {dimension_numbers = #tpu.dot_dimension_numbers<[1], [0], [0], [1], [0, 0, 1, 1], [], []>} : vector<512x8xf32>, vector<8x16xf32>, vector<512x16xf32> -> vector<512x16xf32>
    %c0_i32_9 = arith.constant 0 : i32
    %29 = vector.broadcast %c0_i32_9 : i32 to vector<512x1xi32>
    %30 = arith.cmpi ne, %19, %29 : vector<512x1xi32>
    %cst_10 = arith.constant 0.000000e+00 : f32
    %31 = vector.shape_cast %30 : vector<512x1xi1> to vector<512x1xi1>
    %32 = vector.broadcast %31 : vector<512x1xi1> to vector<512x16xi1>
    %33 = vector.broadcast %cst_10 : f32 to vector<512x16xf32>
    %34 = arith.select %32, %28, %33 : vector<512x16xi1>, vector<512x16xf32>
    %35 = arith.addf %20, %34 : vector<512x16xf32>
    %c32_i32_11 = arith.constant 32 : i32
    %36 = arith.addi %0, %c32_i32_11 : i32
    %c0_i32_12 = arith.constant 0 : i32
    %37 = arith.addi %36, %c0_i32_12 : i32
    %c0_13 = arith.constant 0 : index
    %38 = arith.index_cast %37 : i32 to index
    %c0_14 = arith.constant 0 : index
    %39 = vector.load %arg2[%c0_13, %38, %c0_14] : memref<1x1152x8xf32, #tpu.memory_space<vmem>>, vector<1x512x8xf32>
    %40 = vector.shape_cast %39 : vector<1x512x8xf32> to vector<512x8xf32>
    %c1 = arith.constant 1 : index
    %c0_15 = arith.constant 0 : index
    %c0_16 = arith.constant 0 : index
    %41 = vector.load %arg3[%c1, %c0_15, %c0_16] : memref<9x8x16xf32, #tpu.memory_space<vmem>>, vector<1x8x16xf32>
    %42 = vector.shape_cast %41 : vector<1x8x16xf32> to vector<8x16xf32>
    %cst_17 = arith.constant dense<0.000000e+00> : vector<512x16xf32>
    %43 = tpu.matmul %40, %42, %cst_17 {dimension_numbers = #tpu.dot_dimension_numbers<[1], [0], [0], [1], [0, 0, 1, 1], [], []>} : vector<512x8xf32>, vector<8x16xf32>, vector<512x16xf32> -> vector<512x16xf32>
    %44 = arith.addf %35, %43 : vector<512x16xf32>
    %c32_i32_18 = arith.constant 32 : i32
    %45 = arith.addi %0, %c32_i32_18 : i32
    %c1_i32_19 = arith.constant 1 : i32
    %46 = arith.addi %45, %c1_i32_19 : i32
    %c0_20 = arith.constant 0 : index
    %47 = arith.index_cast %46 : i32 to index
    %c0_21 = arith.constant 0 : index
    %48 = vector.load %arg2[%c0_20, %47, %c0_21] : memref<1x1152x8xf32, #tpu.memory_space<vmem>>, vector<1x512x8xf32>
    %49 = vector.shape_cast %48 : vector<1x512x8xf32> to vector<512x8xf32>
    %c2 = arith.constant 2 : index
    %c0_22 = arith.constant 0 : index
    %c0_23 = arith.constant 0 : index
    %50 = vector.load %arg3[%c2, %c0_22, %c0_23] : memref<9x8x16xf32, #tpu.memory_space<vmem>>, vector<1x8x16xf32>
    %51 = vector.shape_cast %50 : vector<1x8x16xf32> to vector<8x16xf32>
    %cst_24 = arith.constant dense<0.000000e+00> : vector<512x16xf32>
    %52 = tpu.matmul %49, %51, %cst_24 {dimension_numbers = #tpu.dot_dimension_numbers<[1], [0], [0], [1], [0, 0, 1, 1], [], []>} : vector<512x8xf32>, vector<8x16xf32>, vector<512x16xf32> -> vector<512x16xf32>
    %c31_i32 = arith.constant 31 : i32
    %53 = vector.broadcast %c31_i32 : i32 to vector<512x1xi32>
    %54 = arith.cmpi ne, %19, %53 : vector<512x1xi32>
    %cst_25 = arith.constant 0.000000e+00 : f32
    %55 = vector.shape_cast %54 : vector<512x1xi1> to vector<512x1xi1>
    %56 = vector.broadcast %55 : vector<512x1xi1> to vector<512x16xi1>
    %57 = vector.broadcast %cst_25 : f32 to vector<512x16xf32>
    %58 = arith.select %56, %52, %57 : vector<512x16xi1>, vector<512x16xf32>
    %59 = arith.addf %44, %58 : vector<512x16xf32>
    %c64_i32 = arith.constant 64 : i32
    %60 = arith.addi %0, %c64_i32 : i32
    %c-1_i32_26 = arith.constant -1 : i32
    %61 = arith.addi %60, %c-1_i32_26 : i32
    %c0_27 = arith.constant 0 : index
    %62 = arith.index_cast %61 : i32 to index
    %c0_28 = arith.constant 0 : index
    %63 = vector.load %arg2[%c0_27, %62, %c0_28] : memref<1x1152x8xf32, #tpu.memory_space<vmem>>, vector<1x512x8xf32>
    %64 = vector.shape_cast %63 : vector<1x512x8xf32> to vector<512x8xf32>
    %c3 = arith.constant 3 : index
    %c0_29 = arith.constant 0 : index
    %c0_30 = arith.constant 0 : index
    %65 = vector.load %arg3[%c3, %c0_29, %c0_30] : memref<9x8x16xf32, #tpu.memory_space<vmem>>, vector<1x8x16xf32>
    %66 = vector.shape_cast %65 : vector<1x8x16xf32> to vector<8x16xf32>
    %cst_31 = arith.constant dense<0.000000e+00> : vector<512x16xf32>
    %67 = tpu.matmul %64, %66, %cst_31 {dimension_numbers = #tpu.dot_dimension_numbers<[1], [0], [0], [1], [0, 0, 1, 1], [], []>} : vector<512x8xf32>, vector<8x16xf32>, vector<512x16xf32> -> vector<512x16xf32>
    %c0_i32_32 = arith.constant 0 : i32
    %68 = vector.broadcast %c0_i32_32 : i32 to vector<512x1xi32>
    %69 = arith.cmpi ne, %19, %68 : vector<512x1xi32>
    %cst_33 = arith.constant 0.000000e+00 : f32
    %70 = vector.shape_cast %69 : vector<512x1xi1> to vector<512x1xi1>
    %71 = vector.broadcast %70 : vector<512x1xi1> to vector<512x16xi1>
    %72 = vector.broadcast %cst_33 : f32 to vector<512x16xf32>
    %73 = arith.select %71, %67, %72 : vector<512x16xi1>, vector<512x16xf32>
    %74 = arith.addf %59, %73 : vector<512x16xf32>
    %c64_i32_34 = arith.constant 64 : i32
    %75 = arith.addi %0, %c64_i32_34 : i32
    %c0_i32_35 = arith.constant 0 : i32
    %76 = arith.addi %75, %c0_i32_35 : i32
    %c0_36 = arith.constant 0 : index
    %77 = arith.index_cast %76 : i32 to index
    %c0_37 = arith.constant 0 : index
    %78 = vector.load %arg2[%c0_36, %77, %c0_37] : memref<1x1152x8xf32, #tpu.memory_space<vmem>>, vector<1x512x8xf32>
    %79 = vector.shape_cast %78 : vector<1x512x8xf32> to vector<512x8xf32>
    %c4 = arith.constant 4 : index
    %c0_38 = arith.constant 0 : index
    %c0_39 = arith.constant 0 : index
    %80 = vector.load %arg3[%c4, %c0_38, %c0_39] : memref<9x8x16xf32, #tpu.memory_space<vmem>>, vector<1x8x16xf32>
    %81 = vector.shape_cast %80 : vector<1x8x16xf32> to vector<8x16xf32>
    %cst_40 = arith.constant dense<0.000000e+00> : vector<512x16xf32>
    %82 = tpu.matmul %79, %81, %cst_40 {dimension_numbers = #tpu.dot_dimension_numbers<[1], [0], [0], [1], [0, 0, 1, 1], [], []>} : vector<512x8xf32>, vector<8x16xf32>, vector<512x16xf32> -> vector<512x16xf32>
    %83 = arith.addf %74, %82 : vector<512x16xf32>
    %c64_i32_41 = arith.constant 64 : i32
    %84 = arith.addi %0, %c64_i32_41 : i32
    %c1_i32_42 = arith.constant 1 : i32
    %85 = arith.addi %84, %c1_i32_42 : i32
    %c0_43 = arith.constant 0 : index
    %86 = arith.index_cast %85 : i32 to index
    %c0_44 = arith.constant 0 : index
    %87 = vector.load %arg2[%c0_43, %86, %c0_44] : memref<1x1152x8xf32, #tpu.memory_space<vmem>>, vector<1x512x8xf32>
    %88 = vector.shape_cast %87 : vector<1x512x8xf32> to vector<512x8xf32>
    %c5 = arith.constant 5 : index
    %c0_45 = arith.constant 0 : index
    %c0_46 = arith.constant 0 : index
    %89 = vector.load %arg3[%c5, %c0_45, %c0_46] : memref<9x8x16xf32, #tpu.memory_space<vmem>>, vector<1x8x16xf32>
    %90 = vector.shape_cast %89 : vector<1x8x16xf32> to vector<8x16xf32>
    %cst_47 = arith.constant dense<0.000000e+00> : vector<512x16xf32>
    %91 = tpu.matmul %88, %90, %cst_47 {dimension_numbers = #tpu.dot_dimension_numbers<[1], [0], [0], [1], [0, 0, 1, 1], [], []>} : vector<512x8xf32>, vector<8x16xf32>, vector<512x16xf32> -> vector<512x16xf32>
    %c31_i32_48 = arith.constant 31 : i32
    %92 = vector.broadcast %c31_i32_48 : i32 to vector<512x1xi32>
    %93 = arith.cmpi ne, %19, %92 : vector<512x1xi32>
    %cst_49 = arith.constant 0.000000e+00 : f32
    %94 = vector.shape_cast %93 : vector<512x1xi1> to vector<512x1xi1>
    %95 = vector.broadcast %94 : vector<512x1xi1> to vector<512x16xi1>
    %96 = vector.broadcast %cst_49 : f32 to vector<512x16xf32>
    %97 = arith.select %95, %91, %96 : vector<512x16xi1>, vector<512x16xf32>
    %98 = arith.addf %83, %97 : vector<512x16xf32>
    %c96_i32 = arith.constant 96 : i32
    %99 = arith.addi %0, %c96_i32 : i32
    %c-1_i32_50 = arith.constant -1 : i32
    %100 = arith.addi %99, %c-1_i32_50 : i32
    %c0_51 = arith.constant 0 : index
    %101 = arith.index_cast %100 : i32 to index
    %c0_52 = arith.constant 0 : index
    %102 = vector.load %arg2[%c0_51, %101, %c0_52] : memref<1x1152x8xf32, #tpu.memory_space<vmem>>, vector<1x512x8xf32>
    %103 = vector.shape_cast %102 : vector<1x512x8xf32> to vector<512x8xf32>
    %c6 = arith.constant 6 : index
    %c0_53 = arith.constant 0 : index
    %c0_54 = arith.constant 0 : index
    %104 = vector.load %arg3[%c6, %c0_53, %c0_54] : memref<9x8x16xf32, #tpu.memory_space<vmem>>, vector<1x8x16xf32>
    %105 = vector.shape_cast %104 : vector<1x8x16xf32> to vector<8x16xf32>
    %cst_55 = arith.constant dense<0.000000e+00> : vector<512x16xf32>
    %106 = tpu.matmul %103, %105, %cst_55 {dimension_numbers = #tpu.dot_dimension_numbers<[1], [0], [0], [1], [0, 0, 1, 1], [], []>} : vector<512x8xf32>, vector<8x16xf32>, vector<512x16xf32> -> vector<512x16xf32>
    %c0_i32_56 = arith.constant 0 : i32
    %107 = vector.broadcast %c0_i32_56 : i32 to vector<512x1xi32>
    %108 = arith.cmpi ne, %19, %107 : vector<512x1xi32>
    %cst_57 = arith.constant 0.000000e+00 : f32
    %109 = vector.shape_cast %108 : vector<512x1xi1> to vector<512x1xi1>
    %110 = vector.broadcast %109 : vector<512x1xi1> to vector<512x16xi1>
    %111 = vector.broadcast %cst_57 : f32 to vector<512x16xf32>
    %112 = arith.select %110, %106, %111 : vector<512x16xi1>, vector<512x16xf32>
    %113 = arith.addf %98, %112 : vector<512x16xf32>
    %c96_i32_58 = arith.constant 96 : i32
    %114 = arith.addi %0, %c96_i32_58 : i32
    %c0_i32_59 = arith.constant 0 : i32
    %115 = arith.addi %114, %c0_i32_59 : i32
    %c0_60 = arith.constant 0 : index
    %116 = arith.index_cast %115 : i32 to index
    %c0_61 = arith.constant 0 : index
    %117 = vector.load %arg2[%c0_60, %116, %c0_61] : memref<1x1152x8xf32, #tpu.memory_space<vmem>>, vector<1x512x8xf32>
    %118 = vector.shape_cast %117 : vector<1x512x8xf32> to vector<512x8xf32>
    %c7 = arith.constant 7 : index
    %c0_62 = arith.constant 0 : index
    %c0_63 = arith.constant 0 : index
    %119 = vector.load %arg3[%c7, %c0_62, %c0_63] : memref<9x8x16xf32, #tpu.memory_space<vmem>>, vector<1x8x16xf32>
    %120 = vector.shape_cast %119 : vector<1x8x16xf32> to vector<8x16xf32>
    %cst_64 = arith.constant dense<0.000000e+00> : vector<512x16xf32>
    %121 = tpu.matmul %118, %120, %cst_64 {dimension_numbers = #tpu.dot_dimension_numbers<[1], [0], [0], [1], [0, 0, 1, 1], [], []>} : vector<512x8xf32>, vector<8x16xf32>, vector<512x16xf32> -> vector<512x16xf32>
    %122 = arith.addf %113, %121 : vector<512x16xf32>
    %c96_i32_65 = arith.constant 96 : i32
    %123 = arith.addi %0, %c96_i32_65 : i32
    %c1_i32_66 = arith.constant 1 : i32
    %124 = arith.addi %123, %c1_i32_66 : i32
    %c0_67 = arith.constant 0 : index
    %125 = arith.index_cast %124 : i32 to index
    %c0_68 = arith.constant 0 : index
    %126 = vector.load %arg2[%c0_67, %125, %c0_68] : memref<1x1152x8xf32, #tpu.memory_space<vmem>>, vector<1x512x8xf32>
    %127 = vector.shape_cast %126 : vector<1x512x8xf32> to vector<512x8xf32>
    %c8 = arith.constant 8 : index
    %c0_69 = arith.constant 0 : index
    %c0_70 = arith.constant 0 : index
    %128 = vector.load %arg3[%c8, %c0_69, %c0_70] : memref<9x8x16xf32, #tpu.memory_space<vmem>>, vector<1x8x16xf32>
    %129 = vector.shape_cast %128 : vector<1x8x16xf32> to vector<8x16xf32>
    %cst_71 = arith.constant dense<0.000000e+00> : vector<512x16xf32>
    %130 = tpu.matmul %127, %129, %cst_71 {dimension_numbers = #tpu.dot_dimension_numbers<[1], [0], [0], [1], [0, 0, 1, 1], [], []>} : vector<512x8xf32>, vector<8x16xf32>, vector<512x16xf32> -> vector<512x16xf32>
    %c31_i32_72 = arith.constant 31 : i32
    %131 = vector.broadcast %c31_i32_72 : i32 to vector<512x1xi32>
    %132 = arith.cmpi ne, %19, %131 : vector<512x1xi32>
    %cst_73 = arith.constant 0.000000e+00 : f32
    %133 = vector.shape_cast %132 : vector<512x1xi1> to vector<512x1xi1>
    %134 = vector.broadcast %133 : vector<512x1xi1> to vector<512x16xi1>
    %135 = vector.broadcast %cst_73 : f32 to vector<512x16xf32>
    %136 = arith.select %134, %130, %135 : vector<512x16xi1>, vector<512x16xf32>
    %137 = arith.addf %122, %136 : vector<512x16xf32>
    %c0_74 = arith.constant 0 : index
    %c0_75 = arith.constant 0 : index
    %138 = vector.load %arg4[%c0_74, %c0_75] : memref<1x16xf32, #tpu.memory_space<vmem>>, vector<1x16xf32>
    %139 = vector.broadcast %138 : vector<1x16xf32> to vector<512x16xf32>
    %140 = arith.addf %137, %139 : vector<512x16xf32>
    %c0_76 = arith.constant 0 : index
    %c0_77 = arith.constant 0 : index
    %c0_78 = arith.constant 0 : index
    %141 = vector.load %arg5[%c0_76, %c0_77, %c0_78] : memref<1x512x16xf32, #tpu.memory_space<vmem>>, vector<1x512x16xf32>
    %142 = vector.shape_cast %141 : vector<1x512x16xf32> to vector<512x16xf32>
    %143 = vector.shape_cast %140 : vector<512x16xf32> to vector<1x512x16xf32>
    tpu.vector_store %arg5[%c0_76, %c0_77, %c0_78], %143 {strides = array<i32>} : memref<1x512x16xf32, #tpu.memory_space<vmem>>, vector<1x512x16xf32>,
    return
  }
  func.func @transform_0(%arg0: i32, %arg1: i32) -> (i32, i32, i32) {
    %c0_i32 = arith.constant 0 : i32
    %c0_i32_0 = arith.constant 0 : i32
    %c0_i32_1 = arith.constant 0 : i32
    return %arg0, %c0_i32, %c0_i32_0 : i32, i32, i32
  }
  func.func @transform_1(%arg0: i32, %arg1: i32) -> (i32, i32, i32) {
    %c0_i32 = arith.constant 0 : i32
    %c0_i32_0 = arith.constant 0 : i32
    %c0_i32_1 = arith.constant 0 : i32
    %c0_i32_2 = arith.constant 0 : i32
    return %c0_i32, %c0_i32_0, %c0_i32_1 : i32, i32, i32
  }
  func.func @transform_2(%arg0: i32, %arg1: i32) -> (i32, i32) {
    %c0_i32 = arith.constant 0 : i32
    %c0_i32_0 = arith.constant 0 : i32
    %c0_i32_1 = arith.constant 0 : i32
    return %c0_i32, %c0_i32_0 : i32, i32
  }
  func.func @transform_3(%arg0: i32, %arg1: i32) -> (i32, i32, i32) {
    %c0_i32 = arith.constant 0 : i32
    %c0_i32_0 = arith.constant 0 : i32
    return %arg0, %arg1, %c0_i32 : i32, i32, i32
  }
}

</mosaic_0001>

<bundles_post_ra>
// kernel: tpu_custom_call.1
= control target key start
LH: loop header
LB: loop body
LE: loop exit
PB: predicated region body
PF: predicated region fallthrough
CT: control target
= control target key end

     0   :  { %s11323_s12 = smov 0   ;;  %s11325_s13 = smov 0   ;;  %s16657_s0 = inlined_call_operand.vmem [shape: f32[2,1152,8], index: 0, kind: input, shape index: {}]   ;;  %s16658_s1 = inlined_call_operand.vmem [shape: f32[9,8,16], index: 1, kind: input, shape index: {}]   ;;  %s16659_s2 = inlined_call_operand.vmem [shape: f32[1,16], index: 2, kind: input, shape index: {}]   ;;  %s16660_s3 = inlined_call_operand.vmem [shape: f32[2,1024,16], index: 3, kind: output, shape index: {}]  }
   0x1   :  { %s11327_s14 = smov 0   ;;  %s11329_s15 = smov 0  }
   0x2   :  { %s11331_s16 = smov 0  }
   0x3 LB: > { %s22_s17 = sadd.s32 1, %s11293_s14  ;;  %s25_s18 = sadd.s32 1, %s11297_s15  ;;  %s11301_s16 = sphi %s11331_s16, %s13_s16   ;;  %s11297_s15 = sphi %s11329_s15, %s17958_s15   ;;  %s11293_s14 = sphi %s11327_s14, %s17957_s14   ;;  %s11289_s13 = sphi %s11325_s13, %s17956_s13   ;;  %s11285_s12 = sphi %s11323_s12, %s17955_s12  }
   0x4   : > { %p23_p0 = scmp.ge.s32.totalorder %s22_s17, 2  ;;  %p8493_p1 = scmp.ge.s32.totalorder %s11301_s16, 1 }
   0x5   : > { %p151_p2 = scmp.lt.s32.totalorder %s11301_s16, 5 }
   0x6   : > { %s17960_s17 = smov (%p23_p0, %s22_s17), 0  ;;  %s17962_s18 = smov (!%p23_p0, %s25_s18), %s11297_s15 }
   0x7   : > { %p152_p3 = pnand %p8493_p1, %p151_p2  ;;  %p27_p4 = scmp.ge.s32.totalorder %s17962_s18, 2 }
   0x9   : > { %s17964_s18 = smov (%p27_p4, %s17962_s18), 0  ;;  %155 = sbr.rel (%p152_p3) target bundleno = 814 (0x32e), region = 32 }
   0xe   : > { %v1159_v0 = vld [vmem:[%s16658_s1] sm:$0xff]  ;;  %p179_p5 = scmp.lt.s32.totalorder %s11289_s13, 1  ;;  %v8757_v1 = vld [vmem:[%s16658_s1 + $0x8] sm:$0xff]  ;;  %v8887_v2 = vld [vmem:[%s16658_s1 + $0x10] sm:$0xff]  ;;  %s8498_s26 = sshll.u32 %s11285_s12, 9  ;;  %vm1160_vm0 = vcmask 64512  }
   0xf   : > { %11202 = vmatprep.subr.mxu1 %v1159_v0  ;;  %10320 = vmatprep.subr.mxu0 %v1159_v0  ;;  %v11388_v9 = vld [vmem:[%s16658_s1 + $0x18] sm:$0xff]  ;;  %v11393_v10 = vld [vmem:[%s16658_s1 + $0x20] sm:$0xff] }
  0x10   : > { %11203 = vmatpush3.msra.mxu1 %v1159_v0  ;;  %10321 = vmatpush3.msra.mxu0 %v1159_v0  ;;  %s17966_s13 = smov (!%p179_p5, %s11289_s13), 1 }
  0x11   : > { %10418 = vmatprep.subr.mxu1 %v8757_v1  ;;  %10516 = vmatprep.subr.mxu0 %v8887_v2  ;;  %s11204_s25 = smul.u32 1152, %s17966_s13 }
  0x13   : > { %s183_s29 = scalar_lea.vmem %s16657_s0, %s11204_s25 }
  0x14   : > { %s11373_s30 = scalar_lea.vmem %s183_s29, %s8498_s26 }
  0x15   : > { %v8564_v3 = vld [vmem:[%s11373_s30 + $0x1f] sm:$0xff]  ;;  %v8565_v5 = vld [vmem:[%s11373_s30 + $0x27] sm:$0xff]  ;;  %v8566_v7 = vld [vmem:[%s11373_s30 + $0x2f] sm:$0xff] }
  0x16   : > { %v8596_v4 = vld [vmem:[%s11373_s30 + $0x11f] sm:$0xff]  ;;  %10322 = vmatprep.mubr.msk.f32.mxu0 %vm1160_vm0, %v8564_v3  ;;  %v8597_v6 = vld [vmem:[%s11373_s30 + $0x127] sm:$0xff]  ;;  %v8598_v8 = vld [vmem:[%s11373_s30 + $0x12f] sm:$0xff] }
  0x17   : > { %10370 = vmatprep.mubr.msk.f32.mxu1 %vm1160_vm0, %v8596_v4  ;;  %10323 = vmatmul.mubr.msk.f32.vlgmr.msra.gmra.mxu0 %vm1160_vm0, %v8565_v5  ;;  %v8567_v11 = vld [vmem:[%s11373_s30 + $0x37] sm:$0xff]  ;;  %v8568_v13 = vld [vmem:[%s11373_s30 + $0x3f] sm:$0xff]  ;;  %v8569_v15 = vld [vmem:[%s11373_s30 + $0x47] sm:$0xff] }
  0x18   : > { %10371 = vmatmul.mubr.msk.f32.vlgmr.msra.gmra.mxu1 %vm1160_vm0, %v8597_v6  ;;  %10517 = vmatpush3.msra.mxu0 %v8887_v2  ;;  %v8599_v12 = vld [vmem:[%s11373_s30 + $0x137] sm:$0xff]  ;;  %v8600_v14 = vld [vmem:[%s11373_s30 + $0x13f] sm:$0xff]  ;;  %v8601_v16 = vld [vmem:[%s11373_s30 + $0x147] sm:$0xff] }
  0x19   : > { %10419 = vmatpush3.msra.mxu1 %v8757_v1  ;;  %10325 = vmatprep.mubr.msk.f32.mxu0 %vm1160_vm0, %v8566_v7  ;;  %v8570_v17 = vld [vmem:[%s11373_s30 + $0x4f] sm:$0xff]  ;;  %v8571_v19 = vld [vmem:[%s11373_s30 + $0x57] sm:$0xff]  ;;  %v8572_v21 = vld [vmem:[%s11373_s30 + $0x5f] sm:$0xff] }
  0x1a   : > { %10373 = vmatprep.mubr.msk.f32.mxu1 %vm1160_vm0, %v8598_v8  ;;  %10614 = vmatprep.subr.mxu1 %v11388_v9  ;;  %v8602_v18 = vld [vmem:[%s11373_s30 + $0x14f] sm:$0xff]  ;;  %v8603_v20 = vld [vmem:[%s11373_s30 + $0x157] sm:$0xff]  ;;  %v8604_v22 = vld [vmem:[%s11373_s30 + $0x15f] sm:$0xff] }
  0x1b   : > { %10712 = vmatprep.subr.mxu0 %v11393_v10  ;;  %10326 = vmatmul.mubr.msk.f32.gmra.mxu0 %vm1160_vm0, %v8567_v11  ;;  %v8573_v23 = vld [vmem:[%s11373_s30 + $0x67] sm:$0xff]  ;;  %v8574_v25 = vld [vmem:[%s11373_s30 + $0x6f] sm:$0xff]  ;;  %v8575_v27 = vld [vmem:[%s11373_s30 + $0x77] sm:$0xff] }
  0x1c   : > { %10374 = vmatmul.mubr.msk.f32.gmra.mxu1 %vm1160_vm0, %v8599_v12  ;;  %10328 = vmatprep.mubr.msk.f32.mxu0 %vm1160_vm0, %v8568_v13  ;;  %v8605_v24 = vld [vmem:[%s11373_s30 + $0x167] sm:$0xff]  ;;  %v8606_v26 = vld [vmem:[%s11373_s30 + $0x16f] sm:$0xff]  ;;  %v8607_v28 = vld [vmem:[%s11373_s30 + $0x177] sm:$0xff] }
  0x1d   : > { %10376 = vmatprep.mubr.msk.f32.mxu1 %vm1160_vm0, %v8600_v14  ;;  %v8576_v29 = vld [vmem:[%s11373_s30 + $0x7f] sm:$0xff]  ;;  %v8577_v31 = vld [vmem:[%s11373_s30 + $0x87] sm:$0xff]  ;;  %v8578_v33 = vld [vmem:[%s11373_s30 + $0x8f] sm:$0xff] }
  0x1e   : > { %v8608_v30 = vld [vmem:[%s11373_s30 + $0x17f] sm:$0xff]  ;;  %v8609_v32 = vld [vmem:[%s11373_s30 + $0x187] sm:$0xff]  ;;  %v8610_v34 = vld [vmem:[%s11373_s30 + $0x18f] sm:$0xff] }
  0x1f   : > { %10329 = vmatmul.mubr.msk.f32.gmra.mxu0 %vm1160_vm0, %v8569_v15  ;;  %v8579_v35 = vld [vmem:[%s11373_s30 + $0x97] sm:$0xff]  ;;  %v8580_v37 = vld [vmem:[%s11373_s30 + $0x9f] sm:$0xff]  ;;  %v8581_v39 = vld [vmem:[%s11373_s30 + $0xa7] sm:$0xff] }
  0x20   : > { %10377 = vmatmul.mubr.msk.f32.gmra.mxu1 %vm1160_vm0, %v8601_v16  ;;  %10331 = vmatprep.mubr.msk.f32.mxu0 %vm1160_vm0, %v8570_v17  ;;  %v8611_v36 = vld [vmem:[%s11373_s30 + $0x197] sm:$0xff]  ;;  %v8612_v38 = vld [vmem:[%s11373_s30 + $0x19f] sm:$0xff]  ;;  %v8613_v40 = vld [vmem:[%s11373_s30 + $0x1a7] sm:$0xff] }
  0x21   : > { %10379 = vmatprep.mubr.msk.f32.mxu1 %vm1160_vm0, %v8602_v18  ;;  %v8582_v41 = vld [vmem:[%s11373_s30 + $0xaf] sm:$0xff]  ;;  %v8583_v43 = vld [vmem:[%s11373_s30 + $0xb7] sm:$0xff]  ;;  %v8584_v45 = vld [vmem:[%s11373_s30 + $0xbf] sm:$0xff] }
  0x22   : > { %v8614_v42 = vld [vmem:[%s11373_s30 + $0x1af] sm:$0xff]  ;;  %v8615_v44 = vld [vmem:[%s11373_s30 + $0x1b7] sm:$0xff]  ;;  %v8616_v46 = vld [vmem:[%s11373_s30 + $0x1bf] sm:$0xff] }
  0x23   : > { %10332 = vmatmul.mubr.msk.f32.gmra.mxu0 %vm1160_vm0, %v8571_v19  ;;  %v8585_v47 = vld [vmem:[%s11373_s30 + $0xc7] sm:$0xff]  ;;  %v8586_v49 = vld [vmem:[%s11373_s30 + $0xcf] sm:$0xff]  ;;  %v8587_v51 = vld [vmem:[%s11373_s30 + $0xd7] sm:$0xff] }
  0x24   : > { %10380 = vmatmul.mubr.msk.f32.gmra.mxu1 %vm1160_vm0, %v8603_v20  ;;  %10334 = vmatprep.mubr.msk.f32.mxu0 %vm1160_vm0, %v8572_v21  ;;  %v8617_v48 = vld [vmem:[%s11373_s30 + $0x1c7] sm:$0xff]  ;;  %v8618_v50 = vld [vmem:[%s11373_s30 + $0x1cf] sm:$0xff]  ;;  %v8619_v52 = vld [vmem:[%s11373_s30 + $0x1d7] sm:$0xff] }
  0x25   : > { %10382 = vmatprep.mubr.msk.f32.mxu1 %vm1160_vm0, %v8604_v22  ;;  %v8588_v53 = vld [vmem:[%s11373_s30 + $0xdf] sm:$0xff]  ;;  %v8589_v55 = vld [vmem:[%s11373_s30 + $0xe7] sm:$0xff]  ;;  %v8590_v57 = vld [vmem:[%s11373_s30 + $0xef] sm:$0xff] }
  0x26   : > { %v8620_v54 = vld [vmem:[%s11373_s30 + $0x1df] sm:$0xff]  ;;  %v8621_v56 = vld [vmem:[%s11373_s30 + $0x1e7] sm:$0xff]  ;;  %v8622_v58 = vld [vmem:[%s11373_s30 + $0x1ef] sm:$0xff] }
  0x27   : > { %10335 = vmatmul.mubr.msk.f32.gmra.mxu0 %vm1160_vm0, %v8573_v23  ;;  %v8591_v59 = vld [vmem:[%s11373_s30 + $0xf7] sm:$0xff]  ;;  %v8592_v61 = vld [vmem:[%s11373_s30 + $0xff] sm:$0xff]  ;;  %v8593_v63 = vld [vmem:[%s11373_s30 + $0x107] sm:$0xff] }
  0x28   : > { %10383 = vmatmul.mubr.msk.f32.gmra.mxu1 %vm1160_vm0, %v8605_v24  ;;  %10337 = vmatprep.mubr.msk.f32.mxu0 %vm1160_vm0, %v8574_v25  ;;  %v8623_v60 = vld [vmem:[%s11373_s30 + $0x1f7] sm:$0xff]  ;;  %v8624_v62 = vld [vmem:[%s11373_s30 + $0x1ff] sm:$0xff]  ;;  %v8625_v0 = vld [vmem:[%s11373_s30 + $0x207] sm:$0xff] }
  0x29   : > { %10385 = vmatprep.mubr.msk.f32.mxu1 %vm1160_vm0, %v8606_v26  ;;  %v8594_v1 = vld [vmem:[%s11373_s30 + $0x10f] sm:$0xff]  ;;  %v8595_v3 = vld [vmem:[%s11373_s30 + $0x117] sm:$0xff]  ;;  %v8693_v5 = vld [vmem:[%s11373_s30 + $0x20] sm:$0xff] }
  0x2a   : > { %v8626_v2 = vld [vmem:[%s11373_s30 + $0x20f] sm:$0xff]  ;;  %v8627_v4 = vld [vmem:[%s11373_s30 + $0x217] sm:$0xff]  ;;  %v8823_v6 = vld [vmem:[%s11373_s30 + $0x21] sm:$0xff] }
  0x2b   : > { %10338 = vmatmul.mubr.msk.f32.gmra.mxu0 %vm1160_vm0, %v8575_v27  ;;  %v8694_v7 = vld [vmem:[%s11373_s30 + $0x28] sm:$0xff]  ;;  %v8695_v11 = vld [vmem:[%s11373_s30 + $0x30] sm:$0xff]  ;;  %v8696_v14 = vld [vmem:[%s11373_s30 + $0x38] sm:$0xff] }
  0x2c   : > { %10386 = vmatmul.mubr.msk.f32.gmra.mxu1 %vm1160_vm0, %v8607_v28  ;;  %10340 = vmatprep.mubr.msk.f32.mxu0 %vm1160_vm0, %v8576_v29  ;;  %v8824_v8 = vld [vmem:[%s11373_s30 + $0x29] sm:$0xff]  ;;  %v8825_v12 = vld [vmem:[%s11373_s30 + $0x31] sm:$0xff]  ;;  %v8826_v15 = vld [vmem:[%s11373_s30 + $0x39] sm:$0xff] }
  0x2d   : > { %10388 = vmatprep.mubr.msk.f32.mxu1 %vm1160_vm0, %v8608_v30  ;;  %v9277_v13 = vld [vmem:[%s16658_s1 + $0x28] sm:$0xff]  ;;  %v9407_v16 = vld [vmem:[%s16658_s1 + $0x30] sm:$0xff]  ;;  %v8697_v17 = vld [vmem:[%s11373_s30 + $0x40] sm:$0xff] }
  0x2e   : > { %v8827_v18 = vld [vmem:[%s11373_s30 + $0x41] sm:$0xff]  ;;  %v8699_v19 = vld [vmem:[%s11373_s30 + $0x50] sm:$0xff]  ;;  %v8700_v21 = vld [vmem:[%s11373_s30 + $0x58] sm:$0xff] }
  0x2f   : > { %10341 = vmatmul.mubr.msk.f32.gmra.mxu0 %vm1160_vm0, %v8577_v31  ;;  %v8829_v20 = vld [vmem:[%s11373_s30 + $0x51] sm:$0xff]  ;;  %v8830_v22 = vld [vmem:[%s11373_s30 + $0x59] sm:$0xff]  ;;  %v8831_v24 = vld [vmem:[%s11373_s30 + $0x61] sm:$0xff] }
  0x30   : > { %10389 = vmatmul.mubr.msk.f32.gmra.mxu1 %vm1160_vm0, %v8609_v32  ;;  %10343 = vmatprep.mubr.msk.f32.mxu0 %vm1160_vm0, %v8578_v33  ;;  %v8701_v23 = vld [vmem:[%s11373_s30 + $0x60] sm:$0xff]  ;;  %v8702_v25 = vld [vmem:[%s11373_s30 + $0x68] sm:$0xff]  ;;  %v8703_v27 = vld [vmem:[%s11373_s30 + $0x70] sm:$0xff] }
  0x31   : > { %10391 = vmatprep.mubr.msk.f32.mxu1 %vm1160_vm0, %v8610_v34  ;;  %v8832_v26 = vld [vmem:[%s11373_s30 + $0x69] sm:$0xff]  ;;  %v8833_v28 = vld [vmem:[%s11373_s30 + $0x71] sm:$0xff]  ;;  %v8834_v30 = vld [vmem:[%s11373_s30 + $0x79] sm:$0xff] }
  0x32   : > { %v8704_v29 = vld [vmem:[%s11373_s30 + $0x78] sm:$0xff]  ;;  %v8705_v31 = vld [vmem:[%s11373_s30 + $0x80] sm:$0xff]  ;;  %v8706_v33 = vld [vmem:[%s11373_s30 + $0x88] sm:$0xff] }
  0x33   : > { %10344 = vmatmul.mubr.msk.f32.gmra.mxu0 %vm1160_vm0, %v8579_v35  ;;  %v8835_v32 = vld [vmem:[%s11373_s30 + $0x81] sm:$0xff]  ;;  %v8836_v34 = vld [vmem:[%s11373_s30 + $0x89] sm:$0xff]  ;;  %v195_v35 = vlaneseq }
  0x34   : > { %10392 = vmatmul.mubr.msk.f32.gmra.mxu1 %vm1160_vm0, %v8611_v36  ;;  %10346 = vmatprep.mubr.msk.f32.mxu0 %vm1160_vm0, %v8580_v37  ;;  %v8707_v36 = vld [vmem:[%s11373_s30 + $0x90] sm:$0xff] }
  0x35   : > { %10394 = vmatprep.mubr.msk.f32.mxu1 %vm1160_vm0, %v8612_v38  ;;  %v8837_v37 = vld [vmem:[%s11373_s30 + $0x91] sm:$0xff] }
  0x36   : > { %v8708_v38 = vld [vmem:[%s11373_s30 + $0x98] sm:$0xff] }
  0x37   : > { %10347 = vmatmul.mubr.msk.f32.gmra.mxu0 %vm1160_vm0, %v8581_v39  ;;  %v8838_v39 = vld [vmem:[%s11373_s30 + $0x99] sm:$0xff] }
  0x38   : > { %10395 = vmatmul.mubr.msk.f32.gmra.mxu1 %vm1160_vm0, %v8613_v40  ;;  %10349 = vmatprep.mubr.msk.f32.mxu0 %vm1160_vm0, %v8582_v41  ;;  %v11585_v40 = vshrl.u32 %v195_v35, 7  ;;  %v8709_v41 = vld [vmem:[%s11373_s30 + $0xa0] sm:$0xff] }
  0x39   : > { %10397 = vmatprep.mubr.msk.f32.mxu1 %vm1160_vm0, %v8614_v42  ;;  %v8839_v42 = vld [vmem:[%s11373_s30 + $0xa1] sm:$0xff] }
  0x3a   : > { %16947 = vst [vmem:[#allocation2_spill] sm:$0xff] %v11585_v40 }
  0x3b   : > { %10350 = vmatmul.mubr.msk.f32.gmra.mxu0 %vm1160_vm0, %v8583_v43  ;;  %v8710_v43 = vld [vmem:[%s11373_s30 + $0xa8] sm:$0xff] }
  0x3c   : > { %10398 = vmatmul.mubr.msk.f32.gmra.mxu1 %vm1160_vm0, %v8615_v44  ;;  %10352 = vmatprep.mubr.msk.f32.mxu0 %vm1160_vm0, %v8584_v45  ;;  %v8840_v44 = vld [vmem:[%s11373_s30 + $0xa9] sm:$0xff]  ;;  %v229_v45 = vadd.s32 264, %v11585_v40 }
  0x3d   : > { %10400 = vmatprep.mubr.msk.f32.mxu1 %vm1160_vm0, %v8616_v46  ;;  %v8711_v46 = vld [vmem:[%s11373_s30 + $0xb0] sm:$0xff] }
  0x3f   : > { %10353 = vmatmul.mubr.msk.f32.gmra.mxu0 %vm1160_vm0, %v8585_v47  ;;  %v8841_v47 = vld [vmem:[%s11373_s30 + $0xb1] sm:$0xff] }
  0x40   : > { %10401 = vmatmul.mubr.msk.f32.gmra.mxu1 %vm1160_vm0, %v8617_v48  ;;  %10355 = vmatprep.mubr.msk.f32.mxu0 %vm1160_vm0, %v8586_v49  ;;  %v11600_v48 = vstv %s8498_s26  ;;  %v197_v49 = vadd.s32 8, %v11585_v40 }
  0x41   : > { %10403 = vmatprep.mubr.msk.f32.mxu1 %vm1160_vm0, %v8618_v50  ;;  %v8712_v50 = vld [vmem:[%s11373_s30 + $0xb8] sm:$0xff] }
  0x43   : > { %10356 = vmatmul.mubr.msk.f32.gmra.mxu0 %vm1160_vm0, %v8587_v51  ;;  %v8842_v51 = vld [vmem:[%s11373_s30 + $0xb9] sm:$0xff] }
  0x44   : > { %10404 = vmatmul.mubr.msk.f32.gmra.mxu1 %vm1160_vm0, %v8619_v52  ;;  %10358 = vmatprep.mubr.msk.f32.mxu0 %vm1160_vm0, %v8588_v53  ;;  %v11610_v52 = vadd.s32 %v11600_v48, %v229_v45  ;;  %v228_v53 = vadd.s32 256, %v11585_v40  ;;  %v8723_v45 = vld [vmem:[%s11373_s30 + $0x110] sm:$0xff] }
  0x45   : > { %10406 = vmatprep.mubr.msk.f32.mxu1 %vm1160_vm0, %v8620_v54  ;;  %v8713_v54 = vld [vmem:[%s11373_s30 + $0xc0] sm:$0xff] }
  0x46   : > { %vm556_vm1 = vcmp.lt.s32.totalorder %v11610_v52, 0 }
  0x47   : > { %10359 = vmatmul.mubr.msk.f32.gmra.mxu0 %vm1160_vm0, %v8589_v55  ;;  %v8843_v55 = vld [vmem:[%s11373_s30 + $0xc1] sm:$0xff] }
  0x48   : > { %10407 = vmatmul.mubr.msk.f32.gmra.mxu1 %vm1160_vm0, %v8621_v56  ;;  %10361 = vmatprep.mubr.msk.f32.mxu0 %vm1160_vm0, %v8590_v57  ;;  %v11618_v56 = vadd.s32 %v11600_v48, %v197_v49  ;;  %v8714_v57 = vld [vmem:[%s11373_s30 + $0xc8] sm:$0xff] }
  0x49   : > { %10409 = vmatprep.mubr.msk.f32.mxu1 %vm1160_vm0, %v8622_v58  ;;  %v8844_v58 = vld [vmem:[%s11373_s30 + $0xc9] sm:$0xff] }
  0x4a   : > { %vm332_vm2 = vcmp.lt.s32.totalorder %v11618_v56, 0 }
  0x4b   : > { %10362 = vmatmul.mubr.msk.f32.gmra.mxu0 %vm1160_vm0, %v8591_v59  ;;  %v557_v59 = vsub.s32 0, %v11610_v52 }
  0x4c   : > { %10410 = vmatmul.mubr.msk.f32.gmra.mxu1 %vm1160_vm0, %v8623_v60  ;;  %10364 = vmatprep.mubr.msk.f32.mxu0 %vm1160_vm0, %v8592_v61  ;;  %v11627_v60 = vadd.s32 %v11600_v48, %v11585_v40  ;;  %v11630_v61 = vadd.s32 %v11600_v48, %v228_v53 }
  0x4d   : > { %10412 = vmatprep.mubr.msk.f32.mxu1 %vm1160_vm0, %v8624_v62  ;;  %v8715_v62 = vld [vmem:[%s11373_s30 + $0xd0] sm:$0xff] }
  0x4e   : > { %vm325_vm3 = vcmp.lt.s32.totalorder %v11627_v60, 0  ;;  %vm549_vm4 = vcmp.lt.s32.totalorder %v11630_v61, 0 }
  0x4f   : > { %10365 = vmatmul.mubr.msk.f32.gmra.mxu0 %vm1160_vm0, %v8593_v63  ;;  %v8845_v63 = vld [vmem:[%s11373_s30 + $0xd1] sm:$0xff] }
  0x50   : > { %10413 = vmatmul.mubr.msk.f32.gmra.mxu1 %vm1160_vm0, %v8625_v0  ;;  %10367 = vmatprep.mubr.msk.f32.mxu0 %vm1160_vm0, %v8594_v1  ;;  %v199_v0 = vadd.s32 24, %v11585_v40  ;;  %v231_v1 = vadd.s32 280, %v11585_v40 }
  0x51   : > { %10415 = vmatprep.mubr.msk.f32.mxu1 %vm1160_vm0, %v8626_v2  ;;  %v333_v2 = vsub.s32 0, %v11618_v56 }
  0x53   : > { %10368 = vmatmul.mubr.msk.f32.gmra.mxu0 %vm1160_vm0, %v8595_v3  ;;  %v8716_v3 = vld [vmem:[%s11373_s30 + $0xd8] sm:$0xff] }
  0x54   : > { %10416 = vmatmul.mubr.msk.f32.gmra.mxu1 %vm1160_vm0, %v8627_v4  ;;  %10518 = vmatprep.mubr.msk.f32.mxu0 %vm1160_vm0, %v8823_v6  ;;  %v8846_v4 = vld [vmem:[%s11373_s30 + $0xd9] sm:$0xff]  ;;  %v326_v6 = vsub.s32 0, %v11627_v60 }
  0x55   : > { %10420 = vmatprep.mubr.msk.f32.mxu1 %vm1160_vm0, %v8693_v5  ;;  %v8532_v5 = vmin.u32 %v557_v59, %v11610_v52  ;;  %v233_v52 = vadd.s32 296, %v11585_v40 }
  0x57   : > { %10519 = vmatmul.mubr.msk.f32.vlgmr.msra.gmra.mxu0 %vm1160_vm0, %v8824_v8  ;;  %v8717_v8 = vld [vmem:[%s11373_s30 + $0xe0] sm:$0xff] }
  0x58   : > { %10421 = vmatmul.mubr.msk.f32.vlgmr.msra.gmra.mxu1 %vm1160_vm0, %v8694_v7  ;;  %10713 = vmatpush3.msra.mxu0 %v11393_v10  ;;  %v8828_v10 = vld [vmem:[%s11373_s30 + $0x49] sm:$0xff]  ;;  %v550_v7 = vsub.s32 0, %v11630_v61 }
  0x59   : > { %10615 = vmatpush3.msra.mxu1 %v11388_v9  ;;  %10423 = vmatprep.mubr.msk.f32.mxu1 %vm1160_vm0, %v8695_v11  ;;  %v8698_v9 = vld [vmem:[%s11373_s30 + $0x48] sm:$0xff] }
  0x5a   : > { %10521 = vmatprep.mubr.msk.f32.mxu0 %vm1160_vm0, %v8825_v12  ;;  %10810 = vmatprep.subr.mxu1 %v9277_v13  ;;  %v8847_v11 = vld [vmem:[%s11373_s30 + $0xe1] sm:$0xff]  ;;  %v11649_v12 = vadd.s32 %v11600_v48, %v199_v0  ;;  %v11652_v13 = vadd.s32 %v11600_v48, %v231_v1 }
  0x5b   : > { %10908 = vmatprep.subr.mxu0 %v9407_v16  ;;  %10522 = vmatmul.mubr.msk.f32.gmra.mxu0 %vm1160_vm0, %v8826_v15  ;;  %v198_v15 = vadd.s32 16, %v11585_v40  ;;  %v8718_v16 = vld [vmem:[%s11373_s30 + $0xe8] sm:$0xff] }
  0x5c   : > { %10424 = vmatmul.mubr.msk.f32.gmra.mxu1 %vm1160_vm0, %v8696_v14  ;;  %10524 = vmatprep.mubr.msk.f32.mxu0 %vm1160_vm0, %v8827_v18  ;;  %v8500_v14 = vmin.u32 %v333_v2, %v11618_v56  ;;  %v560_v18 = vand.u32 31, %v8532_v5  ;;  %vm346_vm7 = vcmp.lt.s32.totalorder %v11649_v12, 0  ;;  %vm570_vm8 = vcmp.lt.s32.totalorder %v11652_v13, 0 }
  0x5d   : > { %10426 = vmatprep.mubr.msk.f32.mxu1 %vm1160_vm0, %v8697_v17  ;;  %v8848_v17 = vld [vmem:[%s11373_s30 + $0xe9] sm:$0xff] }
  0x5f   : > { %10525 = vmatmul.mubr.msk.f32.gmra.mxu0 %vm1160_vm0, %v8828_v10  ;;  %v8531_v10 = vmin.u32 %v550_v7, %v11630_v61  ;;  %v8856_v7 = vld [vmem:[%s11373_s30 + $0x129] sm:$0xff] }
  0x60   : > { %10427 = vmatmul.mubr.msk.f32.gmra.mxu1 %vm1160_vm0, %v8698_v9  ;;  %10527 = vmatprep.mubr.msk.f32.mxu0 %vm1160_vm0, %v8829_v20  ;;  %v8499_v9 = vmin.u32 %v326_v6, %v11627_v60  ;;  %v8849_v20 = vld [vmem:[%s11373_s30 + $0xf1] sm:$0xff]  ;;  %v200_v60 = vadd.s32 32, %v11585_v40  ;;  %v8726_v6 = vld [vmem:[%s11373_s30 + $0x128] sm:$0xff] }
  0x61   : > { %10429 = vmatprep.mubr.msk.f32.mxu1 %vm1160_vm0, %v8699_v19  ;;  %v8719_v19 = vld [vmem:[%s11373_s30 + $0xf0] sm:$0xff] }
  0x63   : > { %10528 = vmatmul.mubr.msk.f32.gmra.mxu0 %vm1160_vm0, %v8830_v22  ;;  %v571_v22 = vsub.s32 0, %v11652_v13 }
  0x64   : > { %10430 = vmatmul.mubr.msk.f32.gmra.mxu1 %vm1160_vm0, %v8700_v21  ;;  %10530 = vmatprep.mubr.msk.f32.mxu0 %vm1160_vm0, %v8831_v24  ;;  %v347_v21 = vsub.s32 0, %v11649_v12  ;;  %v336_v24 = vand.u32 31, %v8500_v14  ;;  %v8727_v14 = vld [vmem:[%s11373_s30 + $0x130] sm:$0xff] }
  0x65   : > { %10432 = vmatprep.mubr.msk.f32.mxu1 %vm1160_vm0, %v8701_v23  ;;  %v230_v23 = vadd.s32 272, %v11585_v40 }
  0x67   : > { %10531 = vmatmul.mubr.msk.f32.gmra.mxu0 %vm1160_vm0, %v8832_v26  ;;  %v8720_v26 = vld [vmem:[%s11373_s30 + $0xf8] sm:$0xff]  ;;  %v11688_v35 = vadd.s32 %v11600_v48, %v230_v23 }
  0x68   : > { %10433 = vmatmul.mubr.msk.f32.gmra.mxu1 %vm1160_vm0, %v8702_v25  ;;  %10533 = vmatprep.mubr.msk.f32.mxu0 %vm1160_vm0, %v8833_v28  ;;  %v11672_v25 = vadd.s32 %v11600_v48, %v198_v15  ;;  %v561_v28 = vsub.s32 0, %v560_v18  ;;  %v8857_v15 = vld [vmem:[%s11373_s30 + $0x131] sm:$0xff]  ;;  %v8858_v23 = vld [vmem:[%s11373_s30 + $0x139] sm:$0xff] }
  0x69   : > { %10435 = vmatprep.mubr.msk.f32.mxu1 %vm1160_vm0, %v8703_v27  ;;  %v8850_v27 = vld [vmem:[%s11373_s30 + $0xf9] sm:$0xff] }
  0x6a   : > { %vm339_vm15 = vcmp.lt.s32.totalorder %v11672_v25, 0 }
  0x6b   : > { %10534 = vmatmul.mubr.msk.f32.gmra.mxu0 %vm1160_vm0, %v8834_v30  ;;  %v553_v30 = vand.u32 31, %v8531_v10 }
  0x6c   : > { %10436 = vmatmul.mubr.msk.f32.gmra.mxu1 %vm1160_vm0, %v8704_v29  ;;  %10536 = vmatprep.mubr.msk.f32.mxu0 %vm1160_vm0, %v8835_v32  ;;  %v329_v29 = vand.u32 31, %v8499_v9  ;;  %v8851_v32 = vld [vmem:[%s11373_s30 + $0x101] sm:$0xff]  ;;  %v11777_v9 = vadd.s32 %v11600_v48, %v200_v60  ;;  %v8732_v60 = vld [vmem:[%s11373_s30 + $0x158] sm:$0xff] }
  0x6d   : > { %10438 = vmatprep.mubr.msk.f32.mxu1 %vm1160_vm0, %v8705_v31  ;;  %v8721_v31 = vld [vmem:[%s11373_s30 + $0x100] sm:$0xff] }
  0x6f   : > { %10537 = vmatmul.mubr.msk.f32.gmra.mxu0 %vm1160_vm0, %v8836_v34  ;;  %v11685_v34 = vmin.u32 %v571_v22, %v11652_v13  ;;  %v235_v13 = vadd.s32 312, %v11585_v40  ;;  %v8728_v22 = vld [vmem:[%s11373_s30 + $0x138] sm:$0xff] }
  0x70   : > { %10439 = vmatmul.mubr.msk.f32.gmra.mxu1 %vm1160_vm0, %v8706_v33  ;;  %10539 = vmatprep.mubr.msk.f32.mxu0 %vm1160_vm0, %v8837_v37  ;;  %v11682_v33 = vmin.u32 %v347_v21, %v11649_v12  ;;  %v337_v37 = vsub.s32 0, %v336_v24  ;;  %v202_v21 = vadd.s32 48, %v11585_v40 }
  0x71   : > { %10441 = vmatprep.mubr.msk.f32.mxu1 %vm1160_vm0, %v8707_v36  ;;  %v201_v36 = vadd.s32 40, %v11585_v40  ;;  %v574_v49 = vand.u32 31, %v11685_v34 }
  0x72   : > { %v11716_v53 = vsel %vm332_vm2, %v337_v37, %v336_v24  ;;  %v8735_v24 = vld [vmem:[%s11373_s30 + $0x170] sm:$0xff] }
  0x73   : > { %10540 = vmatmul.mubr.msk.f32.gmra.mxu0 %vm1160_vm0, %v8838_v39  ;;  %v8722_v39 = vld [vmem:[%s11373_s30 + $0x108] sm:$0xff]  ;;  %v575_v1 = vsub.s32 0, %v574_v49  ;;  %vm774_vm9 = vcmp.ne.s32.totalorder %v11716_v53, 0  ;;  %vm838_vm10 = vcmp.lt.s32.totalorder %v11716_v53, 0  ;;  %v966_v5 = vadd.s32 32, %v11716_v53 }
  0x74   : > { %10442 = vmatmul.mubr.msk.f32.gmra.mxu1 %vm1160_vm0, %v8708_v38  ;;  %10542 = vmatprep.mubr.msk.f32.mxu0 %vm1160_vm0, %v8839_v42  ;;  %v340_v38 = vsub.s32 0, %v11672_v25  ;;  %v11699_v42 = vsel %vm556_vm1, %v561_v28, %v560_v18  ;;  %v8859_v28 = vld [vmem:[%s11373_s30 + $0x141] sm:$0xff] }
  0x75   : > { %10444 = vmatprep.mubr.msk.f32.mxu1 %vm1160_vm0, %v8709_v41  ;;  %v8852_v41 = vld [vmem:[%s11373_s30 + $0x109] sm:$0xff]  ;;  %vm806_vm5 = vcmp.ne.s32.totalorder %v11699_v42, 0  ;;  %vm870_vm6 = vcmp.lt.s32.totalorder %v11699_v42, 0 }
  0x76   : > { %v11737_v59 = vmin.u32 %v340_v38, %v11672_v25  ;;  %vm11801_vm1 = vmand %vm870_vm6, %vm806_vm5  ;;  %v8866_v38 = vld [vmem:[%s11373_s30 + $0x179] sm:$0xff] }
  0x77   : > { %10543 = vmatmul.mubr.msk.f32.gmra.mxu0 %vm1160_vm0, %v8840_v44  ;;  %v554_v44 = vsub.s32 0, %v553_v30 }
  0x78   : > { %10445 = vmatmul.mubr.msk.f32.gmra.mxu1 %vm1160_vm0, %v8710_v43  ;;  %10545 = vmatprep.mubr.msk.f32.mxu0 %vm1160_vm0, %v8841_v47  ;;  %v330_v43 = vsub.s32 0, %v329_v29  ;;  %v350_v47 = vand.u32 31, %v11682_v33 }
  0x79   : > { %10447 = vmatprep.mubr.msk.f32.mxu1 %vm1160_vm0, %v8711_v46  ;;  %v8853_v46 = vld [vmem:[%s11373_s30 + $0x111] sm:$0xff]  ;;  %v11733_v56 = vsel %vm549_vm4, %v554_v44, %v553_v30  ;;  %vm563_vm4 = vcmp.lt.s32.totalorder %v11688_v35, 0  ;;  %v8730_v44 = vld [vmem:[%s11373_s30 + $0x148] sm:$0xff] }
  0x7a   : > { %v351_v0 = vsub.s32 0, %v350_v47  ;;  %vm805_vm13 = vcmp.ne.s32.totalorder %v11733_v56, 0  ;;  %vm869_vm14 = vcmp.lt.s32.totalorder %v11733_v56, 0 }
  0x7b   : > { %10546 = vmatmul.mubr.msk.f32.gmra.mxu0 %vm1160_vm0, %v8842_v51  ;;  %v11709_v51 = vadd.s32 %v11600_v48, %v201_v36 }
  0x7c   : > { %10448 = vmatmul.mubr.msk.f32.gmra.mxu1 %vm1160_vm0, %v8712_v50  ;;  %10548 = vmatprep.mubr.msk.f32.mxu0 %vm1160_vm0, %v8843_v55  ;;  %v564_v50 = vsub.s32 0, %v11688_v35  ;;  %v8724_v55 = vld [vmem:[%s11373_s30 + $0x118] sm:$0xff] }
  0x7d   : > { %10450 = vmatprep.mubr.msk.f32.mxu1 %vm1160_vm0, %v8713_v54  ;;  %v11721_v54 = vadd.s32 32, %v11699_v42  ;;  %v361_v61 = vsub.s32 0, %v11709_v51 }
  0x7e   : > { %v11742_v2 = vmin.u32 %v564_v50, %v11688_v35 }
  0x7f   : > { %10549 = vmatmul.mubr.msk.f32.gmra.mxu0 %vm1160_vm0, %v8844_v58  ;;  %v11729_v58 = vsel %vm325_vm3, %v330_v43, %v329_v29  ;;  %v11780_v10 = vmin.u32 %v361_v61, %v11709_v51  ;;  %v11852_v43 = vadd.s32 %v11600_v48, %v202_v21  ;;  %v8862_v61 = vld [vmem:[%s11373_s30 + $0x159] sm:$0xff] }
  0x80   : > { %10451 = vmatmul.mubr.msk.f32.gmra.mxu1 %vm1160_vm0, %v8714_v57  ;;  %10551 = vmatprep.mubr.msk.f32.mxu0 %vm1160_vm0, %v8845_v63  ;;  %v8854_v57 = vld [vmem:[%s11373_s30 + $0x119] sm:$0xff]  ;;  %v8855_v63 = vld [vmem:[%s11373_s30 + $0x121] sm:$0xff]  ;;  %vm773_vm11 = vcmp.ne.s32.totalorder %v11729_v58, 0  ;;  %vm837_vm12 = vcmp.lt.s32.totalorder %v11729_v58, 0  ;;  %v567_v18 = vand.u32 31, %v11742_v2 }
  0x81   : > { %10453 = vmatprep.mubr.msk.f32.mxu1 %vm1160_vm0, %v8715_v62  ;;  %v8725_v62 = vld [vmem:[%s11373_s30 + $0x120] sm:$0xff]  ;;  %v364_v33 = vand.u32 31, %v11780_v10  ;;  %v368_v2 = vsub.s32 0, %v11852_v43  ;;  %v8734_v10 = vld [vmem:[%s11373_s30 + $0x168] sm:$0xff] }
  0x82   : > { %v568_v30 = vsub.s32 0, %v567_v18 }
  0x83   : > { %10552 = vmatmul.mubr.msk.f32.gmra.mxu0 %vm1160_vm0, %v8846_v4  ;;  %v232_v4 = vadd.s32 288, %v11585_v40 }
  0x84   : > { %10454 = vmatmul.mubr.msk.f32.gmra.mxu1 %vm1160_vm0, %v8716_v3  ;;  %10554 = vmatprep.mubr.msk.f32.mxu0 %vm1160_vm0, %v8847_v11  ;;  %v11748_v3 = vadd.s32 %v11600_v48, %v233_v52  ;;  %v343_v11 = vand.u32 31, %v11737_v59  ;;  %v11900_v59 = vsel %vm563_vm4, %v568_v30, %v567_v18  ;;  %v205_v18 = vadd.s32 72, %v11585_v40 }
  0x85   : > { %10456 = vmatprep.mubr.msk.f32.mxu1 %vm1160_vm0, %v8717_v8  ;;  %v965_v8 = vadd.s32 32, %v11729_v58  ;;  %v11784_v12 = vadd.s32 %v11600_v48, %v232_v4  ;;  %v999_v21 = vadd.s32 32, %v11900_v59 }
  0x87   : > { %10555 = vmatmul.mubr.msk.f32.gmra.mxu0 %vm1160_vm0, %v8848_v17  ;;  %v11773_v17 = vsel %vm570_vm8, %v575_v1, %v574_v49  ;;  %vm11825_vm8 = vmand %vm837_vm12, %vm773_vm11  ;;  %v578_v36 = vsub.s32 0, %v11784_v12  ;;  %vm360_vm12 = vcmp.lt.s32.totalorder %v11709_v51, 0  ;;  %v11957_v51 = vmin.u32 %v368_v2, %v11852_v43 }
  0x88   : > { %10457 = vmatmul.mubr.msk.f32.gmra.mxu1 %vm1160_vm0, %v8718_v16  ;;  %10557 = vmatprep.mubr.msk.f32.mxu0 %vm1160_vm0, %v8849_v20  ;;  %v11769_v16 = vsel %vm346_vm7, %v351_v0, %v350_v47  ;;  %v203_v20 = vadd.s32 56, %v11585_v40  ;;  %vm11814_vm7 = vmand %vm838_vm10, %vm774_vm9  ;;  %vm808_vm5 = vcmp.ne.s32.totalorder %v11773_v17, 0  ;;  %vm872_vm6 = vcmp.lt.s32.totalorder %v11773_v17, 0 }
  0x89   : > { %10459 = vmatprep.mubr.msk.f32.mxu1 %vm1160_vm0, %v8719_v19  ;;  %v585_v19 = vsub.s32 0, %v11748_v3  ;;  %vm776_vm2 = vcmp.ne.s32.totalorder %v11769_v16, 0  ;;  %vm840_vm3 = vcmp.lt.s32.totalorder %v11769_v16, 0  ;;  %vm11843_vm9 = vmand %vm869_vm14, %vm805_vm13  ;;  %v11867_v47 = vsel %vm11801_vm1, %v11721_v54, %v11699_v42 }
  0x8a   : > { %v11835_v37 = vadd.s32 %v11600_v48, %v203_v20  ;;  %16957 = vst [vmem:[#allocation4_spill] sm:$0xff] %v11867_v47  ;;  %vm11873_vm10 = vmand %vm840_vm3, %vm776_vm2  ;;  %v968_v50 = vadd.s32 32, %v11769_v16  ;;  %v1000_v52 = vadd.s32 32, %v11773_v17  ;;  %v11907_v0 = vmin.u32 %v578_v36, %v11784_v12  ;;  %v8736_v36 = vld [vmem:[%s11373_s30 + $0x178] sm:$0xff]  ;;  %v8871_v20 = vld [vmem:[%s11373_s30 + $0x1a1] sm:$0xff] }
  0x8b   : > { %10558 = vmatmul.mubr.msk.f32.gmra.mxu0 %vm1160_vm0, %v8850_v27  ;;  %v8729_v27 = vld [vmem:[%s11373_s30 + $0x140] sm:$0xff]  ;;  %v11831_v34 = vmin.u32 %v585_v19, %v11748_v3  ;;  %vm11890_vm11 = vmand %vm872_vm6, %vm808_vm5  ;;  %vm871_vm1 = vcmp.lt.s32.totalorder %v11900_v59, 0  ;;  %vm584_vm2 = vcmp.lt.s32.totalorder %v11748_v3, 0  ;;  %v8864_v19 = vld [vmem:[%s11373_s30 + $0x169] sm:$0xff]  ;;  %vm353_vm5 = vcmp.lt.s32.totalorder %v11777_v9, 0 }
  0x8c   : > { %10460 = vmatmul.mubr.msk.f32.gmra.mxu1 %vm1160_vm0, %v8720_v26  ;;  %10560 = vmatprep.mubr.msk.f32.mxu0 %vm1160_vm0, %v8851_v32  ;;  %v344_v26 = vsub.s32 0, %v343_v11  ;;  %v375_v25 = vsub.s32 0, %v11835_v37  ;;  %v11927_v4 = vsel %vm11873_vm10, %v968_v50, %v11769_v16  ;;  %vm577_vm6 = vcmp.lt.s32.totalorder %v11784_v12, 0  ;;  %v8737_v50 = vld [vmem:[%s11373_s30 + $0x180] sm:$0xff]  ;;  %v8738_v12 = vld [vmem:[%s11373_s30 + $0x188] sm:$0xff] }
  0x8d   : > { %10462 = vmatprep.mubr.msk.f32.mxu1 %vm1160_vm0, %v8721_v31  ;;  %v354_v31 = vsub.s32 0, %v11777_v9  ;;  %16964 = vst [vmem:[#allocation7_spill] sm:$0xff] %v11927_v4  ;;  %v204_v3 = vadd.s32 64, %v11585_v40  ;;  %v236_v2 = vadd.s32 320, %v11585_v40 }
  0x8e   : > { %v11896_v54 = vsel %vm339_vm15, %v344_v26, %v343_v11  ;;  %vm807_vm15 = vcmp.ne.s32.totalorder %v11900_v59, 0  ;;  %v11948_v16 = vmin.u32 %v375_v25, %v11835_v37  ;;  %v8865_v26 = vld [vmem:[%s11373_s30 + $0x171] sm:$0xff] }
  0x8f   : > { %10561 = vmatmul.mubr.msk.f32.gmra.mxu0 %vm1160_vm0, %v8852_v41  ;;  %v11849_v41 = vadd.s32 %v11600_v48, %v235_v13  ;;  %vm775_vm13 = vcmp.ne.s32.totalorder %v11896_v54, 0  ;;  %vm839_vm14 = vcmp.lt.s32.totalorder %v11896_v54, 0  ;;  %v967_v13 = vadd.s32 32, %v11896_v54  ;;  %vm11984_vm4 = vmand %vm871_vm1, %vm807_vm15 }
  0x90   : > { %10463 = vmatmul.mubr.msk.f32.gmra.mxu1 %vm1160_vm0, %v8722_v39  ;;  %10563 = vmatprep.mubr.msk.f32.mxu0 %vm1160_vm0, %v8853_v46  ;;  %v997_v39 = vadd.s32 32, %v11733_v56  ;;  %v11861_v46 = vsel %vm11814_vm7, %v966_v5, %v11716_v53  ;;  %v8731_v53 = vld [vmem:[%s11373_s30 + $0x150] sm:$0xff]  ;;  %v234_v5 = vadd.s32 304, %v11585_v40  ;;  %vm11968_vm3 = vmand %vm839_vm14, %vm775_vm13  ;;  %vm367_vm14 = vcmp.lt.s32.totalorder %v11852_v43, 0 }
  0x91   : > { %10465 = vmatprep.mubr.msk.f32.mxu1 %vm1160_vm0, %v8723_v45  ;;  %v8860_v45 = vld [vmem:[%s11373_s30 + $0x149] sm:$0xff]  ;;  %16956 = vst [vmem:[#allocation3_spill] sm:$0xff] %v11861_v46  ;;  %v599_v1 = vsub.s32 0, %v11849_v41  ;;  %vm598_vm13 = vcmp.lt.s32.totalorder %v11849_v41, 0  ;;  %v12102_v43 = vadd.s32 %v11600_v48, %v236_v2  ;;  %v8744_v2 = vld [vmem:[%s11373_s30 + $0x1b8] sm:$0xff] }
  0x92   : > { %v11915_v35 = vsel %vm11843_vm9, %v997_v39, %v11733_v56  ;;  %v11932_v56 = vsel %vm11890_vm11, %v1000_v52, %v11773_v17  ;;  %v12012_v39 = vsel %vm11968_vm3, %v967_v13, %v11896_v54  ;;  %v8867_v52 = vld [vmem:[%s11373_s30 + $0x181] sm:$0xff] }
  0x93   : > { %10564 = vmatmul.mubr.msk.f32.gmra.mxu0 %vm1160_vm0, %v8854_v57  ;;  %v11884_v57 = vsel %vm11825_vm8, %v965_v8, %v11729_v58  ;;  %v11903_v58 = vmin.u32 %v354_v31, %v11777_v9  ;;  %16963 = vst [vmem:[#allocation6_spill] sm:$0xff] %v11915_v35  ;;  %16965 = vst [vmem:[#allocation8_spill] sm:$0xff] %v11932_v56  ;;  %v11954_v17 = vmin.u32 %v599_v1, %v11849_v41 }
  0x94   : > { %10466 = vmatmul.mubr.msk.f32.gmra.mxu1 %vm1160_vm0, %v8724_v55  ;;  %10566 = vmatprep.mubr.msk.f32.mxu0 %vm1160_vm0, %v8855_v63  ;;  %v8861_v55 = vld [vmem:[%s11373_s30 + $0x151] sm:$0xff]  ;;  %16960 = vst [vmem:[#allocation5_spill] sm:$0xff] %v11884_v57  ;;  %v588_v63 = vand.u32 31, %v11831_v34  ;;  %v378_v31 = vand.u32 31, %v11948_v16  ;;  %v12002_v34 = vadd.s32 %v11600_v48, %v205_v18  ;;  %16970 = vst [vmem:[#allocation9_spill] sm:$0xff] %v12012_v39 }
  0x95   : > { %10468 = vmatprep.mubr.msk.f32.mxu1 %vm1160_vm0, %v8725_v62  ;;  %v365_v62 = vsub.s32 0, %v364_v33  ;;  %v357_v8 = vand.u32 31, %v11903_v58  ;;  %v602_v32 = vand.u32 31, %v11954_v17  ;;  %v8740_v17 = vld [vmem:[%s11373_s30 + $0x198] sm:$0xff] }
  0x97   : > { %10567 = vmatmul.mubr.msk.f32.gmra.mxu0 %vm1160_vm0, %v8856_v7  ;;  %v8863_v7 = vld [vmem:[%s11373_s30 + $0x161] sm:$0xff]  ;;  %v11944_v11 = vsel %vm360_vm12, %v365_v62, %v364_v33  ;;  %v371_v33 = vand.u32 31, %v11957_v51  ;;  %vm374_vm12 = vcmp.lt.s32.totalorder %v11835_v37, 0  ;;  %v603_v9 = vsub.s32 0, %v602_v32  ;;  %v8870_v51 = vld [vmem:[%s11373_s30 + $0x199] sm:$0xff] }
  0x98   : > { %10469 = vmatmul.mubr.msk.f32.gmra.mxu1 %vm1160_vm0, %v8726_v6  ;;  %10569 = vmatprep.mubr.msk.f32.mxu0 %vm1160_vm0, %v8857_v15  ;;  %v8733_v6 = vld [vmem:[%s11373_s30 + $0x160] sm:$0xff]  ;;  %v581_v15 = vand.u32 31, %v11907_v0  ;;  %vm778_vm7 = vcmp.ne.s32.totalorder %v11944_v11, 0  ;;  %vm842_vm8 = vcmp.lt.s32.totalorder %v11944_v11, 0  ;;  %v389_v62 = vsub.s32 0, %v12002_v34  ;;  %v8868_v0 = vld [vmem:[%s11373_s30 + $0x189] sm:$0xff] }
  0x99   : > { %10471 = vmatprep.mubr.msk.f32.mxu1 %vm1160_vm0, %v8727_v14  ;;  %v589_v14 = vsub.s32 0, %v588_v63  ;;  %vm12036_vm11 = vmand %vm842_vm8, %vm778_vm7  ;;  %v372_v58 = vsub.s32 0, %v371_v33 }
  0x9a   : > { %v582_v30 = vsub.s32 0, %v581_v15  ;;  %v12090_v16 = vmin.u32 %v389_v62, %v12002_v34 }
  0x9b   : > { %10570 = vmatmul.mubr.msk.f32.gmra.mxu0 %vm1160_vm0, %v8858_v23  ;;  %v237_v23 = vadd.s32 328, %v11585_v40  ;;  %v11994_v29 = vsel %vm584_vm2, %v589_v14, %v588_v63  ;;  %v12050_v63 = vadd.s32 %v11600_v48, %v204_v3 }
  0x9c   : > { %10472 = vmatmul.mubr.msk.f32.gmra.mxu1 %vm1160_vm0, %v8728_v22  ;;  %10572 = vmatprep.mubr.msk.f32.mxu0 %vm1160_vm0, %v8859_v28  ;;  %v11975_v22 = vadd.s32 %v11600_v48, %v234_v5  ;;  %v358_v28 = vsub.s32 0, %v357_v8  ;;  %vm810_vm9 = vcmp.ne.s32.totalorder %v11994_v29, 0  ;;  %vm874_vm10 = vcmp.lt.s32.totalorder %v11994_v29, 0 }
  0x9d   : > { %10474 = vmatprep.mubr.msk.f32.mxu1 %vm1160_vm0, %v8729_v27  ;;  %v12021_v49 = vadd.s32 %v11600_v48, %v237_v23  ;;  %v12042_v54 = vsel %vm577_vm6, %v582_v30, %v581_v15  ;;  %v12087_v15 = vsel %vm367_vm14, %v372_v58, %v371_v33  ;;  %v382_v37 = vsub.s32 0, %v12050_v63  ;;  %v8742_v30 = vld [vmem:[%s11373_s30 + $0x1a8] sm:$0xff] }
  0x9e   : > { %vm809_vm2 = vcmp.ne.s32.totalorder %v12042_v54, 0  ;;  %vm873_vm3 = vcmp.lt.s32.totalorder %v12042_v54, 0  ;;  %v1001_v13 = vadd.s32 32, %v12042_v54  ;;  %v206_v23 = vadd.s32 80, %v11585_v40 }
  0x9f   : > { %10573 = vmatmul.mubr.msk.f32.gmra.mxu0 %vm1160_vm0, %v8860_v45  ;;  %v592_v45 = vsub.s32 0, %v11975_v22  ;;  %v613_v1 = vsub.s32 0, %v12021_v49  ;;  %v392_v27 = vand.u32 31, %v12090_v16  ;;  %vm591_vm14 = vcmp.lt.s32.totalorder %v11975_v22, 0  ;;  %v8875_v16 = vld [vmem:[%s11373_s30 + $0x1c1] sm:$0xff] }
  0xa0   : > { %10475 = vmatmul.mubr.msk.f32.gmra.mxu1 %vm1160_vm0, %v8730_v44  ;;  %10575 = vmatprep.mubr.msk.f32.mxu0 %vm1160_vm0, %v8861_v55  ;;  %v12017_v44 = vsel %vm11984_vm4, %v999_v21, %v11900_v59  ;;  %v12030_v55 = vsel %vm353_vm5, %v358_v28, %v357_v8  ;;  %v379_v59 = vsub.s32 0, %v378_v31  ;;  %vm12117_vm4 = vmand %vm874_vm10, %vm810_vm9  ;;  %vm779_vm10 = vcmp.ne.s32.totalorder %v12087_v15, 0 }
  0xa1   : > { %10477 = vmatprep.mubr.msk.f32.mxu1 %vm1160_vm0, %v8731_v53  ;;  %16971 = vst [vmem:[#allocation10_spill] sm:$0xff] %v12017_v44  ;;  %v970_v53 = vadd.s32 32, %v11944_v11  ;;  %v12058_v25 = vmin.u32 %v592_v45, %v11975_v22  ;;  %vm777_vm15 = vcmp.ne.s32.totalorder %v12030_v55, 0  ;;  %vm841_vm1 = vcmp.lt.s32.totalorder %v12030_v55, 0  ;;  %v8743_v45 = vld [vmem:[%s11373_s30 + $0x1b0] sm:$0xff] }
  0xa2   : > { %v969_v8 = vadd.s32 32, %v12030_v55  ;;  %v12077_v14 = vsel %vm374_vm12, %v379_v59, %v378_v31  ;;  %v12099_v41 = vmin.u32 %v613_v1, %v12021_v49  ;;  %vm12131_vm9 = vmand %vm841_vm1, %vm777_vm15  ;;  %v12139_v28 = vmin.u32 %v382_v37, %v12050_v63  ;;  %v8872_v31 = vld [vmem:[%s11373_s30 + $0x1a9] sm:$0xff] }
  0xa3   : > { %10576 = vmatmul.mubr.msk.f32.gmra.mxu0 %vm1160_vm0, %v8862_v61  ;;  %v8869_v61 = vld [vmem:[%s11373_s30 + $0x191] sm:$0xff]  ;;  %v12067_v5 = vsel %vm12036_vm11, %v970_v53, %v11944_v11  ;;  %v12083_v11 = vsel %vm598_vm13, %v603_v9, %v602_v32  ;;  %v595_v18 = vand.u32 31, %v12058_v25  ;;  %vm780_vm7 = vcmp.ne.s32.totalorder %v12077_v14, 0  ;;  %vm12149_vm12 = vmand %vm873_vm3, %vm809_vm2  ;;  %v8879_v53 = vld [vmem:[%s11373_s30 + $0x1e1] sm:$0xff] }
  0xa4   : > { %10478 = vmatmul.mubr.msk.f32.gmra.mxu1 %vm1160_vm0, %v8732_v60  ;;  %10578 = vmatprep.mubr.msk.f32.mxu0 %vm1160_vm0, %v8863_v7  ;;  %v8739_v60 = vld [vmem:[%s11373_s30 + $0x190] sm:$0xff]  ;;  %16974 = vst [vmem:[#allocation11_spill] sm:$0xff] %v12067_v5  ;;  %v207_v7 = vadd.s32 88, %v11585_v40  ;;  %vm844_vm5 = vcmp.lt.s32.totalorder %v12077_v14, 0  ;;  %vm812_vm6 = vcmp.ne.s32.totalorder %v12083_v11, 0  ;;  %vm876_vm8 = vcmp.lt.s32.totalorder %v12083_v11, 0 }
  0xa5   : > { %10480 = vmatprep.mubr.msk.f32.mxu1 %vm1160_vm0, %v8733_v6  ;;  %v1002_v6 = vadd.s32 32, %v11994_v29  ;;  %vm843_vm11 = vcmp.lt.s32.totalorder %v12087_v15, 0  ;;  %v596_v33 = vsub.s32 0, %v595_v18  ;;  %v616_v3 = vand.u32 31, %v12099_v41  ;;  %vm12169_vm13 = vmand %vm844_vm5, %vm780_vm7 }
  0xa6   : > { %v12110_v21 = vadd.s32 %v11600_v48, %v207_v7  ;;  %v12176_v59 = vadd.s32 %v11600_v48, %v206_v23  ;;  %v972_v9 = vadd.s32 32, %v12077_v14  ;;  %vm12188_vm15 = vmand %vm876_vm8, %vm812_vm6  ;;  %v1004_v62 = vadd.s32 32, %v12083_v11  ;;  %v8747_v23 = vld [vmem:[%s11373_s30 + $0x1d0] sm:$0xff] }
  0xa7   : > { %10579 = vmatmul.mubr.msk.f32.gmra.mxu0 %vm1160_vm0, %v8864_v19  ;;  %v8741_v19 = vld [vmem:[%s11373_s30 + $0x1a0] sm:$0xff]  ;;  %vm12205_vm1 = vmand %vm843_vm11, %vm779_vm10  ;;  %vm388_vm2 = vcmp.lt.s32.totalorder %v12002_v34, 0  ;;  %v393_v25 = vsub.s32 0, %v392_v27  ;;  %v385_v1 = vand.u32 31, %v12139_v28  ;;  %vm612_vm3 = vcmp.lt.s32.totalorder %v12021_v49, 0 }
  0xa8   : > { %10481 = vmatmul.mubr.msk.f32.gmra.mxu1 %vm1160_vm0, %v8734_v10  ;;  %10581 = vmatprep.mubr.msk.f32.mxu0 %vm1160_vm0, %v8865_v26  ;;  %v239_v10 = vadd.s32 344, %v11585_v40  ;;  %v403_v42 = vsub.s32 0, %v12110_v21  ;;  %v238_v22 = vadd.s32 336, %v11585_v40  ;;  %v209_v49 = vadd.s32 104, %v11585_v40 }
  0xa9   : > { %10483 = vmatprep.mubr.msk.f32.mxu1 %vm1160_vm0, %v8735_v24  ;;  %v8877_v24 = vld [vmem:[%s11373_s30 + $0x1d1] sm:$0xff]  ;;  %v240_v32 = vadd.s32 352, %v11585_v40  ;;  %vm402_vm10 = vcmp.lt.s32.totalorder %v12110_v21, 0 }
  0xaa   : > { %v12227_v37 = vmin.u32 %v403_v42, %v12110_v21  ;;  %v12277_v28 = vadd.s32 %v11600_v48, %v238_v22  ;;  %v8751_v22 = vld [vmem:[%s11373_s30 + $0x1f0] sm:$0xff] }
  0xab   : > { %10582 = vmatmul.mubr.msk.f32.gmra.mxu0 %vm1160_vm0, %v8866_v38  ;;  %v12156_v38 = vadd.s32 %v11600_v48, %v239_v10  ;;  %v8876_v10 = vld [vmem:[%s11373_s30 + $0x1c9] sm:$0xff] }
  0xac   : > { %10484 = vmatmul.mubr.msk.f32.gmra.mxu1 %vm1160_vm0, %v8736_v36  ;;  %10584 = vmatprep.mubr.msk.f32.mxu0 %vm1160_vm0, %v8867_v52  ;;  %v606_v36 = vsub.s32 0, %v12102_v43  ;;  %v12163_v52 = vsel %vm12117_vm4, %v1002_v6, %v11994_v29  ;;  %v12181_v29 = vsel %vm12131_vm9, %v969_v8, %v12030_v55  ;;  %v12199_v55 = vsel %vm12149_vm12, %v1001_v13, %v12042_v54  ;;  %v8874_v54 = vld [vmem:[%s11373_s30 + $0x1b9] sm:$0xff] }
  0xad   : > { %10486 = vmatprep.mubr.msk.f32.mxu1 %vm1160_vm0, %v8737_v50  ;;  %v8873_v50 = vld [vmem:[%s11373_s30 + $0x1b1] sm:$0xff]  ;;  %16981 = vst [vmem:[#allocation12_spill] sm:$0xff] %v12163_v52  ;;  %16984 = vst [vmem:[#allocation13_spill] sm:$0xff] %v12181_v29  ;;  %v627_v7 = vsub.s32 0, %v12156_v38  ;;  %v8745_v8 = vld [vmem:[%s11373_s30 + $0x1c0] sm:$0xff]  ;;  %vm381_vm4 = vcmp.lt.s32.totalorder %v12050_v63, 0 }
  0xae   : > { %16987 = vst [vmem:[#allocation14_spill] sm:$0xff] %v12199_v55  ;;  %v12220_v6 = vmin.u32 %v606_v36, %v12102_v43  ;;  %v406_v26 = vand.u32 31, %v12227_v37  ;;  %vm605_vm9 = vcmp.lt.s32.totalorder %v12102_v43, 0  ;;  %v8878_v36 = vld [vmem:[%s11373_s30 + $0x1d9] sm:$0xff]  ;;  %v620_v58 = vsub.s32 0, %v12277_v28 }
  0xaf   : > { %10585 = vmatmul.mubr.msk.f32.gmra.mxu0 %vm1160_vm0, %v8868_v0  ;;  %v12268_v34 = vmin.u32 %v627_v7, %v12156_v38  ;;  %v8749_v63 = vld [vmem:[%s11373_s30 + $0x1e0] sm:$0xff]  ;;  %v8750_v7 = vld [vmem:[%s11373_s30 + $0x1e8] sm:$0xff] }
  0xb0   : > { %10487 = vmatmul.mubr.msk.f32.gmra.mxu1 %vm1160_vm0, %v8738_v12  ;;  %10587 = vmatprep.mubr.msk.f32.mxu0 %vm1160_vm0, %v8869_v61  ;;  %v971_v12 = vadd.s32 32, %v12087_v15  ;;  %v617_v61 = vsub.s32 0, %v616_v3  ;;  %v609_v13 = vand.u32 31, %v12220_v6  ;;  %v407_v42 = vsub.s32 0, %v406_v26 }
  0xb1   : > { %10489 = vmatprep.mubr.msk.f32.mxu1 %vm1160_vm0, %v8739_v60  ;;  %v12217_v60 = vsel %vm591_vm14, %v596_v33, %v595_v18  ;;  %v12239_v18 = vsel %vm12188_vm15, %v1004_v62, %v12083_v11  ;;  %v386_v11 = vsub.s32 0, %v385_v1  ;;  %v12305_v62 = vadd.s32 %v11600_v48, %v209_v49 }
  0xb2   : > { %16991 = vst [vmem:[#allocation16_spill] sm:$0xff] %v12239_v18  ;;  %v12244_v41 = vsel %vm12205_vm1, %v971_v12, %v12087_v15  ;;  %vm811_vm7 = vcmp.ne.s32.totalorder %v12217_v60, 0  ;;  %vm875_vm5 = vcmp.lt.s32.totalorder %v12217_v60, 0  ;;  %v8746_v15 = vld [vmem:[%s11373_s30 + $0x1c8] sm:$0xff]  ;;  %vm626_vm1 = vcmp.lt.s32.totalorder %v12156_v38, 0 }
  0xb3   : > { %10588 = vmatmul.mubr.msk.f32.gmra.mxu0 %vm1160_vm0, %v8870_v51  ;;  %v12234_v51 = vsel %vm12169_vm13, %v972_v9, %v12077_v14  ;;  %16992 = vst [vmem:[#allocation17_spill] sm:$0xff] %v12244_v41  ;;  %v12253_v14 = vsel %vm388_vm2, %v393_v25, %v392_v27  ;;  %v12289_v33 = vsel %vm381_vm4, %v386_v11, %v385_v1  ;;  %vm12311_vm13 = vmand %vm875_vm5, %vm811_vm7  ;;  %vm395_vm4 = vcmp.lt.s32.totalorder %v12176_v59, 0  ;;  %v8881_v11 = vld [vmem:[%s11373_s30 + $0x1f1] sm:$0xff] }
  0xb4   : > { %10490 = vmatmul.mubr.msk.f32.gmra.mxu1 %vm1160_vm0, %v8740_v17  ;;  %10590 = vmatprep.mubr.msk.f32.mxu0 %vm1160_vm0, %v8871_v20  ;;  %v396_v17 = vsub.s32 0, %v12176_v59  ;;  %16990 = vst [vmem:[#allocation15_spill] sm:$0xff] %v12234_v51  ;;  %v12264_v20 = vsel %vm612_vm3, %v617_v61, %v616_v3  ;;  %vm782_vm6 = vcmp.ne.s32.totalorder %v12253_v14, 0  ;;  %vm846_vm8 = vcmp.lt.s32.totalorder %v12253_v14, 0  ;;  %v8748_v3 = vld [vmem:[%s11373_s30 + $0x1d8] sm:$0xff] }
  0xb5   : > { %10492 = vmatprep.mubr.msk.f32.mxu1 %vm1160_vm0, %v8741_v19  ;;  %v12260_v19 = vadd.s32 32, %v12217_v60  ;;  %vm814_vm11 = vcmp.ne.s32.totalorder %v12264_v20, 0  ;;  %vm878_vm12 = vcmp.lt.s32.totalorder %v12264_v20, 0  ;;  %v12322_v1 = vadd.s32 %v11600_v48, %v240_v32  ;;  %vm12331_vm14 = vmand %vm846_vm8, %vm782_vm6  ;;  %v8882_v32 = vld [vmem:[%s11373_s30 + $0x1f9] sm:$0xff] }
  0xb6   : > { %v12274_v27 = vmin.u32 %v396_v17, %v12176_v59  ;;  %v974_v61 = vadd.s32 32, %v12253_v14  ;;  %v1006_v6 = vadd.s32 32, %v12264_v20  ;;  %vm781_vm15 = vcmp.ne.s32.totalorder %v12289_v33, 0  ;;  %vm12347_vm2 = vmand %vm878_vm12, %vm814_vm11 }
  0xb7   : > { %10591 = vmatmul.mubr.msk.f32.gmra.mxu0 %vm1160_vm0, %v8872_v31  ;;  %v208_v31 = vadd.s32 96, %v11585_v40  ;;  %vm845_vm3 = vcmp.lt.s32.totalorder %v12289_v33, 0  ;;  %v12379_v21 = vsel %vm12311_vm13, %v12260_v19, %v12217_v60  ;;  %v8883_v19 = vld [vmem:[%s11373_s30 + $0x201] sm:$0xff]  ;;  %v243_v12 = vadd.s32 376, %v11585_v40 }
  0xb8   : > { %10493 = vmatmul.mubr.msk.f32.gmra.mxu1 %vm1160_vm0, %v8742_v30  ;;  %10593 = vmatprep.mubr.msk.f32.mxu0 %vm1160_vm0, %v8873_v50  ;;  %v241_v30 = vadd.s32 360, %v11585_v40  ;;  %v630_v50 = vand.u32 31, %v12268_v34  ;;  %v399_v9 = vand.u32 31, %v12274_v27  ;;  %v12364_v34 = vmin.u32 %v620_v58, %v12277_v28  ;;  %16999 = vst [vmem:[#allocation18_spill] sm:$0xff] %v12379_v21  ;;  %vm12400_vm7 = vmand %vm845_vm3, %vm781_vm15 }
  0xb9   : > { %10495 = vmatprep.mubr.msk.f32.mxu1 %vm1160_vm0, %v8743_v45  ;;  %v610_v45 = vsub.s32 0, %v609_v13  ;;  %v12319_v25 = vadd.s32 %v11600_v48, %v208_v31  ;;  %v12389_v49 = vsel %vm12347_vm2, %v1006_v6, %v12264_v20  ;;  %v8752_v31 = vld [vmem:[%s11373_s30 + $0x1f8] sm:$0xff]  ;;  %v8755_v6 = vld [vmem:[%s11373_s30 + $0x210] sm:$0xff]  ;;  %v213_v60 = vadd.s32 136, %v11585_v40 }
  0xba   : > { %v12316_v0 = vadd.s32 %v11600_v48, %v241_v30  ;;  %v631_v17 = vsub.s32 0, %v630_v50  ;;  %17001 = vst [vmem:[#allocation20_spill] sm:$0xff] %v12389_v49  ;;  %v973_v30 = vadd.s32 32, %v12289_v33 }
  0xbb   : > { %10594 = vmatmul.mubr.msk.f32.gmra.mxu0 %vm1160_vm0, %v8874_v54  ;;  %v12354_v37 = vsel %vm605_vm9, %v610_v45, %v609_v13  ;;  %v410_v13 = vsub.s32 0, %v12319_v25 }
  0xbc   : > { %10496 = vmatmul.mubr.msk.f32.gmra.mxu1 %vm1160_vm0, %v8744_v2  ;;  %10596 = vmatprep.mubr.msk.f32.mxu0 %vm1160_vm0, %v8875_v16  ;;  %v211_v2 = vadd.s32 120, %v11585_v40  ;;  %v641_v43 = vsub.s32 0, %v12316_v0  ;;  %vm813_vm5 = vcmp.ne.s32.totalorder %v12354_v37, 0  ;;  %vm877_vm6 = vcmp.lt.s32.totalorder %v12354_v37, 0 }
  0xbd   : > { %10498 = vmatprep.mubr.msk.f32.mxu1 %vm1160_vm0, %v8745_v8  ;;  %v8880_v8 = vld [vmem:[%s11373_s30 + $0x1e9] sm:$0xff]  ;;  %v12412_v20 = vsel %vm626_vm1, %v631_v17, %v630_v50  ;;  %v12437_v50 = vsel %vm12400_vm7, %v973_v30, %v12289_v33  ;;  %v8886_v30 = vld [vmem:[%s11373_s30 + $0x219] sm:$0xff]  ;;  %vm640_vm7 = vcmp.lt.s32.totalorder %v12316_v0, 0 }
  0xbe   : > { %v12371_v27 = vadd.s32 %v11600_v48, %v211_v2  ;;  %17004 = vst [vmem:[#allocation21_spill] sm:$0xff] %v12437_v50  ;;  %v8754_v33 = vld [vmem:[%s11373_s30 + $0x208] sm:$0xff]  ;;  %vm816_vm12 = vcmp.ne.s32.totalorder %v12412_v20, 0  ;;  %vm880_vm13 = vcmp.lt.s32.totalorder %v12412_v20, 0 }
  0xbf   : > { %10597 = vmatmul.mubr.msk.f32.gmra.mxu0 %vm1160_vm0, %v8876_v10  ;;  %v400_v10 = vsub.s32 0, %v399_v9  ;;  %v8884_v2 = vld [vmem:[%s11373_s30 + $0x209] sm:$0xff]  ;;  %vm12501_vm2 = vmand %vm880_vm13, %vm816_vm12 }
  0xc0   : > { %10499 = vmatmul.mubr.msk.f32.gmra.mxu1 %vm1160_vm0, %v8746_v15  ;;  %10599 = vmatprep.mubr.msk.f32.mxu0 %vm1160_vm0, %v8877_v24  ;;  %v12361_v15 = vsel %vm402_vm10, %v407_v42, %v406_v26  ;;  %v634_v24 = vsub.s32 0, %v12322_v1  ;;  %v12384_v26 = vsel %vm12331_vm14, %v974_v61, %v12253_v14  ;;  %v8753_v14 = vld [vmem:[%s11373_s30 + $0x200] sm:$0xff]  ;;  %v431_v59 = vsub.s32 0, %v12371_v27  ;;  %vm12443_vm10 = vmand %vm877_vm6, %vm813_vm5 }
  0xc1   : > { %10501 = vmatprep.mubr.msk.f32.mxu1 %vm1160_vm0, %v8747_v23  ;;  %v417_v23 = vsub.s32 0, %v12305_v62  ;;  %17000 = vst [vmem:[#allocation19_spill] sm:$0xff] %v12384_v26  ;;  %vm784_vm8 = vcmp.ne.s32.totalorder %v12361_v15, 0  ;;  %vm848_vm9 = vcmp.lt.s32.totalorder %v12361_v15, 0  ;;  %v976_v58 = vadd.s32 32, %v12361_v15  ;;  %v11245_v42 = vld [vmem:[%s11373_s30 + $0x3f] sm:$0xff] }
  0xc2   : > { %v12429_v38 = vmin.u32 %v634_v24, %v12322_v1  ;;  %vm12458_vm11 = vmand %vm848_vm9, %vm784_vm8  ;;  %vm619_vm14 = vcmp.lt.s32.totalorder %v12277_v28, 0  ;;  %v210_v61 = vadd.s32 112, %v11585_v40  ;;  %v8756_v24 = vld [vmem:[%s11373_s30 + $0x218] sm:$0xff]  ;;  %vm409_vm5 = vcmp.lt.s32.totalorder %v12319_v25, 0 }
  0xc3   : > { %10600 = vmatmul.mubr.msk.f32.gmra.mxu0 %vm1160_vm0, %v8878_v36  ;;  %v623_v36 = vand.u32 31, %v12364_v34  ;;  %v12420_v45 = vmin.u32 %v417_v23, %v12305_v62  ;;  %v12487_v23 = vsel %vm12458_vm11, %v976_v58, %v12361_v15  ;;  %v1008_v15 = vadd.s32 32, %v12412_v20 }
  0xc4   : > { %10502 = vmatmul.mubr.msk.f32.gmra.mxu1 %vm1160_vm0, %v8748_v3  ;;  %10602 = vmatprep.mubr.msk.f32.mxu0 %vm1160_vm0, %v8879_v53  ;;  %v12416_v3 = vsel %vm395_vm4, %v400_v10, %v399_v9  ;;  %v12426_v53 = vmin.u32 %v410_v13, %v12319_v25  ;;  %v1005_v9 = vadd.s32 32, %v12354_v37  ;;  %v12475_v10 = vmin.u32 %v431_v59, %v12371_v27 }
  0xc5   : > { %10504 = vmatprep.mubr.msk.f32.mxu1 %vm1160_vm0, %v8749_v63  ;;  %v12423_v63 = vmin.u32 %v641_v43, %v12316_v0  ;;  %vm783_vm15 = vcmp.ne.s32.totalorder %v12416_v3, 0  ;;  %vm847_vm1 = vcmp.lt.s32.totalorder %v12416_v3, 0  ;;  %v420_v16 = vand.u32 31, %v12420_v45  ;;  %17010 = vst [vmem:[#allocation23_spill] sm:$0xff] %v12487_v23 }
  0xc6   : > { %v12482_v34 = vsel %vm12443_vm10, %v1005_v9, %v12354_v37  ;;  %v12490_v43 = vadd.s32 %v11600_v48, %v243_v12  ;;  %v242_v13 = vadd.s32 368, %v11585_v40  ;;  %vm12515_vm3 = vmand %vm847_vm1, %vm783_vm15  ;;  %vm416_vm4 = vcmp.lt.s32.totalorder %v12305_v62, 0  ;;  %v11246_v9 = vld [vmem:[%s11373_s30 + $0x40] sm:$0xff] }
  0xc7   : > { %10603 = vmatmul.mubr.msk.f32.gmra.mxu0 %vm1160_vm0, %v8880_v8  ;;  %v624_v8 = vsub.s32 0, %v623_v36  ;;  %v644_v17 = vand.u32 31, %v12423_v63  ;;  %17009 = vst [vmem:[#allocation22_spill] sm:$0xff] %v12482_v34  ;;  %v421_v45 = vsub.s32 0, %v420_v16  ;;  %v434_v59 = vand.u32 31, %v12475_v10 }
  0xc8   : > { %10505 = vmatmul.mubr.msk.f32.gmra.mxu1 %vm1160_vm0, %v8750_v7  ;;  %10605 = vmatprep.mubr.msk.f32.mxu0 %vm1160_vm0, %v8881_v11  ;;  %v8885_v7 = vld [vmem:[%s11373_s30 + $0x211] sm:$0xff]  ;;  %v637_v11 = vand.u32 31, %v12429_v38  ;;  %vm633_vm6 = vcmp.lt.s32.totalorder %v12322_v1, 0  ;;  %v655_v28 = vsub.s32 0, %v12490_v43  ;;  %v12541_v58 = vsel %vm12501_vm2, %v1008_v15, %v12412_v20 }
  0xc9   : > { %10507 = vmatprep.mubr.msk.f32.mxu1 %vm1160_vm0, %v8751_v22  ;;  %v413_v22 = vand.u32 31, %v12426_v53  ;;  %v645_v63 = vsub.s32 0, %v644_v17  ;;  %17015 = vst [vmem:[#allocation24_spill] sm:$0xff] %v12541_v58  ;;  %v12556_v54 = vsel %vm416_vm4, %v421_v45, %v420_v16  ;;  %vm430_vm10 = vcmp.lt.s32.totalorder %v12371_v27, 0  ;;  %v11248_v16 = vld [vmem:[%s11373_s30 + $0x48] sm:$0xff] }
  0xca   : > { %v638_v38 = vsub.s32 0, %v637_v11  ;;  %v12580_v0 = vmin.u32 %v655_v28, %v12490_v43  ;;  %v245_v1 = vadd.s32 392, %v11585_v40  ;;  %vm786_vm11 = vcmp.ne.s32.totalorder %v12556_v54, 0  ;;  %v11254_v28 = vld [vmem:[%s11373_s30 + $0x58] sm:$0xff] }
  0xcb   : > { %10606 = vmatmul.mubr.msk.f32.gmra.mxu0 %vm1160_vm0, %v8882_v32  ;;  %v12508_v32 = vadd.s32 %v11600_v48, %v210_v61  ;;  %v414_v53 = vsub.s32 0, %v413_v22  ;;  %v12561_v20 = vsel %vm640_vm7, %v645_v63, %v644_v17  ;;  %v212_v17 = vadd.s32 128, %v11585_v40 }
  0xcc   : > { %10508 = vmatmul.mubr.msk.f32.gmra.mxu1 %vm1160_vm0, %v8752_v31  ;;  %10608 = vmatprep.mubr.msk.f32.mxu0 %vm1160_vm0, %v8883_v19  ;;  %v975_v31 = vadd.s32 32, %v12416_v3  ;;  %v12521_v19 = vsel %vm619_vm14, %v624_v8, %v623_v36  ;;  %v12532_v36 = vadd.s32 %v11600_v48, %v242_v13  ;;  %v12569_v61 = vsel %vm633_vm6, %v638_v38, %v637_v11  ;;  %v11247_v8 = vld [vmem:[%s11373_s30 + $0x47] sm:$0xff]  ;;  %v11250_v11 = vld [vmem:[%s16658_s1 + $0x30] sm:$0xff] }
  0xcd   : > { %10510 = vmatprep.mubr.msk.f32.mxu1 %vm1160_vm0, %v8753_v14  ;;  %vm815_vm8 = vcmp.ne.s32.totalorder %v12521_v19, 0  ;;  %vm879_vm9 = vcmp.lt.s32.totalorder %v12521_v19, 0  ;;  %v1007_v10 = vadd.s32 32, %v12521_v19  ;;  %vm850_vm12 = vcmp.lt.s32.totalorder %v12556_v54, 0  ;;  %v11253_v38 = vld [vmem:[%s11373_s30 + $0x57] sm:$0xff] }
  0xce   : > { %v12546_v12 = vsel %vm12515_vm3, %v975_v31, %v12416_v3  ;;  %v12565_v3 = vsel %vm409_vm5, %v414_v53, %v413_v22  ;;  %v648_v25 = vsub.s32 0, %v12532_v36  ;;  %v11249_v22 = vld [vmem:[%s16658_s1 + $0x28] sm:$0xff]  ;;  %vm818_vm13 = vcmp.ne.s32.totalorder %v12561_v20, 0  ;;  %vm12616_vm1 = vmand %vm879_vm9, %vm815_vm8 }
  0xcf   : > { %10609 = vmatmul.mubr.msk.f32.gmra.mxu0 %vm1160_vm0, %v8884_v2  ;;  %17016 = vst [vmem:[#allocation25_spill] sm:$0xff] %v12546_v12  ;;  %v12550_v2 = vadd.s32 %v11600_v48, %v213_v60  ;;  %v11251_v31 = vld [vmem:[%s11373_s30 + $0x4f] sm:$0xff]  ;;  %vm882_vm14 = vcmp.lt.s32.totalorder %v12561_v20, 0  ;;  %vm785_vm15 = vcmp.ne.s32.totalorder %v12565_v3, 0  ;;  %vm849_vm2 = vcmp.lt.s32.totalorder %v12565_v3, 0  ;;  %vm12657_vm7 = vmand %vm850_vm12, %vm786_vm11 }
  0xd0   : > { %10511 = vmatmul.mubr.msk.f32.gmra.mxu1 %vm1160_vm0, %v8754_v33  ;;  %10611 = vmatprep.mubr.msk.f32.mxu0 %vm1160_vm0, %v8885_v7  ;;  %v424_v33 = vsub.s32 0, %v12508_v32  ;;  %v11252_v60 = vld [vmem:[%s11373_s30 + $0x50] sm:$0xff]  ;;  %vm817_vm3 = vcmp.ne.s32.totalorder %v12569_v61, 0  ;;  %vm881_vm4 = vcmp.lt.s32.totalorder %v12569_v61, 0  ;;  %v12640_v27 = vadd.s32 %v11600_v48, %v245_v1  ;;  %vm12682_vm5 = vmand %vm882_vm14, %vm818_vm13  ;;  %v11257_v1 = vld [vmem:[%s11373_s30 + $0x68] sm:$0xff] }
  0xd1   : > { %10513 = vmatprep.mubr.msk.f32.mxu1 %vm1160_vm0, %v8755_v6  ;;  %v435_v6 = vsub.s32 0, %v434_v59  ;;  %vm12692_vm6 = vmand %vm849_vm2, %vm785_vm15  ;;  %vm423_vm12 = vcmp.lt.s32.totalorder %v12508_v32, 0  ;;  %vm647_vm13 = vcmp.lt.s32.totalorder %v12532_v36, 0  ;;  %vm444_vm15 = vcmp.lt.s32.totalorder %v12550_v2, 0 }
  0xd2   : > { %v12594_v13 = vmin.u32 %v424_v33, %v12508_v32  ;;  %v9667_v33 = vld [vmem:[%s16658_s1 + $0x40] sm:$0xff]  ;;  %vm12711_vm11 = vmand %vm881_vm4, %vm817_vm3  ;;  %v669_v49 = vsub.s32 0, %v12640_v27  ;;  %v214_v32 = vadd.s32 144, %v11585_v40 }
  0xd3   : > { %10612 = vmatmul.mubr.msk.f32.gmra.mxu0 %vm1160_vm0, %v8886_v30  ;;  %v9537_v30 = vld [vmem:[%s16658_s1 + $0x38] sm:$0xff]  ;;  %v12625_v45 = vsel %vm430_vm10, %v435_v6, %v434_v59  ;;  %v12643_v59 = vadd.s32 %v11600_v48, %v212_v17  ;;  %vm654_vm10 = vcmp.lt.s32.totalorder %v12490_v43, 0 }
  0xd4   : > { %10514 = vmatmul.mubr.msk.f32.gmra.mxu1 %vm1160_vm0, %v8756_v24  ;;  %10714 = vmatprep.mubr.msk.f32.mxu0 %vm1160_vm0, %v11246_v9  ;;  %v445_v24 = vsub.s32 0, %v12550_v2  ;;  %v12637_v9 = vmin.u32 %v648_v25, %v12532_v36  ;;  %v11255_v6 = vld [vmem:[%s11373_s30 + $0x5f] sm:$0xff]  ;;  %vm788_vm8 = vcmp.ne.s32.totalorder %v12625_v45, 0  ;;  %vm852_vm9 = vcmp.lt.s32.totalorder %v12625_v45, 0 }
  0xd5   : > { %10616 = vmatprep.mubr.msk.f32.mxu1 %vm1160_vm0, %v11245_v42  ;;  %v980_v25 = vadd.s32 32, %v12625_v45  ;;  %vm12773_vm14 = vmand %vm852_vm9, %vm788_vm8  ;;  %v17045_v43 = vand.u32 31, %v12594_v13  ;;  %v217_v36 = vadd.s32 168, %v11585_v40 }
  0xd6   : > { %v12663_v17 = vmin.u32 %v445_v24, %v12550_v2  ;;  %v651_v34 = vand.u32 31, %v12637_v9  ;;  %v11259_v24 = vld [vmem:[%s11373_s30 + $0x78] sm:$0xff] }
  0xd7   : > { %v12571_v7 = vpop.f32.mrf.mxu0  ;;  %10715 = vmatmul.mubr.msk.f32.vlgmr.msra.gmra.mxu0 %vm1160_vm0, %v11248_v16  ;;  %v8958_v16 = vld [vmem:[%s11373_s30 + $0x67] sm:$0xff] }
  0xd8   : > { %v12573_v62 = vpop.f32.mrf.mxu1  ;;  %10617 = vmatmul.mubr.msk.f32.vlgmr.msra.gmra.mxu1 %vm1160_vm0, %v11247_v8  ;;  %10909 = vmatpush3.msra.mxu0 %v11250_v11  ;;  %v11256_v8 = vld [vmem:[%s11373_s30 + $0x60] sm:$0xff]  ;;  %v215_v11 = vadd.s32 152, %v11585_v40 }
  0xd9   : > { %10811 = vmatpush3.msra.mxu1 %v11249_v22  ;;  %v12600_v37 = vpop.f32.mrf.mxu0  ;;  %10619 = vmatprep.mubr.msk.f32.mxu1 %vm1160_vm0, %v11251_v31  ;;  %v244_v22 = vadd.s32 384, %v11585_v40 }
  0xda   : > { %v12602_v15 = vpop.f32.mrf.mxu1  ;;  %10717 = vmatprep.mubr.msk.f32.mxu0 %vm1160_vm0, %v11252_v60  ;;  %11006 = vmatprep.subr.mxu1 %v9537_v30  ;;  %v8959_v60 = vld [vmem:[%s11373_s30 + $0x6f] sm:$0xff]  ;;  %v12731_v9 = vadd.s32 %v11600_v48, %v215_v11 }
  0xdb   : > { %v12627_v63 = vpop.f32.mrf.mxu0  ;;  %10718 = vmatmul.mubr.msk.f32.gmra.mxu0 %vm1160_vm0, %v11254_v28  ;;  %v978_v28 = vadd.s32 32, %v12556_v54  ;;  %11104 = vmatprep.subr.mxu0 %v9667_v33  ;;  %v12728_v12 = vadd.s32 %v11600_v48, %v244_v22  ;;  %v247_v22 = vadd.s32 408, %v11585_v40 }
  0xdc   : > { %v12629_v53 = vpop.f32.mrf.mxu1  ;;  %10620 = vmatmul.mubr.msk.f32.gmra.mxu1 %vm1160_vm0, %v11253_v38  ;;  %10720 = vmatprep.mubr.msk.f32.mxu0 %vm1160_vm0, %v11256_v8  ;;  %v12675_v38 = vsel %vm12616_vm1, %v1007_v10, %v12521_v19  ;;  %v977_v8 = vadd.s32 32, %v12565_v3  ;;  %v1009_v10 = vadd.s32 32, %v12569_v61 }
  0xdd   : > { %10622 = vmatprep.mubr.msk.f32.mxu1 %vm1160_vm0, %v11255_v6  ;;  %v12667_v30 = vpop.f32.mrf.mxu0  ;;  %17023 = vst [vmem:[#allocation28_spill] sm:$0xff] %v12675_v38  ;;  %v1010_v6 = vadd.s32 32, %v12561_v20  ;;  %v17032_v38 = vand.u32 31, %v12580_v0 }
  0xde   : > { %17021 = vst [vmem:[#allocation26_spill] sm:$0xff] %v12667_v30  ;;  %v12669_v31 = vpop.f32.mrf.mxu1  ;;  %v448_v30 = vand.u32 31, %v12663_v17  ;;  %v12753_v11 = vsel %vm12692_vm6, %v977_v8, %v12565_v3  ;;  %v12784_v8 = vmin.u32 %v669_v49, %v12640_v27  ;;  %v662_v49 = vsub.s32 0, %v12728_v12 }
  0xdf   : > { %17022 = vst [vmem:[#allocation27_spill] sm:$0xff] %v12669_v31  ;;  %v12700_v14 = vpop.f32.mrf.mxu0  ;;  %10721 = vmatmul.mubr.msk.f32.gmra.mxu0 %vm1160_vm0, %v11257_v1  ;;  %v659_v58 = vsub.s32 0, %v17032_v38  ;;  %v11258_v1 = vld [vmem:[%s11373_s30 + $0x70] sm:$0xff]  ;;  %v12746_v17 = vsel %vm12682_vm5, %v1010_v6, %v12561_v20  ;;  %17038 = vst [vmem:[#allocation35_spill] sm:$0xff] %v12753_v11  ;;  %v652_v6 = vsub.s32 0, %v651_v34  ;;  %vm437_vm5 = vcmp.lt.s32.totalorder %v12643_v59, 0 }
  0xe0   : > { %17028 = vst [vmem:[#allocation29_spill] sm:$0xff] %v12700_v14  ;;  %v12702_v33 = vpop.f32.mrf.mxu1  ;;  %10623 = vmatmul.mubr.msk.f32.gmra.mxu1 %vm1160_vm0, %v8958_v16  ;;  %v438_v16 = vsub.s32 0, %v12643_v59  ;;  %10723 = vmatprep.mubr.msk.f32.mxu0 %vm1160_vm0, %v11258_v1  ;;  %v17033_v14 = vand.u32 31, %v12594_v13  ;;  %v12741_v1 = vsel %vm12657_vm7, %v978_v28, %v12556_v54  ;;  %17037 = vst [vmem:[#allocation34_spill] sm:$0xff] %v12746_v17  ;;  %v246_v13 = vadd.s32 400, %v11585_v40 }
  0xe1   : > { %17029 = vst [vmem:[#allocation30_spill] sm:$0xff] %v12702_v33  ;;  %10625 = vmatprep.mubr.msk.f32.mxu1 %vm1160_vm0, %v8959_v60  ;;  %v8960_v33 = vld [vmem:[%s11373_s30 + $0x77] sm:$0xff]  ;;  %v12733_v38 = vpop.f32.mrf.mxu0  ;;  %v8961_v60 = vld [vmem:[%s11373_s30 + $0x7f] sm:$0xff]  ;;  %17036 = vst [vmem:[#allocation33_spill] sm:$0xff] %v12741_v1  ;;  %v12758_v54 = vsel %vm12711_vm11, %v1009_v10, %v12569_v61  ;;  %v17044_v61 = vand.u32 31, %v12580_v0  ;;  %vm668_vm7 = vcmp.lt.s32.totalorder %v12640_v27, 0 }
  0xe2   : > { %v428_v31 = vsub.s32 0, %v17033_v14  ;;  %17034 = vst [vmem:[#allocation31_spill] sm:$0xff] %v12733_v38  ;;  %v12735_v23 = vpop.f32.mrf.mxu1  ;;  %17039 = vst [vmem:[#allocation36_spill] sm:$0xff] %v12758_v54  ;;  %v12787_v19 = vmin.u32 %v438_v16, %v12643_v59  ;;  %v11260_v10 = vld [vmem:[%s11373_s30 + $0x80] sm:$0xff]  ;;  %v9092_v0 = vld [vmem:[%s11373_s30 + $0x88] sm:$0xff] }
  0xe3   : > { %17035 = vst [vmem:[#allocation32_spill] sm:$0xff] %v12735_v23  ;;  %v12762_v20 = vpop.f32.mrf.mxu0  ;;  %10724 = vmatmul.mubr.msk.f32.gmra.mxu0 %vm1160_vm0, %v11259_v24  ;;  %v12781_v42 = vsel %vm654_vm10, %v659_v58, %v17044_v61  ;;  %v8962_v14 = vld [vmem:[%s11373_s30 + $0x87] sm:$0xff]  ;;  %v459_v24 = vsub.s32 0, %v12731_v9  ;;  %v9093_v54 = vld [vmem:[%s11373_s30 + $0x90] sm:$0xff] }
  0xe4   : > { %17040 = vst [vmem:[#allocation37_spill] sm:$0xff] %v12762_v20  ;;  %v12764_v28 = vpop.f32.mrf.mxu1  ;;  %10626 = vmatmul.mubr.msk.f32.gmra.mxu1 %vm1160_vm0, %v8960_v33  ;;  %10726 = vmatprep.mubr.msk.f32.mxu0 %vm1160_vm0, %v11260_v10  ;;  %v12798_v58 = vsel %vm423_vm12, %v428_v31, %v17045_v43  ;;  %v449_v33 = vsub.s32 0, %v448_v30  ;;  %v12810_v10 = vadd.s32 %v11600_v48, %v247_v22  ;;  %vm820_vm1 = vcmp.ne.s32.totalorder %v12781_v42, 0  ;;  %v8967_v20 = vld [vmem:[%s11373_s30 + $0xaf] sm:$0xff] }
  0xe5   : > { %17041 = vst [vmem:[#allocation38_spill] sm:$0xff] %v12764_v28  ;;  %10628 = vmatprep.mubr.msk.f32.mxu1 %vm1160_vm0, %v8961_v60  ;;  %v12802_v16 = vpop.f32.mrf.mxu0  ;;  %v8963_v60 = vld [vmem:[%s11373_s30 + $0x8f] sm:$0xff]  ;;  %v12817_v31 = vsel %vm12773_vm14, %v980_v25, %v12625_v45  ;;  %vm884_vm2 = vcmp.lt.s32.totalorder %v12781_v42, 0  ;;  %v1012_v43 = vadd.s32 32, %v12781_v42  ;;  %vm787_vm3 = vcmp.ne.s32.totalorder %v12798_v58, 0 }
  0xe6   : > { %17046 = vst [vmem:[#allocation39_spill] sm:$0xff] %v12802_v16  ;;  %v12804_v61 = vpop.f32.mrf.mxu1  ;;  %17048 = vst [vmem:[#allocation41_spill] sm:$0xff] %v12817_v31  ;;  %v12831_v45 = vsel %vm647_vm13, %v652_v6, %v651_v34  ;;  %v672_v25 = vand.u32 31, %v12784_v8  ;;  %v12847_v34 = vmin.u32 %v459_v24, %v12731_v9  ;;  %vm851_vm4 = vcmp.lt.s32.totalorder %v12798_v58, 0  ;;  %v9097_v23 = vld [vmem:[%s11373_s30 + $0xb0] sm:$0xff] }
  0xe7   : > { %17047 = vst [vmem:[#allocation40_spill] sm:$0xff] %v12804_v61  ;;  %v12822_v17 = vpop.f32.mrf.mxu0  ;;  %10727 = vmatmul.mubr.msk.f32.gmra.mxu0 %vm1160_vm0, %v9092_v0  ;;  %v12841_v0 = vsel %vm444_vm15, %v449_v33, %v448_v30  ;;  %v683_v2 = vsub.s32 0, %v12810_v10  ;;  %v12859_v30 = vadd.s32 %v11600_v48, %v214_v32  ;;  %v12862_v33 = vadd.s32 %v11600_v48, %v246_v13  ;;  %vm12878_vm6 = vmand %vm884_vm2, %vm820_vm1 }
  0xe8   : > { %17049 = vst [vmem:[#allocation42_spill] sm:$0xff] %v12822_v17  ;;  %v12824_v22 = vpop.f32.mrf.mxu1  ;;  %10629 = vmatmul.mubr.msk.f32.gmra.mxu1 %vm1160_vm0, %v8962_v14  ;;  %10729 = vmatprep.mubr.msk.f32.mxu0 %vm1160_vm0, %v9093_v54  ;;  %v9094_v14 = vld [vmem:[%s11373_s30 + $0x98] sm:$0xff]  ;;  %v12844_v17 = vmin.u32 %v662_v49, %v12728_v12  ;;  %v9095_v54 = vld [vmem:[%s11373_s30 + $0xa0] sm:$0xff]  ;;  %v979_v49 = vadd.s32 32, %v12798_v58  ;;  %v249_v24 = vadd.s32 424, %v11585_v40  ;;  %vm819_vm8 = vcmp.ne.s32.totalorder %v12831_v45, 0  ;;  %vm12893_vm11 = vmand %vm851_vm4, %vm787_vm3 }
  0xe9   : > { %17050 = vst [vmem:[#allocation43_spill] sm:$0xff] %v12824_v22  ;;  %10631 = vmatprep.mubr.msk.f32.mxu1 %vm1160_vm0, %v8963_v60  ;;  %v8964_v22 = vld [vmem:[%s11373_s30 + $0x97] sm:$0xff]  ;;  %v12850_v6 = vpop.f32.mrf.mxu0  ;;  %v8965_v60 = vld [vmem:[%s11373_s30 + $0x9f] sm:$0xff]  ;;  %vm883_vm9 = vcmp.lt.s32.totalorder %v12831_v45, 0  ;;  %vm790_vm10 = vcmp.ne.s32.totalorder %v12841_v0, 0  ;;  %v673_v13 = vsub.s32 0, %v672_v25  ;;  %v12912_v38 = vmin.u32 %v683_v2, %v12810_v10 }
  0xea   : > { %17051 = vst [vmem:[#allocation44_spill] sm:$0xff] %v12850_v6  ;;  %v12852_v8 = vpop.f32.mrf.mxu1  ;;  %v665_v61 = vand.u32 31, %v12844_v17  ;;  %v462_v16 = vand.u32 31, %v12847_v34  ;;  %vm854_vm12 = vcmp.lt.s32.totalorder %v12841_v0, 0  ;;  %v676_v17 = vsub.s32 0, %v12862_v33  ;;  %vm12941_vm13 = vmand %vm883_vm9, %vm819_vm8 }
  0xeb   : > { %17052 = vst [vmem:[#allocation45_spill] sm:$0xff] %v12852_v8  ;;  %v12868_v3 = vpop.f32.mrf.mxu0  ;;  %10730 = vmatmul.mubr.msk.f32.gmra.mxu0 %vm1160_vm0, %v9094_v14  ;;  %v9096_v14 = vld [vmem:[%s11373_s30 + $0xa8] sm:$0xff]  ;;  %v12919_v34 = vsel %vm12878_vm6, %v1012_v43, %v12781_v42  ;;  %v12935_v42 = vsel %vm12893_vm11, %v979_v49, %v12798_v58  ;;  %v12948_v32 = vsel %vm668_vm7, %v673_v13, %v672_v25  ;;  %vm661_vm14 = vcmp.lt.s32.totalorder %v12728_v12, 0  ;;  %v8968_v58 = vld [vmem:[%s11373_s30 + $0xb7] sm:$0xff]  ;;  %vm12959_vm15 = vmand %vm854_vm12, %vm790_vm10 }
  0xec   : > { %17053 = vst [vmem:[#allocation46_spill] sm:$0xff] %v12868_v3  ;;  %v12870_v8 = vpop.f32.mrf.mxu1  ;;  %10632 = vmatmul.mubr.msk.f32.gmra.mxu1 %vm1160_vm0, %v8964_v22  ;;  %10732 = vmatprep.mubr.msk.f32.mxu0 %vm1160_vm0, %v9095_v54  ;;  %v8966_v22 = vld [vmem:[%s11373_s30 + $0xa7] sm:$0xff]  ;;  %v17059_v3 = vand.u32 31, %v12787_v19  ;;  %17062 = vst [vmem:[#allocation50_spill] sm:$0xff] %v12919_v34  ;;  %v17070_v27 = vand.u32 31, %v12787_v19  ;;  %v666_v13 = vsub.s32 0, %v665_v61  ;;  %v12982_v59 = vmin.u32 %v676_v17, %v12862_v33 }
  0xed   : > { %17054 = vst [vmem:[#allocation47_spill] sm:$0xff] %v12870_v8  ;;  %10634 = vmatprep.mubr.msk.f32.mxu1 %vm1160_vm0, %v8965_v60  ;;  %v12902_v60 = vadd.s32 %v11600_v48, %v217_v36  ;;  %v12904_v54 = vpop.f32.mrf.mxu0  ;;  %v1011_v36 = vadd.s32 32, %v12831_v45  ;;  %17065 = vst [vmem:[#allocation53_spill] sm:$0xff] %v12935_v42  ;;  %v9098_v8 = vld [vmem:[%s11373_s30 + $0xb8] sm:$0xff]  ;;  %v9099_v34 = vld [vmem:[%s11373_s30 + $0xc0] sm:$0xff]  ;;  %vm458_vm1 = vcmp.lt.s32.totalorder %v12731_v9, 0 }
  0xee   : > { %v442_v6 = vsub.s32 0, %v17059_v3  ;;  %17060 = vst [vmem:[#allocation48_spill] sm:$0xff] %v12904_v54  ;;  %v12906_v28 = vpop.f32.mrf.mxu1  ;;  %v452_v3 = vsub.s32 0, %v12859_v30  ;;  %v216_v54 = vadd.s32 160, %v11585_v40  ;;  %vm822_vm2 = vcmp.ne.s32.totalorder %v12948_v32, 0  ;;  %v9100_v17 = vld [vmem:[%s11373_s30 + $0xc8] sm:$0xff] }
  0xef   : > { %17061 = vst [vmem:[#allocation49_spill] sm:$0xff] %v12906_v28  ;;  %v12923_v28 = vadd.s32 %v11600_v48, %v249_v24  ;;  %v12926_v2 = vpop.f32.mrf.mxu0  ;;  %10733 = vmatmul.mubr.msk.f32.gmra.mxu0 %vm1160_vm0, %v9096_v14  ;;  %v982_v24 = vadd.s32 32, %v12841_v0  ;;  %vm886_vm3 = vcmp.lt.s32.totalorder %v12948_v32, 0  ;;  %v679_v12 = vand.u32 31, %v12982_v59 }
  0xf0   : > { %17063 = vst [vmem:[#allocation51_spill] sm:$0xff] %v12926_v2  ;;  %v12928_v31 = vpop.f32.mrf.mxu1  ;;  %10635 = vmatmul.mubr.msk.f32.gmra.mxu1 %vm1160_vm0, %v8966_v22  ;;  %10735 = vmatprep.mubr.msk.f32.mxu0 %vm1160_vm0, %v9097_v23  ;;  %v12967_v25 = vsel %vm437_vm5, %v442_v6, %v17070_v27  ;;  %v473_v23 = vsub.s32 0, %v12902_v60  ;;  %v686_v2 = vand.u32 31, %v12912_v38  ;;  %v12979_v19 = vmin.u32 %v452_v3, %v12859_v30  ;;  %vm13047_vm6 = vmand %vm886_vm3, %vm822_vm2 }
  0xf1   : > { %17064 = vst [vmem:[#allocation52_spill] sm:$0xff] %v12928_v31  ;;  %10637 = vmatprep.mubr.msk.f32.mxu1 %vm1160_vm0, %v8967_v20  ;;  %v463_v20 = vsub.s32 0, %v462_v16  ;;  %v12970_v22 = vpop.f32.mrf.mxu0  ;;  %v8969_v31 = vld [vmem:[%s11373_s30 + $0xbf] sm:$0xff]  ;;  %v12987_v6 = vsel %vm12941_vm13, %v1011_v36, %v12831_v45  ;;  %v697_v27 = vsub.s32 0, %v12923_v28  ;;  %v248_v38 = vadd.s32 416, %v11585_v40 }
  0xf2   : > { %17071 = vst [vmem:[#allocation54_spill] sm:$0xff] %v12970_v22  ;;  %v12972_v14 = vpop.f32.mrf.mxu1  ;;  %17073 = vst [vmem:[#allocation56_spill] sm:$0xff] %v12987_v6  ;;  %v13003_v45 = vsel %vm12959_vm15, %v982_v24, %v12841_v0  ;;  %vm789_vm4 = vcmp.ne.s32.totalorder %v12967_v25, 0  ;;  %vm853_vm7 = vcmp.lt.s32.totalorder %v12967_v25, 0  ;;  %v13015_v36 = vsel %vm661_vm14, %v666_v13, %v665_v61 }
  0xf3   : > { %17072 = vst [vmem:[#allocation55_spill] sm:$0xff] %v12972_v14  ;;  %v12991_v14 = vadd.s32 %v11600_v48, %v216_v54  ;;  %v12994_v22 = vpop.f32.mrf.mxu0  ;;  %10736 = vmatmul.mubr.msk.f32.gmra.mxu0 %vm1160_vm0, %v9098_v8  ;;  %17076 = vst [vmem:[#allocation59_spill] sm:$0xff] %v13003_v45  ;;  %v8970_v54 = vld [vmem:[%s11373_s30 + $0xc7] sm:$0xff]  ;;  %v13019_v0 = vsel %vm458_vm1, %v463_v20, %v462_v16  ;;  %v13022_v43 = vmin.u32 %v473_v23, %v12902_v60 }
  0xf4   : > { %17074 = vst [vmem:[#allocation57_spill] sm:$0xff] %v12994_v22  ;;  %v12996_v3 = vpop.f32.mrf.mxu1  ;;  %10638 = vmatmul.mubr.msk.f32.gmra.mxu1 %vm1160_vm0, %v8968_v58  ;;  %10738 = vmatprep.mubr.msk.f32.mxu0 %vm1160_vm0, %v9099_v34  ;;  %v8971_v34 = vld [vmem:[%s11373_s30 + $0xcf] sm:$0xff]  ;;  %v687_v8 = vsub.s32 0, %v686_v2  ;;  %v455_v49 = vand.u32 31, %v12979_v19  ;;  %v219_v61 = vadd.s32 184, %v11585_v40  ;;  %vm682_vm5 = vcmp.lt.s32.totalorder %v12810_v10, 0  ;;  %vm13063_vm10 = vmand %vm853_vm7, %vm789_vm4 }
  0xf5   : > { %17075 = vst [vmem:[#allocation58_spill] sm:$0xff] %v12996_v3  ;;  %10640 = vmatprep.mubr.msk.f32.mxu1 %vm1160_vm0, %v8969_v31  ;;  %v13024_v24 = vpop.f32.mrf.mxu0  ;;  %v9101_v58 = vld [vmem:[%s11373_s30 + $0xd0] sm:$0xff]  ;;  %v13035_v9 = vmin.u32 %v697_v27, %v12923_v28  ;;  %v466_v16 = vsub.s32 0, %v12991_v14  ;;  %v13039_v13 = vadd.s32 %v11600_v48, %v248_v38  ;;  %v1014_v19 = vadd.s32 32, %v12948_v32  ;;  %v9104_v38 = vld [vmem:[%s11373_s30 + $0xe8] sm:$0xff] }
  0xf6   : > { %17077 = vst [vmem:[#allocation60_spill] sm:$0xff] %v13024_v24  ;;  %v13026_v31 = vpop.f32.mrf.mxu1  ;;  %v981_v27 = vadd.s32 32, %v12967_v25  ;;  %vm821_vm8 = vcmp.ne.s32.totalorder %v13015_v36, 0  ;;  %vm885_vm9 = vcmp.lt.s32.totalorder %v13015_v36, 0  ;;  %vm792_vm11 = vcmp.ne.s32.totalorder %v13019_v0, 0  ;;  %v9103_v24 = vld [vmem:[%s11373_s30 + $0xe0] sm:$0xff] }
  0xf7   : > { %17078 = vst [vmem:[#allocation61_spill] sm:$0xff] %v13026_v31  ;;  %v13041_v20 = vpop.f32.mrf.mxu0  ;;  %10739 = vmatmul.mubr.msk.f32.gmra.mxu0 %vm1160_vm0, %v9100_v17  ;;  %vm856_vm12 = vcmp.lt.s32.totalorder %v13019_v0, 0  ;;  %v9102_v17 = vld [vmem:[%s11373_s30 + $0xd8] sm:$0xff]  ;;  %vm451_vm13 = vcmp.lt.s32.totalorder %v12859_v30, 0  ;;  %v13081_v6 = vsel %vm682_vm5, %v687_v8, %v686_v2  ;;  %v13086_v22 = vadd.s32 %v11600_v48, %v219_v61  ;;  %vm13108_vm15 = vmand %vm885_vm9, %vm821_vm8 }
  0xf8   : > { %17079 = vst [vmem:[#allocation62_spill] sm:$0xff] %v13041_v20  ;;  %v13052_v59 = vpop.f32.mrf.mxu1  ;;  %10641 = vmatmul.mubr.msk.f32.gmra.mxu1 %vm1160_vm0, %v8970_v54  ;;  %10741 = vmatprep.mubr.msk.f32.mxu0 %vm1160_vm0, %v9101_v58  ;;  %v8972_v54 = vld [vmem:[%s11373_s30 + $0xd7] sm:$0xff]  ;;  %v680_v58 = vsub.s32 0, %v679_v12  ;;  %v8973_v20 = vld [vmem:[%s11373_s30 + $0xdf] sm:$0xff]  ;;  %vm675_vm14 = vcmp.lt.s32.totalorder %v12862_v33, 0  ;;  %v700_v45 = vand.u32 31, %v13035_v9  ;;  %v13097_v10 = vsel %vm13047_vm6, %v1014_v19, %v12948_v32  ;;  %vm13124_vm1 = vmand %vm856_vm12, %vm792_vm11 }
  0xf9   : > { %17082 = vst [vmem:[#allocation63_spill] sm:$0xff] %v13052_v59  ;;  %10643 = vmatprep.mubr.msk.f32.mxu1 %vm1160_vm0, %v8971_v34  ;;  %v13075_v31 = vpop.f32.mrf.mxu0  ;;  %v456_v34 = vsub.s32 0, %v455_v49  ;;  %v13091_v59 = vmin.u32 %v466_v16, %v12991_v14  ;;  %17087 = vst [vmem:[#allocation66_spill] sm:$0xff] %v13097_v10  ;;  %v13102_v2 = vsel %vm13063_vm10, %v981_v27, %v12967_v25  ;;  %v1013_v61 = vadd.s32 32, %v13015_v36  ;;  %v8974_v27 = vld [vmem:[%s11373_s30 + $0xe7] sm:$0xff] }
  0xfa   : > { %17085 = vst [vmem:[#allocation64_spill] sm:$0xff] %v13075_v31  ;;  %v13077_v3 = vpop.f32.mrf.mxu1  ;;  %17088 = vst [vmem:[#allocation67_spill] sm:$0xff] %v13102_v2  ;;  %v984_v9 = vadd.s32 32, %v13019_v0  ;;  %vm824_vm2 = vcmp.ne.s32.totalorder %v13081_v6, 0  ;;  %vm888_vm3 = vcmp.lt.s32.totalorder %v13081_v6, 0  ;;  %v17095_v23 = vand.u32 31, %v13022_v43 }
  0xfb   : > { %17086 = vst [vmem:[#allocation65_spill] sm:$0xff] %v13077_v3  ;;  %v690_v3 = vsub.s32 0, %v13039_v13  ;;  %v13114_v32 = vpop.f32.mrf.mxu0  ;;  %10742 = vmatmul.mubr.msk.f32.gmra.mxu0 %vm1160_vm0, %v9102_v17  ;;  %v13139_v17 = vsel %vm451_vm13, %v456_v34, %v455_v49  ;;  %v13145_v10 = vsel %vm675_vm14, %v680_v58, %v679_v12  ;;  %v221_v31 = vadd.s32 200, %v11585_v40  ;;  %vm13180_vm5 = vmand %vm888_vm3, %vm824_vm2 }
  0xfc   : > { %17091 = vst [vmem:[#allocation68_spill] sm:$0xff] %v13114_v32  ;;  %v13116_v16 = vpop.f32.mrf.mxu1  ;;  %10644 = vmatmul.mubr.msk.f32.gmra.mxu1 %vm1160_vm0, %v8972_v54  ;;  %10744 = vmatprep.mubr.msk.f32.mxu0 %vm1160_vm0, %v9103_v24  ;;  %v477_v19 = vsub.s32 0, %v17095_v23  ;;  %v218_v54 = vadd.s32 176, %v11585_v40  ;;  %v8975_v24 = vld [vmem:[%s11373_s30 + $0xef] sm:$0xff]  ;;  %v487_v23 = vsub.s32 0, %v13086_v22  ;;  %vm472_vm4 = vcmp.lt.s32.totalorder %v12902_v60, 0 }
  0xfd   : > { %17092 = vst [vmem:[#allocation69_spill] sm:$0xff] %v13116_v16  ;;  %10646 = vmatprep.mubr.msk.f32.mxu1 %vm1160_vm0, %v8973_v20  ;;  %v13141_v16 = vpop.f32.mrf.mxu0  ;;  %v9105_v32 = vld [vmem:[%s11373_s30 + $0xf0] sm:$0xff]  ;;  %v701_v2 = vsub.s32 0, %v700_v45  ;;  %v13156_v49 = vmin.u32 %v690_v3, %v13039_v13  ;;  %v13161_v33 = vsel %vm13108_vm15, %v1013_v61, %v13015_v36  ;;  %v13166_v12 = vsel %vm13124_vm1, %v984_v9, %v13019_v0  ;;  %v9106_v0 = vld [vmem:[%s11373_s30 + $0xf8] sm:$0xff] }
  0xfe   : > { %v13147_v20 = vpop.f32.mrf.mxu1  ;;  %17097 = vst [vmem:[#allocation71_spill] sm:$0xff] %v13161_v33  ;;  %17098 = vst [vmem:[#allocation72_spill] sm:$0xff] %v13166_v12  ;;  %v1016_v34 = vadd.s32 32, %v13081_v6  ;;  %vm696_vm7 = vcmp.lt.s32.totalorder %v12923_v28, 0  ;;  %vm791_vm6 = vcmp.ne.s32.totalorder %v13139_v17, 0  ;;  %vm855_vm8 = vcmp.lt.s32.totalorder %v13139_v17, 0 }
  0xff   : > { %17096 = vst [vmem:[#allocation70_spill] sm:$0xff] %v13147_v20  ;;  %v13169_v58 = vpop.f32.mrf.mxu0  ;;  %10745 = vmatmul.mubr.msk.f32.gmra.mxu0 %vm1160_vm0, %v9104_v38  ;;  %vm823_vm9 = vcmp.ne.s32.totalorder %v13145_v10, 0  ;;  %v8976_v36 = vld [vmem:[%s11373_s30 + $0xf7] sm:$0xff]  ;;  %v13192_v8 = vadd.s32 %v11600_v48, %v218_v54  ;;  %vm16682_vm10 = vcmp.ne.s32.totalorder %v11861_v46, 0  ;;  %vm16679_vm11 = vcmp.ne.s32.totalorder %v11867_v47, 0  ;;  %v8977_v38 = vld [vmem:[%s11373_s30 + $0xff] sm:$0xff]  ;;  %vm13244_vm2 = vmand %vm855_vm8, %vm791_vm6 }
 0x100   : > { %v13172_v30 = vpop.f32.mrf.mxu1  ;;  %10647 = vmatmul.mubr.msk.f32.gmra.mxu1 %vm1160_vm0, %v8974_v27  ;;  %10747 = vmatprep.mubr.msk.f32.mxu0 %vm1160_vm0, %v9105_v32  ;;  %vm887_vm12 = vcmp.lt.s32.totalorder %v13145_v10, 0  ;;  %v17102_v61 = vand.u32 31, %v13022_v43  ;;  %v13208_v27 = vmin.u32 %v487_v23, %v13086_v22  ;;  %v9107_v54 = vld [vmem:[%s11373_s30 + $0x100] sm:$0xff]  ;;  %v17105_v60 = vand.u32 31, %v13091_v59  ;;  %v9109_v20 = vld [vmem:[%s11373_s30 + $0x110] sm:$0xff] }
 0x101   : > { %17099 = vst [vmem:[#allocation73_spill] sm:$0xff] %v13172_v30  ;;  %10649 = vmatprep.mubr.msk.f32.mxu1 %vm1160_vm0, %v8975_v24  ;;  %v13203_v25 = vpop.f32.mrf.mxu0  ;;  %v13213_v24 = vadd.s32 %v11600_v48, %v221_v31  ;;  %v13217_v30 = vsel %vm696_vm7, %v701_v2, %v700_v45  ;;  %vm16681_vm13 = vcmp.ne.s32.totalorder %v11884_v57, 0  ;;  %vm16678_vm14 = vcmp.ne.s32.totalorder %v11915_v35, 0  ;;  %vm13260_vm7 = vmand %vm887_vm12, %vm823_vm9  ;;  %v9115_v35 = vld [vmem:[%s11373_s30 + $0x140] sm:$0xff] }
 0x102   : > { %v13201_v9 = vsel %vm472_vm4, %v477_v19, %v17102_v61  ;;  %17103 = vst [vmem:[#allocation74_spill] sm:$0xff] %v13203_v25  ;;  %v13205_v32 = vpop.f32.mrf.mxu1  ;;  %v470_v43 = vsub.s32 0, %v17105_v60  ;;  %v251_v61 = vadd.s32 440, %v11585_v40  ;;  %v13228_v31 = vsel %vm13180_vm5, %v1016_v34, %v13081_v6  ;;  %v9111_v60 = vld [vmem:[%s11373_s30 + $0x120] sm:$0xff] }
 0x103   : > { %17104 = vst [vmem:[#allocation75_spill] sm:$0xff] %v13205_v32  ;;  %17106 = vst [vmem:[#allocation76_spill] sm:$0xff] %v13228_v31  ;;  %v983_v28 = vadd.s32 32, %v13139_v17  ;;  %vm465_vm15 = vcmp.lt.s32.totalorder %v12991_v14, 0  ;;  %v13232_v45 = vpop.f32.mrf.mxu0  ;;  %10748 = vmatmul.mubr.msk.f32.gmra.mxu0 %vm1160_vm0, %v9106_v0  ;;  %v220_v23 = vadd.s32 192, %v11585_v40  ;;  %vm16680_vm1 = vcmp.ne.s32.totalorder %v11927_v4, 0 }
 0x104   : > { %17107 = vst [vmem:[#allocation77_spill] sm:$0xff] %v13232_v45  ;;  %v13234_v2 = vpop.f32.mrf.mxu1  ;;  %10650 = vmatmul.mubr.msk.f32.gmra.mxu1 %vm1160_vm0, %v8976_v36  ;;  %v1015_v34 = vadd.s32 32, %v13145_v10  ;;  %vm794_vm3 = vcmp.ne.s32.totalorder %v13201_v9, 0  ;;  %vm858_vm4 = vcmp.lt.s32.totalorder %v13201_v9, 0  ;;  %v480_v3 = vsub.s32 0, %v13192_v8  ;;  %10750 = vmatprep.mubr.msk.f32.mxu0 %vm1160_vm0, %v9107_v54  ;;  %v8978_v36 = vld [vmem:[%s11373_s30 + $0x107] sm:$0xff] }
 0x105   : > { %17108 = vst [vmem:[#allocation78_spill] sm:$0xff] %v13234_v2  ;;  %10652 = vmatprep.mubr.msk.f32.mxu1 %vm1160_vm0, %v8977_v38  ;;  %v9108_v0 = vld [vmem:[%s11373_s30 + $0x108] sm:$0xff]  ;;  %vm826_vm5 = vcmp.ne.s32.totalorder %v13217_v30, 0  ;;  %vm890_vm6 = vcmp.lt.s32.totalorder %v13217_v30, 0  ;;  %v13267_v2 = vpop.f32.mrf.mxu0  ;;  %v501_v54 = vsub.s32 0, %v13213_v24  ;;  %vm16688_vm8 = vcmp.ne.s32.totalorder %v11932_v56, 0  ;;  %vm13291_vm9 = vmand %vm858_vm4, %vm794_vm3 }
 0x106   : > { %17113 = vst [vmem:[#allocation79_spill] sm:$0xff] %v13267_v2  ;;  %v13269_v38 = vpop.f32.mrf.mxu1  ;;  %v8979_v32 = vld [vmem:[%s11373_s30 + $0x10f] sm:$0xff]  ;;  %v17115_v31 = vand.u32 31, %v13091_v59  ;;  %v17116_v45 = vand.u32 31, %v13156_v49  ;;  %v13284_v19 = vadd.s32 %v11600_v48, %v251_v61  ;;  %v986_v14 = vadd.s32 32, %v13201_v9  ;;  %vm13323_vm4 = vmand %vm890_vm6, %vm826_vm5  ;;  %v17151_v56 = vld [vmem:[#allocation25_spill] sm:$0xff] }
 0x107   : > { %17114 = vst [vmem:[#allocation80_spill] sm:$0xff] %v13269_v38  ;;  %v250_v38 = vadd.s32 432, %v11585_v40  ;;  %v1018_v59 = vadd.s32 32, %v13217_v30  ;;  %vm689_vm12 = vcmp.lt.s32.totalorder %v13039_v13, 0  ;;  %10751 = vmatmul.mubr.msk.f32.gmra.mxu0 %vm1160_vm0, %v9108_v0  ;;  %v17124_v6 = vand.u32 31, %v13208_v27 }
 0x108   : > { %v13279_v33 = vsel %vm465_vm15, %v470_v43, %v17115_v31  ;;  %v694_v25 = vsub.s32 0, %v17116_v45  ;;  %v13298_v43 = vpop.f32.mrf.mxu0  ;;  %v13300_v61 = vpop.f32.mrf.mxu1  ;;  %10653 = vmatmul.mubr.msk.f32.gmra.mxu1 %vm1160_vm0, %v8978_v36  ;;  %v13305_v31 = vadd.s32 %v11600_v48, %v220_v23  ;;  %v13312_v45 = vsel %vm13244_vm2, %v983_v28, %v13139_v17  ;;  %10753 = vmatprep.mubr.msk.f32.mxu0 %vm1160_vm0, %v9109_v20  ;;  %v9110_v28 = vld [vmem:[%s11373_s30 + $0x118] sm:$0xff] }
 0x109   : > { %17119 = vst [vmem:[#allocation81_spill] sm:$0xff] %v13300_v61  ;;  %17120 = vst [vmem:[#allocation82_spill] sm:$0xff] %v13312_v45  ;;  %v13317_v61 = vsel %vm13260_vm7, %v1015_v34, %v13145_v10  ;;  %v13328_v36 = vmin.u32 %v480_v3, %v13192_v8  ;;  %10655 = vmatprep.mubr.msk.f32.mxu1 %vm1160_vm0, %v8979_v32  ;;  %v223_v17 = vadd.s32 216, %v11585_v40  ;;  %v8980_v10 = vld [vmem:[%s11373_s30 + $0x117] sm:$0xff]  ;;  %vm793_vm7 = vcmp.ne.s32.totalorder %v13279_v33, 0  ;;  %v8981_v20 = vld [vmem:[%s11373_s30 + $0x11f] sm:$0xff] }
 0x10a   : > { %17121 = vst [vmem:[#allocation83_spill] sm:$0xff] %v13317_v61  ;;  %vm857_vm5 = vcmp.lt.s32.totalorder %v13279_v33, 0  ;;  %v491_v34 = vsub.s32 0, %v17124_v6  ;;  %v13341_v3 = vmin.u32 %v501_v54, %v13213_v24  ;;  %v13343_v0 = vpop.f32.mrf.mxu0  ;;  %v13345_v32 = vpop.f32.mrf.mxu1  ;;  %vm16699_vm6 = vcmp.ne.s32.totalorder %v12163_v52, 0  ;;  %v8987_v52 = vld [vmem:[%s11373_s30 + $0x14f] sm:$0xff] }
 0x10b   : > { %17125 = vst [vmem:[#allocation84_spill] sm:$0xff] %v13343_v0  ;;  %17126 = vst [vmem:[#allocation85_spill] sm:$0xff] %v13345_v32  ;;  %vm16700_vm2 = vcmp.ne.s32.totalorder %v12181_v29, 0  ;;  %vm16698_vm3 = vcmp.ne.s32.totalorder %v12199_v55, 0  ;;  %v17127_v61 = vand.u32 31, %v13156_v49  ;;  %vm486_vm15 = vcmp.lt.s32.totalorder %v13086_v22, 0  ;;  %10754 = vmatmul.mubr.msk.f32.gmra.mxu0 %vm1160_vm0, %v9110_v28 }
 0x10c   : > { %v711_v54 = vsub.s32 0, %v13284_v19  ;;  %v13361_v32 = vadd.s32 %v11600_v48, %v250_v38  ;;  %v13366_v0 = vsel %vm13291_vm9, %v986_v14, %v13201_v9  ;;  %v13371_v13 = vsel %vm13323_vm4, %v1018_v59, %v13217_v30  ;;  %v13377_v38 = vpop.f32.mrf.mxu1  ;;  %10656 = vmatmul.mubr.msk.f32.gmra.mxu1 %vm1160_vm0, %v8980_v10  ;;  %vm13395_vm9 = vmand %vm857_vm5, %vm793_vm7  ;;  %10756 = vmatprep.mubr.msk.f32.mxu0 %vm1160_vm0, %v9111_v60  ;;  %v9113_v60 = vld [vmem:[%s11373_s30 + $0x130] sm:$0xff] }
 0x10d   : > { %v13356_v6 = vsel %vm689_vm12, %v694_v25, %v17127_v61  ;;  %17129 = vst [vmem:[#allocation87_spill] sm:$0xff] %v13366_v0  ;;  %17130 = vst [vmem:[#allocation88_spill] sm:$0xff] %v13371_v13  ;;  %v985_v49 = vadd.s32 32, %v13279_v33  ;;  %v494_v25 = vsub.s32 0, %v13305_v31  ;;  %v13375_v61 = vpop.f32.mrf.mxu0  ;;  %v13384_v9 = vsel %vm16682_vm10, %v12571_v7, 0.0  ;;  %10658 = vmatprep.mubr.msk.f32.mxu1 %vm1160_vm0, %v8981_v20  ;;  %v8982_v7 = vld [vmem:[%s11373_s30 + $0x127] sm:$0xff] }
 0x10e   : > { %17128 = vst [vmem:[#allocation86_spill] sm:$0xff] %v13361_v32  ;;  %17131 = vst [vmem:[#allocation89_spill] sm:$0xff] %v13375_v61  ;;  %v13389_v30 = vsel %vm16679_vm11, %v12573_v62, 0.0  ;;  %v13401_v59 = vadd.s32 %v11600_v48, %v223_v17  ;;  %v9112_v62 = vld [vmem:[%s11373_s30 + $0x128] sm:$0xff]  ;;  %vm825_vm12 = vcmp.ne.s32.totalorder %v13356_v6, 0  ;;  %vm889_vm4 = vcmp.lt.s32.totalorder %v13356_v6, 0  ;;  %v13418_v14 = vpop.f32.mrf.mxu1 }
 0x10f   : > { %17132 = vst [vmem:[#allocation90_spill] sm:$0xff] %v13377_v38  ;;  %17133 = vst [vmem:[#allocation91_spill] sm:$0xff] %v13389_v30  ;;  %v17136_v23 = vand.u32 31, %v13208_v27  ;;  %v13416_v17 = vpop.f32.mrf.mxu0  ;;  %v8983_v20 = vld [vmem:[%s11373_s30 + $0x12f] sm:$0xff]  ;;  %v13425_v38 = vsel %vm16681_vm13, %v12600_v37, 0.0  ;;  %v13430_v27 = vsel %vm16678_vm14, %v12602_v15, 0.0  ;;  %v13435_v22 = vmin.u32 %v711_v54, %v13284_v19  ;;  %10757 = vmatmul.mubr.msk.f32.gmra.mxu0 %vm1160_vm0, %v9112_v62 }
 0x110   : > { %17137 = vst [vmem:[#allocation92_spill] sm:$0xff] %v13416_v17  ;;  %17138 = vst [vmem:[#allocation93_spill] sm:$0xff] %v13418_v14  ;;  %vm16703_vm7 = vcmp.ne.s32.totalorder %v12239_v18, 0  ;;  %vm16710_vm5 = vcmp.ne.s32.totalorder %v12244_v41, 0  ;;  %v13447_v37 = vsel %vm13395_vm9, %v985_v49, %v13279_v33  ;;  %v1017_v15 = vadd.s32 32, %v13356_v6  ;;  %10659 = vmatmul.mubr.msk.f32.gmra.mxu1 %vm1160_vm0, %v8982_v7  ;;  %10759 = vmatprep.mubr.msk.f32.mxu0 %vm1160_vm0, %v9113_v60  ;;  %v8984_v7 = vld [vmem:[%s11373_s30 + $0x137] sm:$0xff] }
 0x111   : > { %v13413_v10 = vsel %vm486_vm15, %v491_v34, %v17136_v23  ;;  %17139 = vst [vmem:[#allocation94_spill] sm:$0xff] %v13430_v27  ;;  %vm16805_vm15 = vcmp.ne.s32.totalorder %v12234_v51, 0  ;;  %v704_v34 = vsub.s32 0, %v13361_v32  ;;  %v13441_v23 = vsel %vm16680_vm1, %v12627_v63, 0.0  ;;  %17140 = vst [vmem:[#allocation95_spill] sm:$0xff] %v13447_v37  ;;  %v13454_v28 = vpop.f32.mrf.mxu0  ;;  %v13456_v63 = vpop.f32.mrf.mxu1  ;;  %10661 = vmatprep.mubr.msk.f32.mxu1 %vm1160_vm0, %v8983_v20  ;;  %v9114_v62 = vld [vmem:[%s11373_s30 + $0x138] sm:$0xff] }
 0x112   : > { %vm710_vm14 = vcmp.lt.s32.totalorder %v13284_v19, 0  ;;  %v13452_v54 = vmin.u32 %v494_v25, %v13305_v31  ;;  %17141 = vst [vmem:[#allocation96_spill] sm:$0xff] %v13454_v28  ;;  %17142 = vst [vmem:[#allocation97_spill] sm:$0xff] %v13456_v63  ;;  %vm796_vm13 = vcmp.ne.s32.totalorder %v13413_v10, 0  ;;  %vm860_vm10 = vcmp.lt.s32.totalorder %v13413_v10, 0  ;;  %v17147_v14 = vld [vmem:[#allocation23_spill] sm:$0xff] }
 0x113   : > { %vm13466_vm1 = vmand %vm889_vm4, %vm825_vm12  ;;  %v17145_v49 = vand.u32 31, %v13328_v36  ;;  %v515_v2 = vsub.s32 0, %v13401_v59  ;;  %v13482_v63 = vsel %vm16688_vm8, %v12629_v53, 0.0  ;;  %v988_v13 = vadd.s32 32, %v13413_v10  ;;  %v13490_v27 = vpop.f32.mrf.mxu0  ;;  %v13492_v60 = vpop.f32.mrf.mxu1  ;;  %v8985_v30 = vld [vmem:[%s11373_s30 + $0x13f] sm:$0xff]  ;;  %10760 = vmatmul.mubr.msk.f32.gmra.mxu0 %vm1160_vm0, %v9114_v62  ;;  %v17184_v61 = vld [vmem:[#allocation39_spill] sm:$0xff] }
 0x114   : > { %17146 = vst [vmem:[#allocation98_spill] sm:$0xff] %v13482_v63  ;;  %vm479_vm11 = vcmp.lt.s32.totalorder %v13192_v8, 0  ;;  %17149 = vst [vmem:[#allocation99_spill] sm:$0xff] %v13490_v27  ;;  %v13499_v63 = vmin.u32 %v704_v34, %v13361_v32  ;;  %vm500_vm4 = vcmp.lt.s32.totalorder %v13213_v24, 0  ;;  %v253_v47 = vadd.s32 456, %v11585_v40  ;;  %v17153_v28 = vld [vmem:[#allocation26_spill] sm:$0xff]  ;;  %10662 = vmatmul.mubr.msk.f32.gmra.mxu1 %vm1160_vm0, %v8984_v7  ;;  %10762 = vmatprep.mubr.msk.f32.mxu0 %vm1160_vm0, %v9115_v35 }
 0x115   : > { %v484_v25 = vsub.s32 0, %v17145_v49  ;;  %v17148_v49 = vand.u32 31, %v13341_v3  ;;  %17150 = vst [vmem:[#allocation100_spill] sm:$0xff] %v13492_v60  ;;  %vm17154_vm12 = vcmp.ne.s32.totalorder %v12012_v39, 0  ;;  %v17155_v27 = vld [vmem:[#allocation27_spill] sm:$0xff]  ;;  %vm17156_vm9 = vcmp.ne.s32.totalorder %v12017_v44, 0  ;;  %vm13522_vm8 = vmand %vm860_vm10, %vm796_vm13  ;;  %v13527_v44 = vpop.f32.mrf.mxu0  ;;  %10664 = vmatprep.mubr.msk.f32.mxu1 %vm1160_vm0, %v8985_v30 }
 0x116   : > { %17152 = vst [vmem:[#allocation101_spill] sm:$0xff] %v13499_v63  ;;  %v13511_v60 = vsel %vm17156_vm9, %v17155_v27, 0.0  ;;  %v13516_v53 = vsel %vm13466_vm1, %v1017_v15, %v13356_v6  ;;  %17161 = vst [vmem:[#allocation102_spill] sm:$0xff] %v13527_v44  ;;  %v13529_v27 = vpop.f32.mrf.mxu1  ;;  %v17163_v6 = vld [vmem:[#allocation29_spill] sm:$0xff]  ;;  %vm17164_vm1 = vcmp.ne.s32.totalorder %v12067_v5, 0  ;;  %vm16804_vm10 = vcmp.ne.s32.totalorder %v12741_v1, 0 }
 0x117   : > { %v505_v20 = vsub.s32 0, %v17148_v49  ;;  %v13506_v49 = vsel %vm17154_vm12, %v17153_v28, 0.0  ;;  %17157 = vst [vmem:[#allocation26_spill] sm:$0xff] %v13511_v60  ;;  %17158 = vst [vmem:[#allocation27_spill] sm:$0xff] %v13516_v53  ;;  %v13536_v15 = vsel %vm17164_vm1, %v17163_v6, 0.0  ;;  %vm16730_vm13 = vcmp.ne.s32.totalorder %v12753_v11, 0 }
 0x118   : > { %17162 = vst [vmem:[#allocation103_spill] sm:$0xff] %v13529_v27  ;;  %v17165_v33 = vld [vmem:[#allocation41_spill] sm:$0xff]  ;;  %v17166_v28 = vand.u32 31, %v13328_v36  ;;  %v13548_v62 = vmin.u32 %v515_v2, %v13401_v59  ;;  %v222_v6 = vadd.s32 208, %v11585_v40  ;;  %v8986_v27 = vld [vmem:[%s11373_s30 + $0x147] sm:$0xff]  ;;  %v17170_v2 = vld [vmem:[#allocation32_spill] sm:$0xff]  ;;  %v13586_v55 = vsel %vm13522_vm8, %v988_v13, %v13413_v10 }
 0x119   : > { %vm16729_vm9 = vcmp.ne.s32.totalorder %v17165_v33, 0  ;;  %v9116_v53 = vld [vmem:[%s11373_s30 + $0x148] sm:$0xff]  ;;  %v17167_v60 = vld [vmem:[#allocation30_spill] sm:$0xff]  ;;  %v17172_v35 = vand.u32 31, %v13341_v3  ;;  %17175 = vst [vmem:[#allocation104_spill] sm:$0xff] %v13586_v55  ;;  %v13592_v24 = vadd.s32 %v11600_v48, %v253_v47  ;;  %vm493_vm8 = vcmp.lt.s32.totalorder %v13305_v31, 0  ;;  %10665 = vmatmul.mubr.msk.f32.gmra.mxu1 %vm1160_vm0, %v8986_v27 }
 0x11a   : > { %v13545_v7 = vsel %vm479_vm11, %v484_v25, %v17166_v28  ;;  %v13558_v36 = vsel %vm16699_vm6, %v17167_v60, 0.0  ;;  %v17169_v8 = vld [vmem:[#allocation31_spill] sm:$0xff]  ;;  %v13568_v28 = vsel %vm16698_vm3, %v17170_v2, 0.0  ;;  %vm16724_vm11 = vcmp.ne.s32.totalorder %v12935_v42, 0  ;;  %v13577_v60 = vpop.f32.mrf.mxu0  ;;  %10763 = vmatmul.mubr.msk.f32.gmra.mxu0 %vm1160_vm0, %v9116_v53  ;;  %10667 = vmatprep.mubr.msk.f32.mxu1 %vm1160_vm0, %v8987_v52  ;;  %v17181_v27 = vld [vmem:[#allocation37_spill] sm:$0xff]  ;;  %v17192_v19 = vld [vmem:[#allocation42_spill] sm:$0xff] }
 0x11b   : > { %17168 = vst [vmem:[#allocation29_spill] sm:$0xff] %v13558_v36  ;;  %v13563_v25 = vsel %vm16700_vm2, %v17169_v8, 0.0  ;;  %17171 = vst [vmem:[#allocation30_spill] sm:$0xff] %v13568_v28  ;;  %v13575_v30 = vsel %vm500_vm4, %v505_v20, %v17172_v35  ;;  %v13579_v36 = vpop.f32.mrf.mxu1  ;;  %v9117_v8 = vld [vmem:[%s11373_s30 + $0x150] sm:$0xff]  ;;  %v17176_v2 = vand.u32 31, %v13435_v22  ;;  %v17178_v20 = vld [vmem:[#allocation59_spill] sm:$0xff]  ;;  %v13611_v3 = vadd.s32 %v11600_v48, %v222_v6 }
 0x11c   : > { %17173 = vst [vmem:[#allocation31_spill] sm:$0xff] %v13577_v60  ;;  %17174 = vst [vmem:[#allocation32_spill] sm:$0xff] %v13579_v36  ;;  %v17179_v35 = vld [vmem:[#allocation67_spill] sm:$0xff]  ;;  %vm795_vm1 = vcmp.ne.s32.totalorder %v13545_v7, 0  ;;  %vm859_vm3 = vcmp.lt.s32.totalorder %v13545_v7, 0  ;;  %v17180_v13 = vand.u32 31, %v13452_v54  ;;  %10765 = vmatprep.mubr.msk.f32.mxu0 %vm1160_vm0, %v9117_v8 }
 0x11d   : > { %v715_v28 = vsub.s32 0, %v17176_v2  ;;  %17177 = vst [vmem:[#allocation105_spill] sm:$0xff] %v13592_v24  ;;  %v13601_v34 = vpop.f32.mrf.mxu1  ;;  %v13603_v2 = vpop.f32.mrf.mxu0  ;;  %vm798_vm6 = vcmp.ne.s32.totalorder %v13575_v30, 0  ;;  %vm862_vm2 = vcmp.lt.s32.totalorder %v13575_v30, 0  ;;  %v9118_v36 = vld [vmem:[%s11373_s30 + $0x158] sm:$0xff]  ;;  %v13620_v53 = vsel %vm16805_vm15, %v17181_v27, 0.0 }
 0x11e   : > { %v498_v10 = vsub.s32 0, %v17180_v13  ;;  %v8988_v13 = vld [vmem:[%s11373_s30 + $0x157] sm:$0xff]  ;;  %v17182_v60 = vld [vmem:[#allocation38_spill] sm:$0xff]  ;;  %vm16785_vm4 = vcmp.ne.s32.totalorder %v13166_v12, 0  ;;  %vm16784_vm12 = vcmp.ne.s32.totalorder %v13312_v45, 0  ;;  %v987_v52 = vadd.s32 32, %v13545_v7  ;;  %10766 = vmatmul.mubr.msk.f32.gmra.mxu0 %vm1160_vm0, %v9118_v36 }
 0x11f   : > { %v13625_v44 = vsel %vm16703_vm7, %v17182_v60, 0.0  ;;  %v225_v6 = vadd.s32 232, %v11585_v40  ;;  %v13631_v8 = vpop.f32.mrf.mxu1  ;;  %v13633_v47 = vpop.f32.mrf.mxu0  ;;  %v8989_v17 = vld [vmem:[%s11373_s30 + $0x15f] sm:$0xff]  ;;  %v13640_v18 = vsel %vm16710_vm5, %v17184_v61, 0.0  ;;  %v17185_v60 = vand.u32 31, %v13435_v22  ;;  %vm13652_vm7 = vmand %vm859_vm3, %vm795_vm1  ;;  %v17189_v61 = vld [vmem:[#allocation40_spill] sm:$0xff]  ;;  %10668 = vmatmul.mubr.msk.f32.gmra.mxu1 %vm1160_vm0, %v8988_v13 }
 0x120   : > { %17183 = vst [vmem:[#allocation37_spill] sm:$0xff] %v13625_v44  ;;  %v9119_v27 = vld [vmem:[%s11373_s30 + $0x160] sm:$0xff]  ;;  %v990_v51 = vadd.s32 32, %v13575_v30  ;;  %v725_v41 = vsub.s32 0, %v13592_v24  ;;  %vm17190_vm5 = vcmp.ne.s32.totalorder %v12379_v21, 0  ;;  %vm16775_vm3 = vcmp.ne.s32.totalorder %v13366_v0, 0  ;;  %vm13677_vm1 = vmand %vm862_vm2, %vm798_vm6  ;;  %10670 = vmatprep.mubr.msk.f32.mxu1 %vm1160_vm0, %v8989_v17 }
 0x121   : > { %v13646_v44 = vsel %vm710_vm14, %v715_v28, %v17185_v60  ;;  %v13661_v22 = vsel %vm17190_vm5, %v17189_v61, 0.0  ;;  %vm17193_vm14 = vcmp.ne.s32.totalorder %v12384_v26, 0  ;;  %v17194_v60 = vand.u32 31, %v13499_v63  ;;  %v13687_v21 = vpop.f32.mrf.mxu1  ;;  %v13689_v26 = vpop.f32.mrf.mxu0  ;;  %v17201_v63 = vld [vmem:[#allocation46_spill] sm:$0xff]  ;;  %10768 = vmatprep.mubr.msk.f32.mxu0 %vm1160_vm0, %v9119_v27  ;;  %v9120_v13 = vld [vmem:[%s11373_s30 + $0x168] sm:$0xff]  ;;  %v17223_v11 = vld [vmem:[#allocation64_spill] sm:$0xff] }
 0x122   : > { %17186 = vst [vmem:[#allocation38_spill] sm:$0xff] %v13646_v44  ;;  %17191 = vst [vmem:[#allocation39_spill] sm:$0xff] %v13661_v22  ;;  %v13666_v28 = vsel %vm17193_vm14, %v17192_v19, 0.0  ;;  %v17198_v22 = vand.u32 31, %v13452_v54  ;;  %vm17200_vm2 = vcmp.ne.s32.totalorder %v12437_v50, 0  ;;  %vm17202_vm6 = vcmp.ne.s32.totalorder %v17147_v14, 0  ;;  %10769 = vmatmul.mubr.msk.f32.gmra.mxu0 %vm1160_vm0, %v9120_v13 }
 0x123   : > { %v13671_v44 = vsub.s32 0, %v17194_v60  ;;  %v17199_v60 = vld [vmem:[#allocation44_spill] sm:$0xff]  ;;  %v13701_v31 = vsel %vm17202_vm6, %v17201_v63, 0.0  ;;  %v17203_v54 = vand.u32 31, %v13548_v62  ;;  %v8990_v36 = vld [vmem:[%s11373_s30 + $0x167] sm:$0xff]  ;;  %vm17205_vm5 = vcmp.ne.s32.totalorder %v17151_v56, 0  ;;  %v13726_v27 = vpop.f32.mrf.mxu1 }
 0x124   : > { %v13685_v19 = vsel %vm493_vm8, %v498_v10, %v17198_v22  ;;  %v508_v22 = vsub.s32 0, %v13611_v3  ;;  %vm16773_vm8 = vcmp.ne.s32.totalorder %v13447_v37, 0  ;;  %vm16771_vm14 = vcmp.ne.s32.totalorder %v13586_v55, 0  ;;  %v9121_v56 = vld [vmem:[%s11373_s30 + $0x170] sm:$0xff]  ;;  %10671 = vmatmul.mubr.msk.f32.gmra.mxu1 %vm1160_vm0, %v8990_v36  ;;  %v9122_v13 = vld [vmem:[%s11373_s30 + $0x178] sm:$0xff]  ;;  %v17221_v42 = vld [vmem:[#allocation62_spill] sm:$0xff] }
 0x125   : > { %17195 = vst [vmem:[#allocation40_spill] sm:$0xff] %v13671_v44  ;;  %v13696_v44 = vsel %vm17200_vm2, %v17199_v60, 0.0  ;;  %v519_v10 = vsub.s32 0, %v17203_v54  ;;  %v17204_v60 = vld [vmem:[#allocation48_spill] sm:$0xff]  ;;  %v13720_v63 = vsel %vm13652_vm7, %v987_v52, %v13545_v7  ;;  %vm514_vm2 = vcmp.lt.s32.totalorder %v13401_v59, 0  ;;  %v13728_v54 = vpop.f32.mrf.mxu0  ;;  %v17210_v7 = vld [vmem:[#allocation51_spill] sm:$0xff]  ;;  %10771 = vmatprep.mubr.msk.f32.mxu0 %vm1160_vm0, %v9121_v56 }
 0x126   : > { %v13713_v50 = vsel %vm17205_vm5, %v17204_v60, 0.0  ;;  %17207 = vst [vmem:[#allocation44_spill] sm:$0xff] %v13720_v63  ;;  %v13724_v17 = vadd.s32 %v11600_v48, %v225_v6  ;;  %v8991_v60 = vld [vmem:[%s11373_s30 + $0x16f] sm:$0xff]  ;;  %v13738_v32 = vmin.u32 %v725_v41, %v13592_v24  ;;  %vm797_vm7 = vcmp.ne.s32.totalorder %v13685_v19, 0  ;;  %v17211_v6 = vld [vmem:[#allocation54_spill] sm:$0xff]  ;;  %v13760_v24 = vpop.f32.mrf.mxu1  ;;  %v8992_v36 = vld [vmem:[%s11373_s30 + $0x177] sm:$0xff]  ;;  %10772 = vmatmul.mubr.msk.f32.gmra.mxu0 %vm1160_vm0, %v9122_v13 }
 0x127   : > { %17206 = vst [vmem:[#allocation42_spill] sm:$0xff] %v13713_v50  ;;  %v13735_v50 = vsel %vm13677_vm1, %v990_v51, %v13575_v30  ;;  %vm861_vm6 = vcmp.lt.s32.totalorder %v13685_v19, 0  ;;  %v13745_v52 = vsel %vm16804_vm10, %v17210_v7, 0.0  ;;  %v13750_v61 = vsel %vm16730_vm13, %v17211_v6, 0.0  ;;  %v17213_v51 = vld [vmem:[#allocation57_spill] sm:$0xff]  ;;  %v17216_v7 = vld [vmem:[#allocation60_spill] sm:$0xff]  ;;  %10673 = vmatprep.mubr.msk.f32.mxu1 %vm1160_vm0, %v8991_v60 }
 0x128   : > { %17208 = vst [vmem:[#allocation46_spill] sm:$0xff] %v13735_v50  ;;  %17209 = vst [vmem:[#allocation48_spill] sm:$0xff] %v13738_v32  ;;  %v13755_v41 = vsel %vm16729_vm9, %v17213_v51, 0.0  ;;  %v13758_v30 = vadd.s32 448, %v11585_v40  ;;  %v13762_v32 = vpop.f32.mrf.mxu0  ;;  %v13769_v6 = vsel %vm16724_vm11, %v17216_v7, 0.0  ;;  %v989_v33 = vadd.s32 32, %v13685_v19  ;;  %10674 = vmatmul.mubr.msk.f32.gmra.mxu1 %vm1160_vm0, %v8992_v36 }
 0x129   : > { %17212 = vst [vmem:[#allocation51_spill] sm:$0xff] %v13750_v61  ;;  %17214 = vst [vmem:[#allocation54_spill] sm:$0xff] %v13755_v41  ;;  %v17218_v51 = vand.u32 31, %v13548_v62  ;;  %v13779_v41 = vmin.u32 %v508_v22, %v13611_v3  ;;  %vm16770_vm1 = vcmp.ne.s32.totalorder %v13720_v63, 0  ;;  %vm16769_vm5 = vcmp.ne.s32.totalorder %v13735_v50, 0  ;;  %v13800_v22 = vpop.f32.mrf.mxu1  ;;  %v8993_v7 = vld [vmem:[%s11373_s30 + $0x17f] sm:$0xff] }
 0x12a   : > { %17215 = vst [vmem:[#allocation57_spill] sm:$0xff] %v13758_v30  ;;  %17217 = vst [vmem:[#allocation60_spill] sm:$0xff] %v13769_v6  ;;  %v529_v62 = vsub.s32 0, %v13724_v17  ;;  %v2704_v56 = vadd.f32 %v13601_v34, %v13384_v9  ;;  %vm16761_vm11 = vcmp.ne.s32.totalorder %v11861_v46, 31  ;;  %v13802_v60 = vpop.f32.mrf.mxu0  ;;  %v227_v9 = vadd.s32 248, %v11585_v40  ;;  %10676 = vmatprep.mubr.msk.f32.mxu1 %vm1160_vm0, %v8993_v7  ;;  %v9124_v36 = vld [vmem:[%s11373_s30 + $0x188] sm:$0xff] }
 0x12b   : > { %v13776_v30 = vsel %vm514_vm2, %v519_v10, %v17218_v51  ;;  %vm13791_vm2 = vmand %vm861_vm6, %vm797_vm7  ;;  %v224_v10 = vadd.s32 224, %v11585_v40  ;;  %v9123_v51 = vld [vmem:[%s11373_s30 + $0x180] sm:$0xff]  ;;  %vm17222_vm7 = vcmp.ne.s32.totalorder %v17178_v20, 0  ;;  %vm17224_vm6 = vcmp.ne.s32.totalorder %v17179_v35, 0  ;;  %v13826_v35 = vpop.f32.mrf.mxu1  ;;  %v8995_v59 = vld [vmem:[%s11373_s30 + $0x18f] sm:$0xff] }
 0x12c   : > { %v13809_v6 = vsel %vm17222_vm7, %v17221_v42, 0.0  ;;  %v13814_v61 = vsel %vm17224_vm6, %v17223_v11, 0.0  ;;  %v3605_v34 = vsel %vm16761_vm11, %v13603_v2, 0.0  ;;  %vm800_vm9 = vcmp.ne.s32.totalorder %v13776_v30, 0  ;;  %v13828_v11 = vpop.f32.mrf.mxu0  ;;  %v17226_v2 = vld [vmem:[#allocation68_spill] sm:$0xff]  ;;  %10774 = vmatprep.mubr.msk.f32.mxu0 %vm1160_vm0, %v9123_v51 }
 0x12d   : > { %vm864_vm13 = vcmp.lt.s32.totalorder %v13776_v30, 0  ;;  %v13822_v20 = vadd.f32 %v3605_v34, %v2704_v56  ;;  %v2703_v42 = vadd.f32 %v13631_v8, %v13425_v38  ;;  %v13835_v46 = vsel %vm16785_vm4, %v17226_v2, 0.0  ;;  %v8994_v8 = vld [vmem:[%s11373_s30 + $0x187] sm:$0xff]  ;;  %v9125_v7 = vld [vmem:[%s11373_s30 + $0x190] sm:$0xff]  ;;  %10775 = vmatmul.mubr.msk.f32.gmra.mxu0 %vm1160_vm0, %v9124_v36 }
 0x12e   : > { %v13840_v56 = vsel %vm16784_vm12, %v13141_v16, 0.0  ;;  %v13845_v38 = vsel %vm13791_vm2, %v989_v33, %v13685_v19  ;;  %vm16759_vm7 = vcmp.ne.s32.totalorder %v11884_v57, 31  ;;  %v992_v13 = vadd.s32 32, %v13776_v30  ;;  %v13860_v33 = vpop.f32.mrf.mxu1  ;;  %v13862_v19 = vpop.f32.mrf.mxu0  ;;  %vm13875_vm2 = vmand %vm864_vm13, %vm800_vm9  ;;  %10677 = vmatmul.mubr.msk.f32.gmra.mxu1 %vm1160_vm0, %v8994_v8  ;;  %10777 = vmatprep.mubr.msk.f32.mxu0 %vm1160_vm0, %v9125_v7  ;;  %v9126_v8 = vld [vmem:[%s11373_s30 + $0x198] sm:$0xff]  ;;  %v9127_v7 = vld [vmem:[%s11373_s30 + $0x1a0] sm:$0xff] }
 0x12f   : > { %17225 = vst [vmem:[#allocation62_spill] sm:$0xff] %v13822_v20  ;;  %17227 = vst [vmem:[#allocation64_spill] sm:$0xff] %v13840_v56  ;;  %v13855_v16 = vmin.u32 %v529_v62, %v13724_v17  ;;  %v13858_v2 = vadd.s32 %v11600_v48, %v224_v10  ;;  %v13869_v51 = vsel %vm16775_vm3, %v13169_v58, 0.0  ;;  %v13880_v10 = vadd.s32 %v11600_v48, %v227_v9 }
 0x130   : > { %17228 = vst [vmem:[#allocation68_spill] sm:$0xff] %v13845_v38  ;;  %17229 = vst [vmem:[#allocation106_spill] sm:$0xff] %v13869_v51  ;;  %v3604_v34 = vsel %vm16759_vm7, %v13633_v47, 0.0  ;;  %v2706_v58 = vadd.f32 %v13687_v21, %v13441_v23  ;;  %v226_v20 = vadd.s32 240, %v11585_v40  ;;  %vm16754_vm13 = vcmp.ne.s32.totalorder %v11927_v4, 31  ;;  %v10434_v9 = vpop.f32.mrf.mxu1  ;;  %v13893_v0 = vpop.f32.mrf.mxu0  ;;  %v17233_v47 = vld [vmem:[#allocation74_spill] sm:$0xff]  ;;  %10679 = vmatprep.mubr.msk.f32.mxu1 %vm1160_vm0, %v8995_v59 }
 0x131   : > { %v13888_v51 = vadd.f32 %v3604_v34, %v2703_v42  ;;  %v2705_v56 = vadd.f32 %v13726_v27, %v13506_v49  ;;  %v13900_v21 = vsel %vm16773_vm8, %v17233_v47, 0.0  ;;  %v17234_v23 = vld [vmem:[#allocation77_spill] sm:$0xff]  ;;  %vm507_vm9 = vcmp.lt.s32.totalorder %v13611_v3, 0  ;;  %10778 = vmatmul.mubr.msk.f32.gmra.mxu0 %vm1160_vm0, %v9126_v8 }
 0x132   : > { %v13905_v42 = vsel %vm16771_vm14, %v17234_v23, 0.0  ;;  %v3607_v49 = vsel %vm16754_vm13, %v13689_v26, 0.0  ;;  %v8996_v27 = vld [vmem:[%s11373_s30 + $0x197] sm:$0xff]  ;;  %v13918_v36 = vsel %vm13875_vm2, %v992_v13, %v13776_v30  ;;  %v17236_v34 = vand.u32 31, %v13779_v41  ;;  %v13924_v4 = vpop.f32.mrf.mxu1  ;;  %v13926_v26 = vpop.f32.mrf.mxu0  ;;  %v8997_v59 = vld [vmem:[%s11373_s30 + $0x19f] sm:$0xff]  ;;  %10780 = vmatprep.mubr.msk.f32.mxu0 %vm1160_vm0, %v9127_v7  ;;  %v8999_v23 = vld [vmem:[%s11373_s30 + $0x1af] sm:$0xff] }
 0x133   : > { %17232 = vst [vmem:[#allocation107_spill] sm:$0xff] %v13888_v51  ;;  %17235 = vst [vmem:[#allocation74_spill] sm:$0xff] %v13918_v36  ;;  %v522_v51 = vsub.s32 0, %v13858_v2  ;;  %v543_v57 = vsub.s32 0, %v13880_v10  ;;  %v13931_v40 = vadd.f32 %v3607_v49, %v2706_v58  ;;  %vm16743_vm6 = vcmp.ne.s32.totalorder %v12012_v39, 31  ;;  %10680 = vmatmul.mubr.msk.f32.gmra.mxu1 %vm1160_vm0, %v8996_v27  ;;  %v9128_v27 = vld [vmem:[%s11373_s30 + $0x1a8] sm:$0xff] }
 0x134   : > { %v512_v47 = vsub.s32 0, %v17236_v34  ;;  %v2708_v30 = vadd.f32 %v13760_v24, %v13536_v15  ;;  %v13937_v13 = vadd.s32 %v11600_v48, %v226_v20  ;;  %v3606_v62 = vsel %vm16743_vm6, %v13728_v54, 0.0  ;;  %v10437_v49 = vpop.f32.mrf.mxu1  ;;  %v10535_v34 = vpop.f32.mrf.mxu0  ;;  %v17237_v15 = vld [vmem:[#allocation79_spill] sm:$0xff]  ;;  %10682 = vmatprep.mubr.msk.f32.mxu1 %vm1160_vm0, %v8997_v59  ;;  %v17242_v3 = vld [vmem:[#allocation17_spill] sm:$0xff] }
 0x135   : > { %vm16744_vm2 = vcmp.ne.s32.totalorder %v12067_v5, 31  ;;  %v2707_v58 = vadd.f32 %v13800_v22, %v13563_v25  ;;  %v13950_v24 = vsel %vm16770_vm1, %v17237_v15, 0.0  ;;  %v13955_v20 = vsel %vm16769_vm5, %v13298_v43, 0.0  ;;  %v8998_v22 = vld [vmem:[%s11373_s30 + $0x1a7] sm:$0xff]  ;;  %10781 = vmatmul.mubr.msk.f32.gmra.mxu0 %vm1160_vm0, %v9128_v27 }
 0x136   : > { %v13957_v54 = vadd.f32 %v3606_v62, %v2705_v56  ;;  %v3609_v25 = vsel %vm16744_vm2, %v13762_v32, 0.0  ;;  %v13967_v8 = vmin.u32 %v522_v51, %v13858_v2  ;;  %vm16749_vm6 = vcmp.ne.s32.totalorder %v12181_v29, 31  ;;  %v2434_v56 = vpop.f32.mrf.mxu1  ;;  %v3143_v62 = vpop.f32.mrf.mxu0  ;;  %v9129_v32 = vld [vmem:[%s11373_s30 + $0x1b0] sm:$0xff]  ;;  %v17239_v51 = vld [vmem:[#allocation15_spill] sm:$0xff] }
 0x137   : > { %v13969_v15 = vadd.f32 %v3609_v25, %v2708_v30  ;;  %v2710_v43 = vadd.f32 %v13826_v35, %v13620_v53  ;;  %v13977_v59 = vmin.u32 %v543_v57, %v13880_v10  ;;  %v3608_v7 = vsel %vm16749_vm6, %v13802_v60, 0.0  ;;  %10683 = vmatmul.mubr.msk.f32.gmra.mxu1 %vm1160_vm0, %v8998_v22  ;;  %10783 = vmatprep.mubr.msk.f32.mxu0 %vm1160_vm0, %v9129_v32 }
 0x138   : > { %vm16750_vm2 = vcmp.ne.s32.totalorder %v17239_v51, 31  ;;  %v2709_v30 = vadd.f32 %v13860_v33, %v13640_v18  ;;  %v17240_v25 = vand.u32 31, %v13779_v41  ;;  %v17241_v57 = vand.u32 31, %v13855_v16  ;;  %v10538_v5 = vpop.f32.mrf.mxu0  ;;  %v17243_v33 = vld [vmem:[#allocation19_spill] sm:$0xff]  ;;  %10685 = vmatprep.mubr.msk.f32.mxu1 %vm1160_vm0, %v8999_v23  ;;  %v9131_v23 = vld [vmem:[%s11373_s30 + $0x1c0] sm:$0xff] }
 0x139   : > { %17238 = vst [vmem:[#allocation77_spill] sm:$0xff] %v13969_v15  ;;  %v536_v29 = vsub.s32 0, %v13937_v13  ;;  %v13996_v60 = vadd.f32 %v3608_v7, %v2707_v58  ;;  %v10440_v15 = vpop.f32.mrf.mxu1  ;;  %v3611_v18 = vsel %vm16750_vm2, %v13828_v11, 0.0  ;;  %v2712_v41 = vadd.f32 %v10434_v9, %v13666_v28  ;;  %v9130_v58 = vld [vmem:[%s11373_s30 + $0x1b8] sm:$0xff] }
 0x13a   : > { %v13989_v35 = vsel %vm507_vm9, %v512_v47, %v17240_v25  ;;  %v13993_v53 = vsub.s32 0, %v17241_v57  ;;  %vm16752_vm9 = vcmp.ne.s32.totalorder %v17242_v3, 31  ;;  %vm16751_vm6 = vcmp.ne.s32.totalorder %v17243_v33, 31  ;;  %v9000_v47 = vld [vmem:[%s11373_s30 + $0x1b7] sm:$0xff]  ;;  %v3153_v7 = vpop.f32.mrf.mxu0  ;;  %v9001_v25 = vld [vmem:[%s11373_s30 + $0x1bf] sm:$0xff]  ;;  %10784 = vmatmul.mubr.msk.f32.gmra.mxu0 %vm1160_vm0, %v9130_v58 }
 0x13b   : > { %v14011_v27 = vadd.f32 %v3611_v18, %v2710_v43  ;;  %v3610_v11 = vsel %vm16752_vm9, %v13862_v19, 0.0  ;;  %v3613_v28 = vsel %vm16751_vm6, %v13893_v0, 0.0  ;;  %v2444_v9 = vpop.f32.mrf.mxu1  ;;  %vm528_vm2 = vcmp.lt.s32.totalorder %v13724_v17, 0  ;;  %v17244_v0 = vld [vmem:[#allocation21_spill] sm:$0xff]  ;;  %10686 = vmatmul.mubr.msk.f32.gmra.mxu1 %vm1160_vm0, %v9000_v47  ;;  %10786 = vmatprep.mubr.msk.f32.mxu0 %vm1160_vm0, %v9131_v23 }
 0x13c   : > { %v14023_v57 = vadd.f32 %v3610_v11, %v2709_v30  ;;  %v14025_v43 = vadd.f32 %v3613_v28, %v2712_v41  ;;  %v2711_v19 = vadd.f32 %v13924_v4, %v13696_v44  ;;  %v14030_v18 = vmin.u32 %v536_v29, %v13937_v13  ;;  %v10541_v32 = vpop.f32.mrf.mxu0  ;;  %v17245_v29 = vld [vmem:[#allocation42_spill] sm:$0xff]  ;;  %10688 = vmatprep.mubr.msk.f32.mxu1 %vm1160_vm0, %v9001_v25  ;;  %v9132_v41 = vld [vmem:[%s11373_s30 + $0x1c8] sm:$0xff] }
 0x13d   : > { %vm16758_vm6 = vcmp.ne.s32.totalorder %v17244_v0, 31  ;;  %v2714_v22 = vadd.f32 %v10437_v49, %v13701_v31  ;;  %vm16756_vm9 = vcmp.ne.s32.totalorder %v17147_v14, 31  ;;  %v10443_v33 = vpop.f32.mrf.mxu1  ;;  %v2713_v30 = vadd.f32 %v2434_v56, %v17245_v29  ;;  %v17246_v31 = vld [vmem:[#allocation25_spill] sm:$0xff]  ;;  %v9002_v49 = vld [vmem:[%s11373_s30 + $0x1c7] sm:$0xff]  ;;  %v9003_v56 = vld [vmem:[%s11373_s30 + $0x1cf] sm:$0xff] }
 0x13e   : > { %v3612_v4 = vsel %vm16758_vm6, %v13926_v26, 0.0  ;;  %v3615_v44 = vsel %vm16756_vm9, %v10535_v34, 0.0  ;;  %vm16760_vm13 = vcmp.ne.s32.totalorder %v17246_v31, 31  ;;  %v2716_v11 = vadd.f32 %v10440_v15, %v13745_v52  ;;  %v3163_v28 = vpop.f32.mrf.mxu0  ;;  %v9133_v29 = vld [vmem:[%s11373_s30 + $0x1d0] sm:$0xff]  ;;  %v17250_v25 = vld [vmem:[#allocation51_spill] sm:$0xff]  ;;  %v17252_v15 = vld [vmem:[#allocation54_spill] sm:$0xff]  ;;  %10787 = vmatmul.mubr.msk.f32.gmra.mxu0 %vm1160_vm0, %v9132_v41 }
 0x13f   : > { %v14048_v47 = vadd.f32 %v3612_v4, %v2711_v19  ;;  %v14050_v58 = vadd.f32 %v3615_v44, %v2714_v22  ;;  %v3614_v26 = vsel %vm16760_vm13, %v3143_v62, 0.0  ;;  %v2454_v34 = vpop.f32.mrf.mxu1  ;;  %vm16763_vm9 = vcmp.ne.s32.totalorder %v12741_v1, 31  ;;  %v17251_v0 = vld [vmem:[#allocation35_spill] sm:$0xff]  ;;  %v17253_v19 = vld [vmem:[#allocation41_spill] sm:$0xff]  ;;  %10689 = vmatmul.mubr.msk.f32.gmra.mxu1 %vm1160_vm0, %v9002_v49  ;;  %10789 = vmatprep.mubr.msk.f32.mxu0 %vm1160_vm0, %v9133_v29 }
 0x140   : > { %v14057_v14 = vadd.f32 %v3614_v26, %v2713_v30  ;;  %v2715_v23 = vadd.f32 %v2444_v9, %v17250_v25  ;;  %vm16762_vm6 = vcmp.ne.s32.totalorder %v17251_v0, 31  ;;  %vm799_vm7 = vcmp.ne.s32.totalorder %v13989_v35, 0  ;;  %v10544_v44 = vpop.f32.mrf.mxu0  ;;  %10691 = vmatprep.mubr.msk.f32.mxu1 %vm1160_vm0, %v9003_v56  ;;  %v9004_v49 = vld [vmem:[%s11373_s30 + $0x1d7] sm:$0xff]  ;;  %v17363_v0 = vld [vmem:[#allocation63_spill] sm:$0xff] }
 0x141   : > { %17247 = vst [vmem:[#allocation79_spill] sm:$0xff] %v14048_v47  ;;  %17248 = vst [vmem:[#allocation42_spill] sm:$0xff] %v14050_v58  ;;  %v3617_v62 = vsel %vm16763_vm9, %v10538_v5, 0.0  ;;  %v3616_v52 = vsel %vm16762_vm6, %v3153_v7, 0.0  ;;  %v2718_v22 = vadd.f32 %v10443_v33, %v17252_v15  ;;  %vm16764_vm13 = vcmp.ne.s32.totalorder %v17253_v19, 31  ;;  %v10446_v4 = vpop.f32.mrf.mxu1  ;;  %v17256_v33 = vld [vmem:[#allocation60_spill] sm:$0xff] }
 0x142   : > { %17249 = vst [vmem:[#allocation108_spill] sm:$0xff] %v14057_v14  ;;  %vm16781_vm11 = vcmp.ne.s32.totalorder %v13845_v38, 0  ;;  %v14072_v9 = vadd.f32 %v3617_v62, %v2716_v11  ;;  %v14074_v5 = vadd.f32 %v3616_v52, %v2715_v23  ;;  %v3619_v7 = vsel %vm16764_vm13, %v10541_v32, 0.0  ;;  %v9134_v26 = vld [vmem:[%s11373_s30 + $0x1d8] sm:$0xff]  ;;  %v17259_v62 = vld [vmem:[#allocation59_spill] sm:$0xff]  ;;  %v3173_v52 = vpop.f32.mrf.mxu0  ;;  %v9135_v32 = vld [vmem:[%s11373_s30 + $0x1e0] sm:$0xff] }
 0x143   : > { %v2717_v30 = vadd.f32 %v2454_v34, %v17256_v33  ;;  %v14083_v41 = vadd.f32 %v3619_v7, %v2718_v22  ;;  %v17258_v25 = vld [vmem:[#allocation53_spill] sm:$0xff]  ;;  %v2720_v11 = vadd.f32 %v10446_v4, %v13809_v6  ;;  %vm16766_vm9 = vcmp.ne.s32.totalorder %v17259_v62, 31  ;;  %v2464_v23 = vpop.f32.mrf.mxu1  ;;  %v17260_v22 = vld [vmem:[#allocation67_spill] sm:$0xff]  ;;  %10692 = vmatmul.mubr.msk.f32.gmra.mxu1 %vm1160_vm0, %v9004_v49  ;;  %10790 = vmatmul.mubr.msk.f32.gmra.mxu0 %vm1160_vm0, %v9134_v26 }
 0x144   : > { %17254 = vst [vmem:[#allocation51_spill] sm:$0xff] %v14072_v9  ;;  %17255 = vst [vmem:[#allocation54_spill] sm:$0xff] %v14074_v5  ;;  %vm16765_vm6 = vcmp.ne.s32.totalorder %v17258_v25, 31  ;;  %v9005_v15 = vld [vmem:[%s11373_s30 + $0x1df] sm:$0xff]  ;;  %v3621_v56 = vsel %vm16766_vm9, %v10544_v44, 0.0  ;;  %v2719_v29 = vadd.f32 %v2464_v23, %v13814_v61  ;;  %vm16767_vm13 = vcmp.ne.s32.totalorder %v17260_v22, 31  ;;  %10792 = vmatprep.mubr.msk.f32.mxu0 %vm1160_vm0, %v9135_v32 }
 0x145   : > { %17257 = vst [vmem:[#allocation60_spill] sm:$0xff] %v14083_v41  ;;  %v3618_v34 = vsel %vm16765_vm6, %v3163_v28, 0.0  ;;  %v14098_v6 = vadd.f32 %v3621_v56, %v2720_v11  ;;  %v3620_v4 = vsel %vm16767_vm13, %v3173_v52, 0.0  ;;  %v10449_v33 = vpop.f32.mrf.mxu1  ;;  %v10547_v41 = vpop.f32.mrf.mxu0  ;;  %vm16768_vm6 = vcmp.ne.s32.totalorder %v13166_v12, 31  ;;  %10694 = vmatprep.mubr.msk.f32.mxu1 %vm1160_vm0, %v9005_v15  ;;  %v9136_v11 = vld [vmem:[%s11373_s30 + $0x1e8] sm:$0xff]  ;;  %v9137_v32 = vld [vmem:[%s11373_s30 + $0x1f0] sm:$0xff] }
 0x146   : > { %v14096_v7 = vadd.f32 %v3618_v34, %v2717_v30  ;;  %v14105_v61 = vadd.f32 %v3620_v4, %v2719_v29  ;;  %v2722_v28 = vadd.f32 %v10449_v33, %v13835_v46  ;;  %v3623_v44 = vsel %vm16768_vm6, %v10547_v41, 0.0  ;;  %v9006_v30 = vld [vmem:[%s11373_s30 + $0x1e7] sm:$0xff]  ;;  %v9007_v15 = vld [vmem:[%s11373_s30 + $0x1ef] sm:$0xff]  ;;  %v9347_v12 = vld [vmem:[%s11373_s30 + $0x7f] sm:$0xff] }
 0x147   : > { %17262 = vst [vmem:[#allocation110_spill] sm:$0xff] %v14098_v6  ;;  %vm16772_vm9 = vcmp.ne.s32.totalorder %v13312_v45, 31  ;;  %v17264_v49 = vand.u32 31, %v13855_v16  ;;  %vm521_vm13 = vcmp.lt.s32.totalorder %v13858_v2, 0  ;;  %v17265_v46 = vand.u32 31, %v13967_v8  ;;  %v2474_v23 = vpop.f32.mrf.mxu1  ;;  %v3183_v52 = vpop.f32.mrf.mxu0  ;;  %v17266_v34 = vld [vmem:[#allocation87_spill] sm:$0xff]  ;;  %10695 = vmatmul.mubr.msk.f32.gmra.mxu1 %vm1160_vm0, %v9006_v30  ;;  %10793 = vmatmul.mubr.msk.f32.gmra.mxu0 %vm1160_vm0, %v9136_v11 }
 0x148   : > { %17261 = vst [vmem:[#allocation109_spill] sm:$0xff] %v14096_v7  ;;  %17263 = vst [vmem:[#allocation111_spill] sm:$0xff] %v14105_v61  ;;  %vm16774_vm6 = vcmp.ne.s32.totalorder %v17266_v34, 31  ;;  %v539_v56 = vand.u32 31, %v14030_v18  ;;  %v14129_v29 = vadd.f32 %v3623_v44, %v2722_v28  ;;  %v17268_v16 = vld [vmem:[#allocation64_spill] sm:$0xff]  ;;  %v3622_v17 = vsel %vm16772_vm9, %v3183_v52, 0.0  ;;  %10697 = vmatprep.mubr.msk.f32.mxu1 %vm1160_vm0, %v9007_v15  ;;  %10795 = vmatprep.mubr.msk.f32.mxu0 %vm1160_vm0, %v9137_v32 }
 0x149   : > { %v14120_v26 = vsel %vm528_vm2, %v13993_v53, %v17264_v49  ;;  %v526_v41 = vsub.s32 0, %v17265_v46  ;;  %v2721_v4 = vadd.f32 %v2474_v23, %v17268_v16  ;;  %vm863_vm2 = vcmp.lt.s32.totalorder %v13989_v35, 0  ;;  %v10452_v33 = vpop.f32.mrf.mxu1  ;;  %v10550_v49 = vpop.f32.mrf.mxu0  ;;  %v17271_v46 = vld [vmem:[#allocation106_spill] sm:$0xff]  ;;  %v9008_v30 = vld [vmem:[%s11373_s30 + $0x1f7] sm:$0xff] }
 0x14a   : > { %17267 = vst [vmem:[#allocation112_spill] sm:$0xff] %v14129_v29  ;;  %v991_v53 = vadd.s32 32, %v13989_v35  ;;  %vm542_vm5 = vcmp.lt.s32.totalorder %v13880_v10, 0  ;;  %vm16780_vm1 = vcmp.ne.s32.totalorder %v13447_v37, 31  ;;  %vm16792_vm14 = vcmp.ne.s32.totalorder %v13918_v36, 0  ;;  %v9138_v11 = vld [vmem:[%s11373_s30 + $0x1f8] sm:$0xff]  ;;  %vm14167_vm3 = vmand %vm863_vm2, %vm799_vm7 }
 0x14b   : > { %v17269_v18 = vand.u32 31, %v13977_v59  ;;  %v14143_v44 = vadd.f32 %v3622_v17, %v2721_v4  ;;  %v2724_v23 = vadd.f32 %v10452_v33, %v17271_v46  ;;  %v3625_v52 = vsel %vm16774_vm6, %v10550_v49, 0.0  ;;  %v2484_v17 = vpop.f32.mrf.mxu1  ;;  %v3193_v33 = vpop.f32.mrf.mxu0  ;;  %v9009_v49 = vld [vmem:[%s11373_s30 + $0x1ff] sm:$0xff]  ;;  %v17276_v46 = vld [vmem:[#allocation84_spill] sm:$0xff]  ;;  %10698 = vmatmul.mubr.msk.f32.gmra.mxu1 %vm1160_vm0, %v9008_v30  ;;  %10796 = vmatmul.mubr.msk.f32.gmra.mxu0 %vm1160_vm0, %v9138_v11  ;;  %v9010_v11 = vld [vmem:[%s11373_s30 + $0x207] sm:$0xff] }
 0x14c   : > { %vm802_vm9 = vcmp.ne.s32.totalorder %v14120_v26, 0  ;;  %vm866_vm8 = vcmp.lt.s32.totalorder %v14120_v26, 0  ;;  %v17272_v16 = vand.u32 31, %v13967_v8  ;;  %vm16779_vm6 = vcmp.ne.s32.totalorder %v13586_v55, 31  ;;  %v9139_v15 = vld [vmem:[%s11373_s30 + $0x200] sm:$0xff]  ;;  %10700 = vmatprep.mubr.msk.f32.mxu1 %vm1160_vm0, %v9009_v49  ;;  %v9345_v55 = vld [vmem:[%s11373_s30 + $0x6f] sm:$0xff] }
 0x14d   : > { %v547_v28 = vsub.s32 0, %v17269_v18  ;;  %17270 = vst [vmem:[#allocation64_spill] sm:$0xff] %v14143_v44  ;;  %v540_v18 = vsub.s32 0, %v539_v56  ;;  %v14171_v8 = vadd.f32 %v3625_v52, %v2724_v23  ;;  %v2723_v2 = vadd.f32 %v2484_v17, %v13900_v21  ;;  %v10455_v44 = vpop.f32.mrf.mxu1  ;;  %v10553_v45 = vpop.f32.mrf.mxu0  ;;  %v17277_v21 = vld [vmem:[#allocation86_spill] sm:$0xff]  ;;  %10798 = vmatprep.mubr.msk.f32.mxu0 %vm1160_vm0, %v9139_v15  ;;  %v17362_v19 = vld [vmem:[#allocation61_spill] sm:$0xff] }
 0x14e   : > { %v14158_v4 = vsel %vm521_vm13, %v526_v41, %v17272_v16  ;;  %v3624_v41 = vsel %vm16780_vm1, %v3193_v33, 0.0  ;;  %v1954_v16 = vsel %vm16781_vm11, %v17276_v46, 0.0  ;;  %v994_v34 = vadd.s32 32, %v14120_v26  ;;  %v9140_v46 = vld [vmem:[%s11373_s30 + $0x208] sm:$0xff]  ;;  %v17341_v22 = vld [vmem:[#allocation94_spill] sm:$0xff] }
 0x14f   : > { %17275 = vst [vmem:[#allocation106_spill] sm:$0xff] %v14171_v8  ;;  %vm535_vm7 = vcmp.lt.s32.totalorder %v13937_v13, 0  ;;  %vm16783_vm13 = vcmp.ne.s32.totalorder %v13720_v63, 31  ;;  %vm703_vm2 = vcmp.lt.s32.totalorder %v17277_v21, 0  ;;  %v17278_v23 = vand.u32 31, %v13977_v59  ;;  %v3203_v59 = vpop.f32.mrf.mxu0  ;;  %10701 = vmatmul.mubr.msk.f32.gmra.mxu1 %vm1160_vm0, %v9010_v11  ;;  %10799 = vmatmul.mubr.msk.f32.gmra.mxu0 %vm1160_vm0, %v9140_v46  ;;  %v9143_v46 = vld [vmem:[%s11373_s30 + $0x220] sm:$0xff] }
 0x150   : > { %v14191_v17 = vadd.f32 %v3624_v41, %v2723_v2  ;;  %v2726_v33 = vadd.f32 %v10455_v44, %v13905_v42  ;;  %v3627_v30 = vsel %vm16779_vm6, %v10553_v45, 0.0  ;;  %v14203_v10 = vsel %vm14167_vm3, %v991_v53, %v13989_v35  ;;  %v2494_v45 = vpop.f32.mrf.mxu1  ;;  %v9141_v44 = vld [vmem:[%s11373_s30 + $0x210] sm:$0xff]  ;;  %v17288_v42 = vld [vmem:[#allocation38_spill] sm:$0xff] }
 0x151   : > { %v14189_v52 = vsel %vm542_vm5, %v547_v28, %v17278_v23  ;;  %17280 = vst [vmem:[#allocation86_spill] sm:$0xff] %v14203_v10  ;;  %vm14209_vm5 = vmand %vm866_vm8, %vm802_vm9  ;;  %vm801_vm6 = vcmp.ne.s32.totalorder %v14158_v4, 0  ;;  %vm865_vm1 = vcmp.lt.s32.totalorder %v14158_v4, 0  ;;  %vm16782_vm11 = vcmp.ne.s32.totalorder %v13735_v50, 31  ;;  %v9011_v28 = vld [vmem:[%s11373_s30 + $0x20f] sm:$0xff]  ;;  %v10556_v41 = vpop.f32.mrf.mxu0  ;;  %10801 = vmatprep.mubr.msk.f32.mxu0 %vm1160_vm0, %v9141_v44  ;;  %v17329_v8 = vld [vmem:[#allocation2_spill] sm:$0xff] }
 0x152   : > { %17279 = vst [vmem:[#allocation84_spill] sm:$0xff] %v14191_v17  ;;  %v14220_v35 = vsel %vm535_vm7, %v540_v18, %v539_v56  ;;  %v14222_v53 = vadd.f32 %v3627_v30, %v2726_v33  ;;  %v2725_v49 = vadd.f32 %v2494_v45, %v13950_v24  ;;  %v3626_v15 = vsel %vm16783_vm13, %v3203_v59, 0.0  ;;  %v10458_v2 = vpop.f32.mrf.mxu1  ;;  %vm14242_vm7 = vmand %vm865_vm1, %vm801_vm6  ;;  %10703 = vmatprep.mubr.msk.f32.mxu1 %vm1160_vm0, %v9011_v28  ;;  %v17367_v9 = vld [vmem:[#allocation30_spill] sm:$0xff] }
 0x153   : > { %v993_v32 = vadd.s32 32, %v14158_v4  ;;  %vm804_vm3 = vcmp.ne.s32.totalorder %v14189_v52, 0  ;;  %vm868_vm8 = vcmp.lt.s32.totalorder %v14189_v52, 0  ;;  %vm16788_vm9 = vcmp.ne.s32.totalorder %v13845_v38, 31  ;;  %v3213_v11 = vpop.f32.mrf.mxu0 }
 0x154   : > { %17283 = vst [vmem:[#allocation113_spill] sm:$0xff] %v14222_v53  ;;  %v14236_v13 = vsel %vm14209_vm5, %v994_v34, %v14120_v26  ;;  %v14246_v56 = vadd.f32 %v3626_v15, %v2725_v49  ;;  %v2728_v18 = vadd.f32 %v10458_v2, %v13955_v20  ;;  %v3629_v23 = vsel %vm16782_vm11, %v10556_v41, 0.0  ;;  %v9012_v26 = vld [vmem:[%s11373_s30 + $0x217] sm:$0xff]  ;;  %v2504_v30 = vpop.f32.mrf.mxu1  ;;  %v9013_v20 = vld [vmem:[%s11373_s30 + $0x21f] sm:$0xff]  ;;  %vm14268_vm4 = vmand %vm868_vm8, %vm804_vm3 }
 0x155   : > { %17284 = vst [vmem:[#allocation114_spill] sm:$0xff] %v14236_v13  ;;  %v9142_v34 = vld [vmem:[%s11373_s30 + $0x218] sm:$0xff]  ;;  %v996_v33 = vadd.s32 32, %v14189_v52  ;;  %vm803_vm1 = vcmp.ne.s32.totalorder %v14220_v35, 0  ;;  %vm867_vm6 = vcmp.lt.s32.totalorder %v14220_v35, 0  ;;  %vm16791_vm5 = vcmp.ne.s32.totalorder %v13918_v36, 31  ;;  %10704 = vmatmul.mubr.msk.f32.gmra.mxu1 %vm1160_vm0, %v9012_v26 }
 0x156   : > { %17287 = vst [vmem:[#allocation115_spill] sm:$0xff] %v14246_v56  ;;  %vm828_vm11 = vcmp.ne.s32.totalorder %v17288_v42, 0  ;;  %vm892_vm13 = vcmp.lt.s32.totalorder %v17288_v42, 0  ;;  %vm16798_vm12 = vcmp.ne.s32.totalorder %v14203_v10, 0  ;;  %v14272_v59 = vadd.f32 %v3629_v23, %v2728_v18  ;;  %v17292_v49 = vld [vmem:[#allocation89_spill] sm:$0xff]  ;;  %v10461_v50 = vpop.f32.mrf.mxu1  ;;  %v10559_v18 = vpop.f32.mrf.mxu0  ;;  %10802 = vmatmul.mubr.msk.f32.gmra.mxu0 %vm1160_vm0, %v9142_v34  ;;  %10706 = vmatprep.mubr.msk.f32.mxu1 %vm1160_vm0, %v9013_v20  ;;  %v9014_v26 = vld [vmem:[%s11373_s30 + $0x227] sm:$0xff] }
 0x157   : > { %v2727_v28 = vadd.f32 %v2504_v30, %v1954_v16  ;;  %v3628_v44 = vsel %vm16788_vm9, %v3213_v11, 0.0  ;;  %v1957_v15 = vsel %vm16792_vm14, %v17292_v49, 0.0  ;;  %v14282_v2 = vsel %vm14242_vm7, %v993_v32, %v14158_v4  ;;  %v17294_v16 = vld [vmem:[#allocation20_spill] sm:$0xff]  ;;  %vm14294_vm7 = vmand %vm867_vm6, %vm803_vm1  ;;  %10804 = vmatprep.mubr.msk.f32.mxu0 %vm1160_vm0, %v9143_v46  ;;  %v9144_v34 = vld [vmem:[%s11373_s30 + $0x228] sm:$0xff] }
 0x158   : > { %17291 = vst [vmem:[#allocation38_spill] sm:$0xff] %v14272_v59  ;;  %17293 = vst [vmem:[#allocation89_spill] sm:$0xff] %v14282_v2  ;;  %v995_v41 = vadd.s32 32, %v14220_v35  ;;  %vm16795_vm3 = vcmp.ne.s32.totalorder %v14203_v10, 31  ;;  %vm1779_vm8 = vcmp.ne.s32.totalorder %v17294_v16, 0  ;;  %vm16797_vm9 = vcmp.ne.s32.totalorder %v14236_v13, 0 }
 0x159   : > { %v14298_v32 = vadd.f32 %v3628_v44, %v2727_v28  ;;  %v2730_v24 = vadd.f32 %v10461_v50, %v1957_v15  ;;  %v3631_v23 = vsel %vm16791_vm5, %v10559_v18, 0.0  ;;  %v17298_v30 = vld [vmem:[#allocation57_spill] sm:$0xff]  ;;  %v17299_v49 = vld [vmem:[#allocation92_spill] sm:$0xff]  ;;  %v14316_v50 = vsel %vm14268_vm4, %v996_v33, %v14189_v52  ;;  %v2514_v28 = vpop.f32.mrf.mxu1  ;;  %v3223_v44 = vpop.f32.mrf.mxu0  ;;  %v17301_v15 = vld [vmem:[#allocation22_spill] sm:$0xff]  ;;  %10707 = vmatmul.mubr.msk.f32.gmra.mxu1 %vm1160_vm0, %v9014_v26 }
 0x15a   : > { %v14308_v11 = vadd.s32 %v11600_v48, %v17298_v30  ;;  %v1956_v38 = vsel %vm16798_vm12, %v17299_v49, 0.0  ;;  %17300 = vst [vmem:[#allocation57_spill] sm:$0xff] %v14316_v50  ;;  %vm16796_vm1 = vcmp.ne.s32.totalorder %v14236_v13, 31  ;;  %v9015_v20 = vld [vmem:[%s11373_s30 + $0x22f] sm:$0xff]  ;;  %vm16837_vm6 = vcmp.ne.s32.totalorder %v17301_v15, 0  ;;  %v17304_v52 = vld [vmem:[#allocation101_spill] sm:$0xff]  ;;  %10805 = vmatmul.mubr.msk.f32.gmra.mxu0 %vm1160_vm0, %v9144_v34 }
 0x15b   : > { %17297 = vst [vmem:[#allocation116_spill] sm:$0xff] %v14298_v32  ;;  %v9145_v46 = vld [vmem:[%s11373_s30 + $0x230] sm:$0xff]  ;;  %vm16799_vm14 = vcmp.ne.s32.totalorder %v14282_v2, 0  ;;  %v14324_v30 = vadd.f32 %v3631_v23, %v2730_v24  ;;  %v2729_v49 = vadd.f32 %v2514_v28, %v1956_v38  ;;  %v3630_v45 = vsel %vm16795_vm3, %v3223_v44, 0.0  ;;  %v10464_v24 = vpop.f32.mrf.mxu1  ;;  %v10562_v23 = vpop.f32.mrf.mxu0  ;;  %10709 = vmatprep.mubr.msk.f32.mxu1 %vm1160_vm0, %v9015_v20  ;;  %v9146_v4 = vld [vmem:[%s11373_s30 + $0x238] sm:$0xff]  ;;  %v17311_v26 = vld [vmem:[#allocation34_spill] sm:$0xff] }
 0x15c   : > { %v17302_v18 = vld [vmem:[#allocation24_spill] sm:$0xff]  ;;  %v17305_v33 = vand.u32 31, %v17304_v52  ;;  %v14341_v38 = vsel %vm14294_vm7, %v995_v41, %v14220_v35  ;;  %vm16806_vm4 = vcmp.ne.s32.totalorder %v14282_v2, 31  ;;  %vm16807_vm3 = vcmp.ne.s32.totalorder %v14316_v50, 0  ;;  %10807 = vmatprep.mubr.msk.f32.mxu0 %vm1160_vm0, %v9145_v46  ;;  %v17313_v52 = vld [vmem:[#allocation99_spill] sm:$0xff]  ;;  %v9343_v20 = vld [vmem:[%s11373_s30 + $0x5f] sm:$0xff] }
 0x15d   : > { %vm16835_vm5 = vcmp.ne.s32.totalorder %v17302_v18, 0  ;;  %17303 = vst [vmem:[#allocation92_spill] sm:$0xff] %v14324_v30  ;;  %v17306_v36 = vld [vmem:[#allocation40_spill] sm:$0xff]  ;;  %17308 = vst [vmem:[#allocation101_spill] sm:$0xff] %v14341_v38  ;;  %v14348_v21 = vadd.f32 %v3630_v45, %v2729_v49  ;;  %v3633_v35 = vsel %vm16796_vm1, %v10562_v23, 0.0  ;;  %vm16829_vm7 = vcmp.ne.s32.totalorder %v17311_v26, 0  ;;  %v3233_v45 = vpop.f32.mrf.mxu0 }
 0x15e   : > { %v14333_v32 = vsel %vm703_vm2, %v17306_v36, %v17305_v33  ;;  %v17307_v59 = vld [vmem:[#allocation96_spill] sm:$0xff]  ;;  %v718_v44 = vsub.s32 0, %v14308_v11  ;;  %v1958_v49 = vsel %vm16799_vm14, %v17313_v52, 0.0  ;;  %vm16808_vm1 = vcmp.ne.s32.totalorder %v14316_v50, 31  ;;  %v9213_v33 = vld [vmem:[%s11373_s30 + $0x41] sm:$0xff]  ;;  %10808 = vmatmul.mubr.msk.f32.gmra.mxu0 %vm1160_vm0, %v9146_v4  ;;  %v9216_v4 = vld [vmem:[%s11373_s30 + $0x59] sm:$0xff] }
 0x15f   : > { %v1959_v56 = vsel %vm16797_vm9, %v17307_v59, 0.0  ;;  %v17309_v36 = vld [vmem:[#allocation28_spill] sm:$0xff]  ;;  %17310 = vst [vmem:[#allocation40_spill] sm:$0xff] %v14348_v21  ;;  %vm1768_vm12 = vcmp.ne.s32.totalorder %v14341_v38, 0  ;;  %v3632_v28 = vsel %vm16806_vm4, %v3233_v45, 0.0  ;;  %v1020_v52 = vadd.s32 32, %v17288_v42  ;;  %v10565_v30 = vpop.f32.mrf.mxu0  ;;  %10910 = vmatprep.mubr.msk.f32.mxu0 %vm1160_vm0, %v9343_v20 }
 0x160   : > { %vm16832_vm2 = vcmp.ne.s32.totalorder %v17309_v36, 0  ;;  %v2732_v59 = vadd.f32 %v10464_v24, %v1959_v56  ;;  %v9016_v41 = vld [vmem:[%s11373_s30 + $0x237] sm:$0xff]  ;;  %v2524_v56 = vpop.f32.mrf.mxu1  ;;  %vm827_vm14 = vcmp.ne.s32.totalorder %v14333_v32, 0  ;;  %v17316_v13 = vld [vmem:[#allocation102_spill] sm:$0xff]  ;;  %vm16819_vm10 = vcmp.ne.s32.totalorder %v14341_v38, 31 }
 0x161   : > { %v17312_v34 = vld [vmem:[#allocation48_spill] sm:$0xff]  ;;  %v2731_v23 = vadd.f32 %v2524_v56, %v1958_v49  ;;  %v1961_v21 = vsel %vm16807_vm3, %v17316_v13, 0.0  ;;  %10710 = vmatmul.mubr.msk.f32.gmra.mxu1 %vm1160_vm0, %v9016_v41  ;;  %vm891_vm15 = vcmp.lt.s32.totalorder %v14333_v32, 0  ;;  %v3635_v49 = vsel %vm16808_vm1, %v10565_v30, 0.0  ;;  %v9344_v56 = vld [vmem:[%s11373_s30 + $0x67] sm:$0xff]  ;;  %vm14393_vm3 = vmand %vm892_vm13, %vm828_vm11  ;;  %v3243_v20 = vpop.f32.mrf.mxu0 }
 0x162   : > { %v17314_v24 = vld [vmem:[#allocation36_spill] sm:$0xff]  ;;  %v14367_v46 = vadd.f32 %v3633_v35, %v2732_v59  ;;  %v10467_v10 = vpop.f32.mrf.mxu1  ;;  %10812 = vmatprep.mubr.msk.f32.mxu1 %vm1160_vm0, %v9213_v33  ;;  %v17318_v41 = vld [vmem:[#allocation50_spill] sm:$0xff]  ;;  %v17322_v30 = vand.u32 31, %v17312_v34  ;;  %v14407_v2 = vmin.u32 %v718_v44, %v14308_v11  ;;  %v1019_v37 = vadd.s32 32, %v14333_v32  ;;  %10911 = vmatmul.mubr.msk.f32.vlgmr.msra.gmra.mxu0 %vm1160_vm0, %v9344_v56 }
 0x163   : > { %v14380_v59 = vadd.f32 %v3632_v28, %v2731_v23  ;;  %v2734_v35 = vadd.f32 %v10467_v10, %v1961_v21  ;;  %v9214_v13 = vld [vmem:[%s11373_s30 + $0x49] sm:$0xff]  ;;  %v17321_v10 = vld [vmem:[#allocation105_spill] sm:$0xff]  ;;  %v255_v29 = vadd.s32 472, %v17329_v8  ;;  %10913 = vmatprep.mubr.msk.f32.mxu0 %vm1160_vm0, %v9345_v55 }
 0x164   : > { %17315 = vst [vmem:[#allocation96_spill] sm:$0xff] %v14367_v46  ;;  %vm724_vm1 = vcmp.lt.s32.totalorder %v17321_v10, 0  ;;  %v729_v21 = vsub.s32 0, %v17322_v30  ;;  %v17323_v28 = vld [vmem:[#allocation31_spill] sm:$0xff]  ;;  %v2534_v33 = vpop.f32.mrf.mxu1  ;;  %v17324_v23 = vld [vmem:[#allocation4_spill] sm:$0xff]  ;;  %v3634_v30 = vsel %vm16819_vm10, %v3243_v20, 0.0  ;;  %vm14434_vm10 = vmand %vm891_vm15, %vm827_vm14 }
 0x165   : > { %17317 = vst [vmem:[#allocation48_spill] sm:$0xff] %v14380_v59  ;;  %v1960_v45 = vsel %vm1768_vm12, %v17323_v28, 0.0  ;;  %vm16828_vm4 = vcmp.ne.s32.totalorder %v17324_v23, 31  ;;  %v17325_v50 = vld [vmem:[#allocation56_spill] sm:$0xff]  ;;  %v17326_v59 = vld [vmem:[#allocation66_spill] sm:$0xff]  ;;  %v14409_v46 = vadd.f32 %v3635_v49, %v2734_v35  ;;  %v17328_v28 = vld [vmem:[#allocation43_spill] sm:$0xff]  ;;  %v10568_v35 = vpop.f32.mrf.mxu0  ;;  %10813 = vmatmul.mubr.msk.f32.vlgmr.msra.gmra.mxu1 %vm1160_vm0, %v9214_v13 }
 0x166   : > { %vm1784_vm9 = vcmp.ne.s32.totalorder %v17325_v50, 0  ;;  %vm1787_vm11 = vcmp.ne.s32.totalorder %v17326_v59, 0  ;;  %v2733_v63 = vadd.f32 %v2534_v33, %v1960_v45  ;;  %v9215_v53 = vld [vmem:[%s11373_s30 + $0x51] sm:$0xff]  ;;  %v14418_v17 = vsel %vm1779_vm8, %v17328_v28, 0.0  ;;  %v10470_v44 = vpop.f32.mrf.mxu1  ;;  %v17330_v49 = vld [vmem:[#allocation6_spill] sm:$0xff]  ;;  %v17334_v13 = vld [vmem:[#allocation91_spill] sm:$0xff] }
 0x167   : > { %17327 = vst [vmem:[#allocation99_spill] sm:$0xff] %v14409_v46  ;;  %vm16827_vm13 = vcmp.ne.s32.totalorder %v17330_v49, 31  ;;  %v14428_v45 = vsel %vm14393_vm3, %v1020_v52, %v17288_v42  ;;  %v2736_v28 = vadd.f32 %v10470_v44, %v17334_v13  ;;  %v3637_v56 = vsel %vm16828_vm4, %v10568_v35, 0.0  ;;  %v11261_v42 = vld [vmem:[%s16658_s1 + $0x38] sm:$0xff]  ;;  %v11262_v52 = vld [vmem:[%s16658_s1 + $0x40] sm:$0xff]  ;;  %v17336_v35 = vld [vmem:[#allocation47_spill] sm:$0xff]  ;;  %v3253_v38 = vpop.f32.mrf.mxu0  ;;  %10815 = vmatprep.mubr.msk.f32.mxu1 %vm1160_vm0, %v9215_v53 }
 0x168   : > { %v14438_v20 = vadd.f32 %v3634_v30, %v2733_v63  ;;  %11007 = vmatpush3.msra.mxu1 %v11261_v42  ;;  %11105 = vmatpush3.msra.mxu0 %v11262_v52  ;;  %v9346_v63 = vld [vmem:[%s11373_s30 + $0x77] sm:$0xff]  ;;  %v14459_v13 = vsel %vm16835_vm5, %v17336_v35, 0.0  ;;  %v17337_v23 = vld [vmem:[#allocation71_spill] sm:$0xff]  ;;  %v17338_v42 = vand.u32 31, %v17312_v34  ;;  %v2544_v52 = vpop.f32.mrf.mxu1  ;;  %v721_v35 = vand.u32 31, %v14407_v2 }
 0x169   : > { %v17335_v30 = vld [vmem:[#allocation45_spill] sm:$0xff]  ;;  %vm16852_vm15 = vcmp.ne.s32.totalorder %v17337_v23, 0  ;;  %v9217_v46 = vld [vmem:[%s11373_s30 + $0x61] sm:$0xff]  ;;  %v14474_v61 = vadd.f32 %v3637_v56, %v2736_v28  ;;  %v2735_v34 = vadd.f32 %v2544_v52, %v17341_v22  ;;  %v3636_v10 = vsel %vm16827_vm13, %v3253_v38, 0.0  ;;  %v17343_v55 = vld [vmem:[#allocation76_spill] sm:$0xff]  ;;  %v10571_v56 = vpop.f32.mrf.mxu0  ;;  %10816 = vmatmul.mubr.msk.f32.gmra.mxu1 %vm1160_vm0, %v9216_v4  ;;  %10914 = vmatmul.mubr.msk.f32.gmra.mxu0 %vm1160_vm0, %v9346_v63 }
 0x16a   : > { %17333 = vst [vmem:[#allocation102_spill] sm:$0xff] %v14438_v20  ;;  %v14454_v44 = vsel %vm16837_vm6, %v17335_v30, 0.0  ;;  %v14466_v20 = vsel %vm724_vm1, %v729_v21, %v17338_v42  ;;  %v17339_v30 = vld [vmem:[#allocation8_spill] sm:$0xff]  ;;  %v17342_v21 = vld [vmem:[#allocation49_spill] sm:$0xff]  ;;  %vm16850_vm3 = vcmp.ne.s32.totalorder %v17343_v55, 0  ;;  %v14488_v2 = vsel %vm14434_vm10, %v1019_v37, %v14333_v32  ;;  %v10473_v22 = vpop.f32.mrf.mxu1  ;;  %v17344_v38 = vld [vmem:[#allocation10_spill] sm:$0xff]  ;;  %10818 = vmatprep.mubr.msk.f32.mxu1 %vm1160_vm0, %v9217_v46  ;;  %10916 = vmatprep.mubr.msk.f32.mxu0 %vm1160_vm0, %v9347_v12 }
 0x16b   : > { %vm16830_vm14 = vcmp.ne.s32.totalorder %v17339_v30, 31  ;;  %17340 = vst [vmem:[#allocation105_spill] sm:$0xff] %v14474_v61  ;;  %v14482_v53 = vsel %vm16832_vm2, %v17342_v21, 0.0  ;;  %v14491_v28 = vadd.s32 %v11600_v48, %v255_v29  ;;  %vm16836_vm1 = vcmp.ne.s32.totalorder %v17344_v38, 31  ;;  %v17345_v42 = vld [vmem:[#allocation52_spill] sm:$0xff]  ;;  %v17347_v32 = vld [vmem:[#allocation98_spill] sm:$0xff] }
 0x16c   : > { %v14499_v52 = vsel %vm16829_vm7, %v17345_v42, 0.0  ;;  %v14501_v37 = vadd.f32 %v3636_v10, %v2735_v34  ;;  %v2738_v29 = vadd.f32 %v10473_v22, %v17347_v32  ;;  %v3639_v33 = vsel %vm16830_vm14, %v10571_v56, 0.0  ;;  %v9218_v4 = vld [vmem:[%s11373_s30 + $0x69] sm:$0xff]  ;;  %v2554_v34 = vpop.f32.mrf.mxu1  ;;  %v3263_v10 = vpop.f32.mrf.mxu0  ;;  %v9219_v56 = vld [vmem:[%s11373_s30 + $0x71] sm:$0xff]  ;;  %v17353_v30 = vld [vmem:[#allocation26_spill] sm:$0xff] }
 0x16d   : > { %v9348_v63 = vld [vmem:[%s11373_s30 + $0x87] sm:$0xff]  ;;  %vm17349_vm10 = vcmp.ne.s32.totalorder %v17314_v24, 0  ;;  %vm830_vm13 = vcmp.ne.s32.totalorder %v14466_v20, 0  ;;  %vm894_vm4 = vcmp.lt.s32.totalorder %v14466_v20, 0  ;;  %v17350_v22 = vld [vmem:[#allocation12_spill] sm:$0xff]  ;;  %v722_v12 = vsub.s32 0, %v721_v35  ;;  %10819 = vmatmul.mubr.msk.f32.gmra.mxu1 %vm1160_vm0, %v9218_v4 }
 0x16e   : > { %17346 = vst [vmem:[#allocation31_spill] sm:$0xff] %v14501_v37  ;;  %v17348_v21 = vld [vmem:[#allocation55_spill] sm:$0xff]  ;;  %vm16846_vm7 = vcmp.ne.s32.totalorder %v17350_v22, 31  ;;  %v14521_v32 = vadd.f32 %v3639_v33, %v2738_v29  ;;  %v2737_v37 = vadd.f32 %v2554_v34, %v17353_v30  ;;  %v17354_v61 = vld [vmem:[#allocation88_spill] sm:$0xff]  ;;  %v1022_v6 = vadd.s32 32, %v14466_v20  ;;  %v10476_v7 = vpop.f32.mrf.mxu1  ;;  %v10574_v25 = vpop.f32.mrf.mxu0  ;;  %10917 = vmatmul.mubr.msk.f32.gmra.mxu0 %vm1160_vm0, %v9348_v63  ;;  %v17355_v30 = vld [vmem:[#allocation14_spill] sm:$0xff]  ;;  %10821 = vmatprep.mubr.msk.f32.mxu1 %vm1160_vm0, %v9219_v56 }
 0x16f   : > { %v14513_v49 = vsel %vm17349_vm10, %v17348_v21, 0.0  ;;  %v9349_v42 = vld [vmem:[%s11373_s30 + $0x8f] sm:$0xff]  ;;  %v3638_v21 = vsel %vm16836_vm1, %v3263_v10, 0.0  ;;  %vm16877_vm10 = vcmp.ne.s32.totalorder %v17354_v61, 0  ;;  %vm717_vm2 = vcmp.lt.s32.totalorder %v14308_v11, 0  ;;  %v17356_v29 = vld [vmem:[#allocation58_spill] sm:$0xff]  ;;  %vm14542_vm6 = vmand %vm894_vm4, %vm830_vm13 }
 0x170   : > { %v17351_v46 = vld [vmem:[#allocation83_spill] sm:$0xff]  ;;  %17352 = vst [vmem:[#allocation66_spill] sm:$0xff] %v14521_v32  ;;  %v739_v62 = vsub.s32 0, %v14491_v28  ;;  %vm16845_vm5 = vcmp.ne.s32.totalorder %v17355_v30, 31  ;;  %vm17357_vm1 = vcmp.ne.s32.totalorder %v17318_v41, 0  ;;  %v14546_v4 = vadd.f32 %v3638_v21, %v2737_v37  ;;  %v17361_v63 = vld [vmem:[#allocation29_spill] sm:$0xff]  ;;  %10919 = vmatprep.mubr.msk.f32.mxu0 %vm1160_vm0, %v9349_v42  ;;  %v2564_v21 = vpop.f32.mrf.mxu1 }
 0x171   : > { %vm1788_vm14 = vcmp.ne.s32.totalorder %v17351_v46, 0  ;;  %v14536_v33 = vsel %vm17357_vm1, %v17356_v29, 0.0  ;;  %v2740_v10 = vadd.f32 %v10476_v7, %v17361_v63  ;;  %v3641_v38 = vsel %vm16846_vm7, %v10574_v25, 0.0  ;;  %v9220_v29 = vld [vmem:[%s11373_s30 + $0x79] sm:$0xff]  ;;  %v3273_v25 = vpop.f32.mrf.mxu0  ;;  %v17364_v63 = vld [vmem:[#allocation16_spill] sm:$0xff]  ;;  %v9221_v56 = vld [vmem:[%s11373_s30 + $0x81] sm:$0xff] }
 0x172   : > { %17360 = vst [vmem:[#allocation43_spill] sm:$0xff] %v14546_v4  ;;  %v9350_v32 = vld [vmem:[%s11373_s30 + $0x97] sm:$0xff]  ;;  %v14558_v5 = vsel %vm1784_vm9, %v17362_v19, 0.0  ;;  %v14563_v37 = vsel %vm1787_vm11, %v17363_v0, 0.0  ;;  %v254_v7 = vadd.s32 464, %v17329_v8  ;;  %vm16847_vm4 = vcmp.ne.s32.totalorder %v17364_v63, 31  ;;  %10822 = vmatmul.mubr.msk.f32.gmra.mxu1 %vm1160_vm0, %v9220_v29 }
 0x173   : > { %v9351_v42 = vld [vmem:[%s11373_s30 + $0x9f] sm:$0xff]  ;;  %v17365_v22 = vld [vmem:[#allocation27_spill] sm:$0xff]  ;;  %v14572_v4 = vsel %vm717_vm2, %v722_v12, %v721_v35  ;;  %v14574_v19 = vadd.f32 %v3641_v38, %v2740_v10  ;;  %v2739_v1 = vadd.f32 %v2564_v21, %v17367_v9  ;;  %v3640_v0 = vsel %vm16845_vm5, %v3273_v25, 0.0  ;;  %v10479_v35 = vpop.f32.mrf.mxu1  ;;  %v10577_v38 = vpop.f32.mrf.mxu0  ;;  %10920 = vmatmul.mubr.msk.f32.gmra.mxu0 %vm1160_vm0, %v9350_v32  ;;  %10824 = vmatprep.mubr.msk.f32.mxu1 %vm1160_vm0, %v9221_v56 }
 0x174   : > { %vm16867_vm13 = vcmp.ne.s32.totalorder %v17365_v22, 0  ;;  %v14582_v14 = vsel %vm14542_vm6, %v1022_v6, %v14466_v20  ;;  %v14585_v31 = vmin.u32 %v739_v62, %v14491_v28  ;;  %v257_v11 = vadd.s32 488, %v17329_v8  ;;  %v17368_v9 = vld [vmem:[#allocation18_spill] sm:$0xff]  ;;  %v17369_v12 = vld [vmem:[#allocation65_spill] sm:$0xff]  ;;  %10922 = vmatprep.mubr.msk.f32.mxu0 %vm1160_vm0, %v9351_v42  ;;  %v9222_v32 = vld [vmem:[%s11373_s30 + $0x89] sm:$0xff] }
 0x175   : > { %17366 = vst [vmem:[#allocation2_spill] sm:$0xff] %v14574_v19  ;;  %vm16851_vm2 = vcmp.ne.s32.totalorder %v17368_v9, 31  ;;  %v14594_v6 = vsel %vm16852_vm15, %v17369_v12, 0.0  ;;  %vm16864_vm6 = vcmp.ne.s32.totalorder %v14428_v45, 0  ;;  %v14597_v62 = vadd.f32 %v3640_v0, %v2739_v1  ;;  %v17371_v20 = vld [vmem:[#allocation37_spill] sm:$0xff]  ;;  %v9352_v29 = vld [vmem:[%s11373_s30 + $0xa7] sm:$0xff]  ;;  %v2574_v1 = vpop.f32.mrf.mxu1  ;;  %v3283_v25 = vpop.f32.mrf.mxu0 }
 0x176   : > { %v2742_v34 = vadd.f32 %v10479_v35, %v17371_v20  ;;  %v3643_v10 = vsel %vm16847_vm4, %v10577_v38, 0.0  ;;  %vm829_vm1 = vcmp.ne.s32.totalorder %v14572_v4, 0  ;;  %vm893_vm5 = vcmp.lt.s32.totalorder %v14572_v4, 0  ;;  %v9223_v0 = vld [vmem:[%s11373_s30 + $0x91] sm:$0xff]  ;;  %v17374_v12 = vld [vmem:[#allocation39_spill] sm:$0xff]  ;;  %10825 = vmatmul.mubr.msk.f32.gmra.mxu1 %vm1160_vm0, %v9222_v32  ;;  %v9224_v32 = vld [vmem:[%s11373_s30 + $0x99] sm:$0xff] }
 0x177   : > { %17370 = vst [vmem:[#allocation91_spill] sm:$0xff] %v14597_v62  ;;  %v14609_v21 = vadd.s32 %v11600_v48, %v254_v7  ;;  %vm16860_vm7 = vcmp.ne.s32.totalorder %v17294_v16, 31  ;;  %v9353_v35 = vld [vmem:[%s11373_s30 + $0xaf] sm:$0xff]  ;;  %v17372_v38 = vld [vmem:[#allocation69_spill] sm:$0xff]  ;;  %vm16862_vm4 = vcmp.ne.s32.totalorder %v14488_v2, 0  ;;  %v2741_v20 = vadd.f32 %v2574_v1, %v17374_v12  ;;  %v10580_v19 = vpop.f32.mrf.mxu0  ;;  %10923 = vmatmul.mubr.msk.f32.gmra.mxu0 %vm1160_vm0, %v9352_v29  ;;  %10827 = vmatprep.mubr.msk.f32.mxu1 %vm1160_vm0, %v9223_v0  ;;  %v17378_v1 = vld [vmem:[#allocation70_spill] sm:$0xff] }
 0x178   : > { %v14617_v56 = vsel %vm16850_vm3, %v17372_v38, 0.0  ;;  %v14620_v42 = vadd.f32 %v3643_v10, %v2742_v34  ;;  %v3642_v7 = vsel %vm16851_vm2, %v3283_v25, 0.0  ;;  %v1021_v63 = vadd.s32 32, %v14572_v4  ;;  %v10482_v38 = vpop.f32.mrf.mxu1  ;;  %vm14637_vm2 = vmand %vm893_vm5, %vm829_vm1  ;;  %10925 = vmatprep.mubr.msk.f32.mxu0 %vm1160_vm0, %v9353_v35  ;;  %v9354_v29 = vld [vmem:[%s11373_s30 + $0xb7] sm:$0xff]  ;;  %v9226_v34 = vld [vmem:[%s11373_s30 + $0xa9] sm:$0xff] }
 0x179   : > { %v742_v62 = vand.u32 31, %v14585_v31  ;;  %v14628_v30 = vadd.s32 %v11600_v48, %v257_v11  ;;  %vm16858_vm3 = vcmp.ne.s32.totalorder %v17301_v15, 31  ;;  %vm738_vm15 = vcmp.lt.s32.totalorder %v14491_v28, 0  ;;  %v17379_v0 = vld [vmem:[#allocation73_spill] sm:$0xff] }
 0x17a   : > { %17373 = vst [vmem:[#allocation45_spill] sm:$0xff] %v14620_v42  ;;  %v14642_v31 = vadd.f32 %v3642_v7, %v2741_v20  ;;  %v2744_v11 = vadd.f32 %v10482_v38, %v14418_v17  ;;  %v3645_v10 = vsel %vm16860_vm7, %v10580_v19, 0.0  ;;  %v14654_v25 = vsel %vm1788_vm14, %v17378_v1, 0.0  ;;  %v2584_v7 = vpop.f32.mrf.mxu1  ;;  %v3293_v17 = vpop.f32.mrf.mxu0  ;;  %v9225_v19 = vld [vmem:[%s11373_s30 + $0xa1] sm:$0xff]  ;;  %10828 = vmatmul.mubr.msk.f32.gmra.mxu1 %vm1160_vm0, %v9224_v32 }
 0x17b   : > { %v732_v12 = vsub.s32 0, %v14609_v21  ;;  %v256_v20 = vadd.s32 480, %v17329_v8  ;;  %vm16855_vm5 = vcmp.ne.s32.totalorder %v17302_v18, 31  ;;  %v9355_v38 = vld [vmem:[%s11373_s30 + $0xbf] sm:$0xff]  ;;  %v14664_v35 = vsel %vm16877_vm10, %v17379_v0, 0.0  ;;  %10926 = vmatmul.mubr.msk.f32.gmra.mxu0 %vm1160_vm0, %v9354_v29  ;;  %10830 = vmatprep.mubr.msk.f32.mxu1 %vm1160_vm0, %v9225_v19  ;;  %v17380_v32 = vld [vmem:[#allocation75_spill] sm:$0xff] }
 0x17c   : > { %17377 = vst [vmem:[#allocation47_spill] sm:$0xff] %v14642_v31  ;;  %v14666_v16 = vadd.f32 %v3645_v10, %v2744_v11  ;;  %v2743_v1 = vadd.f32 %v2584_v7, %v14454_v44  ;;  %v3644_v31 = vsel %vm16858_vm3, %v3293_v17, 0.0  ;;  %v14674_v9 = vsel %vm14637_vm2, %v1021_v63, %v14572_v4  ;;  %v10485_v47 = vpop.f32.mrf.mxu1  ;;  %v10583_v0 = vpop.f32.mrf.mxu0  ;;  %10928 = vmatprep.mubr.msk.f32.mxu0 %vm1160_vm0, %v9355_v38  ;;  %v9356_v10 = vld [vmem:[%s11373_s30 + $0xc7] sm:$0xff]  ;;  %v9227_v17 = vld [vmem:[%s11373_s30 + $0xb1] sm:$0xff] }
 0x17d   : > { %v743_v42 = vsub.s32 0, %v742_v62  ;;  %v753_v58 = vsub.s32 0, %v14628_v30  ;;  %vm16857_vm1 = vcmp.ne.s32.totalorder %v17309_v36, 31  ;;  %v259_v44 = vadd.s32 504, %v17329_v8  ;;  %v9357_v19 = vld [vmem:[%s11373_s30 + $0xcf] sm:$0xff] }
 0x17e   : > { %v14681_v11 = vadd.f32 %v3644_v31, %v2743_v1  ;;  %v2746_v4 = vadd.f32 %v10485_v47, %v14459_v13  ;;  %v3647_v63 = vsel %vm16855_vm5, %v10583_v0, 0.0  ;;  %v14693_v29 = vsel %vm16867_vm13, %v17380_v32, 0.0  ;;  %v2594_v47 = vpop.f32.mrf.mxu1  ;;  %v3303_v13 = vpop.f32.mrf.mxu0  ;;  %v17381_v32 = vld [vmem:[#allocation78_spill] sm:$0xff]  ;;  %10831 = vmatmul.mubr.msk.f32.gmra.mxu1 %vm1160_vm0, %v9226_v34  ;;  %v9358_v34 = vld [vmem:[%s11373_s30 + $0xd7] sm:$0xff] }
 0x17f   : > { %v14696_v7 = vmin.u32 %v732_v12, %v14609_v21  ;;  %v14699_v31 = vadd.s32 %v11600_v48, %v256_v20  ;;  %vm16859_vm2 = vcmp.ne.s32.totalorder %v17311_v26, 31  ;;  %vm16875_vm5 = vcmp.ne.s32.totalorder %v14582_v14, 0  ;;  %10929 = vmatmul.mubr.msk.f32.gmra.mxu0 %vm1160_vm0, %v9356_v10  ;;  %10833 = vmatprep.mubr.msk.f32.mxu1 %vm1160_vm0, %v9227_v17  ;;  %v17382_v10 = vld [vmem:[#allocation80_spill] sm:$0xff] }
 0x180   : > { %v258_v38 = vadd.s32 496, %v17329_v8  ;;  %v14706_v1 = vadd.f32 %v3647_v63, %v2746_v4  ;;  %v2745_v0 = vadd.f32 %v2594_v47, %v14482_v53  ;;  %v3646_v12 = vsel %vm16857_vm1, %v3303_v13, 0.0  ;;  %v10488_v4 = vpop.f32.mrf.mxu1  ;;  %v10586_v63 = vpop.f32.mrf.mxu0  ;;  %10931 = vmatprep.mubr.msk.f32.mxu0 %vm1160_vm0, %v9357_v19 }
 0x181   : > { %v14714_v20 = vsel %vm16864_vm6, %v17381_v32, 0.0  ;;  %v14718_v18 = vsel %vm738_vm15, %v743_v42, %v742_v62  ;;  %v14721_v8 = vmin.u32 %v753_v58, %v14628_v30  ;;  %vm16863_vm1 = vcmp.ne.s32.totalorder %v17314_v24, 31  ;;  %v9228_v42 = vld [vmem:[%s11373_s30 + $0xb9] sm:$0xff] }
 0x182   : > { %vm16874_vm3 = vcmp.ne.s32.totalorder %v14674_v9, 0  ;;  %v14728_v53 = vadd.s32 %v11600_v48, %v259_v44  ;;  %v14730_v28 = vadd.f32 %v3646_v12, %v2745_v0  ;;  %v2748_v58 = vadd.f32 %v10488_v4, %v14499_v52  ;;  %v2604_v0 = vpop.f32.mrf.mxu1  ;;  %v3313_v52 = vpop.f32.mrf.mxu0  ;;  %v9229_v12 = vld [vmem:[%s11373_s30 + $0xc1] sm:$0xff]  ;;  %10834 = vmatmul.mubr.msk.f32.gmra.mxu1 %vm1160_vm0, %v9228_v42 }
 0x183   : > { %v3649_v62 = vsel %vm16859_vm2, %v10586_v63, 0.0  ;;  %v14742_v47 = vsel %vm16862_vm4, %v17382_v10, 0.0  ;;  %v735_v44 = vand.u32 31, %v14696_v7  ;;  %v746_v13 = vsub.s32 0, %v14699_v31  ;;  %v9359_v32 = vld [vmem:[%s11373_s30 + $0xdf] sm:$0xff]  ;;  %10932 = vmatmul.mubr.msk.f32.gmra.mxu0 %vm1160_vm0, %v9358_v34  ;;  %10836 = vmatprep.mubr.msk.f32.mxu1 %vm1160_vm0, %v9229_v12 }
 0x184   : > { %vm16865_vm15 = vcmp.ne.s32.totalorder %v17318_v41, 31  ;;  %v14750_v17 = vadd.s32 %v11600_v48, %v258_v38  ;;  %v14752_v19 = vadd.f32 %v3649_v62, %v2748_v58  ;;  %v2747_v4 = vadd.f32 %v2604_v0, %v14513_v49  ;;  %v10491_v10 = vpop.f32.mrf.mxu1  ;;  %v10589_v26 = vpop.f32.mrf.mxu0  ;;  %10934 = vmatprep.mubr.msk.f32.mxu0 %vm1160_vm0, %v9359_v32  ;;  %v9360_v62 = vld [vmem:[%s11373_s30 + $0xe7] sm:$0xff] }
 0x185   : > { %v3648_v63 = vsel %vm16863_vm1, %v3313_v52, 0.0  ;;  %vm832_vm2 = vcmp.ne.s32.totalorder %v14718_v18, 0  ;;  %vm896_vm7 = vcmp.lt.s32.totalorder %v14718_v18, 0  ;;  %v756_v7 = vand.u32 31, %v14721_v8  ;;  %v9230_v8 = vld [vmem:[%s11373_s30 + $0xc9] sm:$0xff] }
 0x186   : > { %vm16868_vm4 = vcmp.ne.s32.totalorder %v17325_v50, 31  ;;  %v767_v48 = vsub.s32 0, %v14728_v53  ;;  %v14764_v49 = vadd.f32 %v3648_v63, %v2747_v4  ;;  %v2750_v38 = vadd.f32 %v10491_v10, %v14536_v33  ;;  %v2614_v0 = vpop.f32.mrf.mxu1  ;;  %v3323_v52 = vpop.f32.mrf.mxu0  ;;  %v9231_v33 = vld [vmem:[%s11373_s30 + $0xd1] sm:$0xff]  ;;  %10837 = vmatmul.mubr.msk.f32.gmra.mxu1 %vm1160_vm0, %v9230_v8 }
 0x187   : > { %v3651_v58 = vsel %vm16865_vm15, %v10589_v26, 0.0  ;;  %vm731_vm1 = vcmp.lt.s32.totalorder %v14609_v21, 0  ;;  %v736_v42 = vsub.s32 0, %v735_v44  ;;  %v14775_v34 = vmin.u32 %v746_v13, %v14699_v31  ;;  %v9361_v4 = vld [vmem:[%s11373_s30 + $0xef] sm:$0xff]  ;;  %10935 = vmatmul.mubr.msk.f32.gmra.mxu0 %vm1160_vm0, %v9360_v62  ;;  %10839 = vmatprep.mubr.msk.f32.mxu1 %vm1160_vm0, %v9231_v33  ;;  %v17387_v50 = vld [vmem:[#allocation81_spill] sm:$0xff] }
 0x188   : > { %17383 = vst [vmem:[#allocation71_spill] sm:$0xff] %v14764_v49  ;;  %vm16872_vm6 = vcmp.ne.s32.totalorder %v17326_v59, 31  ;;  %v760_v26 = vsub.s32 0, %v14750_v17  ;;  %v14781_v63 = vadd.f32 %v3651_v58, %v2750_v38  ;;  %v2749_v12 = vadd.f32 %v2614_v0, %v14558_v5  ;;  %v10494_v41 = vpop.f32.mrf.mxu1  ;;  %v10592_v49 = vpop.f32.mrf.mxu0  ;;  %10937 = vmatprep.mubr.msk.f32.mxu0 %vm1160_vm0, %v9361_v4  ;;  %v9232_v0 = vld [vmem:[%s11373_s30 + $0xd9] sm:$0xff] }
 0x189   : > { %v3650_v32 = vsel %vm16868_vm4, %v3323_v52, 0.0  ;;  %v1024_v10 = vadd.s32 32, %v14718_v18  ;;  %vm752_vm15 = vcmp.lt.s32.totalorder %v14628_v30, 0  ;;  %v757_v13 = vsub.s32 0, %v756_v7  ;;  %vm14795_vm4 = vmand %vm896_vm7, %vm832_vm2  ;;  %v9362_v52 = vld [vmem:[%s11373_s30 + $0xf7] sm:$0xff]  ;;  %v9363_v33 = vld [vmem:[%s11373_s30 + $0xff] sm:$0xff] }
 0x18a   : > { %17384 = vst [vmem:[#allocation94_spill] sm:$0xff] %v14781_v63  ;;  %vm16871_vm13 = vcmp.ne.s32.totalorder %v17337_v23, 31  ;;  %v14800_v38 = vmin.u32 %v767_v48, %v14728_v53  ;;  %v14802_v58 = vadd.f32 %v3650_v32, %v2749_v12  ;;  %v2752_v8 = vadd.f32 %v10494_v41, %v14563_v37  ;;  %v2624_v37 = vpop.f32.mrf.mxu1  ;;  %v3333_v12 = vpop.f32.mrf.mxu0  ;;  %10840 = vmatmul.mubr.msk.f32.gmra.mxu1 %vm1160_vm0, %v9232_v0  ;;  %v9235_v0 = vld [vmem:[%s11373_s30 + $0xf1] sm:$0xff] }
 0x18b   : > { %v3653_v62 = vsel %vm16872_vm6, %v10592_v49, 0.0  ;;  %v14814_v63 = vsel %vm16875_vm5, %v17387_v50, 0.0  ;;  %v14818_v48 = vsel %vm731_vm1, %v736_v42, %v735_v44  ;;  %v749_v41 = vand.u32 31, %v14775_v34  ;;  %v9233_v49 = vld [vmem:[%s11373_s30 + $0xe1] sm:$0xff]  ;;  %v17388_v44 = vld [vmem:[#allocation85_spill] sm:$0xff]  ;;  %10938 = vmatmul.mubr.msk.f32.gmra.mxu0 %vm1160_vm0, %v9362_v52 }
 0x18c   : > { %vm16870_vm7 = vcmp.ne.s32.totalorder %v17343_v55, 31  ;;  %v14825_v4 = vmin.u32 %v760_v26, %v14750_v17  ;;  %v14827_v32 = vadd.f32 %v3653_v62, %v2752_v8  ;;  %v2751_v50 = vadd.f32 %v2624_v37, %v14594_v6  ;;  %v10497_v6 = vpop.f32.mrf.mxu1  ;;  %v10595_v8 = vpop.f32.mrf.mxu0  ;;  %10842 = vmatprep.mubr.msk.f32.mxu1 %vm1160_vm0, %v9233_v49  ;;  %10940 = vmatprep.mubr.msk.f32.mxu0 %vm1160_vm0, %v9363_v33 }
 0x18d   : > { %v3652_v21 = vsel %vm16871_vm13, %v3333_v12, 0.0  ;;  %v14835_v42 = vsel %vm16874_vm3, %v17388_v44, 0.0  ;;  %v14840_v34 = vsel %vm14795_vm4, %v1024_v10, %v14718_v18  ;;  %v14844_v26 = vsel %vm752_vm15, %v757_v13, %v756_v7  ;;  %v9234_v7 = vld [vmem:[%s11373_s30 + $0xe9] sm:$0xff] }
 0x18e   : > { %vm16873_vm1 = vcmp.ne.s32.totalorder %v17351_v46, 31  ;;  %v770_v62 = vand.u32 31, %v14800_v38  ;;  %v14850_v37 = vadd.f32 %v3652_v21, %v2751_v50  ;;  %v2754_v18 = vadd.f32 %v10497_v6, %v14617_v56  ;;  %v9364_v10 = vld [vmem:[%s11373_s30 + $0x107] sm:$0xff]  ;;  %v2634_v5 = vpop.f32.mrf.mxu1  ;;  %v3343_v38 = vpop.f32.mrf.mxu0  ;;  %v9365_v56 = vld [vmem:[%s11373_s30 + $0x10f] sm:$0xff]  ;;  %10843 = vmatmul.mubr.msk.f32.gmra.mxu1 %vm1160_vm0, %v9234_v7 }
 0x18f   : > { %v3655_v30 = vsel %vm16870_vm7, %v10595_v8, 0.0  ;;  %vm831_vm4 = vcmp.ne.s32.totalorder %v14818_v48, 0  ;;  %vm745_vm2 = vcmp.lt.s32.totalorder %v14699_v31, 0  ;;  %v750_v13 = vsub.s32 0, %v749_v41  ;;  %10941 = vmatmul.mubr.msk.f32.gmra.mxu0 %vm1160_vm0, %v9364_v10  ;;  %10845 = vmatprep.mubr.msk.f32.mxu1 %vm1160_vm0, %v9235_v0 }
 0x190   : > { %vm16876_vm15 = vcmp.ne.s32.totalorder %v17354_v61, 31  ;;  %v763_v52 = vand.u32 31, %v14825_v4  ;;  %v14865_v12 = vadd.f32 %v3655_v30, %v2754_v18  ;;  %v2753_v49 = vadd.f32 %v2634_v5, %v14654_v25  ;;  %v10500_v21 = vpop.f32.mrf.mxu1  ;;  %v10598_v44 = vpop.f32.mrf.mxu0  ;;  %10943 = vmatprep.mubr.msk.f32.mxu0 %vm1160_vm0, %v9365_v56  ;;  %v9236_v18 = vld [vmem:[%s11373_s30 + $0xf9] sm:$0xff] }
 0x191   : > { %v3654_v33 = vsel %vm16873_vm1, %v3343_v38, 0.0  ;;  %vm895_vm7 = vcmp.lt.s32.totalorder %v14818_v48, 0  ;;  %v1023_v50 = vadd.s32 32, %v14818_v48  ;;  %vm834_vm13 = vcmp.ne.s32.totalorder %v14844_v26, 0  ;;  %v9366_v30 = vld [vmem:[%s11373_s30 + $0x117] sm:$0xff]  ;;  %v9367_v38 = vld [vmem:[%s11373_s30 + $0x11f] sm:$0xff] }
 0x192   : > { %vm16879_vm6 = vcmp.ne.s32.totalorder %v17365_v22, 31  ;;  %v771_v25 = vsub.s32 0, %v770_v62  ;;  %v14876_v4 = vadd.f32 %v3654_v33, %v2753_v49  ;;  %v2756_v6 = vadd.f32 %v10500_v21, %v14664_v35  ;;  %v2644_v10 = vpop.f32.mrf.mxu1  ;;  %v3353_v5 = vpop.f32.mrf.mxu0  ;;  %v9237_v35 = vld [vmem:[%s11373_s30 + $0x101] sm:$0xff]  ;;  %10846 = vmatmul.mubr.msk.f32.gmra.mxu1 %vm1160_vm0, %v9236_v18  ;;  %v9238_v18 = vld [vmem:[%s11373_s30 + $0x109] sm:$0xff] }
 0x193   : > { %v3657_v8 = vsel %vm16876_vm15, %v10598_v44, 0.0  ;;  %vm898_vm1 = vcmp.lt.s32.totalorder %v14844_v26, 0  ;;  %v14888_v7 = vsel %vm745_vm2, %v750_v13, %v749_v41  ;;  %vm766_vm3 = vcmp.lt.s32.totalorder %v14728_v53, 0  ;;  %vm14898_vm15 = vmand %vm895_vm7, %vm831_vm4  ;;  %10944 = vmatmul.mubr.msk.f32.gmra.mxu0 %vm1160_vm0, %v9366_v30  ;;  %10848 = vmatprep.mubr.msk.f32.mxu1 %vm1160_vm0, %v9237_v35  ;;  %v9368_v30 = vld [vmem:[%s11373_s30 + $0x127] sm:$0xff] }
 0x194   : > { %vm16878_vm5 = vcmp.ne.s32.totalorder %v14428_v45, 31  ;;  %v764_v56 = vsub.s32 0, %v763_v52  ;;  %v14902_v31 = vadd.f32 %v3657_v8, %v2756_v6  ;;  %v2755_v41 = vadd.f32 %v2644_v10, %v14693_v29  ;;  %v10503_v33 = vpop.f32.mrf.mxu1  ;;  %v10601_v21 = vpop.f32.mrf.mxu0  ;;  %10946 = vmatprep.mubr.msk.f32.mxu0 %vm1160_vm0, %v9367_v38  ;;  %v9239_v10 = vld [vmem:[%s11373_s30 + $0x111] sm:$0xff] }
 0x195   : > { %v3656_v13 = vsel %vm16879_vm6, %v3353_v5, 0.0  ;;  %vm1797_vm2 = vcmp.ne.s32.totalorder %v14840_v34, 0  ;;  %v1026_v49 = vadd.s32 32, %v14844_v26  ;;  %vm759_vm10 = vcmp.lt.s32.totalorder %v14750_v17, 0  ;;  %v9369_v5 = vld [vmem:[%s11373_s30 + $0x12f] sm:$0xff] }
 0x196   : > { %vm16881_vm7 = vcmp.ne.s32.totalorder %v14488_v2, 31  ;;  %v14915_v29 = vsel %vm766_vm3, %v771_v25, %v770_v62  ;;  %v14917_v44 = vadd.f32 %v3656_v13, %v2755_v41  ;;  %v2758_v6 = vadd.f32 %v10503_v33, %v14714_v20  ;;  %vm14935_vm3 = vmand %vm898_vm1, %vm834_vm13  ;;  %v2654_v62 = vpop.f32.mrf.mxu1  ;;  %v3363_v25 = vpop.f32.mrf.mxu0  ;;  %10849 = vmatmul.mubr.msk.f32.gmra.mxu1 %vm1160_vm0, %v9238_v18  ;;  %v9371_v18 = vld [vmem:[%s11373_s30 + $0x13f] sm:$0xff] }
 0x197   : > { %v3659_v8 = vsel %vm16878_vm5, %v10601_v21, 0.0  ;;  %v14929_v53 = vsel %vm14898_vm15, %v1023_v50, %v14818_v48  ;;  %vm833_vm4 = vcmp.ne.s32.totalorder %v14888_v7, 0  ;;  %vm897_vm5 = vcmp.lt.s32.totalorder %v14888_v7, 0  ;;  %10947 = vmatmul.mubr.msk.f32.gmra.mxu0 %vm1160_vm0, %v9368_v30  ;;  %10851 = vmatprep.mubr.msk.f32.mxu1 %vm1160_vm0, %v9239_v10  ;;  %v17399_v10 = vld [vmem:[#allocation90_spill] sm:$0xff] }
 0x198   : > { %17391 = vst [vmem:[#allocation49_spill] sm:$0xff] %v14929_v53  ;;  %vm16880_vm6 = vcmp.ne.s32.totalorder %v14582_v14, 31  ;;  %v14946_v48 = vsel %vm759_vm10, %v764_v56, %v763_v52  ;;  %v14948_v50 = vadd.f32 %v3659_v8, %v2758_v6  ;;  %v2757_v35 = vadd.f32 %v2654_v62, %v14742_v47  ;;  %v10506_v41 = vpop.f32.mrf.mxu1  ;;  %v10604_v13 = vpop.f32.mrf.mxu0  ;;  %vm14968_vm15 = vmand %vm897_vm5, %vm833_vm4  ;;  %10949 = vmatprep.mubr.msk.f32.mxu0 %vm1160_vm0, %v9369_v5 }
 0x199   : > { %v3658_v38 = vsel %vm16881_vm7, %v3363_v25, 0.0  ;;  %v1025_v0 = vadd.s32 32, %v14888_v7  ;;  %vm836_vm13 = vcmp.ne.s32.totalorder %v14915_v29, 0  ;;  %vm900_vm1 = vcmp.lt.s32.totalorder %v14915_v29, 0 }
 0x19a   : > { %vm3468_vm10 = vcmp.ne.s32.totalorder %v14674_v9, 31  ;;  %v14962_v47 = vsel %vm14935_vm3, %v1026_v49, %v14844_v26  ;;  %v14972_v52 = vadd.f32 %v3658_v38, %v2757_v35  ;;  %v2760_v56 = vadd.f32 %v10506_v41, %v14814_v63  ;;  %v9240_v26 = vld [vmem:[%s11373_s30 + $0x119] sm:$0xff]  ;;  %v2664_v6 = vpop.f32.mrf.mxu1  ;;  %v3373_v8 = vpop.f32.mrf.mxu0  ;;  %v9241_v63 = vld [vmem:[%s11373_s30 + $0x121] sm:$0xff]  ;;  %vm14992_vm7 = vmand %vm900_vm1, %vm836_vm13 }
 0x19b   : > { %17394 = vst [vmem:[#allocation76_spill] sm:$0xff] %v14962_v47  ;;  %v3661_v33 = vsel %vm16880_vm6, %v10604_v13, 0.0  ;;  %v9370_v49 = vld [vmem:[%s11373_s30 + $0x137] sm:$0xff]  ;;  %v1028_v21 = vadd.s32 32, %v14915_v29  ;;  %vm835_vm5 = vcmp.ne.s32.totalorder %v14946_v48, 0  ;;  %vm899_vm3 = vcmp.lt.s32.totalorder %v14946_v48, 0  ;;  %10852 = vmatmul.mubr.msk.f32.gmra.mxu1 %vm1160_vm0, %v9240_v26 }
 0x19c   : > { %vm16883_vm4 = vcmp.ne.s32.totalorder %v14840_v34, 31  ;;  %vm1796_vm6 = vcmp.ne.s32.totalorder %v14929_v53, 0  ;;  %v14996_v20 = vadd.f32 %v3661_v33, %v2760_v56  ;;  %v2759_v62 = vadd.f32 %v2664_v6, %v14835_v42  ;;  %v10509_v41 = vpop.f32.mrf.mxu1  ;;  %v10607_v13 = vpop.f32.mrf.mxu0  ;;  %10950 = vmatmul.mubr.msk.f32.gmra.mxu0 %vm1160_vm0, %v9370_v49  ;;  %10854 = vmatprep.mubr.msk.f32.mxu1 %vm1160_vm0, %v9241_v63  ;;  %v9242_v56 = vld [vmem:[%s11373_s30 + $0x129] sm:$0xff]  ;;  %v17403_v26 = vld [vmem:[#allocation93_spill] sm:$0xff] }
 0x19d   : > { %v3660_v25 = vsel %vm3468_vm10, %v3373_v8, 0.0  ;;  %v1989_v5 = vsel %vm1797_vm2, %v17399_v10, 0.0  ;;  %v15007_v35 = vsel %vm14968_vm15, %v1025_v0, %v14888_v7  ;;  %v1027_v38 = vadd.s32 32, %v14946_v48  ;;  %vm15018_vm15 = vmand %vm899_vm3, %vm835_vm5  ;;  %10952 = vmatprep.mubr.msk.f32.mxu0 %vm1160_vm0, %v9371_v18  ;;  %v9372_v33 = vld [vmem:[%s11373_s30 + $0x147] sm:$0xff]  ;;  %v9373_v10 = vld [vmem:[%s11373_s30 + $0x14f] sm:$0xff] }
 0x19e   : > { %17400 = vst [vmem:[#allocation52_spill] sm:$0xff] %v15007_v35  ;;  %vm16882_vm13 = vcmp.ne.s32.totalorder %v14929_v53, 31  ;;  %vm1799_vm1 = vcmp.ne.s32.totalorder %v14962_v47, 0  ;;  %v15022_v7 = vadd.f32 %v3660_v25, %v2759_v62  ;;  %v2762_v0 = vadd.f32 %v10509_v41, %v1989_v5  ;;  %v2674_v8 = vpop.f32.mrf.mxu1  ;;  %v3383_v62 = vpop.f32.mrf.mxu0  ;;  %v9243_v25 = vld [vmem:[%s11373_s30 + $0x131] sm:$0xff] }
 0x19f   : > { %v3663_v17 = vsel %vm16883_vm4, %v10607_v13, 0.0  ;;  %v1988_v49 = vsel %vm1796_vm6, %v17403_v26, 0.0  ;;  %v15036_v6 = vsel %vm14992_vm7, %v1028_v21, %v14915_v29  ;;  %vm16884_vm5 = vcmp.ne.s32.totalorder %v14962_v47, 31  ;;  %v17405_v41 = vld [vmem:[#allocation97_spill] sm:$0xff]  ;;  %10855 = vmatmul.mubr.msk.f32.gmra.mxu1 %vm1160_vm0, %v9242_v56  ;;  %v17407_v56 = vld [vmem:[#allocation100_spill] sm:$0xff] }
 0x1a0   : > { %17404 = vst [vmem:[#allocation98_spill] sm:$0xff] %v15036_v6  ;;  %vm1798_vm3 = vcmp.ne.s32.totalorder %v15007_v35, 0  ;;  %v15042_v63 = vadd.f32 %v3663_v17, %v2762_v0  ;;  %v2761_v18 = vadd.f32 %v2674_v8, %v1988_v49  ;;  %v3662_v5 = vsel %vm16882_vm13, %v3383_v62, 0.0  ;;  %v10512_v30 = vpop.f32.mrf.mxu1  ;;  %v10610_v13 = vpop.f32.mrf.mxu0  ;;  %10953 = vmatmul.mubr.msk.f32.gmra.mxu0 %vm1160_vm0, %v9372_v33  ;;  %10857 = vmatprep.mubr.msk.f32.mxu1 %vm1160_vm0, %v9243_v25  ;;  %v9245_v8 = vld [vmem:[%s11373_s30 + $0x141] sm:$0xff] }
 0x1a1   : > { %v1991_v29 = vsel %vm1799_vm1, %v17405_v41, 0.0  ;;  %v15052_v21 = vsel %vm15018_vm15, %v1027_v38, %v14946_v48  ;;  %vm3472_vm7 = vcmp.ne.s32.totalorder %v15007_v35, 31  ;;  %vm16926_vm13 = vcmp.ne.s32.totalorder %v15036_v6, 0  ;;  %10955 = vmatprep.mubr.msk.f32.mxu0 %vm1160_vm0, %v9373_v10  ;;  %v9244_v48 = vld [vmem:[%s11373_s30 + $0x139] sm:$0xff] }
 0x1a2   : > { %17406 = vst [vmem:[#allocation55_spill] sm:$0xff] %v15052_v21  ;;  %v15058_v0 = vadd.f32 %v3662_v5, %v2761_v18  ;;  %v2764_v17 = vadd.f32 %v10512_v30, %v1991_v29  ;;  %v3665_v42 = vsel %vm16884_vm5, %v10610_v13, 0.0  ;;  %v9374_v38 = vld [vmem:[%s11373_s30 + $0x157] sm:$0xff]  ;;  %v1990_v33 = vsel %vm1798_vm3, %v17407_v56, 0.0  ;;  %v2684_v26 = vpop.f32.mrf.mxu1  ;;  %v3393_v49 = vpop.f32.mrf.mxu0  ;;  %v9375_v62 = vld [vmem:[%s11373_s30 + $0x15f] sm:$0xff]  ;;  %v17408_v5 = vld [vmem:[#allocation103_spill] sm:$0xff] }
 0x1a3   : > { %vm16885_vm15 = vcmp.ne.s32.totalorder %v15036_v6, 31  ;;  %vm16900_vm4 = vcmp.ne.s32.totalorder %v15052_v21, 0  ;;  %v2763_v25 = vadd.f32 %v2684_v26, %v1990_v33  ;;  %v3664_v10 = vsel %vm3472_vm7, %v3393_v49, 0.0  ;;  %10858 = vmatmul.mubr.msk.f32.gmra.mxu1 %vm1160_vm0, %v9244_v48  ;;  %v9246_v56 = vld [vmem:[%s11373_s30 + $0x149] sm:$0xff] }
 0x1a4   : > { %v15073_v18 = vadd.f32 %v3665_v42, %v2764_v17  ;;  %v1993_v41 = vsel %vm16926_vm13, %v17408_v5, 0.0  ;;  %v10515_v29 = vpop.f32.mrf.mxu1  ;;  %v10613_v30 = vpop.f32.mrf.mxu0  ;;  %10956 = vmatmul.mubr.msk.f32.gmra.mxu0 %vm1160_vm0, %v9374_v38  ;;  %vm16890_vm5 = vcmp.ne.s32.totalorder %v15052_v21, 31  ;;  %10860 = vmatprep.mubr.msk.f32.mxu1 %vm1160_vm0, %v9245_v8  ;;  %v9376_v33 = vld [vmem:[%s11373_s30 + $0x167] sm:$0xff]  ;;  %v17409_v26 = vld [vmem:[#allocation32_spill] sm:$0xff] }
 0x1a5   : > { %v15083_v13 = vadd.f32 %v3664_v10, %v2763_v25  ;;  %v2766_v17 = vadd.f32 %v10515_v29, %v1993_v41  ;;  %v3667_v42 = vsel %vm16885_vm15, %v10613_v30, 0.0  ;;  %10958 = vmatprep.mubr.msk.f32.mxu0 %vm1160_vm0, %v9375_v62  ;;  %v1992_v48 = vsel %vm16900_vm4, %v17409_v26, 0.0  ;;  %v9247_v25 = vld [vmem:[%s11373_s30 + $0x151] sm:$0xff]  ;;  %v17411_v26 = vld [vmem:[#allocation3_spill] sm:$0xff] }
 0x1a6   : > { %v2694_v38 = vpop.f32.mrf.mxu1  ;;  %v3403_v49 = vpop.f32.mrf.mxu0  ;;  %v9377_v10 = vld [vmem:[%s11373_s30 + $0x16f] sm:$0xff]  ;;  %vm17412_vm15 = vcmp.ne.s32.totalorder %v17411_v26, 0 }
 0x1a7   : > { %v15096_v5 = vadd.f32 %v3667_v42, %v2766_v17  ;;  %v2765_v41 = vadd.f32 %v2694_v38, %v1992_v48  ;;  %v3666_v8 = vsel %vm16890_vm5, %v3403_v49, 0.0  ;;  %10861 = vmatmul.mubr.msk.f32.gmra.mxu1 %vm1160_vm0, %v9246_v56  ;;  %v9248_v17 = vld [vmem:[%s11373_s30 + $0x159] sm:$0xff]  ;;  %v9249_v56 = vld [vmem:[%s11373_s30 + $0x161] sm:$0xff] }
 0x1a8   : > { %v10618_v62 = vpop.f32.mrf.mxu1  ;;  %v10716_v29 = vpop.f32.mrf.mxu0  ;;  %10959 = vmatmul.mubr.msk.f32.gmra.mxu0 %vm1160_vm0, %v9376_v33  ;;  %10863 = vmatprep.mubr.msk.f32.mxu1 %vm1160_vm0, %v9247_v25  ;;  %v9378_v42 = vld [vmem:[%s11373_s30 + $0x177] sm:$0xff]  ;;  %v17413_v48 = vld [vmem:[#allocation62_spill] sm:$0xff] }
 0x1a9   : > { %17410 = vst [vmem:[#allocation83_spill] sm:$0xff] %v15096_v5  ;;  %v15102_v30 = vadd.f32 %v3666_v8, %v2765_v41  ;;  %v4378_v6 = vsel %vm17412_vm15, %v10618_v62, 0.0  ;;  %10961 = vmatprep.mubr.msk.f32.mxu0 %vm1160_vm0, %v9377_v10  ;;  %v9379_v5 = vld [vmem:[%s11373_s30 + $0x17f] sm:$0xff]  ;;  %v17417_v62 = vld [vmem:[#allocation107_spill] sm:$0xff] }
 0x1aa   : > { %v4442_v38 = vadd.f32 %v4378_v6, %v17413_v48  ;;  %v4058_v49 = vpop.f32.mrf.mxu1  ;;  %v4831_v21 = vpop.f32.mrf.mxu0  ;;  %v17414_v33 = vld [vmem:[#allocation5_spill] sm:$0xff]  ;;  %v17418_v6 = vld [vmem:[#allocation7_spill] sm:$0xff] }
 0x1ab   : > { %vm17415_vm5 = vcmp.ne.s32.totalorder %v17414_v33, 0  ;;  %10864 = vmatmul.mubr.msk.f32.gmra.mxu1 %vm1160_vm0, %v9248_v17  ;;  %vm17419_vm15 = vcmp.ne.s32.totalorder %v17418_v6, 0  ;;  %v9380_v33 = vld [vmem:[%s11373_s30 + $0x187] sm:$0xff]  ;;  %v9251_v17 = vld [vmem:[%s11373_s30 + $0x171] sm:$0xff] }
 0x1ac   : > { %v4377_v41 = vsel %vm17415_vm5, %v4058_v49, 0.0  ;;  %v15115_v8 = vadd.f32 %v10716_v29, %v4442_v38  ;;  %v10621_v10 = vpop.f32.mrf.mxu1  ;;  %v10719_v26 = vpop.f32.mrf.mxu0  ;;  %10962 = vmatmul.mubr.msk.f32.gmra.mxu0 %vm1160_vm0, %v9378_v42  ;;  %10866 = vmatprep.mubr.msk.f32.mxu1 %vm1160_vm0, %v9249_v56  ;;  %v9250_v49 = vld [vmem:[%s11373_s30 + $0x169] sm:$0xff]  ;;  %vm17420_vm5 = vcmp.ne.s32.totalorder %v12012_v39, 0 }
 0x1ad   : > { %v4441_v25 = vadd.f32 %v4377_v41, %v17417_v62  ;;  %v4380_v48 = vsel %vm17419_vm15, %v10621_v10, 0.0  ;;  %10964 = vmatprep.mubr.msk.f32.mxu0 %vm1160_vm0, %v9379_v5 }
 0x1ae   : > { %17416 = vst [vmem:[#allocation26_spill] sm:$0xff] %v15115_v8  ;;  %v4444_v38 = vadd.f32 %v4380_v48, %v13931_v40  ;;  %v4068_v41 = vpop.f32.mrf.mxu1  ;;  %v4841_v62 = vpop.f32.mrf.mxu0  ;;  %v9381_v8 = vld [vmem:[%s11373_s30 + $0x18f] sm:$0xff]  ;;  %v9252_v48 = vld [vmem:[%s11373_s30 + $0x179] sm:$0xff] }
 0x1af   : > { %v15126_v29 = vadd.f32 %v4831_v21, %v4441_v25  ;;  %v4379_v42 = vsel %vm17420_vm5, %v4068_v41, 0.0  ;;  %10867 = vmatmul.mubr.msk.f32.gmra.mxu1 %vm1160_vm0, %v9250_v49  ;;  %v17422_v40 = vld [vmem:[#allocation11_spill] sm:$0xff]  ;;  %v9382_v41 = vld [vmem:[%s11373_s30 + $0x197] sm:$0xff] }
 0x1b0   : > { %v15133_v10 = vadd.f32 %v10719_v26, %v4444_v38  ;;  %v4443_v5 = vadd.f32 %v4379_v42, %v13957_v54  ;;  %v10624_v56 = vpop.f32.mrf.mxu1  ;;  %v10722_v21 = vpop.f32.mrf.mxu0  ;;  %10965 = vmatmul.mubr.msk.f32.gmra.mxu0 %vm1160_vm0, %v9380_v33  ;;  %vm17423_vm15 = vcmp.ne.s32.totalorder %v17422_v40, 0  ;;  %10869 = vmatprep.mubr.msk.f32.mxu1 %vm1160_vm0, %v9251_v17  ;;  %v17424_v38 = vld [vmem:[#allocation77_spill] sm:$0xff]  ;;  %v9253_v49 = vld [vmem:[%s11373_s30 + $0x181] sm:$0xff] }
 0x1b1   : > { %v4382_v25 = vsel %vm17423_vm15, %v10624_v56, 0.0  ;;  %10967 = vmatprep.mubr.msk.f32.mxu0 %vm1160_vm0, %v9381_v8  ;;  %v17425_v33 = vld [vmem:[#allocation13_spill] sm:$0xff]  ;;  %vm17427_vm15 = vcmp.ne.s32.totalorder %v17239_v51, 0 }
 0x1b2   : > { %17421 = vst [vmem:[#allocation88_spill] sm:$0xff] %v15133_v10  ;;  %v15144_v26 = vadd.f32 %v4841_v62, %v4443_v5  ;;  %v4446_v54 = vadd.f32 %v4382_v25, %v17424_v38  ;;  %v4078_v42 = vpop.f32.mrf.mxu1  ;;  %v4851_v39 = vpop.f32.mrf.mxu0  ;;  %v9383_v10 = vld [vmem:[%s11373_s30 + $0x19f] sm:$0xff]  ;;  %vm17426_vm5 = vcmp.ne.s32.totalorder %v17425_v33, 0  ;;  %v9254_v25 = vld [vmem:[%s11373_s30 + $0x189] sm:$0xff] }
 0x1b3   : > { %v4381_v40 = vsel %vm17426_vm5, %v4078_v42, 0.0  ;;  %10870 = vmatmul.mubr.msk.f32.gmra.mxu1 %vm1160_vm0, %v9252_v48  ;;  %v9384_v38 = vld [vmem:[%s11373_s30 + $0x1a7] sm:$0xff]  ;;  %v9255_v48 = vld [vmem:[%s11373_s30 + $0x191] sm:$0xff]  ;;  %vm17428_vm5 = vcmp.ne.s32.totalorder %v17242_v3, 0  ;;  %v9387_v3 = vld [vmem:[%s11373_s30 + $0x1bf] sm:$0xff] }
 0x1b4   : > { %v15151_v56 = vadd.f32 %v10722_v21, %v4446_v54  ;;  %v4445_v8 = vadd.f32 %v4381_v40, %v13996_v60  ;;  %v10627_v17 = vpop.f32.mrf.mxu1  ;;  %v10725_v62 = vpop.f32.mrf.mxu0  ;;  %10968 = vmatmul.mubr.msk.f32.gmra.mxu0 %vm1160_vm0, %v9382_v41  ;;  %10872 = vmatprep.mubr.msk.f32.mxu1 %vm1160_vm0, %v9253_v49  ;;  %v9385_v42 = vld [vmem:[%s11373_s30 + $0x1af] sm:$0xff] }
 0x1b5   : > { %v4384_v5 = vsel %vm17427_vm15, %v10627_v17, 0.0  ;;  %10970 = vmatprep.mubr.msk.f32.mxu0 %vm1160_vm0, %v9383_v10 }
 0x1b6   : > { %v15162_v21 = vadd.f32 %v4851_v39, %v4445_v8  ;;  %v4448_v60 = vadd.f32 %v4384_v5, %v14011_v27  ;;  %v4088_v40 = vpop.f32.mrf.mxu1  ;;  %v4861_v54 = vpop.f32.mrf.mxu0  ;;  %v17430_v27 = vld [vmem:[#allocation19_spill] sm:$0xff]  ;;  %v9256_v5 = vld [vmem:[%s11373_s30 + $0x199] sm:$0xff] }
 0x1b7   : > { %v4383_v41 = vsel %vm17428_vm5, %v4088_v40, 0.0  ;;  %10873 = vmatmul.mubr.msk.f32.gmra.mxu1 %vm1160_vm0, %v9254_v25  ;;  %vm17431_vm15 = vcmp.ne.s32.totalorder %v17430_v27, 0  ;;  %v9386_v40 = vld [vmem:[%s11373_s30 + $0x1b7] sm:$0xff]  ;;  %v9257_v25 = vld [vmem:[%s11373_s30 + $0x1a1] sm:$0xff] }
 0x1b8   : > { %v15169_v17 = vadd.f32 %v10725_v62, %v4448_v60  ;;  %v4447_v10 = vadd.f32 %v4383_v41, %v14023_v57  ;;  %v10630_v49 = vpop.f32.mrf.mxu1  ;;  %v10728_v39 = vpop.f32.mrf.mxu0  ;;  %10971 = vmatmul.mubr.msk.f32.gmra.mxu0 %vm1160_vm0, %v9384_v38  ;;  %10875 = vmatprep.mubr.msk.f32.mxu1 %vm1160_vm0, %v9255_v48  ;;  %v17433_v38 = vld [vmem:[#allocation21_spill] sm:$0xff]  ;;  %v17436_v48 = vld [vmem:[#allocation79_spill] sm:$0xff] }
 0x1b9   : > { %v4386_v8 = vsel %vm17431_vm15, %v10630_v49, 0.0  ;;  %10973 = vmatprep.mubr.msk.f32.mxu0 %vm1160_vm0, %v9385_v42  ;;  %vm17434_vm5 = vcmp.ne.s32.totalorder %v17433_v38, 0 }
 0x1ba   : > { %17429 = vst [vmem:[#allocation58_spill] sm:$0xff] %v15169_v17  ;;  %v15180_v62 = vadd.f32 %v4861_v54, %v4447_v10  ;;  %v4450_v57 = vadd.f32 %v4386_v8, %v14025_v43  ;;  %v4098_v60 = vpop.f32.mrf.mxu1  ;;  %v4871_v41 = vpop.f32.mrf.mxu0  ;;  %v17437_v43 = vld [vmem:[#allocation23_spill] sm:$0xff] }
 0x1bb   : > { %v4385_v27 = vsel %vm17434_vm5, %v4098_v60, 0.0  ;;  %10876 = vmatmul.mubr.msk.f32.gmra.mxu1 %vm1160_vm0, %v9256_v5  ;;  %vm17438_vm15 = vcmp.ne.s32.totalorder %v17437_v43, 0  ;;  %v9258_v8 = vld [vmem:[%s11373_s30 + $0x1a9] sm:$0xff]  ;;  %v9259_v5 = vld [vmem:[%s11373_s30 + $0x1b1] sm:$0xff] }
 0x1bc   : > { %17432 = vst [vmem:[#allocation29_spill] sm:$0xff] %v15180_v62  ;;  %v15187_v49 = vadd.f32 %v10728_v39, %v4450_v57  ;;  %v4449_v42 = vadd.f32 %v4385_v27, %v17436_v48  ;;  %v10633_v17 = vpop.f32.mrf.mxu1  ;;  %v10731_v54 = vpop.f32.mrf.mxu0  ;;  %10974 = vmatmul.mubr.msk.f32.gmra.mxu0 %vm1160_vm0, %v9386_v40  ;;  %10878 = vmatprep.mubr.msk.f32.mxu1 %vm1160_vm0, %v9257_v25  ;;  %v9388_v60 = vld [vmem:[%s11373_s30 + $0x1c7] sm:$0xff]  ;;  %v17441_v40 = vld [vmem:[#allocation25_spill] sm:$0xff]  ;;  %v17444_v25 = vld [vmem:[#allocation108_spill] sm:$0xff] }
 0x1bd   : > { %v4388_v10 = vsel %vm17438_vm15, %v10633_v17, 0.0  ;;  %10976 = vmatprep.mubr.msk.f32.mxu0 %vm1160_vm0, %v9387_v3  ;;  %v17440_v57 = vld [vmem:[#allocation42_spill] sm:$0xff]  ;;  %vm17442_vm5 = vcmp.ne.s32.totalorder %v17441_v40, 0 }
 0x1be   : > { %17435 = vst [vmem:[#allocation61_spill] sm:$0xff] %v15187_v49  ;;  %v15198_v39 = vadd.f32 %v4871_v41, %v4449_v42  ;;  %v4452_v27 = vadd.f32 %v4388_v10, %v17440_v57  ;;  %v4108_v48 = vpop.f32.mrf.mxu1  ;;  %v4881_v38 = vpop.f32.mrf.mxu0  ;;  %v9389_v49 = vld [vmem:[%s11373_s30 + $0x1cf] sm:$0xff]  ;;  %v17445_v42 = vld [vmem:[#allocation33_spill] sm:$0xff] }
 0x1bf   : > { %v4387_v43 = vsel %vm17442_vm5, %v4108_v48, 0.0  ;;  %10879 = vmatmul.mubr.msk.f32.gmra.mxu1 %vm1160_vm0, %v9258_v8  ;;  %vm17446_vm15 = vcmp.ne.s32.totalorder %v17445_v42, 0  ;;  %v9260_v57 = vld [vmem:[%s11373_s30 + $0x1b9] sm:$0xff]  ;;  %v9261_v8 = vld [vmem:[%s11373_s30 + $0x1c1] sm:$0xff] }
 0x1c0   : > { %17439 = vst [vmem:[#allocation63_spill] sm:$0xff] %v15198_v39  ;;  %v15205_v17 = vadd.f32 %v10731_v54, %v4452_v27  ;;  %v4451_v3 = vadd.f32 %v4387_v43, %v17444_v25  ;;  %v10636_v62 = vpop.f32.mrf.mxu1  ;;  %v10734_v41 = vpop.f32.mrf.mxu0  ;;  %10977 = vmatmul.mubr.msk.f32.gmra.mxu0 %vm1160_vm0, %v9388_v60  ;;  %10881 = vmatprep.mubr.msk.f32.mxu1 %vm1160_vm0, %v9259_v5  ;;  %v9390_v48 = vld [vmem:[%s11373_s30 + $0x1d7] sm:$0xff]  ;;  %v17448_v27 = vld [vmem:[#allocation51_spill] sm:$0xff]  ;;  %v17452_v5 = vld [vmem:[#allocation54_spill] sm:$0xff] }
 0x1c1   : > { %v4390_v10 = vsel %vm17446_vm15, %v10636_v62, 0.0  ;;  %10979 = vmatprep.mubr.msk.f32.mxu0 %vm1160_vm0, %v9389_v49  ;;  %v17449_v60 = vld [vmem:[#allocation35_spill] sm:$0xff] }
 0x1c2   : > { %17443 = vst [vmem:[#allocation27_spill] sm:$0xff] %v15205_v17  ;;  %v15216_v54 = vadd.f32 %v4881_v38, %v4451_v3  ;;  %v4454_v43 = vadd.f32 %v4390_v10, %v17448_v27  ;;  %v4118_v25 = vpop.f32.mrf.mxu1  ;;  %v4891_v40 = vpop.f32.mrf.mxu0  ;;  %v9391_v17 = vld [vmem:[%s11373_s30 + $0x1df] sm:$0xff]  ;;  %vm17450_vm5 = vcmp.ne.s32.totalorder %v17449_v60, 0  ;;  %v9262_v27 = vld [vmem:[%s11373_s30 + $0x1c9] sm:$0xff] }
 0x1c3   : > { %v4389_v42 = vsel %vm17450_vm5, %v4118_v25, 0.0  ;;  %10882 = vmatmul.mubr.msk.f32.gmra.mxu1 %vm1160_vm0, %v9260_v57  ;;  %v17453_v3 = vld [vmem:[#allocation41_spill] sm:$0xff]  ;;  %v9392_v25 = vld [vmem:[%s11373_s30 + $0x1e7] sm:$0xff] }
 0x1c4   : > { %17447 = vst [vmem:[#allocation30_spill] sm:$0xff] %v15216_v54  ;;  %v15223_v62 = vadd.f32 %v10734_v41, %v4454_v43  ;;  %v4453_v49 = vadd.f32 %v4389_v42, %v17452_v5  ;;  %v10639_v39 = vpop.f32.mrf.mxu1  ;;  %v10737_v38 = vpop.f32.mrf.mxu0  ;;  %10980 = vmatmul.mubr.msk.f32.gmra.mxu0 %vm1160_vm0, %v9390_v48  ;;  %vm17454_vm15 = vcmp.ne.s32.totalorder %v17453_v3, 0  ;;  %10884 = vmatprep.mubr.msk.f32.mxu1 %vm1160_vm0, %v9261_v8  ;;  %v17456_v43 = vld [vmem:[#allocation60_spill] sm:$0xff]  ;;  %v17457_v48 = vld [vmem:[#allocation53_spill] sm:$0xff] }
 0x1c5   : > { %v4392_v10 = vsel %vm17454_vm15, %v10639_v39, 0.0  ;;  %10982 = vmatprep.mubr.msk.f32.mxu0 %vm1160_vm0, %v9391_v17  ;;  %v9263_v57 = vld [vmem:[%s11373_s30 + $0x1d1] sm:$0xff]  ;;  %vm17458_vm5 = vcmp.ne.s32.totalorder %v17457_v48, 0 }
 0x1c6   : > { %17451 = vst [vmem:[#allocation65_spill] sm:$0xff] %v15223_v62  ;;  %v15234_v41 = vadd.f32 %v4891_v40, %v4453_v49  ;;  %v4456_v42 = vadd.f32 %v4392_v10, %v17456_v43  ;;  %v4128_v5 = vpop.f32.mrf.mxu1  ;;  %v4901_v60 = vpop.f32.mrf.mxu0  ;;  %v9393_v62 = vld [vmem:[%s11373_s30 + $0x1ef] sm:$0xff]  ;;  %v17460_v8 = vld [vmem:[#allocation109_spill] sm:$0xff] }
 0x1c7   : > { %v4391_v3 = vsel %vm17458_vm5, %v4128_v5, 0.0  ;;  %10885 = vmatmul.mubr.msk.f32.gmra.mxu1 %vm1160_vm0, %v9262_v27  ;;  %v17461_v49 = vld [vmem:[#allocation59_spill] sm:$0xff]  ;;  %v9264_v43 = vld [vmem:[%s11373_s30 + $0x1d9] sm:$0xff] }
 0x1c8   : > { %17455 = vst [vmem:[#allocation37_spill] sm:$0xff] %v15234_v41  ;;  %v15241_v39 = vadd.f32 %v10737_v38, %v4456_v42  ;;  %v4455_v17 = vadd.f32 %v4391_v3, %v17460_v8  ;;  %v10642_v54 = vpop.f32.mrf.mxu1  ;;  %v10740_v40 = vpop.f32.mrf.mxu0  ;;  %10983 = vmatmul.mubr.msk.f32.gmra.mxu0 %vm1160_vm0, %v9392_v25  ;;  %vm17462_vm15 = vcmp.ne.s32.totalorder %v17461_v49, 0  ;;  %10887 = vmatprep.mubr.msk.f32.mxu1 %vm1160_vm0, %v9263_v57  ;;  %v9394_v5 = vld [vmem:[%s11373_s30 + $0x1f7] sm:$0xff]  ;;  %v17464_v42 = vld [vmem:[#allocation110_spill] sm:$0xff]  ;;  %v17465_v25 = vld [vmem:[#allocation67_spill] sm:$0xff] }
 0x1c9   : > { %v4394_v10 = vsel %vm17462_vm15, %v10642_v54, 0.0  ;;  %10985 = vmatprep.mubr.msk.f32.mxu0 %vm1160_vm0, %v9393_v62  ;;  %v9265_v27 = vld [vmem:[%s11373_s30 + $0x1e1] sm:$0xff]  ;;  %vm17466_vm5 = vcmp.ne.s32.totalorder %v17465_v25, 0 }
 0x1ca   : > { %17459 = vst [vmem:[#allocation69_spill] sm:$0xff] %v15241_v39  ;;  %v15252_v38 = vadd.f32 %v4901_v60, %v4455_v17  ;;  %v4458_v3 = vadd.f32 %v4394_v10, %v17464_v42  ;;  %v4138_v8 = vpop.f32.mrf.mxu1  ;;  %v4911_v48 = vpop.f32.mrf.mxu0  ;;  %v9395_v39 = vld [vmem:[%s11373_s30 + $0x1ff] sm:$0xff]  ;;  %v17468_v57 = vld [vmem:[#allocation111_spill] sm:$0xff]  ;;  %v17469_v17 = vld [vmem:[#allocation72_spill] sm:$0xff] }
 0x1cb   : > { %v4393_v49 = vsel %vm17466_vm5, %v4138_v8, 0.0  ;;  %10888 = vmatmul.mubr.msk.f32.gmra.mxu1 %vm1160_vm0, %v9264_v43  ;;  %vm17470_vm15 = vcmp.ne.s32.totalorder %v17469_v17, 0  ;;  %v9266_v42 = vld [vmem:[%s11373_s30 + $0x1e9] sm:$0xff]  ;;  %v9267_v43 = vld [vmem:[%s11373_s30 + $0x1f1] sm:$0xff] }
 0x1cc   : > { %17463 = vst [vmem:[#allocation39_spill] sm:$0xff] %v15252_v38  ;;  %v15259_v54 = vadd.f32 %v10740_v40, %v4458_v3  ;;  %v4457_v62 = vadd.f32 %v4393_v49, %v17468_v57  ;;  %v10645_v41 = vpop.f32.mrf.mxu1  ;;  %v10743_v60 = vpop.f32.mrf.mxu0  ;;  %10986 = vmatmul.mubr.msk.f32.gmra.mxu0 %vm1160_vm0, %v9394_v5  ;;  %10890 = vmatprep.mubr.msk.f32.mxu1 %vm1160_vm0, %v9265_v27  ;;  %v9396_v8 = vld [vmem:[%s11373_s30 + $0x207] sm:$0xff]  ;;  %v17472_v3 = vld [vmem:[#allocation112_spill] sm:$0xff] }
 0x1cd   : > { %v4396_v10 = vsel %vm17470_vm15, %v10645_v41, 0.0  ;;  %10988 = vmatprep.mubr.msk.f32.mxu0 %vm1160_vm0, %v9395_v39  ;;  %v17473_v5 = vld [vmem:[#allocation82_spill] sm:$0xff]  ;;  %v17476_v27 = vld [vmem:[#allocation64_spill] sm:$0xff] }
 0x1ce   : > { %17467 = vst [vmem:[#allocation70_spill] sm:$0xff] %v15259_v54  ;;  %v15270_v40 = vadd.f32 %v4911_v48, %v4457_v62  ;;  %v4460_v49 = vadd.f32 %v4396_v10, %v17472_v3  ;;  %v4148_v57 = vpop.f32.mrf.mxu1  ;;  %v4921_v25 = vpop.f32.mrf.mxu0  ;;  %v9397_v54 = vld [vmem:[%s11373_s30 + $0x20f] sm:$0xff]  ;;  %vm17474_vm5 = vcmp.ne.s32.totalorder %v17473_v5, 0  ;;  %v9268_v3 = vld [vmem:[%s11373_s30 + $0x1f9] sm:$0xff] }
 0x1cf   : > { %v4395_v17 = vsel %vm17474_vm5, %v4148_v57, 0.0  ;;  %10891 = vmatmul.mubr.msk.f32.gmra.mxu1 %vm1160_vm0, %v9266_v42  ;;  %v17477_v62 = vld [vmem:[#allocation87_spill] sm:$0xff]  ;;  %v9398_v57 = vld [vmem:[%s11373_s30 + $0x217] sm:$0xff] }
 0x1d0   : > { %17471 = vst [vmem:[#allocation73_spill] sm:$0xff] %v15270_v40  ;;  %v15277_v41 = vadd.f32 %v10743_v60, %v4460_v49  ;;  %v4459_v39 = vadd.f32 %v4395_v17, %v17476_v27  ;;  %v10648_v38 = vpop.f32.mrf.mxu1  ;;  %v10746_v48 = vpop.f32.mrf.mxu0  ;;  %10989 = vmatmul.mubr.msk.f32.gmra.mxu0 %vm1160_vm0, %v9396_v8  ;;  %vm17478_vm15 = vcmp.ne.s32.totalorder %v17477_v62, 0  ;;  %10893 = vmatprep.mubr.msk.f32.mxu1 %vm1160_vm0, %v9267_v43  ;;  %v17480_v49 = vld [vmem:[#allocation106_spill] sm:$0xff]  ;;  %v17481_v8 = vld [vmem:[#allocation95_spill] sm:$0xff]  ;;  %v17484_v43 = vld [vmem:[#allocation84_spill] sm:$0xff] }
 0x1d1   : > { %v4398_v10 = vsel %vm17478_vm15, %v10648_v38, 0.0  ;;  %10991 = vmatprep.mubr.msk.f32.mxu0 %vm1160_vm0, %v9397_v54  ;;  %v9269_v42 = vld [vmem:[%s11373_s30 + $0x201] sm:$0xff]  ;;  %vm17482_vm5 = vcmp.ne.s32.totalorder %v17481_v8, 0 }
 0x1d2   : > { %17475 = vst [vmem:[#allocation75_spill] sm:$0xff] %v15277_v41  ;;  %v15288_v60 = vadd.f32 %v4921_v25, %v4459_v39  ;;  %v4462_v17 = vadd.f32 %v4398_v10, %v17480_v49  ;;  %v4158_v27 = vpop.f32.mrf.mxu1  ;;  %v4931_v5 = vpop.f32.mrf.mxu0  ;;  %v9399_v41 = vld [vmem:[%s11373_s30 + $0x21f] sm:$0xff]  ;;  %v17485_v39 = vld [vmem:[#allocation104_spill] sm:$0xff] }
 0x1d3   : > { %v4397_v62 = vsel %vm17482_vm5, %v4158_v27, 0.0  ;;  %10894 = vmatmul.mubr.msk.f32.gmra.mxu1 %vm1160_vm0, %v9268_v3  ;;  %vm17486_vm15 = vcmp.ne.s32.totalorder %v17485_v39, 0  ;;  %v9270_v49 = vld [vmem:[%s11373_s30 + $0x209] sm:$0xff]  ;;  %v9271_v3 = vld [vmem:[%s11373_s30 + $0x211] sm:$0xff] }
 0x1d4   : > { %17479 = vst [vmem:[#allocation78_spill] sm:$0xff] %v15288_v60  ;;  %v15295_v38 = vadd.f32 %v10746_v48, %v4462_v17  ;;  %v4461_v54 = vadd.f32 %v4397_v62, %v17484_v43  ;;  %v10651_v40 = vpop.f32.mrf.mxu1  ;;  %v10749_v25 = vpop.f32.mrf.mxu0  ;;  %10992 = vmatmul.mubr.msk.f32.gmra.mxu0 %vm1160_vm0, %v9398_v57  ;;  %10896 = vmatprep.mubr.msk.f32.mxu1 %vm1160_vm0, %v9269_v42  ;;  %v9400_v27 = vld [vmem:[%s11373_s30 + $0x227] sm:$0xff]  ;;  %v17488_v17 = vld [vmem:[#allocation113_spill] sm:$0xff]  ;;  %v17489_v57 = vld [vmem:[#allocation44_spill] sm:$0xff] }
 0x1d5   : > { %v4400_v10 = vsel %vm17486_vm15, %v10651_v40, 0.0  ;;  %10994 = vmatprep.mubr.msk.f32.mxu0 %vm1160_vm0, %v9399_v41  ;;  %vm17490_vm5 = vcmp.ne.s32.totalorder %v17489_v57, 0  ;;  %v17492_v42 = vld [vmem:[#allocation115_spill] sm:$0xff] }
 0x1d6   : > { %17483 = vst [vmem:[#allocation80_spill] sm:$0xff] %v15295_v38  ;;  %v15306_v48 = vadd.f32 %v4931_v5, %v4461_v54  ;;  %v4464_v62 = vadd.f32 %v4400_v10, %v17488_v17  ;;  %v4168_v43 = vpop.f32.mrf.mxu1  ;;  %v4941_v8 = vpop.f32.mrf.mxu0  ;;  %v9401_v38 = vld [vmem:[%s11373_s30 + $0x22f] sm:$0xff]  ;;  %v17493_v54 = vld [vmem:[#allocation46_spill] sm:$0xff] }
 0x1d7   : > { %v4399_v39 = vsel %vm17490_vm5, %v4168_v43, 0.0  ;;  %10897 = vmatmul.mubr.msk.f32.gmra.mxu1 %vm1160_vm0, %v9270_v49  ;;  %vm17494_vm15 = vcmp.ne.s32.totalorder %v17493_v54, 0  ;;  %v9272_v17 = vld [vmem:[%s11373_s30 + $0x219] sm:$0xff]  ;;  %v9273_v49 = vld [vmem:[%s11373_s30 + $0x221] sm:$0xff] }
 0x1d8   : > { %17487 = vst [vmem:[#allocation81_spill] sm:$0xff] %v15306_v48  ;;  %v15313_v40 = vadd.f32 %v10749_v25, %v4464_v62  ;;  %v4463_v41 = vadd.f32 %v4399_v39, %v17492_v42  ;;  %v10654_v60 = vpop.f32.mrf.mxu1  ;;  %v10752_v5 = vpop.f32.mrf.mxu0  ;;  %10995 = vmatmul.mubr.msk.f32.gmra.mxu0 %vm1160_vm0, %v9400_v27  ;;  %10899 = vmatprep.mubr.msk.f32.mxu1 %vm1160_vm0, %v9271_v3  ;;  %v9402_v43 = vld [vmem:[%s11373_s30 + $0x237] sm:$0xff]  ;;  %v17496_v62 = vld [vmem:[#allocation38_spill] sm:$0xff] }
 0x1d9   : > { %v4402_v10 = vsel %vm17494_vm15, %v10654_v60, 0.0  ;;  %10997 = vmatprep.mubr.msk.f32.mxu0 %vm1160_vm0, %v9401_v38  ;;  %v17497_v27 = vld [vmem:[#allocation68_spill] sm:$0xff] }
 0x1da   : > { %17491 = vst [vmem:[#allocation85_spill] sm:$0xff] %v15313_v40  ;;  %v15324_v25 = vadd.f32 %v4941_v8, %v4463_v41  ;;  %v4466_v39 = vadd.f32 %v4402_v10, %v17496_v62  ;;  %v4178_v42 = vpop.f32.mrf.mxu1  ;;  %v4951_v57 = vpop.f32.mrf.mxu0  ;;  %v9403_v40 = vld [vmem:[%s11373_s30 + $0x23f] sm:$0xff]  ;;  %vm17498_vm5 = vcmp.ne.s32.totalorder %v17497_v27, 0  ;;  %v17500_v3 = vld [vmem:[#allocation116_spill] sm:$0xff] }
 0x1db   : > { %v4401_v54 = vsel %vm17498_vm5, %v4178_v42, 0.0  ;;  %10900 = vmatmul.mubr.msk.f32.gmra.mxu1 %vm1160_vm0, %v9272_v17  ;;  %v17501_v41 = vld [vmem:[#allocation74_spill] sm:$0xff]  ;;  %v9274_v62 = vld [vmem:[%s11373_s30 + $0x229] sm:$0xff]  ;;  %v9275_v17 = vld [vmem:[%s11373_s30 + $0x231] sm:$0xff] }
 0x1dc   : > { %17495 = vst [vmem:[#allocation90_spill] sm:$0xff] %v15324_v25  ;;  %v15331_v60 = vadd.f32 %v10752_v5, %v4466_v39  ;;  %v4465_v38 = vadd.f32 %v4401_v54, %v17500_v3  ;;  %v10657_v48 = vpop.f32.mrf.mxu1  ;;  %v10755_v8 = vpop.f32.mrf.mxu0  ;;  %10998 = vmatmul.mubr.msk.f32.gmra.mxu0 %vm1160_vm0, %v9402_v43  ;;  %vm17502_vm15 = vcmp.ne.s32.totalorder %v17501_v41, 0  ;;  %10902 = vmatprep.mubr.msk.f32.mxu1 %vm1160_vm0, %v9273_v49  ;;  %v9404_v42 = vld [vmem:[%s11373_s30 + $0x247] sm:$0xff]  ;;  %v17504_v39 = vld [vmem:[#allocation92_spill] sm:$0xff] }
 0x1dd   : > { %v4404_v10 = vsel %vm17502_vm15, %v10657_v48, 0.0  ;;  %11000 = vmatprep.mubr.msk.f32.mxu0 %vm1160_vm0, %v9403_v40  ;;  %v17505_v43 = vld [vmem:[#allocation86_spill] sm:$0xff]  ;;  %v17508_v49 = vld [vmem:[#allocation40_spill] sm:$0xff] }
 0x1de   : > { %17499 = vst [vmem:[#allocation93_spill] sm:$0xff] %v15331_v60  ;;  %v15342_v5 = vadd.f32 %v4951_v57, %v4465_v38  ;;  %v4468_v54 = vadd.f32 %v4404_v10, %v17504_v39  ;;  %v4188_v3 = vpop.f32.mrf.mxu1  ;;  %v4961_v27 = vpop.f32.mrf.mxu0  ;;  %v9405_v60 = vld [vmem:[%s11373_s30 + $0x24f] sm:$0xff]  ;;  %vm17506_vm5 = vcmp.ne.s32.totalorder %v17505_v43, 0  ;;  %v17509_v38 = vld [vmem:[#allocation114_spill] sm:$0xff] }
 0x1df   : > { %v4403_v41 = vsel %vm17506_vm5, %v4188_v3, 0.0  ;;  %10903 = vmatmul.mubr.msk.f32.gmra.mxu1 %vm1160_vm0, %v9274_v62  ;;  %vm17510_vm15 = vcmp.ne.s32.totalorder %v17509_v38, 0  ;;  %v9276_v39 = vld [vmem:[%s11373_s30 + $0x239] sm:$0xff] }
 0x1e0   : > { %17503 = vst [vmem:[#allocation97_spill] sm:$0xff] %v15342_v5  ;;  %v15349_v48 = vadd.f32 %v10755_v8, %v4468_v54  ;;  %v4467_v40 = vadd.f32 %v4403_v41, %v17508_v49  ;;  %v10660_v25 = vpop.f32.mrf.mxu1  ;;  %v10758_v57 = vpop.f32.mrf.mxu0  ;;  %11001 = vmatmul.mubr.msk.f32.gmra.mxu0 %vm1160_vm0, %v9404_v42  ;;  %10905 = vmatprep.mubr.msk.f32.mxu1 %vm1160_vm0, %v9275_v17  ;;  %v9406_v3 = vld [vmem:[%s11373_s30 + $0x257] sm:$0xff]  ;;  %v9473_v62 = vld [vmem:[%s11373_s30 + $0x60] sm:$0xff] }
 0x1e1   : > { %v4406_v10 = vsel %vm17510_vm15, %v10660_v25, 0.0  ;;  %11003 = vmatprep.mubr.msk.f32.mxu0 %vm1160_vm0, %v9405_v60  ;;  %v17512_v54 = vld [vmem:[#allocation96_spill] sm:$0xff]  ;;  %v17513_v42 = vld [vmem:[#allocation89_spill] sm:$0xff] }
 0x1e2   : > { %17507 = vst [vmem:[#allocation100_spill] sm:$0xff] %v15349_v48  ;;  %v15360_v8 = vadd.f32 %v4961_v27, %v4467_v40  ;;  %v4470_v41 = vadd.f32 %v4406_v10, %v17512_v54  ;;  %v4198_v49 = vpop.f32.mrf.mxu1  ;;  %v4971_v43 = vpop.f32.mrf.mxu0  ;;  %v9603_v48 = vld [vmem:[%s11373_s30 + $0x61] sm:$0xff]  ;;  %vm17514_vm5 = vcmp.ne.s32.totalorder %v17513_v42, 0  ;;  %v17516_v17 = vld [vmem:[#allocation48_spill] sm:$0xff]  ;;  %v17517_v40 = vld [vmem:[#allocation57_spill] sm:$0xff] }
 0x1e3   : > { %v4405_v38 = vsel %vm17514_vm5, %v4198_v49, 0.0  ;;  %10906 = vmatmul.mubr.msk.f32.gmra.mxu1 %vm1160_vm0, %v9276_v39  ;;  %vm17518_vm15 = vcmp.ne.s32.totalorder %v17517_v40, 0  ;;  %v9474_v54 = vld [vmem:[%s11373_s30 + $0x68] sm:$0xff]  ;;  %v9475_v39 = vld [vmem:[%s11373_s30 + $0x70] sm:$0xff] }
 0x1e4   : > { %17511 = vst [vmem:[#allocation103_spill] sm:$0xff] %v15360_v8  ;;  %v15367_v25 = vadd.f32 %v10758_v57, %v4470_v41  ;;  %v4469_v60 = vadd.f32 %v4405_v38, %v17516_v17  ;;  %v10663_v5 = vpop.f32.mrf.mxu1  ;;  %v10761_v27 = vpop.f32.mrf.mxu0  ;;  %11004 = vmatmul.mubr.msk.f32.gmra.mxu0 %vm1160_vm0, %v9406_v3  ;;  %11008 = vmatprep.mubr.msk.f32.mxu1 %vm1160_vm0, %v9473_v62  ;;  %v9604_v49 = vld [vmem:[%s11373_s30 + $0x69] sm:$0xff]  ;;  %v17523_v62 = vld [vmem:[#allocation102_spill] sm:$0xff] }
 0x1e5   : > { %v4408_v10 = vsel %vm17518_vm15, %v10663_v5, 0.0  ;;  %11106 = vmatprep.mubr.msk.f32.mxu0 %vm1160_vm0, %v9603_v48  ;;  %v17520_v41 = vld [vmem:[#allocation99_spill] sm:$0xff] }
 0x1e6   : > { %17515 = vst [vmem:[#allocation32_spill] sm:$0xff] %v15367_v25  ;;  %v15378_v57 = vadd.f32 %v4971_v43, %v4469_v60  ;;  %v4472_v38 = vadd.f32 %v4408_v10, %v17520_v41  ;;  %v4208_v17 = vpop.f32.mrf.mxu1  ;;  %v4981_v42 = vpop.f32.mrf.mxu0  ;;  %v9605_v25 = vld [vmem:[%s11373_s30 + $0x71] sm:$0xff] }
 0x1e7   : > { %v4407_v40 = vsel %vm1768_vm12, %v4208_v17, 0.0  ;;  %11009 = vmatmul.mubr.msk.f32.vlgmr.msra.gmra.mxu1 %vm1160_vm0, %v9474_v54  ;;  %v17524_v60 = vld [vmem:[#allocation4_spill] sm:$0xff]  ;;  %v9476_v41 = vld [vmem:[%s11373_s30 + $0x78] sm:$0xff]  ;;  %v9477_v54 = vld [vmem:[%s11373_s30 + $0x80] sm:$0xff] }
 0x1e8   : > { %17519 = vst [vmem:[#allocation62_spill] sm:$0xff] %v15378_v57  ;;  %v15385_v5 = vadd.f32 %v10761_v27, %v4472_v38  ;;  %v4471_v48 = vadd.f32 %v4407_v40, %v17523_v62  ;;  %v10666_v8 = vpop.f32.mrf.mxu1  ;;  %v10764_v43 = vpop.f32.mrf.mxu0  ;;  %11107 = vmatmul.mubr.msk.f32.vlgmr.msra.gmra.mxu0 %vm1160_vm0, %v9604_v49  ;;  %vm17525_vm5 = vcmp.ne.s32.totalorder %v17524_v60, 0  ;;  %11011 = vmatprep.mubr.msk.f32.mxu1 %vm1160_vm0, %v9475_v39  ;;  %v9606_v17 = vld [vmem:[%s11373_s30 + $0x79] sm:$0xff]  ;;  %v17531_v39 = vld [vmem:[#allocation31_spill] sm:$0xff] }
 0x1e9   : > { %v4410_v10 = vsel %vm17525_vm5, %v10666_v8, 0.0  ;;  %11109 = vmatprep.mubr.msk.f32.mxu0 %vm1160_vm0, %v9605_v25  ;;  %v17527_v38 = vld [vmem:[#allocation105_spill] sm:$0xff]  ;;  %v17528_v49 = vld [vmem:[#allocation6_spill] sm:$0xff] }
 0x1ea   : > { %17522 = vst [vmem:[#allocation107_spill] sm:$0xff] %v15385_v5  ;;  %v15396_v27 = vadd.f32 %v4981_v42, %v4471_v48  ;;  %v4474_v40 = vadd.f32 %v4410_v10, %v17527_v38  ;;  %v4218_v62 = vpop.f32.mrf.mxu1  ;;  %v4991_v3 = vpop.f32.mrf.mxu0  ;;  %v9607_v5 = vld [vmem:[%s11373_s30 + $0x81] sm:$0xff]  ;;  %vm17529_vm15 = vcmp.ne.s32.totalorder %v17528_v49, 0  ;;  %v17532_v48 = vld [vmem:[#allocation8_spill] sm:$0xff] }
 0x1eb   : > { %v4409_v60 = vsel %vm17529_vm15, %v4218_v62, 0.0  ;;  %11012 = vmatmul.mubr.msk.f32.gmra.mxu1 %vm1160_vm0, %v9476_v41  ;;  %vm17533_vm5 = vcmp.ne.s32.totalorder %v17532_v48, 0  ;;  %v9478_v38 = vld [vmem:[%s11373_s30 + $0x88] sm:$0xff]  ;;  %v9479_v41 = vld [vmem:[%s11373_s30 + $0x90] sm:$0xff] }
 0x1ec   : > { %17526 = vst [vmem:[#allocation77_spill] sm:$0xff] %v15396_v27  ;;  %v15403_v8 = vadd.f32 %v10764_v43, %v4474_v40  ;;  %v4473_v25 = vadd.f32 %v4409_v60, %v17531_v39  ;;  %v10669_v57 = vpop.f32.mrf.mxu1  ;;  %v10767_v42 = vpop.f32.mrf.mxu0  ;;  %11110 = vmatmul.mubr.msk.f32.gmra.mxu0 %vm1160_vm0, %v9606_v17  ;;  %11014 = vmatprep.mubr.msk.f32.mxu1 %vm1160_vm0, %v9477_v54  ;;  %v9608_v62 = vld [vmem:[%s11373_s30 + $0x89] sm:$0xff]  ;;  %v17535_v40 = vld [vmem:[#allocation66_spill] sm:$0xff] }
 0x1ed   : > { %v4412_v10 = vsel %vm17533_vm5, %v10669_v57, 0.0  ;;  %11112 = vmatprep.mubr.msk.f32.mxu0 %vm1160_vm0, %v9607_v5  ;;  %v17536_v17 = vld [vmem:[#allocation10_spill] sm:$0xff]  ;;  %v17539_v54 = vld [vmem:[#allocation43_spill] sm:$0xff] }
 0x1ee   : > { %17530 = vst [vmem:[#allocation79_spill] sm:$0xff] %v15403_v8  ;;  %v15414_v43 = vadd.f32 %v4991_v3, %v4473_v25  ;;  %v4476_v60 = vadd.f32 %v4412_v10, %v17535_v40  ;;  %v4228_v39 = vpop.f32.mrf.mxu1  ;;  %v5001_v49 = vpop.f32.mrf.mxu0  ;;  %v9609_v8 = vld [vmem:[%s11373_s30 + $0x91] sm:$0xff]  ;;  %vm17537_vm15 = vcmp.ne.s32.totalorder %v17536_v17, 0 }
 0x1ef   : > { %v4411_v48 = vsel %vm17537_vm15, %v4228_v39, 0.0  ;;  %11015 = vmatmul.mubr.msk.f32.gmra.mxu1 %vm1160_vm0, %v9478_v38  ;;  %v17540_v25 = vld [vmem:[#allocation12_spill] sm:$0xff]  ;;  %v9480_v40 = vld [vmem:[%s11373_s30 + $0x98] sm:$0xff]  ;;  %v9481_v38 = vld [vmem:[%s11373_s30 + $0xa0] sm:$0xff] }
 0x1f0   : > { %17534 = vst [vmem:[#allocation42_spill] sm:$0xff] %v15414_v43  ;;  %v15421_v57 = vadd.f32 %v10767_v42, %v4476_v60  ;;  %v4475_v5 = vadd.f32 %v4411_v48, %v17539_v54  ;;  %v10672_v27 = vpop.f32.mrf.mxu1  ;;  %v10770_v3 = vpop.f32.mrf.mxu0  ;;  %11113 = vmatmul.mubr.msk.f32.gmra.mxu0 %vm1160_vm0, %v9608_v62  ;;  %vm17541_vm5 = vcmp.ne.s32.totalorder %v17540_v25, 0  ;;  %11017 = vmatprep.mubr.msk.f32.mxu1 %vm1160_vm0, %v9479_v41  ;;  %v9610_v39 = vld [vmem:[%s11373_s30 + $0x99] sm:$0xff]  ;;  %v17547_v41 = vld [vmem:[#allocation91_spill] sm:$0xff] }
 0x1f1   : > { %v4414_v10 = vsel %vm17541_vm5, %v10672_v27, 0.0  ;;  %11115 = vmatprep.mubr.msk.f32.mxu0 %vm1160_vm0, %v9609_v8  ;;  %v17543_v60 = vld [vmem:[#allocation2_spill] sm:$0xff] }
 0x1f2   : > { %17538 = vst [vmem:[#allocation108_spill] sm:$0xff] %v15421_v57  ;;  %v15432_v42 = vadd.f32 %v5001_v49, %v4475_v5  ;;  %v4478_v48 = vadd.f32 %v4414_v10, %v17543_v60  ;;  %v4238_v54 = vpop.f32.mrf.mxu1  ;;  %v5011_v17 = vpop.f32.mrf.mxu0  ;;  %v9611_v57 = vld [vmem:[%s11373_s30 + $0xa1] sm:$0xff]  ;;  %v17548_v5 = vld [vmem:[#allocation16_spill] sm:$0xff] }
 0x1f3   : > { %v17544_v62 = vld [vmem:[#allocation14_spill] sm:$0xff]  ;;  %11018 = vmatmul.mubr.msk.f32.gmra.mxu1 %vm1160_vm0, %v9480_v40  ;;  %vm17549_vm5 = vcmp.ne.s32.totalorder %v17548_v5, 0  ;;  %v9482_v60 = vld [vmem:[%s11373_s30 + $0xa8] sm:$0xff]  ;;  %v9483_v40 = vld [vmem:[%s11373_s30 + $0xb0] sm:$0xff] }
 0x1f4   : > { %17542 = vst [vmem:[#allocation51_spill] sm:$0xff] %v15432_v42  ;;  %vm17545_vm15 = vcmp.ne.s32.totalorder %v17544_v62, 0  ;;  %v15439_v27 = vadd.f32 %v10770_v3, %v4478_v48  ;;  %v10675_v43 = vpop.f32.mrf.mxu1  ;;  %v10773_v49 = vpop.f32.mrf.mxu0  ;;  %11116 = vmatmul.mubr.msk.f32.gmra.mxu0 %vm1160_vm0, %v9610_v39  ;;  %11020 = vmatprep.mubr.msk.f32.mxu1 %vm1160_vm0, %v9481_v38  ;;  %v17550_v48 = vld [vmem:[#allocation45_spill] sm:$0xff]  ;;  %v17551_v39 = vld [vmem:[#allocation18_spill] sm:$0xff]  ;;  %v17553_v38 = vld [vmem:[#allocation47_spill] sm:$0xff] }
 0x1f5   : > { %v4413_v25 = vsel %vm17545_vm15, %v4238_v54, 0.0  ;;  %v4416_v10 = vsel %vm17549_vm5, %v10675_v43, 0.0  ;;  %11118 = vmatprep.mubr.msk.f32.mxu0 %vm1160_vm0, %v9611_v57  ;;  %v9612_v54 = vld [vmem:[%s11373_s30 + $0xa9] sm:$0xff]  ;;  %vm17552_vm15 = vcmp.ne.s32.totalorder %v17551_v39, 0  ;;  %v9615_v39 = vld [vmem:[%s11373_s30 + $0xc1] sm:$0xff]  ;;  %vm17555_vm5 = vcmp.ne.s32.totalorder %v17301_v15, 0 }
 0x1f6   : > { %17546 = vst [vmem:[#allocation54_spill] sm:$0xff] %v15439_v27  ;;  %v4477_v8 = vadd.f32 %v4413_v25, %v17547_v41  ;;  %v4480_v25 = vadd.f32 %v4416_v10, %v17550_v48  ;;  %v4248_v41 = vpop.f32.mrf.mxu1  ;;  %v5021_v62 = vpop.f32.mrf.mxu0  ;;  %v9613_v27 = vld [vmem:[%s11373_s30 + $0xb1] sm:$0xff] }
 0x1f7   : > { %v4415_v5 = vsel %vm17552_vm15, %v4248_v41, 0.0  ;;  %11021 = vmatmul.mubr.msk.f32.gmra.mxu1 %vm1160_vm0, %v9482_v60  ;;  %v9484_v48 = vld [vmem:[%s11373_s30 + $0xb8] sm:$0xff]  ;;  %v9485_v60 = vld [vmem:[%s11373_s30 + $0xc0] sm:$0xff] }
 0x1f8   : > { %v15450_v3 = vadd.f32 %v5011_v17, %v4477_v8  ;;  %v15457_v43 = vadd.f32 %v10773_v49, %v4480_v25  ;;  %v4479_v57 = vadd.f32 %v4415_v5, %v17553_v38  ;;  %v10678_v42 = vpop.f32.mrf.mxu1  ;;  %v10776_v17 = vpop.f32.mrf.mxu0  ;;  %11119 = vmatmul.mubr.msk.f32.gmra.mxu0 %vm1160_vm0, %v9612_v54  ;;  %v17554_v8 = vld [vmem:[#allocation20_spill] sm:$0xff]  ;;  %11023 = vmatprep.mubr.msk.f32.mxu1 %vm1160_vm0, %v9483_v40  ;;  %v9614_v41 = vld [vmem:[%s11373_s30 + $0xb9] sm:$0xff] }
 0x1f9   : > { %v4418_v10 = vsel %vm1779_vm8, %v10678_v42, 0.0  ;;  %11121 = vmatprep.mubr.msk.f32.mxu0 %vm1160_vm0, %v9613_v27  ;;  %v9617_v15 = vld [vmem:[%s11373_s30 + $0xd1] sm:$0xff] }
 0x1fa   : > { %v15468_v49 = vadd.f32 %v5021_v62, %v4479_v57  ;;  %v4482_v5 = vadd.f32 %v4418_v10, %v14666_v16  ;;  %v4258_v25 = vpop.f32.mrf.mxu1  ;;  %v5031_v38 = vpop.f32.mrf.mxu0  ;;  %v17556_v16 = vld [vmem:[#allocation24_spill] sm:$0xff]  ;;  %v9486_v10 = vld [vmem:[%s11373_s30 + $0xc8] sm:$0xff] }
 0x1fb   : > { %v4417_v54 = vsel %vm17555_vm5, %v4258_v25, 0.0  ;;  %11024 = vmatmul.mubr.msk.f32.gmra.mxu1 %vm1160_vm0, %v9484_v48  ;;  %vm17557_vm15 = vcmp.ne.s32.totalorder %v17556_v16, 0  ;;  %v9616_v25 = vld [vmem:[%s11373_s30 + $0xc9] sm:$0xff]  ;;  %vm17558_vm5 = vcmp.ne.s32.totalorder %v17309_v36, 0  ;;  %v9619_v36 = vld [vmem:[%s11373_s30 + $0xe1] sm:$0xff] }
 0x1fc   : > { %v15475_v42 = vadd.f32 %v10776_v17, %v4482_v5  ;;  %v4481_v27 = vadd.f32 %v4417_v54, %v14681_v11  ;;  %v10681_v40 = vpop.f32.mrf.mxu1  ;;  %v10779_v62 = vpop.f32.mrf.mxu0  ;;  %11122 = vmatmul.mubr.msk.f32.gmra.mxu0 %vm1160_vm0, %v9614_v41  ;;  %11026 = vmatprep.mubr.msk.f32.mxu1 %vm1160_vm0, %v9485_v60  ;;  %v9487_v48 = vld [vmem:[%s11373_s30 + $0xd0] sm:$0xff] }
 0x1fd   : > { %v4420_v57 = vsel %vm17557_vm15, %v10681_v40, 0.0  ;;  %11124 = vmatprep.mubr.msk.f32.mxu0 %vm1160_vm0, %v9615_v39 }
 0x1fe   : > { %v15486_v17 = vadd.f32 %v5031_v38, %v4481_v27  ;;  %v4484_v11 = vadd.f32 %v4420_v57, %v14706_v1  ;;  %v4268_v5 = vpop.f32.mrf.mxu1  ;;  %v5041_v54 = vpop.f32.mrf.mxu0  ;;  %v17559_v1 = vld [vmem:[#allocation34_spill] sm:$0xff]  ;;  %v9488_v57 = vld [vmem:[%s11373_s30 + $0xd8] sm:$0xff] }
 0x1ff   : > { %v4419_v41 = vsel %vm17558_vm5, %v4268_v5, 0.0  ;;  %11027 = vmatmul.mubr.msk.f32.gmra.mxu1 %vm1160_vm0, %v9486_v10  ;;  %vm17560_vm15 = vcmp.ne.s32.totalorder %v17559_v1, 0  ;;  %v9618_v5 = vld [vmem:[%s11373_s30 + $0xd9] sm:$0xff]  ;;  %vm17561_vm5 = vcmp.ne.s32.totalorder %v17314_v24, 0 }
 0x200   : > { %v15493_v40 = vadd.f32 %v10779_v62, %v4484_v11  ;;  %v4483_v39 = vadd.f32 %v4419_v41, %v14730_v28  ;;  %v10684_v60 = vpop.f32.mrf.mxu1  ;;  %v10782_v38 = vpop.f32.mrf.mxu0  ;;  %11125 = vmatmul.mubr.msk.f32.gmra.mxu0 %vm1160_vm0, %v9616_v25  ;;  %11029 = vmatprep.mubr.msk.f32.mxu1 %vm1160_vm0, %v9487_v48  ;;  %v9489_v10 = vld [vmem:[%s11373_s30 + $0xe0] sm:$0xff]  ;;  %v17563_v48 = vld [vmem:[#allocation71_spill] sm:$0xff] }
 0x201   : > { %v4422_v27 = vsel %vm17560_vm15, %v10684_v60, 0.0  ;;  %11127 = vmatprep.mubr.msk.f32.mxu0 %vm1160_vm0, %v9617_v15 }
 0x202   : > { %v15504_v62 = vadd.f32 %v5041_v54, %v4483_v39  ;;  %v4486_v28 = vadd.f32 %v4422_v27, %v14752_v19  ;;  %v4278_v11 = vpop.f32.mrf.mxu1  ;;  %v5051_v41 = vpop.f32.mrf.mxu0  ;;  %v17564_v19 = vld [vmem:[#allocation50_spill] sm:$0xff]  ;;  %v9490_v27 = vld [vmem:[%s11373_s30 + $0xe8] sm:$0xff] }
 0x203   : > { %v4421_v25 = vsel %vm17561_vm5, %v4278_v11, 0.0  ;;  %11030 = vmatmul.mubr.msk.f32.gmra.mxu1 %vm1160_vm0, %v9488_v57  ;;  %vm17565_vm15 = vcmp.ne.s32.totalorder %v17564_v19, 0  ;;  %v9620_v11 = vld [vmem:[%s11373_s30 + $0xe9] sm:$0xff]  ;;  %vm17568_vm5 = vcmp.ne.s32.totalorder %v17337_v23, 0 }
 0x204   : > { %v15511_v60 = vadd.f32 %v10782_v38, %v4486_v28  ;;  %v4485_v15 = vadd.f32 %v4421_v25, %v17563_v48  ;;  %v10687_v1 = vpop.f32.mrf.mxu1  ;;  %v10785_v54 = vpop.f32.mrf.mxu0  ;;  %11128 = vmatmul.mubr.msk.f32.gmra.mxu0 %vm1160_vm0, %v9618_v5  ;;  %11032 = vmatprep.mubr.msk.f32.mxu1 %vm1160_vm0, %v9489_v10  ;;  %v17566_v28 = vld [vmem:[#allocation94_spill] sm:$0xff]  ;;  %v9491_v57 = vld [vmem:[%s11373_s30 + $0xf0] sm:$0xff] }
 0x205   : > { %v4424_v39 = vsel %vm17565_vm15, %v10687_v1, 0.0  ;;  %11130 = vmatprep.mubr.msk.f32.mxu0 %vm1160_vm0, %v9619_v36  ;;  %v17567_v5 = vld [vmem:[#allocation56_spill] sm:$0xff]  ;;  %vm17569_vm15 = vcmp.ne.s32.totalorder %v17343_v55, 0 }
 0x206   : > { %17562 = vst [vmem:[#allocation60_spill] sm:$0xff] %v15511_v60  ;;  %v15522_v38 = vadd.f32 %v5051_v41, %v4485_v15  ;;  %v4488_v25 = vadd.f32 %v4424_v39, %v17566_v28  ;;  %v4288_v48 = vpop.f32.mrf.mxu1  ;;  %v5061_v24 = vpop.f32.mrf.mxu0  ;;  %v9621_v60 = vld [vmem:[%s11373_s30 + $0xf1] sm:$0xff]  ;;  %v9622_v28 = vld [vmem:[%s11373_s30 + $0xf9] sm:$0xff] }
 0x207   : > { %v4423_v19 = vsel %vm1784_vm9, %v4288_v48, 0.0  ;;  %11033 = vmatmul.mubr.msk.f32.gmra.mxu1 %vm1160_vm0, %v9490_v27  ;;  %v9492_v39 = vld [vmem:[%s11373_s30 + $0xf8] sm:$0xff]  ;;  %v9493_v27 = vld [vmem:[%s11373_s30 + $0x100] sm:$0xff] }
 0x208   : > { %v15529_v1 = vadd.f32 %v10785_v54, %v4488_v25  ;;  %v4487_v36 = vadd.f32 %v4423_v19, %v14802_v58  ;;  %v10690_v10 = vpop.f32.mrf.mxu1  ;;  %v10788_v41 = vpop.f32.mrf.mxu0  ;;  %11131 = vmatmul.mubr.msk.f32.gmra.mxu0 %vm1160_vm0, %v9620_v11  ;;  %11035 = vmatprep.mubr.msk.f32.mxu1 %vm1160_vm0, %v9491_v57  ;;  %v9623_v48 = vld [vmem:[%s11373_s30 + $0x101] sm:$0xff] }
 0x209   : > { %v4426_v15 = vsel %vm1787_vm11, %v10690_v10, 0.0  ;;  %11133 = vmatprep.mubr.msk.f32.mxu0 %vm1160_vm0, %v9621_v60 }
 0x20a   : > { %v15540_v54 = vadd.f32 %v5061_v24, %v4487_v36  ;;  %v4490_v58 = vadd.f32 %v4426_v15, %v14827_v32  ;;  %v4298_v19 = vpop.f32.mrf.mxu1  ;;  %v5071_v25 = vpop.f32.mrf.mxu0  ;;  %v9494_v36 = vld [vmem:[%s11373_s30 + $0x108] sm:$0xff] }
 0x20b   : > { %v4425_v11 = vsel %vm17568_vm5, %v4298_v19, 0.0  ;;  %11036 = vmatmul.mubr.msk.f32.gmra.mxu1 %vm1160_vm0, %v9492_v39  ;;  %v9624_v15 = vld [vmem:[%s11373_s30 + $0x109] sm:$0xff]  ;;  %vm17570_vm5 = vcmp.ne.s32.totalorder %v17354_v61, 0 }
 0x20c   : > { %v15547_v10 = vadd.f32 %v10788_v41, %v4490_v58  ;;  %v4489_v60 = vadd.f32 %v4425_v11, %v14850_v37  ;;  %v10693_v57 = vpop.f32.mrf.mxu1  ;;  %v10791_v24 = vpop.f32.mrf.mxu0  ;;  %11134 = vmatmul.mubr.msk.f32.gmra.mxu0 %vm1160_vm0, %v9622_v28  ;;  %11038 = vmatprep.mubr.msk.f32.mxu1 %vm1160_vm0, %v9493_v27  ;;  %v9495_v39 = vld [vmem:[%s11373_s30 + $0x110] sm:$0xff] }
 0x20d   : > { %v4428_v32 = vsel %vm17569_vm15, %v10693_v57, 0.0  ;;  %11136 = vmatprep.mubr.msk.f32.mxu0 %vm1160_vm0, %v9623_v48  ;;  %v9625_v11 = vld [vmem:[%s11373_s30 + $0x111] sm:$0xff]  ;;  %vm17571_vm15 = vcmp.ne.s32.totalorder %v17365_v22, 0 }
 0x20e   : > { %v15558_v41 = vadd.f32 %v5071_v25, %v4489_v60  ;;  %v4492_v37 = vadd.f32 %v4428_v32, %v14865_v12  ;;  %v4308_v58 = vpop.f32.mrf.mxu1  ;;  %v5081_v19 = vpop.f32.mrf.mxu0  ;;  %v9496_v60 = vld [vmem:[%s11373_s30 + $0x118] sm:$0xff] }
 0x20f   : > { %v4427_v28 = vsel %vm1788_vm14, %v4308_v58, 0.0  ;;  %11039 = vmatmul.mubr.msk.f32.gmra.mxu1 %vm1160_vm0, %v9494_v36  ;;  %v9626_v32 = vld [vmem:[%s11373_s30 + $0x119] sm:$0xff] }
 0x210   : > { %v15565_v57 = vadd.f32 %v10791_v24, %v4492_v37  ;;  %v4491_v27 = vadd.f32 %v4427_v28, %v14876_v4  ;;  %v10696_v48 = vpop.f32.mrf.mxu1  ;;  %v10794_v25 = vpop.f32.mrf.mxu0  ;;  %11137 = vmatmul.mubr.msk.f32.gmra.mxu0 %vm1160_vm0, %v9624_v15  ;;  %11041 = vmatprep.mubr.msk.f32.mxu1 %vm1160_vm0, %v9495_v39  ;;  %v9497_v36 = vld [vmem:[%s11373_s30 + $0x120] sm:$0xff] }
 0x211   : > { %v4430_v12 = vsel %vm17570_vm5, %v10696_v48, 0.0  ;;  %11139 = vmatprep.mubr.msk.f32.mxu0 %vm1160_vm0, %v9625_v11  ;;  %v9627_v28 = vld [vmem:[%s11373_s30 + $0x121] sm:$0xff]  ;;  %vm17572_vm5 = vcmp.ne.s32.totalorder %v14428_v45, 0 }
 0x212   : > { %v15576_v24 = vadd.f32 %v5081_v19, %v4491_v27  ;;  %v4494_v4 = vadd.f32 %v4430_v12, %v14902_v31  ;;  %v4318_v37 = vpop.f32.mrf.mxu1  ;;  %v5091_v58 = vpop.f32.mrf.mxu0  ;;  %v9498_v27 = vld [vmem:[%s11373_s30 + $0x128] sm:$0xff] }
 0x213   : > { %v4429_v15 = vsel %vm17571_vm15, %v4318_v37, 0.0  ;;  %11042 = vmatmul.mubr.msk.f32.gmra.mxu1 %vm1160_vm0, %v9496_v60  ;;  %v9628_v12 = vld [vmem:[%s11373_s30 + $0x129] sm:$0xff]  ;;  %vm17573_vm15 = vcmp.ne.s32.totalorder %v14488_v2, 0 }
 0x214   : > { %v15583_v48 = vadd.f32 %v10794_v25, %v4494_v4  ;;  %v4493_v39 = vadd.f32 %v4429_v15, %v14917_v44  ;;  %v10699_v11 = vpop.f32.mrf.mxu1  ;;  %v10797_v19 = vpop.f32.mrf.mxu0  ;;  %11140 = vmatmul.mubr.msk.f32.gmra.mxu0 %vm1160_vm0, %v9626_v32  ;;  %11044 = vmatprep.mubr.msk.f32.mxu1 %vm1160_vm0, %v9497_v36  ;;  %v9499_v60 = vld [vmem:[%s11373_s30 + $0x130] sm:$0xff] }
 0x215   : > { %v4432_v31 = vsel %vm17572_vm5, %v10699_v11, 0.0  ;;  %11142 = vmatprep.mubr.msk.f32.mxu0 %vm1160_vm0, %v9627_v28  ;;  %v9629_v15 = vld [vmem:[%s11373_s30 + $0x131] sm:$0xff]  ;;  %vm17574_vm5 = vcmp.ne.s32.totalorder %v14582_v14, 0 }
 0x216   : > { %v15594_v25 = vadd.f32 %v5091_v58, %v4493_v39  ;;  %v4496_v44 = vadd.f32 %v4432_v31, %v14948_v50  ;;  %v4328_v4 = vpop.f32.mrf.mxu1  ;;  %v5101_v37 = vpop.f32.mrf.mxu0  ;;  %v9500_v39 = vld [vmem:[%s11373_s30 + $0x138] sm:$0xff] }
 0x217   : > { %v4431_v32 = vsel %vm17573_vm15, %v4328_v4, 0.0  ;;  %11045 = vmatmul.mubr.msk.f32.gmra.mxu1 %vm1160_vm0, %v9498_v27  ;;  %v9630_v31 = vld [vmem:[%s11373_s30 + $0x139] sm:$0xff]  ;;  %vm17575_vm15 = vcmp.ne.s32.totalorder %v14674_v9, 0 }
 0x218   : > { %v15601_v11 = vadd.f32 %v10797_v19, %v4496_v44  ;;  %v4495_v36 = vadd.f32 %v4431_v32, %v14972_v52  ;;  %v10702_v28 = vpop.f32.mrf.mxu1  ;;  %v10800_v58 = vpop.f32.mrf.mxu0  ;;  %11143 = vmatmul.mubr.msk.f32.gmra.mxu0 %vm1160_vm0, %v9628_v12  ;;  %11047 = vmatprep.mubr.msk.f32.mxu1 %vm1160_vm0, %v9499_v60  ;;  %v9501_v27 = vld [vmem:[%s11373_s30 + $0x140] sm:$0xff] }
 0x219   : > { %v4434_v50 = vsel %vm17574_vm5, %v10702_v28, 0.0  ;;  %11145 = vmatprep.mubr.msk.f32.mxu0 %vm1160_vm0, %v9629_v15  ;;  %v9631_v32 = vld [vmem:[%s11373_s30 + $0x141] sm:$0xff] }
 0x21a   : > { %v15612_v19 = vadd.f32 %v5101_v37, %v4495_v36  ;;  %v4498_v52 = vadd.f32 %v4434_v50, %v14996_v20  ;;  %v4338_v44 = vpop.f32.mrf.mxu1  ;;  %v5111_v4 = vpop.f32.mrf.mxu0  ;;  %v9502_v36 = vld [vmem:[%s11373_s30 + $0x148] sm:$0xff] }
 0x21b   : > { %v4433_v12 = vsel %vm17575_vm15, %v4338_v44, 0.0  ;;  %11048 = vmatmul.mubr.msk.f32.gmra.mxu1 %vm1160_vm0, %v9500_v39  ;;  %v9632_v50 = vld [vmem:[%s11373_s30 + $0x149] sm:$0xff] }
 0x21c   : > { %v15619_v28 = vadd.f32 %v10800_v58, %v4498_v52  ;;  %v4497_v60 = vadd.f32 %v4433_v12, %v15022_v7  ;;  %v10705_v15 = vpop.f32.mrf.mxu1  ;;  %v10803_v37 = vpop.f32.mrf.mxu0  ;;  %11146 = vmatmul.mubr.msk.f32.gmra.mxu0 %vm1160_vm0, %v9630_v31  ;;  %11050 = vmatprep.mubr.msk.f32.mxu1 %vm1160_vm0, %v9501_v27  ;;  %v9503_v39 = vld [vmem:[%s11373_s30 + $0x150] sm:$0xff] }
 0x21d   : > { %v4436_v20 = vsel %vm1797_vm2, %v10705_v15, 0.0  ;;  %11148 = vmatprep.mubr.msk.f32.mxu0 %vm1160_vm0, %v9631_v32  ;;  %v9633_v12 = vld [vmem:[%s11373_s30 + $0x151] sm:$0xff] }
 0x21e   : > { %v15630_v58 = vadd.f32 %v5111_v4, %v4497_v60  ;;  %v4500_v7 = vadd.f32 %v4436_v20, %v15042_v63  ;;  %v4348_v52 = vpop.f32.mrf.mxu1  ;;  %v5121_v44 = vpop.f32.mrf.mxu0  ;;  %v9504_v60 = vld [vmem:[%s11373_s30 + $0x158] sm:$0xff] }
 0x21f   : > { %v4435_v31 = vsel %vm1796_vm6, %v4348_v52, 0.0  ;;  %11051 = vmatmul.mubr.msk.f32.gmra.mxu1 %vm1160_vm0, %v9502_v36  ;;  %v9634_v20 = vld [vmem:[%s11373_s30 + $0x159] sm:$0xff] }
 0x220   : > { %v15637_v15 = vadd.f32 %v10803_v37, %v4500_v7  ;;  %v4499_v27 = vadd.f32 %v4435_v31, %v15058_v0  ;;  %v10708_v32 = vpop.f32.mrf.mxu1  ;;  %v10806_v4 = vpop.f32.mrf.mxu0  ;;  %11149 = vmatmul.mubr.msk.f32.gmra.mxu0 %vm1160_vm0, %v9632_v50  ;;  %11053 = vmatprep.mubr.msk.f32.mxu1 %vm1160_vm0, %v9503_v39  ;;  %v9505_v36 = vld [vmem:[%s11373_s30 + $0x160] sm:$0xff] }
 0x221   : > { %v4438_v63 = vsel %vm1799_vm1, %v10708_v32, 0.0  ;;  %11151 = vmatprep.mubr.msk.f32.mxu0 %vm1160_vm0, %v9633_v12  ;;  %v9635_v31 = vld [vmem:[%s11373_s30 + $0x161] sm:$0xff] }
 0x222   : > { %v15648_v37 = vadd.f32 %v5121_v44, %v4499_v27  ;;  %v4502_v0 = vadd.f32 %v4438_v63, %v15073_v18  ;;  %v4358_v7 = vpop.f32.mrf.mxu1  ;;  %v5131_v52 = vpop.f32.mrf.mxu0  ;;  %v9506_v63 = vld [vmem:[%s11373_s30 + $0x168] sm:$0xff] }
 0x223   : > { %v4437_v50 = vsel %vm1798_vm3, %v4358_v7, 0.0  ;;  %11054 = vmatmul.mubr.msk.f32.gmra.mxu1 %vm1160_vm0, %v9504_v60  ;;  %v9636_v7 = vld [vmem:[%s11373_s30 + $0x169] sm:$0xff] }
 0x224   : > { %v15655_v32 = vadd.f32 %v10806_v4, %v4502_v0  ;;  %v4501_v39 = vadd.f32 %v4437_v50, %v15083_v13  ;;  %v10711_v12 = vpop.f32.mrf.mxu1  ;;  %v10809_v44 = vpop.f32.mrf.mxu0  ;;  %11152 = vmatmul.mubr.msk.f32.gmra.mxu0 %vm1160_vm0, %v9634_v20  ;;  %11056 = vmatprep.mubr.msk.f32.mxu1 %vm1160_vm0, %v9505_v36  ;;  %v17578_v0 = vld [vmem:[#allocation83_spill] sm:$0xff]  ;;  %v9507_v60 = vld [vmem:[%s11373_s30 + $0x170] sm:$0xff] }
 0x225   : > { %v4440_v27 = vsel %vm16926_vm13, %v10711_v12, 0.0  ;;  %11154 = vmatprep.mubr.msk.f32.mxu0 %vm1160_vm0, %v9635_v31 }
 0x226   : > { %17576 = vst [vmem:[#allocation109_spill] sm:$0xff] %v15655_v32  ;;  %v15666_v4 = vadd.f32 %v5131_v52, %v4501_v39  ;;  %v4504_v35 = vadd.f32 %v4440_v27, %v17578_v0  ;;  %v4368_v13 = vpop.f32.mrf.mxu1  ;;  %v5141_v50 = vpop.f32.mrf.mxu0  ;;  %v9637_v32 = vld [vmem:[%s11373_s30 + $0x171] sm:$0xff]  ;;  %v17581_v39 = vld [vmem:[#allocation3_spill] sm:$0xff] }
 0x227   : > { %v4439_v18 = vsel %vm16900_vm4, %v4368_v13, 0.0  ;;  %11057 = vmatmul.mubr.msk.f32.gmra.mxu1 %vm1160_vm0, %v9506_v63  ;;  %vm17582_vm5 = vcmp.ne.s32.totalorder %v17581_v39, 31  ;;  %vm17583_vm15 = vcmp.ne.s32.totalorder %v17581_v39, 0  ;;  %vm17589_vm4 = vcmp.ne.s32.totalorder %v17418_v6, 31 }
 0x228   : > { %v15673_v12 = vadd.f32 %v10809_v44, %v4504_v35  ;;  %v4503_v36 = vadd.f32 %v4439_v18, %v15102_v30  ;;  %v10814_v31 = vpop.f32.mrf.mxu1  ;;  %v10912_v52 = vpop.f32.mrf.mxu0  ;;  %11155 = vmatmul.mubr.msk.f32.gmra.mxu0 %vm1160_vm0, %v9636_v7  ;;  %11059 = vmatprep.mubr.msk.f32.mxu1 %vm1160_vm0, %v9507_v60  ;;  %v9508_v35 = vld [vmem:[%s11373_s30 + $0x178] sm:$0xff]  ;;  %v17584_v18 = vld [vmem:[#allocation26_spill] sm:$0xff] }
 0x229   : > { %v5860_v27 = vsel %vm17582_vm5, %v10814_v31, 0.0  ;;  %v6633_v0 = vsel %vm17583_vm15, %v10912_v52, 0.0  ;;  %11157 = vmatprep.mubr.msk.f32.mxu0 %vm1160_vm0, %v9637_v32  ;;  %v9638_v44 = vld [vmem:[%s11373_s30 + $0x179] sm:$0xff] }
 0x22a   : > { %17580 = vst [vmem:[#allocation110_spill] sm:$0xff] %v15673_v12  ;;  %v15686_v30 = vadd.f32 %v5141_v50, %v4503_v36  ;;  %v5924_v13 = vadd.f32 %v5860_v27, %v17584_v18  ;;  %v5540_v20 = vpop.f32.mrf.mxu1  ;;  %v6313_v63 = vpop.f32.mrf.mxu0  ;;  %v9509_v7 = vld [vmem:[%s11373_s30 + $0x180] sm:$0xff]  ;;  %v17585_v31 = vld [vmem:[#allocation5_spill] sm:$0xff] }
 0x22b   : > { %v9639_v12 = vld [vmem:[%s11373_s30 + $0x181] sm:$0xff]  ;;  %vm17586_vm5 = vcmp.ne.s32.totalorder %v17585_v31, 31  ;;  %11060 = vmatmul.mubr.msk.f32.gmra.mxu1 %vm1160_vm0, %v9508_v35  ;;  %vm17588_vm15 = vcmp.ne.s32.totalorder %v17585_v31, 0 }
 0x22c   : > { %v5859_v39 = vsel %vm17586_vm5, %v5540_v20, 0.0  ;;  %v15693_v52 = vadd.f32 %v6633_v0, %v5924_v13  ;;  %v10817_v60 = vpop.f32.mrf.mxu1  ;;  %v10915_v50 = vpop.f32.mrf.mxu0  ;;  %11158 = vmatmul.mubr.msk.f32.gmra.mxu0 %vm1160_vm0, %v9638_v44  ;;  %v6632_v36 = vsel %vm17588_vm15, %v6313_v63, 0.0  ;;  %vm17590_vm5 = vcmp.ne.s32.totalorder %v17418_v6, 0  ;;  %11062 = vmatprep.mubr.msk.f32.mxu1 %vm1160_vm0, %v9509_v7  ;;  %v17591_v0 = vld [vmem:[#allocation88_spill] sm:$0xff] }
 0x22d   : > { %v5923_v32 = vadd.f32 %v5859_v39, %v15126_v29  ;;  %v5862_v27 = vsel %vm17589_vm4, %v10817_v60, 0.0  ;;  %v6635_v20 = vsel %vm17590_vm5, %v10915_v50, 0.0  ;;  %11160 = vmatprep.mubr.msk.f32.mxu0 %vm1160_vm0, %v9639_v12  ;;  %v9510_v29 = vld [vmem:[%s11373_s30 + $0x188] sm:$0xff]  ;;  %v9511_v44 = vld [vmem:[%s11373_s30 + $0x190] sm:$0xff]  ;;  %v17592_v60 = vld [vmem:[#allocation9_spill] sm:$0xff] }
 0x22e   : > { %17587 = vst [vmem:[#allocation111_spill] sm:$0xff] %v15693_v52  ;;  %v9640_v39 = vld [vmem:[%s11373_s30 + $0x189] sm:$0xff]  ;;  %v5926_v18 = vadd.f32 %v5862_v27, %v17591_v0  ;;  %v5550_v35 = vpop.f32.mrf.mxu1  ;;  %v6323_v13 = vpop.f32.mrf.mxu0  ;;  %v9641_v63 = vld [vmem:[%s11373_s30 + $0x191] sm:$0xff]  ;;  %vm17593_vm4 = vcmp.ne.s32.totalorder %v17592_v60, 31  ;;  %vm17594_vm15 = vcmp.ne.s32.totalorder %v17592_v60, 0 }
 0x22f   : > { %v15711_v31 = vadd.f32 %v6632_v36, %v5923_v32  ;;  %v5861_v6 = vsel %vm17593_vm4, %v5550_v35, 0.0  ;;  %11063 = vmatmul.mubr.msk.f32.gmra.mxu1 %vm1160_vm0, %v9510_v29  ;;  %v6634_v27 = vsel %vm17594_vm15, %v6323_v13, 0.0  ;;  %v17595_v32 = vld [vmem:[#allocation11_spill] sm:$0xff]  ;;  %vm17598_vm15 = vcmp.ne.s32.totalorder %v17425_v33, 31 }
 0x230   : > { %v15715_v50 = vadd.f32 %v6635_v20, %v5926_v18  ;;  %v5925_v12 = vadd.f32 %v5861_v6, %v15144_v26  ;;  %v10820_v7 = vpop.f32.mrf.mxu1  ;;  %v10918_v52 = vpop.f32.mrf.mxu0  ;;  %11161 = vmatmul.mubr.msk.f32.gmra.mxu0 %vm1160_vm0, %v9640_v39  ;;  %vm17596_vm5 = vcmp.ne.s32.totalorder %v17595_v32, 31  ;;  %vm17597_vm4 = vcmp.ne.s32.totalorder %v17595_v32, 0  ;;  %11065 = vmatprep.mubr.msk.f32.mxu1 %vm1160_vm0, %v9511_v44  ;;  %v9512_v6 = vld [vmem:[%s11373_s30 + $0x198] sm:$0xff]  ;;  %v9513_v39 = vld [vmem:[%s11373_s30 + $0x1a0] sm:$0xff] }
 0x231   : > { %v5864_v36 = vsel %vm17596_vm5, %v10820_v7, 0.0  ;;  %v6637_v20 = vsel %vm17597_vm4, %v10918_v52, 0.0  ;;  %11163 = vmatprep.mubr.msk.f32.mxu0 %vm1160_vm0, %v9641_v63  ;;  %v9642_v26 = vld [vmem:[%s11373_s30 + $0x199] sm:$0xff]  ;;  %v9643_v35 = vld [vmem:[%s11373_s30 + $0x1a1] sm:$0xff]  ;;  %vm17600_vm5 = vcmp.ne.s32.totalorder %v17425_v33, 0  ;;  %vm17601_vm4 = vcmp.ne.s32.totalorder %v17239_v51, 31 }
 0x232   : > { %v5928_v0 = vadd.f32 %v5864_v36, %v15151_v56  ;;  %v5560_v29 = vpop.f32.mrf.mxu1  ;;  %v6333_v18 = vpop.f32.mrf.mxu0  ;;  %v15733_v13 = vadd.f32 %v6634_v27, %v5925_v12  ;;  %v9644_v36 = vld [vmem:[%s11373_s30 + $0x1a9] sm:$0xff] }
 0x233   : > { %v5863_v7 = vsel %vm17598_vm15, %v5560_v29, 0.0  ;;  %11066 = vmatmul.mubr.msk.f32.gmra.mxu1 %vm1160_vm0, %v9512_v6  ;;  %v6636_v56 = vsel %vm17600_vm5, %v6333_v18, 0.0  ;;  %vm17602_vm15 = vcmp.ne.s32.totalorder %v17239_v51, 0  ;;  %v9645_v18 = vld [vmem:[%s11373_s30 + $0x1b1] sm:$0xff] }
 0x234   : > { %v15737_v52 = vadd.f32 %v6637_v20, %v5928_v0  ;;  %v5927_v44 = vadd.f32 %v5863_v7, %v15162_v21  ;;  %v10823_v63 = vpop.f32.mrf.mxu1  ;;  %v10921_v32 = vpop.f32.mrf.mxu0  ;;  %11164 = vmatmul.mubr.msk.f32.gmra.mxu0 %vm1160_vm0, %v9642_v26  ;;  %11068 = vmatprep.mubr.msk.f32.mxu1 %vm1160_vm0, %v9513_v39  ;;  %v9514_v21 = vld [vmem:[%s11373_s30 + $0x1a8] sm:$0xff]  ;;  %v17603_v20 = vld [vmem:[#allocation58_spill] sm:$0xff]  ;;  %v9515_v26 = vld [vmem:[%s11373_s30 + $0x1b0] sm:$0xff] }
 0x235   : > { %v5866_v12 = vsel %vm17601_vm4, %v10823_v63, 0.0  ;;  %v6639_v27 = vsel %vm17602_vm15, %v10921_v32, 0.0  ;;  %11166 = vmatprep.mubr.msk.f32.mxu0 %vm1160_vm0, %v9643_v35  ;;  %v17605_v63 = vld [vmem:[#allocation17_spill] sm:$0xff] }
 0x236   : > { %17599 = vst [vmem:[#allocation112_spill] sm:$0xff] %v15737_v52  ;;  %v5930_v0 = vadd.f32 %v5866_v12, %v17603_v20  ;;  %v5570_v6 = vpop.f32.mrf.mxu1  ;;  %v6343_v29 = vpop.f32.mrf.mxu0  ;;  %v15755_v7 = vadd.f32 %v6636_v56, %v5927_v44  ;;  %vm17606_vm5 = vcmp.ne.s32.totalorder %v17605_v63, 31  ;;  %v17608_v39 = vld [vmem:[#allocation29_spill] sm:$0xff]  ;;  %vm17609_vm4 = vcmp.ne.s32.totalorder %v17605_v63, 0  ;;  %v17610_v44 = vld [vmem:[#allocation19_spill] sm:$0xff] }
 0x237   : > { %v5865_v51 = vsel %vm17606_vm5, %v5570_v6, 0.0  ;;  %11069 = vmatmul.mubr.msk.f32.gmra.mxu1 %vm1160_vm0, %v9514_v21  ;;  %v6638_v12 = vsel %vm17609_vm4, %v6343_v29, 0.0  ;;  %vm17611_vm15 = vcmp.ne.s32.totalorder %v17610_v44, 31  ;;  %vm17612_vm5 = vcmp.ne.s32.totalorder %v17610_v44, 0  ;;  %v9646_v20 = vld [vmem:[%s11373_s30 + $0x1b9] sm:$0xff]  ;;  %v9647_v29 = vld [vmem:[%s11373_s30 + $0x1c1] sm:$0xff] }
 0x238   : > { %17604 = vst [vmem:[#allocation64_spill] sm:$0xff] %v15755_v7  ;;  %v15759_v32 = vadd.f32 %v6639_v27, %v5930_v0  ;;  %v5929_v35 = vadd.f32 %v5865_v51, %v17608_v39  ;;  %v10826_v33 = vpop.f32.mrf.mxu1  ;;  %v10924_v52 = vpop.f32.mrf.mxu0  ;;  %11167 = vmatmul.mubr.msk.f32.gmra.mxu0 %vm1160_vm0, %v9644_v36  ;;  %11071 = vmatprep.mubr.msk.f32.mxu1 %vm1160_vm0, %v9515_v26  ;;  %v9516_v51 = vld [vmem:[%s11373_s30 + $0x1b8] sm:$0xff]  ;;  %v9517_v36 = vld [vmem:[%s11373_s30 + $0x1c0] sm:$0xff]  ;;  %v17618_v26 = vld [vmem:[#allocation63_spill] sm:$0xff] }
 0x239   : > { %v5868_v56 = vsel %vm17611_vm15, %v10826_v33, 0.0  ;;  %v6641_v27 = vsel %vm17612_vm5, %v10924_v52, 0.0  ;;  %11169 = vmatprep.mubr.msk.f32.mxu0 %vm1160_vm0, %v9645_v18  ;;  %v17613_v0 = vld [vmem:[#allocation61_spill] sm:$0xff] }
 0x23a   : > { %17607 = vst [vmem:[#allocation106_spill] sm:$0xff] %v15759_v32  ;;  %v5932_v6 = vadd.f32 %v5868_v56, %v17613_v0  ;;  %v5580_v21 = vpop.f32.mrf.mxu1  ;;  %v6353_v39 = vpop.f32.mrf.mxu0  ;;  %v15777_v63 = vadd.f32 %v6638_v12, %v5929_v35  ;;  %v17615_v33 = vld [vmem:[#allocation21_spill] sm:$0xff]  ;;  %v17620_v35 = vld [vmem:[#allocation23_spill] sm:$0xff] }
 0x23b   : > { %vm17616_vm4 = vcmp.ne.s32.totalorder %v17615_v33, 31  ;;  %11072 = vmatmul.mubr.msk.f32.gmra.mxu1 %vm1160_vm0, %v9516_v51  ;;  %vm17619_vm15 = vcmp.ne.s32.totalorder %v17615_v33, 0  ;;  %vm17621_vm5 = vcmp.ne.s32.totalorder %v17620_v35, 31  ;;  %v9648_v0 = vld [vmem:[%s11373_s30 + $0x1c9] sm:$0xff] }
 0x23c   : > { %17614 = vst [vmem:[#allocation84_spill] sm:$0xff] %v15777_v63  ;;  %v5867_v44 = vsel %vm17616_vm4, %v5580_v21, 0.0  ;;  %v15781_v52 = vadd.f32 %v6641_v27, %v5932_v6  ;;  %v10829_v32 = vpop.f32.mrf.mxu1  ;;  %v10927_v7 = vpop.f32.mrf.mxu0  ;;  %11170 = vmatmul.mubr.msk.f32.gmra.mxu0 %vm1160_vm0, %v9646_v20  ;;  %v6640_v56 = vsel %vm17619_vm15, %v6353_v39, 0.0  ;;  %vm17622_vm4 = vcmp.ne.s32.totalorder %v17620_v35, 0  ;;  %11074 = vmatprep.mubr.msk.f32.mxu1 %vm1160_vm0, %v9517_v36  ;;  %v17623_v6 = vld [vmem:[#allocation27_spill] sm:$0xff]  ;;  %v9519_v20 = vld [vmem:[%s11373_s30 + $0x1d0] sm:$0xff] }
 0x23d   : > { %v5931_v18 = vadd.f32 %v5867_v44, %v17618_v26  ;;  %v5870_v12 = vsel %vm17621_vm5, %v10829_v32, 0.0  ;;  %v6643_v27 = vsel %vm17622_vm4, %v10927_v7, 0.0  ;;  %11172 = vmatprep.mubr.msk.f32.mxu0 %vm1160_vm0, %v9647_v29  ;;  %v9518_v44 = vld [vmem:[%s11373_s30 + $0x1c8] sm:$0xff]  ;;  %v9649_v39 = vld [vmem:[%s11373_s30 + $0x1d1] sm:$0xff]  ;;  %v17628_v36 = vld [vmem:[#allocation30_spill] sm:$0xff] }
 0x23e   : > { %17617 = vst [vmem:[#allocation113_spill] sm:$0xff] %v15781_v52  ;;  %v5934_v21 = vadd.f32 %v5870_v12, %v17623_v6  ;;  %v5590_v51 = vpop.f32.mrf.mxu1  ;;  %v6363_v26 = vpop.f32.mrf.mxu0  ;;  %v17625_v32 = vld [vmem:[#allocation25_spill] sm:$0xff] }
 0x23f   : > { %v15799_v33 = vadd.f32 %v6640_v56, %v5931_v18  ;;  %vm17626_vm15 = vcmp.ne.s32.totalorder %v17625_v32, 31  ;;  %11075 = vmatmul.mubr.msk.f32.gmra.mxu1 %vm1160_vm0, %v9518_v44  ;;  %vm17629_vm5 = vcmp.ne.s32.totalorder %v17625_v32, 0  ;;  %v17630_v18 = vld [vmem:[#allocation33_spill] sm:$0xff] }
 0x240   : > { %v5869_v35 = vsel %vm17626_vm15, %v5590_v51, 0.0  ;;  %v15803_v7 = vadd.f32 %v6643_v27, %v5934_v21  ;;  %v10832_v52 = vpop.f32.mrf.mxu1  ;;  %v10930_v63 = vpop.f32.mrf.mxu0  ;;  %11173 = vmatmul.mubr.msk.f32.gmra.mxu0 %vm1160_vm0, %v9648_v0  ;;  %v6642_v12 = vsel %vm17629_vm5, %v6363_v26, 0.0  ;;  %vm17631_vm4 = vcmp.ne.s32.totalorder %v17630_v18, 31  ;;  %11077 = vmatprep.mubr.msk.f32.mxu1 %vm1160_vm0, %v9519_v20  ;;  %v9650_v6 = vld [vmem:[%s11373_s30 + $0x1d9] sm:$0xff]  ;;  %v9651_v26 = vld [vmem:[%s11373_s30 + $0x1e1] sm:$0xff] }
 0x241   : > { %17624 = vst [vmem:[#allocation115_spill] sm:$0xff] %v15799_v33  ;;  %v5933_v29 = vadd.f32 %v5869_v35, %v17628_v36  ;;  %v5872_v56 = vsel %vm17631_vm4, %v10832_v52, 0.0  ;;  %vm17632_vm15 = vcmp.ne.s32.totalorder %v17630_v18, 0  ;;  %11175 = vmatprep.mubr.msk.f32.mxu0 %vm1160_vm0, %v9649_v39  ;;  %v9520_v35 = vld [vmem:[%s11373_s30 + $0x1d8] sm:$0xff]  ;;  %v9521_v0 = vld [vmem:[%s11373_s30 + $0x1e0] sm:$0xff]  ;;  %v17635_v52 = vld [vmem:[#allocation35_spill] sm:$0xff] }
 0x242   : > { %17627 = vst [vmem:[#allocation38_spill] sm:$0xff] %v15803_v7  ;;  %v6645_v27 = vsel %vm17632_vm15, %v10930_v63, 0.0  ;;  %v17633_v21 = vld [vmem:[#allocation65_spill] sm:$0xff]  ;;  %v5600_v44 = vpop.f32.mrf.mxu1  ;;  %v6373_v36 = vpop.f32.mrf.mxu0  ;;  %vm17636_vm5 = vcmp.ne.s32.totalorder %v17635_v52, 31  ;;  %vm17639_vm4 = vcmp.ne.s32.totalorder %v17635_v52, 0 }
 0x243   : > { %v5936_v51 = vadd.f32 %v5872_v56, %v17633_v21  ;;  %v15821_v32 = vadd.f32 %v6642_v12, %v5933_v29  ;;  %v5871_v18 = vsel %vm17636_vm5, %v5600_v44, 0.0  ;;  %v17638_v20 = vld [vmem:[#allocation37_spill] sm:$0xff]  ;;  %11078 = vmatmul.mubr.msk.f32.gmra.mxu1 %vm1160_vm0, %v9520_v35  ;;  %v6644_v56 = vsel %vm17639_vm4, %v6373_v36, 0.0  ;;  %v9652_v21 = vld [vmem:[%s11373_s30 + $0x1e9] sm:$0xff] }
 0x244   : > { %v5935_v39 = vadd.f32 %v5871_v18, %v17638_v20  ;;  %v10835_v7 = vpop.f32.mrf.mxu1  ;;  %v10933_v33 = vpop.f32.mrf.mxu0  ;;  %11176 = vmatmul.mubr.msk.f32.gmra.mxu0 %vm1160_vm0, %v9650_v6  ;;  %v17640_v29 = vld [vmem:[#allocation41_spill] sm:$0xff]  ;;  %11080 = vmatprep.mubr.msk.f32.mxu1 %vm1160_vm0, %v9521_v0  ;;  %v9522_v18 = vld [vmem:[%s11373_s30 + $0x1e8] sm:$0xff]  ;;  %v9523_v6 = vld [vmem:[%s11373_s30 + $0x1f0] sm:$0xff] }
 0x245   : > { %17634 = vst [vmem:[#allocation116_spill] sm:$0xff] %v15821_v32  ;;  %v15825_v63 = vadd.f32 %v6645_v27, %v5936_v51  ;;  %vm17641_vm15 = vcmp.ne.s32.totalorder %v17640_v29, 31  ;;  %vm17642_vm5 = vcmp.ne.s32.totalorder %v17640_v29, 0  ;;  %11178 = vmatprep.mubr.msk.f32.mxu0 %vm1160_vm0, %v9651_v26  ;;  %v17643_v51 = vld [vmem:[#allocation69_spill] sm:$0xff]  ;;  %v17648_v0 = vld [vmem:[#allocation39_spill] sm:$0xff] }
 0x246   : > { %v5874_v12 = vsel %vm17641_vm15, %v10835_v7, 0.0  ;;  %v6647_v27 = vsel %vm17642_vm5, %v10933_v33, 0.0  ;;  %v5610_v35 = vpop.f32.mrf.mxu1  ;;  %v6383_v20 = vpop.f32.mrf.mxu0  ;;  %v9653_v36 = vld [vmem:[%s11373_s30 + $0x1f1] sm:$0xff]  ;;  %v15843_v52 = vadd.f32 %v6644_v56, %v5935_v39  ;;  %v17650_v39 = vld [vmem:[#allocation59_spill] sm:$0xff] }
 0x247   : > { %17637 = vst [vmem:[#allocation92_spill] sm:$0xff] %v15825_v63  ;;  %v5938_v44 = vadd.f32 %v5874_v12, %v17643_v51  ;;  %v17645_v7 = vld [vmem:[#allocation53_spill] sm:$0xff]  ;;  %11081 = vmatmul.mubr.msk.f32.gmra.mxu1 %vm1160_vm0, %v9522_v18  ;;  %vm17651_vm5 = vcmp.ne.s32.totalorder %v17650_v39, 31 }
 0x248   : > { %17644 = vst [vmem:[#allocation40_spill] sm:$0xff] %v15843_v52  ;;  %vm17646_vm4 = vcmp.ne.s32.totalorder %v17645_v7, 31  ;;  %v10838_v63 = vpop.f32.mrf.mxu1  ;;  %v10936_v32 = vpop.f32.mrf.mxu0  ;;  %11179 = vmatmul.mubr.msk.f32.gmra.mxu0 %vm1160_vm0, %v9652_v21  ;;  %vm17649_vm15 = vcmp.ne.s32.totalorder %v17645_v7, 0  ;;  %11083 = vmatprep.mubr.msk.f32.mxu1 %vm1160_vm0, %v9523_v6  ;;  %v9654_v51 = vld [vmem:[%s11373_s30 + $0x1f9] sm:$0xff] }
 0x249   : > { %v5873_v29 = vsel %vm17646_vm4, %v5610_v35, 0.0  ;;  %v15847_v33 = vadd.f32 %v6647_v27, %v5938_v44  ;;  %v6646_v12 = vsel %vm17649_vm15, %v6383_v20, 0.0  ;;  %v5876_v56 = vsel %vm17651_vm5, %v10838_v63, 0.0  ;;  %11181 = vmatprep.mubr.msk.f32.mxu0 %vm1160_vm0, %v9653_v36  ;;  %v17653_v44 = vld [vmem:[#allocation70_spill] sm:$0xff]  ;;  %v17655_v63 = vld [vmem:[#allocation67_spill] sm:$0xff]  ;;  %v17658_v6 = vld [vmem:[#allocation73_spill] sm:$0xff] }
 0x24a   : > { %v5937_v26 = vadd.f32 %v5873_v29, %v17648_v0  ;;  %vm17652_vm4 = vcmp.ne.s32.totalorder %v17650_v39, 0  ;;  %v9524_v29 = vld [vmem:[%s11373_s30 + $0x1f8] sm:$0xff]  ;;  %v5940_v35 = vadd.f32 %v5876_v56, %v17653_v44  ;;  %v5620_v18 = vpop.f32.mrf.mxu1  ;;  %v6393_v0 = vpop.f32.mrf.mxu0  ;;  %v9525_v21 = vld [vmem:[%s11373_s30 + $0x200] sm:$0xff]  ;;  %vm17656_vm15 = vcmp.ne.s32.totalorder %v17655_v63, 31  ;;  %v9656_v44 = vld [vmem:[%s11373_s30 + $0x209] sm:$0xff] }
 0x24b   : > { %17647 = vst [vmem:[#allocation96_spill] sm:$0xff] %v15847_v33  ;;  %v6649_v27 = vsel %vm17652_vm4, %v10936_v32, 0.0  ;;  %v9655_v20 = vld [vmem:[%s11373_s30 + $0x201] sm:$0xff]  ;;  %v5875_v39 = vsel %vm17656_vm15, %v5620_v18, 0.0  ;;  %11084 = vmatmul.mubr.msk.f32.gmra.mxu1 %vm1160_vm0, %v9524_v29  ;;  %vm17659_vm5 = vcmp.ne.s32.totalorder %v17655_v63, 0  ;;  %v9657_v63 = vld [vmem:[%s11373_s30 + $0x211] sm:$0xff] }
 0x24c   : > { %v15865_v7 = vadd.f32 %v6646_v12, %v5937_v26  ;;  %v15869_v32 = vadd.f32 %v6649_v27, %v5940_v35  ;;  %v5939_v33 = vadd.f32 %v5875_v39, %v17658_v6  ;;  %v10841_v36 = vpop.f32.mrf.mxu1  ;;  %v10939_v52 = vpop.f32.mrf.mxu0  ;;  %11182 = vmatmul.mubr.msk.f32.gmra.mxu0 %vm1160_vm0, %v9654_v51  ;;  %v6648_v56 = vsel %vm17659_vm5, %v6393_v0, 0.0  ;;  %v17660_v26 = vld [vmem:[#allocation72_spill] sm:$0xff]  ;;  %11086 = vmatprep.mubr.msk.f32.mxu1 %vm1160_vm0, %v9525_v21  ;;  %v9526_v39 = vld [vmem:[%s11373_s30 + $0x208] sm:$0xff]  ;;  %v17668_v21 = vld [vmem:[#allocation78_spill] sm:$0xff] }
 0x24d   : > { %vm17661_vm4 = vcmp.ne.s32.totalorder %v17660_v26, 31  ;;  %vm17662_vm15 = vcmp.ne.s32.totalorder %v17660_v26, 0  ;;  %11184 = vmatprep.mubr.msk.f32.mxu0 %vm1160_vm0, %v9655_v20  ;;  %v17664_v29 = vld [vmem:[#allocation75_spill] sm:$0xff]  ;;  %v9527_v0 = vld [vmem:[%s11373_s30 + $0x210] sm:$0xff] }
 0x24e   : > { %17654 = vst [vmem:[#allocation48_spill] sm:$0xff] %v15865_v7  ;;  %17657 = vst [vmem:[#allocation99_spill] sm:$0xff] %v15869_v32  ;;  %v5878_v12 = vsel %vm17661_vm4, %v10841_v36, 0.0  ;;  %v6651_v27 = vsel %vm17662_vm15, %v10939_v52, 0.0  ;;  %v15884_v35 = vadd.f32 %v6648_v56, %v5939_v33  ;;  %v5630_v51 = vpop.f32.mrf.mxu1  ;;  %v6403_v6 = vpop.f32.mrf.mxu0  ;;  %v17665_v36 = vld [vmem:[#allocation82_spill] sm:$0xff] }
 0x24f   : > { %v5942_v18 = vadd.f32 %v5878_v12, %v17664_v29  ;;  %vm17666_vm5 = vcmp.ne.s32.totalorder %v17665_v36, 31  ;;  %11087 = vmatmul.mubr.msk.f32.gmra.mxu1 %vm1160_vm0, %v9526_v39  ;;  %vm17669_vm4 = vcmp.ne.s32.totalorder %v17665_v36, 0  ;;  %v17670_v12 = vld [vmem:[#allocation87_spill] sm:$0xff]  ;;  %v17674_v39 = vld [vmem:[#allocation80_spill] sm:$0xff] }
 0x250   : > { %17663 = vst [vmem:[#allocation102_spill] sm:$0xff] %v15884_v35  ;;  %v5877_v26 = vsel %vm17666_vm5, %v5630_v51, 0.0  ;;  %v10844_v20 = vpop.f32.mrf.mxu1  ;;  %v10942_v33 = vpop.f32.mrf.mxu0  ;;  %11185 = vmatmul.mubr.msk.f32.gmra.mxu0 %vm1160_vm0, %v9656_v44  ;;  %v6650_v56 = vsel %vm17669_vm4, %v6403_v6, 0.0  ;;  %vm17671_vm15 = vcmp.ne.s32.totalorder %v17670_v12, 31  ;;  %vm17672_vm5 = vcmp.ne.s32.totalorder %v17670_v12, 0  ;;  %11089 = vmatprep.mubr.msk.f32.mxu1 %vm1160_vm0, %v9527_v0  ;;  %v9529_v6 = vld [vmem:[%s11373_s30 + $0x220] sm:$0xff] }
 0x251   : > { %v15891_v52 = vadd.f32 %v6651_v27, %v5942_v18  ;;  %v5941_v32 = vadd.f32 %v5877_v26, %v17668_v21  ;;  %v5880_v29 = vsel %vm17671_vm15, %v10844_v20, 0.0  ;;  %v6653_v27 = vsel %vm17672_vm5, %v10942_v33, 0.0  ;;  %11187 = vmatprep.mubr.msk.f32.mxu0 %vm1160_vm0, %v9657_v63  ;;  %v9528_v26 = vld [vmem:[%s11373_s30 + $0x218] sm:$0xff]  ;;  %v17675_v20 = vld [vmem:[#allocation95_spill] sm:$0xff] }
 0x252   : > { %v9658_v18 = vld [vmem:[%s11373_s30 + $0x219] sm:$0xff]  ;;  %v5944_v21 = vadd.f32 %v5880_v29, %v17674_v39  ;;  %v5640_v44 = vpop.f32.mrf.mxu1  ;;  %v6413_v36 = vpop.f32.mrf.mxu0  ;;  %vm17676_vm4 = vcmp.ne.s32.totalorder %v17675_v20, 31  ;;  %vm17679_vm15 = vcmp.ne.s32.totalorder %v17675_v20, 0  ;;  %v17680_v29 = vld [vmem:[#allocation104_spill] sm:$0xff] }
 0x253   : > { %17667 = vst [vmem:[#allocation105_spill] sm:$0xff] %v15891_v52  ;;  %v15906_v51 = vadd.f32 %v6650_v56, %v5941_v32  ;;  %v9659_v52 = vld [vmem:[%s11373_s30 + $0x221] sm:$0xff]  ;;  %v5879_v12 = vsel %vm17676_vm4, %v5640_v44, 0.0  ;;  %v17678_v0 = vld [vmem:[#allocation81_spill] sm:$0xff]  ;;  %11090 = vmatmul.mubr.msk.f32.gmra.mxu1 %vm1160_vm0, %v9528_v26  ;;  %v6652_v56 = vsel %vm17679_vm15, %v6413_v36, 0.0  ;;  %vm17681_vm5 = vcmp.ne.s32.totalorder %v17680_v29, 31 }
 0x254   : > { %v15913_v33 = vadd.f32 %v6653_v27, %v5944_v21  ;;  %v5943_v35 = vadd.f32 %v5879_v12, %v17678_v0  ;;  %v10847_v63 = vpop.f32.mrf.mxu1  ;;  %v10945_v32 = vpop.f32.mrf.mxu0  ;;  %11188 = vmatmul.mubr.msk.f32.gmra.mxu0 %vm1160_vm0, %v9658_v18  ;;  %vm17682_vm4 = vcmp.ne.s32.totalorder %v17680_v29, 0  ;;  %11092 = vmatprep.mubr.msk.f32.mxu1 %vm1160_vm0, %v9529_v6  ;;  %v9530_v12 = vld [vmem:[%s11373_s30 + $0x228] sm:$0xff]  ;;  %v17684_v26 = vld [vmem:[#allocation85_spill] sm:$0xff]  ;;  %v9531_v36 = vld [vmem:[%s11373_s30 + $0x230] sm:$0xff] }
 0x255   : > { %17673 = vst [vmem:[#allocation31_spill] sm:$0xff] %v15906_v51  ;;  %v5882_v39 = vsel %vm17681_vm5, %v10847_v63, 0.0  ;;  %v6655_v27 = vsel %vm17682_vm4, %v10945_v32, 0.0  ;;  %11190 = vmatprep.mubr.msk.f32.mxu0 %vm1160_vm0, %v9659_v52  ;;  %v9660_v21 = vld [vmem:[%s11373_s30 + $0x229] sm:$0xff]  ;;  %v17688_v6 = vld [vmem:[#allocation90_spill] sm:$0xff] }
 0x256   : > { %17677 = vst [vmem:[#allocation66_spill] sm:$0xff] %v15913_v33  ;;  %v15928_v44 = vadd.f32 %v6652_v56, %v5943_v35  ;;  %v5946_v0 = vadd.f32 %v5882_v39, %v17684_v26  ;;  %v5650_v18 = vpop.f32.mrf.mxu1  ;;  %v6423_v20 = vpop.f32.mrf.mxu0  ;;  %v9661_v33 = vld [vmem:[%s11373_s30 + $0x231] sm:$0xff]  ;;  %v17690_v39 = vld [vmem:[#allocation46_spill] sm:$0xff] }
 0x257   : > { %v17685_v63 = vld [vmem:[#allocation44_spill] sm:$0xff]  ;;  %11093 = vmatmul.mubr.msk.f32.gmra.mxu1 %vm1160_vm0, %v9530_v12  ;;  %vm17691_vm4 = vcmp.ne.s32.totalorder %v17690_v39, 31  ;;  %v17694_v12 = vld [vmem:[#allocation93_spill] sm:$0xff] }
 0x258   : > { %17683 = vst [vmem:[#allocation43_spill] sm:$0xff] %v15928_v44  ;;  %vm17686_vm15 = vcmp.ne.s32.totalorder %v17685_v63, 31  ;;  %v15935_v32 = vadd.f32 %v6655_v27, %v5946_v0  ;;  %v10850_v52 = vpop.f32.mrf.mxu1  ;;  %v10948_v35 = vpop.f32.mrf.mxu0  ;;  %11191 = vmatmul.mubr.msk.f32.gmra.mxu0 %vm1160_vm0, %v9660_v21  ;;  %vm17689_vm5 = vcmp.ne.s32.totalorder %v17685_v63, 0  ;;  %11095 = vmatprep.mubr.msk.f32.mxu1 %vm1160_vm0, %v9531_v36  ;;  %v9662_v0 = vld [vmem:[%s11373_s30 + $0x239] sm:$0xff] }
 0x259   : > { %v5881_v29 = vsel %vm17686_vm15, %v5650_v18, 0.0  ;;  %v6654_v56 = vsel %vm17689_vm5, %v6423_v20, 0.0  ;;  %v5884_v26 = vsel %vm17691_vm4, %v10850_v52, 0.0  ;;  %vm17692_vm15 = vcmp.ne.s32.totalorder %v17690_v39, 0  ;;  %11193 = vmatprep.mubr.msk.f32.mxu0 %vm1160_vm0, %v9661_v33  ;;  %v9533_v20 = vld [vmem:[%s11373_s30 + $0x240] sm:$0xff]  ;;  %v17695_v52 = vld [vmem:[#allocation68_spill] sm:$0xff] }
 0x25a   : > { %17687 = vst [vmem:[#allocation2_spill] sm:$0xff] %v15935_v32  ;;  %v5945_v51 = vadd.f32 %v5881_v29, %v17688_v6  ;;  %v6657_v27 = vsel %vm17692_vm15, %v10948_v35, 0.0  ;;  %v9532_v29 = vld [vmem:[%s11373_s30 + $0x238] sm:$0xff]  ;;  %v5948_v6 = vadd.f32 %v5884_v26, %v17694_v12  ;;  %v5660_v21 = vpop.f32.mrf.mxu1  ;;  %v6433_v63 = vpop.f32.mrf.mxu0  ;;  %v9663_v32 = vld [vmem:[%s11373_s30 + $0x241] sm:$0xff]  ;;  %vm17696_vm5 = vcmp.ne.s32.totalorder %v17695_v52, 31 }
 0x25b   : > { %v5883_v39 = vsel %vm17696_vm5, %v5660_v21, 0.0  ;;  %v17698_v36 = vld [vmem:[#allocation97_spill] sm:$0xff]  ;;  %11096 = vmatmul.mubr.msk.f32.gmra.mxu1 %vm1160_vm0, %v9532_v29  ;;  %vm17699_vm4 = vcmp.ne.s32.totalorder %v17695_v52, 0  ;;  %v17700_v26 = vld [vmem:[#allocation74_spill] sm:$0xff]  ;;  %v17704_v29 = vld [vmem:[#allocation100_spill] sm:$0xff] }
 0x25c   : > { %v15950_v18 = vadd.f32 %v6654_v56, %v5945_v51  ;;  %v15957_v35 = vadd.f32 %v6657_v27, %v5948_v6  ;;  %v5947_v44 = vadd.f32 %v5883_v39, %v17698_v36  ;;  %v10853_v33 = vpop.f32.mrf.mxu1  ;;  %v10951_v51 = vpop.f32.mrf.mxu0  ;;  %11194 = vmatmul.mubr.msk.f32.gmra.mxu0 %vm1160_vm0, %v9662_v0  ;;  %v6656_v56 = vsel %vm17699_vm4, %v6433_v63, 0.0  ;;  %11098 = vmatprep.mubr.msk.f32.mxu1 %vm1160_vm0, %v9533_v20  ;;  %v9534_v39 = vld [vmem:[%s11373_s30 + $0x248] sm:$0xff]  ;;  %v9535_v63 = vld [vmem:[%s11373_s30 + $0x250] sm:$0xff] }
 0x25d   : > { %vm17701_vm15 = vcmp.ne.s32.totalorder %v17700_v26, 31  ;;  %vm17702_vm5 = vcmp.ne.s32.totalorder %v17700_v26, 0  ;;  %11196 = vmatprep.mubr.msk.f32.mxu0 %vm1160_vm0, %v9663_v32  ;;  %v9664_v6 = vld [vmem:[%s11373_s30 + $0x249] sm:$0xff] }
 0x25e   : > { %17693 = vst [vmem:[#allocation91_spill] sm:$0xff] %v15950_v18  ;;  %17697 = vst [vmem:[#allocation45_spill] sm:$0xff] %v15957_v35  ;;  %v5886_v12 = vsel %vm17701_vm15, %v10853_v33, 0.0  ;;  %v6659_v27 = vsel %vm17702_vm5, %v10951_v51, 0.0  ;;  %v15972_v21 = vadd.f32 %v6656_v56, %v5947_v44  ;;  %v5670_v0 = vpop.f32.mrf.mxu1  ;;  %v6443_v52 = vpop.f32.mrf.mxu0  ;;  %v9665_v35 = vld [vmem:[%s11373_s30 + $0x251] sm:$0xff]  ;;  %v17705_v33 = vld [vmem:[#allocation86_spill] sm:$0xff] }
 0x25f   : > { %v5950_v36 = vadd.f32 %v5886_v12, %v17704_v29  ;;  %vm17706_vm4 = vcmp.ne.s32.totalorder %v17705_v33, 31  ;;  %v17708_v20 = vld [vmem:[#allocation103_spill] sm:$0xff]  ;;  %11099 = vmatmul.mubr.msk.f32.gmra.mxu1 %vm1160_vm0, %v9534_v39  ;;  %vm17709_vm15 = vcmp.ne.s32.totalorder %v17705_v33, 0  ;;  %v17710_v56 = vld [vmem:[#allocation114_spill] sm:$0xff]  ;;  %v17713_v39 = vld [vmem:[#allocation32_spill] sm:$0xff] }
 0x260   : > { %17703 = vst [vmem:[#allocation47_spill] sm:$0xff] %v15972_v21  ;;  %v5885_v26 = vsel %vm17706_vm4, %v5670_v0, 0.0  ;;  %v10856_v32 = vpop.f32.mrf.mxu1  ;;  %v10954_v7 = vpop.f32.mrf.mxu0  ;;  %11197 = vmatmul.mubr.msk.f32.gmra.mxu0 %vm1160_vm0, %v9664_v6  ;;  %v6658_v44 = vsel %vm17709_vm15, %v6443_v52, 0.0  ;;  %vm17711_vm5 = vcmp.ne.s32.totalorder %v17710_v56, 31  ;;  %vm17712_vm13 = vcmp.ne.s32.totalorder %v17710_v56, 0  ;;  %11101 = vmatprep.mubr.msk.f32.mxu1 %vm1160_vm0, %v9535_v63  ;;  %v17714_v33 = vld [vmem:[#allocation89_spill] sm:$0xff] }
 0x261   : > { %v15979_v51 = vadd.f32 %v6659_v27, %v5950_v36  ;;  %v5949_v18 = vadd.f32 %v5885_v26, %v17708_v20  ;;  %v5888_v12 = vsel %vm17711_vm5, %v10856_v32, 0.0  ;;  %v6661_v29 = vsel %vm17712_vm13, %v10954_v7, 0.0  ;;  %11199 = vmatprep.mubr.msk.f32.mxu0 %vm1160_vm0, %v9665_v35  ;;  %v9536_v26 = vld [vmem:[%s11373_s30 + $0x258] sm:$0xff]  ;;  %v17717_v32 = vld [vmem:[#allocation62_spill] sm:$0xff] }
 0x262   : > { %v9666_v27 = vld [vmem:[%s11373_s30 + $0x259] sm:$0xff]  ;;  %v5952_v0 = vadd.f32 %v5888_v12, %v17713_v39  ;;  %v5680_v6 = vpop.f32.mrf.mxu1  ;;  %v6453_v20 = vpop.f32.mrf.mxu0  ;;  %vm17715_vm4 = vcmp.ne.s32.totalorder %v17714_v33, 31  ;;  %vm17718_vm13 = vcmp.ne.s32.totalorder %v17714_v33, 0  ;;  %s8495_s30 = sshll.u32 %s11285_s12, 6  ;;  %s8496_s12 = sshll.u32 %s17966_s13, 7 }
 0x263   : > { %17707 = vst [vmem:[#allocation20_spill] sm:$0xff] %v15979_v51  ;;  %v15994_v36 = vadd.f32 %v6658_v44, %v5949_v18  ;;  %v5887_v52 = vsel %vm17715_vm4, %v5680_v6, 0.0  ;;  %11102 = vmatmul.mubr.msk.f32.gmra.mxu1 %vm1160_vm0, %v9536_v26  ;;  %v6660_v18 = vsel %vm17718_vm13, %v6453_v20, 0.0  ;;  %v17719_v35 = vld [vmem:[#allocation57_spill] sm:$0xff]  ;;  %p187_p6 = scmp.lt.s32.totalorder %s8495_s30, 127 }
 0x264   : > { %v15999_v51 = vadd.f32 %v6661_v29, %v5952_v0  ;;  %v5951_v56 = vadd.f32 %v5887_v52, %v17717_v32  ;;  %v10859_v7 = vpop.f32.mrf.mxu1  ;;  %v10957_v21 = vpop.f32.mrf.mxu0  ;;  %11200 = vmatmul.mubr.msk.f32.gmra.mxu0 %vm1160_vm0, %v9666_v27  ;;  %vm17720_vm15 = vcmp.ne.s32.totalorder %v17719_v35, 31  ;;  %vm17721_vm5 = vcmp.ne.s32.totalorder %v17719_v35, 0  ;;  %v17723_v29 = vld [vmem:[#allocation107_spill] sm:$0xff]  ;;  %v17724_v52 = vld [vmem:[#allocation101_spill] sm:$0xff]  ;;  %v17728_v35 = vld [vmem:[#allocation4_spill] sm:$0xff] }
 0x265   : > { %v5890_v63 = vsel %vm17720_vm15, %v10859_v7, 0.0  ;;  %v6663_v44 = vsel %vm17721_vm5, %v10957_v21, 0.0  ;;  %vm17725_vm4 = vcmp.ne.s32.totalorder %v17724_v52, 31  ;;  %v17727_v27 = vld [vmem:[#allocation77_spill] sm:$0xff]  ;;  %vm17729_vm0 = vcmp.ne.s32.totalorder %v17728_v35, 31  ;;  %s17968_s30 = smov (!%p187_p6, %s8495_s30), 127 }
 0x266   : > { %17716 = vst [vmem:[#allocation71_spill] sm:$0xff] %v15999_v51  ;;  %v16010_v12 = vadd.f32 %v6660_v18, %v5951_v56  ;;  %v5954_v39 = vadd.f32 %v5890_v63, %v17723_v29  ;;  %v5690_v0 = vpop.f32.mrf.mxu1  ;;  %v6463_v6 = vpop.f32.mrf.mxu0  ;;  %vm17730_vm13 = vcmp.ne.s32.totalorder %v17728_v35, 0  ;;  %v17732_v63 = vld [vmem:[#allocation79_spill] sm:$0xff]  ;;  %v17738_v35 = vld [vmem:[#allocation8_spill] sm:$0xff]  ;;  %s190_s13 = sadd.s32 %s8496_s12, %s17968_s30 }
 0x267   : > { %v5889_v26 = vsel %vm17725_vm4, %v5690_v0, 0.0  ;;  %v6662_v7 = vsel %vm1768_vm12, %v6463_v6, 0.0  ;;  %vm17739_vm5 = vcmp.ne.s32.totalorder %v17738_v35, 31  ;;  %vm17740_vm4 = vcmp.ne.s32.totalorder %v17738_v35, 0  ;;  %v17747_v35 = vld [vmem:[#allocation12_spill] sm:$0xff]  ;;  %s8497_s5 = sshll.u32 %s190_s13, 3 }
 0x268   : > { %17722 = vst [vmem:[#allocation94_spill] sm:$0xff] %v16010_v12  ;;  %v16015_v32 = vadd.f32 %v6663_v44, %v5954_v39  ;;  %v5953_v33 = vadd.f32 %v5889_v26, %v17727_v27  ;;  %v10862_v20 = vpop.f32.mrf.mxu1  ;;  %v10960_v51 = vpop.f32.mrf.mxu0  ;;  %v17733_v39 = vld [vmem:[#allocation6_spill] sm:$0xff]  ;;  %s16262_s10 = scalar_lea.vmem %s16660_s3, %s8497_s5 }
 0x269   : > { %v5892_v21 = vsel %vm17729_vm0, %v10862_v20, 0.0  ;;  %v6665_v56 = vsel %vm17730_vm13, %v10960_v51, 0.0  ;;  %vm17734_vm15 = vcmp.ne.s32.totalorder %v17733_v39, 31  ;;  %vm17737_vm12 = vcmp.ne.s32.totalorder %v17733_v39, 0 }
 0x26a   : > { %17726 = vst [vmem:[#allocation56_spill] sm:$0xff] %v16015_v32  ;;  %v16024_v18 = vadd.f32 %v6662_v7, %v5953_v33  ;;  %v5956_v29 = vadd.f32 %v5892_v21, %v17732_v63  ;;  %v5700_v0 = vpop.f32.mrf.mxu1  ;;  %v6473_v44 = vpop.f32.mrf.mxu0  ;;  %v17736_v32 = vld [vmem:[#allocation42_spill] sm:$0xff]  ;;  %v17741_v21 = vld [vmem:[#allocation108_spill] sm:$0xff] }
 0x26b   : > { %v5891_v26 = vsel %vm17734_vm15, %v5700_v0, 0.0  ;;  %v6664_v20 = vsel %vm17737_vm12, %v6473_v44, 0.0  ;;  %vm17748_vm15 = vcmp.ne.s32.totalorder %v17747_v35, 31  ;;  %vm17749_vm12 = vcmp.ne.s32.totalorder %v17747_v35, 0  ;;  %v17754_v35 = vld [vmem:[#allocation16_spill] sm:$0xff] }
 0x26c   : > { %17731 = vst [vmem:[#allocation83_spill] sm:$0xff] %v16024_v18  ;;  %v16029_v27 = vadd.f32 %v6665_v56, %v5956_v29  ;;  %v5955_v52 = vadd.f32 %v5891_v26, %v17736_v32  ;;  %v10865_v6 = vpop.f32.mrf.mxu1  ;;  %v10963_v12 = vpop.f32.mrf.mxu0  ;;  %v17742_v29 = vld [vmem:[#allocation10_spill] sm:$0xff] }
 0x26d   : > { %v5894_v33 = vsel %vm17739_vm5, %v10865_v6, 0.0  ;;  %v6667_v51 = vsel %vm17740_vm4, %v10963_v12, 0.0  ;;  %vm17743_vm0 = vcmp.ne.s32.totalorder %v17742_v29, 31  ;;  %vm17746_vm13 = vcmp.ne.s32.totalorder %v17742_v29, 0 }
 0x26e   : > { %17735 = vst [vmem:[#allocation26_spill] sm:$0xff] %v16029_v27  ;;  %v16038_v7 = vadd.f32 %v6664_v20, %v5955_v52  ;;  %v5958_v63 = vadd.f32 %v5894_v33, %v17741_v21  ;;  %v5710_v0 = vpop.f32.mrf.mxu1  ;;  %v6483_v56 = vpop.f32.mrf.mxu0  ;;  %v17745_v27 = vld [vmem:[#allocation51_spill] sm:$0xff]  ;;  %v17750_v33 = vld [vmem:[#allocation54_spill] sm:$0xff] }
 0x26f   : > { %v5893_v32 = vsel %vm17743_vm0, %v5710_v0, 0.0  ;;  %v6666_v6 = vsel %vm17746_vm13, %v6483_v56, 0.0  ;;  %vm17755_vm0 = vcmp.ne.s32.totalorder %v17754_v35, 31  ;;  %vm17756_vm13 = vcmp.ne.s32.totalorder %v17754_v35, 0 }
 0x270   : > { %v16043_v26 = vadd.f32 %v6667_v51, %v5958_v63  ;;  %v5957_v39 = vadd.f32 %v5893_v32, %v17745_v27  ;;  %v10868_v44 = vpop.f32.mrf.mxu1  ;;  %v10966_v18 = vpop.f32.mrf.mxu0  ;;  %v17751_v63 = vld [vmem:[#allocation14_spill] sm:$0xff] }
 0x271   : > { %v5896_v12 = vsel %vm17748_vm15, %v10868_v44, 0.0  ;;  %v6669_v52 = vsel %vm17749_vm12, %v10966_v18, 0.0  ;;  %vm17752_vm5 = vcmp.ne.s32.totalorder %v17751_v63, 31  ;;  %vm17753_vm4 = vcmp.ne.s32.totalorder %v17751_v63, 0 }
 0x272   : > { %17744 = vst [vmem:[#allocation88_spill] sm:$0xff] %v16043_v26  ;;  %v16052_v20 = vadd.f32 %v6666_v6, %v5957_v39  ;;  %v5960_v21 = vadd.f32 %v5896_v12, %v17750_v33  ;;  %v5720_v0 = vpop.f32.mrf.mxu1  ;;  %v6493_v51 = vpop.f32.mrf.mxu0 }
 0x273   : > { %v5895_v27 = vsel %vm17752_vm5, %v5720_v0, 0.0  ;;  %v6668_v44 = vsel %vm17753_vm4, %v6493_v51, 0.0  ;;  %vm17760_vm5 = vcmp.ne.s32.totalorder %v17554_v8, 31 }
 0x274   : > { %v16057_v32 = vadd.f32 %v6669_v52, %v5960_v21  ;;  %v5959_v29 = vadd.f32 %v5895_v27, %v15450_v3  ;;  %v10871_v56 = vpop.f32.mrf.mxu1  ;;  %v10969_v26 = vpop.f32.mrf.mxu0  ;;  %v17757_v21 = vld [vmem:[#allocation18_spill] sm:$0xff] }
 0x275   : > { %v5898_v18 = vsel %vm17755_vm0, %v10871_v56, 0.0  ;;  %v6671_v39 = vsel %vm17756_vm13, %v10969_v26, 0.0  ;;  %vm17758_vm15 = vcmp.ne.s32.totalorder %v17757_v21, 31  ;;  %vm17759_vm12 = vcmp.ne.s32.totalorder %v17757_v21, 0 }
 0x276   : > { %v16066_v6 = vadd.f32 %v6668_v44, %v5959_v29  ;;  %v5962_v12 = vadd.f32 %v5898_v18, %v15457_v43  ;;  %v5730_v33 = vpop.f32.mrf.mxu1  ;;  %v6503_v52 = vpop.f32.mrf.mxu0  ;;  %vm17765_vm13 = vcmp.ne.s32.totalorder %v17556_v16, 0 }
 0x277   : > { %v5897_v3 = vsel %vm17758_vm15, %v5730_v33, 0.0  ;;  %v6670_v56 = vsel %vm17759_vm12, %v6503_v52, 0.0 }
 0x278   : > { %v16071_v0 = vadd.f32 %v6671_v39, %v5962_v12  ;;  %v5961_v27 = vadd.f32 %v5897_v3, %v15468_v49  ;;  %v10874_v51 = vpop.f32.mrf.mxu1  ;;  %v10972_v63 = vpop.f32.mrf.mxu0  ;;  %v17761_v12 = vld [vmem:[#allocation22_spill] sm:$0xff] }
 0x279   : > { %v5900_v29 = vsel %vm17760_vm5, %v10874_v51, 0.0  ;;  %v6673_v43 = vsel %vm1779_vm8, %v10972_v63, 0.0  ;;  %vm17762_vm4 = vcmp.ne.s32.totalorder %v17761_v12, 31  ;;  %vm17763_vm0 = vcmp.ne.s32.totalorder %v17761_v12, 0 }
 0x27a   : > { %v16080_v26 = vadd.f32 %v6670_v56, %v5961_v27  ;;  %v5964_v44 = vadd.f32 %v5900_v29, %v15475_v42  ;;  %v5740_v18 = vpop.f32.mrf.mxu1  ;;  %v6513_v39 = vpop.f32.mrf.mxu0  ;;  %vm17764_vm8 = vcmp.ne.s32.totalorder %v17556_v16, 31  ;;  %v17770_v16 = vld [vmem:[#allocation34_spill] sm:$0xff] }
 0x27b   : > { %v5899_v49 = vsel %vm17762_vm4, %v5740_v18, 0.0  ;;  %v6672_v51 = vsel %vm17763_vm0, %v6513_v39, 0.0  ;;  %vm17771_vm5 = vcmp.ne.s32.totalorder %v17770_v16, 31  ;;  %vm17772_vm4 = vcmp.ne.s32.totalorder %v17770_v16, 0  ;;  %v17777_v16 = vld [vmem:[#allocation50_spill] sm:$0xff] }
 0x27c   : > { %v16085_v33 = vadd.f32 %v6673_v43, %v5964_v44  ;;  %v5963_v3 = vadd.f32 %v5899_v49, %v15486_v17  ;;  %v10877_v52 = vpop.f32.mrf.mxu1  ;;  %v10975_v21 = vpop.f32.mrf.mxu0  ;;  %v17766_v44 = vld [vmem:[#allocation28_spill] sm:$0xff] }
 0x27d   : > { %v5902_v63 = vsel %vm17764_vm8, %v10877_v52, 0.0  ;;  %v6675_v42 = vsel %vm17765_vm13, %v10975_v21, 0.0  ;;  %vm17767_vm15 = vcmp.ne.s32.totalorder %v17766_v44, 31  ;;  %vm17769_vm12 = vcmp.ne.s32.totalorder %v17766_v44, 0 }
 0x27e   : > { %v16094_v27 = vadd.f32 %v6672_v51, %v5963_v3  ;;  %v5966_v56 = vadd.f32 %v5902_v63, %v15493_v40  ;;  %v5750_v29 = vpop.f32.mrf.mxu1  ;;  %v6523_v43 = vpop.f32.mrf.mxu0  ;;  %v17773_v51 = vld [vmem:[#allocation60_spill] sm:$0xff]  ;;  %vm17778_vm13 = vcmp.ne.s32.totalorder %v17777_v16, 31 }
 0x27f   : > { %v5901_v17 = vsel %vm17767_vm15, %v5750_v29, 0.0  ;;  %v6674_v52 = vsel %vm17769_vm12, %v6523_v43, 0.0  ;;  %vm17779_vm15 = vcmp.ne.s32.totalorder %v17777_v16, 0  ;;  %vm17780_vm12 = vcmp.ne.s32.totalorder %v17567_v5, 31 }
 0x280   : > { %v16099_v18 = vadd.f32 %v6675_v42, %v5966_v56  ;;  %v5965_v49 = vadd.f32 %v5901_v17, %v15504_v62  ;;  %v10880_v39 = vpop.f32.mrf.mxu1  ;;  %v10978_v12 = vpop.f32.mrf.mxu0  ;;  %v17774_v56 = vld [vmem:[#allocation36_spill] sm:$0xff] }
 0x281   : > { %v5904_v21 = vsel %vm17771_vm5, %v10880_v39, 0.0  ;;  %v6677_v40 = vsel %vm17772_vm4, %v10978_v12, 0.0  ;;  %vm17775_vm0 = vcmp.ne.s32.totalorder %v17774_v56, 31  ;;  %vm17776_vm8 = vcmp.ne.s32.totalorder %v17774_v56, 0 }
 0x282   : > { %17768 = vst [vmem:[#allocation9_spill] sm:$0xff] %v16099_v18  ;;  %v16108_v3 = vadd.f32 %v6674_v52, %v5965_v49  ;;  %v5968_v63 = vadd.f32 %v5904_v21, %v17773_v51  ;;  %v5760_v29 = vpop.f32.mrf.mxu1  ;;  %v6533_v42 = vpop.f32.mrf.mxu0  ;;  %vm17781_vm5 = vcmp.ne.s32.totalorder %v17326_v59, 31  ;;  %vm17782_vm4 = vcmp.ne.s32.totalorder %v17337_v23, 31 }
 0x283   : > { %v5903_v62 = vsel %vm17775_vm0, %v5760_v29, 0.0  ;;  %v6676_v39 = vsel %vm17776_vm8, %v6533_v42, 0.0  ;;  %vm17785_vm0 = vcmp.ne.s32.totalorder %v17343_v55, 0  ;;  %vm17786_vm8 = vcmp.ne.s32.totalorder %v17351_v46, 31 }
 0x284   : > { %v16113_v17 = vadd.f32 %v6677_v40, %v5968_v63  ;;  %v5967_v44 = vadd.f32 %v5903_v62, %v15522_v38  ;;  %v10883_v43 = vpop.f32.mrf.mxu1  ;;  %v10981_v18 = vpop.f32.mrf.mxu0 }
 0x285   : > { %v5906_v12 = vsel %vm17778_vm13, %v10883_v43, 0.0  ;;  %v6679_v49 = vsel %vm17779_vm15, %v10981_v18, 0.0  ;;  %vm17787_vm13 = vcmp.ne.s32.totalorder %v17354_v61, 31  ;;  %vm17788_vm15 = vcmp.ne.s32.totalorder %v17354_v61, 0 }
 0x286   : > { %v16122_v52 = vadd.f32 %v6676_v39, %v5967_v44  ;;  %v5970_v21 = vadd.f32 %v5906_v12, %v15529_v1  ;;  %v5770_v51 = vpop.f32.mrf.mxu1  ;;  %v6543_v40 = vpop.f32.mrf.mxu0 }
 0x287   : > { %v5905_v38 = vsel %vm17780_vm12, %v5770_v51, 0.0  ;;  %v6678_v43 = vsel %vm1784_vm9, %v6543_v40, 0.0  ;;  %vm17783_vm9 = vcmp.ne.s32.totalorder %v17337_v23, 0  ;;  %vm17789_vm12 = vcmp.ne.s32.totalorder %v17365_v22, 31 }
 0x288   : > { %v16127_v63 = vadd.f32 %v6679_v49, %v5970_v21  ;;  %v5969_v29 = vadd.f32 %v5905_v38, %v15540_v54  ;;  %v10886_v42 = vpop.f32.mrf.mxu1  ;;  %v10984_v62 = vpop.f32.mrf.mxu0 }
 0x289   : > { %v5908_v44 = vsel %vm17781_vm5, %v10886_v42, 0.0  ;;  %v6681_v1 = vsel %vm1787_vm11, %v10984_v62, 0.0  ;;  %vm17784_vm11 = vcmp.ne.s32.totalorder %v17343_v55, 31  ;;  %vm17791_vm5 = vcmp.ne.s32.totalorder %v14428_v45, 31 }
 0x28a   : > { %v16136_v18 = vadd.f32 %v6678_v43, %v5969_v29  ;;  %v5972_v39 = vadd.f32 %v5908_v44, %v15547_v10  ;;  %v5780_v12 = vpop.f32.mrf.mxu1  ;;  %v6553_v49 = vpop.f32.mrf.mxu0 }
 0x28b   : > { %v5907_v54 = vsel %vm17782_vm4, %v5780_v12, 0.0  ;;  %v6680_v42 = vsel %vm17783_vm9, %v6553_v49, 0.0  ;;  %vm17792_vm4 = vcmp.ne.s32.totalorder %v14428_v45, 0  ;;  %vm17793_vm9 = vcmp.ne.s32.totalorder %v14488_v2, 31 }
 0x28c   : > { %v16141_v21 = vadd.f32 %v6681_v1, %v5972_v39  ;;  %v5971_v51 = vadd.f32 %v5907_v54, %v15558_v41  ;;  %v10889_v40 = vpop.f32.mrf.mxu1  ;;  %v10987_v38 = vpop.f32.mrf.mxu0 }
 0x28d   : > { %v5910_v29 = vsel %vm17784_vm11, %v10889_v40, 0.0  ;;  %v6683_v10 = vsel %vm17785_vm0, %v10987_v38, 0.0  ;;  %vm17794_vm11 = vcmp.ne.s32.totalorder %v14488_v2, 0  ;;  %vm17795_vm0 = vcmp.ne.s32.totalorder %v14582_v14, 31 }
 0x28e   : > { %v16150_v62 = vadd.f32 %v6680_v42, %v5971_v51  ;;  %v5974_v43 = vadd.f32 %v5910_v29, %v15565_v57  ;;  %v5790_v44 = vpop.f32.mrf.mxu1  ;;  %v6563_v1 = vpop.f32.mrf.mxu0 }
 0x28f   : > { %v5909_v41 = vsel %vm17786_vm8, %v5790_v44, 0.0  ;;  %v6682_v40 = vsel %vm1788_vm14, %v6563_v1, 0.0  ;;  %vm17790_vm14 = vcmp.ne.s32.totalorder %v17365_v22, 0  ;;  %vm17796_vm8 = vcmp.ne.s32.totalorder %v14582_v14, 0 }
 0x290   : > { %v16155_v39 = vadd.f32 %v6683_v10, %v5974_v43  ;;  %v5973_v12 = vadd.f32 %v5909_v41, %v15576_v24  ;;  %v10892_v49 = vpop.f32.mrf.mxu1  ;;  %v10990_v54 = vpop.f32.mrf.mxu0 }
 0x291   : > { %v5912_v51 = vsel %vm17787_vm13, %v10892_v49, 0.0  ;;  %v6685_v57 = vsel %vm17788_vm15, %v10990_v54, 0.0  ;;  %vm17797_vm13 = vcmp.ne.s32.totalorder %v14674_v9, 0  ;;  %vm17798_vm15 = vcmp.ne.s32.totalorder %v14840_v34, 31 }
 0x292   : > { %v16164_v38 = vadd.f32 %v6682_v40, %v5973_v12  ;;  %v5976_v42 = vadd.f32 %v5912_v51, %v15583_v48  ;;  %v5800_v29 = vpop.f32.mrf.mxu1  ;;  %v6573_v10 = vpop.f32.mrf.mxu0 }
 0x293   : > { %v5911_v24 = vsel %vm17789_vm12, %v5800_v29, 0.0  ;;  %v6684_v49 = vsel %vm17790_vm14, %v6573_v10, 0.0  ;;  %vm17799_vm12 = vcmp.ne.s32.totalorder %v14929_v53, 31 }
 0x294   : > { %v16169_v43 = vadd.f32 %v6685_v57, %v5976_v42  ;;  %v5975_v44 = vadd.f32 %v5911_v24, %v15594_v25  ;;  %v10895_v1 = vpop.f32.mrf.mxu1  ;;  %v10993_v41 = vpop.f32.mrf.mxu0 }
 0x295   : > { %v5914_v12 = vsel %vm17791_vm5, %v10895_v1, 0.0  ;;  %v6687_v48 = vsel %vm17792_vm4, %v10993_v41, 0.0 }
 0x296   : > { %v16178_v54 = vadd.f32 %v6684_v49, %v5975_v44  ;;  %v5978_v40 = vadd.f32 %v5914_v12, %v15601_v11  ;;  %v5810_v51 = vpop.f32.mrf.mxu1  ;;  %v6583_v57 = vpop.f32.mrf.mxu0 }
 0x297   : > { %v5913_v25 = vsel %vm17793_vm9, %v5810_v51, 0.0  ;;  %v6686_v1 = vsel %vm17794_vm11, %v6583_v57, 0.0  ;;  %vm8313_vm9 = vcmask 130048  }
 0x298   : > { %v16183_v42 = vadd.f32 %v6687_v48, %v5978_v40  ;;  %v5977_v29 = vadd.f32 %v5913_v25, %v15612_v19  ;;  %v10898_v10 = vpop.f32.mrf.mxu1  ;;  %v10996_v24 = vpop.f32.mrf.mxu0 }
 0x299   : > { %v5916_v44 = vsel %vm17795_vm0, %v10898_v10, 0.0  ;;  %v6689_v11 = vsel %vm17796_vm8, %v10996_v24, 0.0  ;;  %vm17820_vm0 = vcmp.ne.s32.totalorder %v17592_v60, 31 }
 0x29a   : > { %v16192_v41 = vadd.f32 %v6686_v1, %v5977_v29  ;;  %v5980_v49 = vadd.f32 %v5916_v44, %v15619_v28  ;;  %v5820_v12 = vpop.f32.mrf.mxu1  ;;  %v6593_v48 = vpop.f32.mrf.mxu0 }
 0x29b   : > { %v5915_v19 = vsel %vm3468_vm10, %v5820_v12, 0.0  ;;  %v6688_v10 = vsel %vm17797_vm13, %v6593_v48, 0.0 }
 0x29c   : > { %v16198_v40 = vadd.f32 %v6689_v11, %v5980_v49  ;;  %v5979_v51 = vadd.f32 %v5915_v19, %v15630_v58  ;;  %v10901_v57 = vpop.f32.mrf.mxu1  ;;  %v10999_v25 = vpop.f32.mrf.mxu0 }
 0x29d   : > { %v5918_v29 = vsel %vm17798_vm15, %v10901_v57, 0.0  ;;  %v6691_v28 = vsel %vm1797_vm2, %v10999_v25, 0.0  ;;  %vm17800_vm2 = vcmp.ne.s32.totalorder %v14962_v47, 31  ;;  %v17808_v47 = vld [vmem:[#allocation110_spill] sm:$0xff] }
 0x29e   : > { %v16207_v24 = vadd.f32 %v6688_v10, %v5979_v51  ;;  %v5982_v1 = vadd.f32 %v5918_v29, %v15637_v15  ;;  %v5830_v44 = vpop.f32.mrf.mxu1  ;;  %v6603_v11 = vpop.f32.mrf.mxu0  ;;  %v17802_v10 = vld [vmem:[#allocation109_spill] sm:$0xff] }
 0x29f   : > { %v5917_v58 = vsel %vm17799_vm12, %v5830_v44, 0.0  ;;  %v6690_v57 = vsel %vm1796_vm6, %v6603_v11, 0.0 }
 0x2a0   : > { %v16212_v49 = vadd.f32 %v6691_v28, %v5982_v1  ;;  %v5981_v12 = vadd.f32 %v5917_v58, %v15648_v37  ;;  %v10904_v48 = vpop.f32.mrf.mxu1  ;;  %v11002_v19 = vpop.f32.mrf.mxu0 }
 0x2a1   : > { %v5920_v51 = vsel %vm17800_vm2, %v10904_v48, 0.0  ;;  %v6693_v15 = vsel %vm1799_vm1, %v11002_v19, 0.0 }
 0x2a2   : > { %v16221_v25 = vadd.f32 %v6690_v57, %v5981_v12  ;;  %v5984_v29 = vadd.f32 %v5920_v51, %v17802_v10  ;;  %v5840_v44 = vpop.f32.mrf.mxu1  ;;  %v6613_v28 = vpop.f32.mrf.mxu0  ;;  %v17805_v12 = vld [vmem:[#allocation98_spill] sm:$0xff] }
 0x2a3   : > { %v5919_v37 = vsel %vm3472_vm7, %v5840_v44, 0.0  ;;  %v6692_v19 = vsel %vm1798_vm3, %v6613_v28, 0.0  ;;  %vm17806_vm6 = vcmp.ne.s32.totalorder %v17805_v12, 31  ;;  %vm17807_vm1 = vcmp.ne.s32.totalorder %v17805_v12, 0 }
 0x2a4   : > { %17801 = vst [vmem:[#allocation58_spill] sm:$0xff] %v16221_v25  ;;  %v16227_v58 = vadd.f32 %v6693_v15, %v5984_v29  ;;  %v5983_v11 = vadd.f32 %v5919_v37, %v15666_v4  ;;  %v10907_v53 = vpop.f32.mrf.mxu1  ;;  %v11005_v48 = vpop.f32.mrf.mxu0  ;;  %v17809_v29 = vld [vmem:[#allocation55_spill] sm:$0xff] }
 0x2a5   : > { %v5922_v57 = vsel %vm17806_vm6, %v10907_v53, 0.0  ;;  %v6695_v51 = vsel %vm17807_vm1, %v11005_v48, 0.0  ;;  %vm17810_vm14 = vcmp.ne.s32.totalorder %v17809_v29, 31  ;;  %vm17811_vm3 = vcmp.ne.s32.totalorder %v17809_v29, 0  ;;  %v17812_v48 = vld [vmem:[#allocation111_spill] sm:$0xff]  ;;  %v17816_v29 = vld [vmem:[#allocation5_spill] sm:$0xff] }
 0x2a6   : > { %17804 = vst [vmem:[#allocation29_spill] sm:$0xff] %v16227_v58  ;;  %v16236_v10 = vadd.f32 %v6692_v19, %v5983_v11  ;;  %v5986_v44 = vadd.f32 %v5922_v57, %v17808_v47  ;;  %v5850_v25 = vpop.f32.mrf.mxu1  ;;  %v6623_v15 = vpop.f32.mrf.mxu0  ;;  %v17813_v19 = vld [vmem:[#allocation3_spill] sm:$0xff]  ;;  %vm17817_vm4 = vcmp.ne.s32.totalorder %v17816_v29, 31 }
 0x2a7   : > { %v5921_v4 = vsel %vm17810_vm14, %v5850_v25, 0.0  ;;  %v6694_v53 = vsel %vm17811_vm3, %v6623_v15, 0.0  ;;  %vm17814_vm5 = vcmp.ne.s32.totalorder %v17813_v19, 31  ;;  %v16254_v25 = vld [vmem:[%s16659_s2] ss:$0 sm:$0xff] }
 0x2a8   : > { %v16241_v37 = vadd.f32 %v6695_v51, %v5986_v44  ;;  %v5985_v28 = vadd.f32 %v5921_v4, %v15686_v30  ;;  %v11010_v1 = vpop.f32.mrf.mxu1  ;;  %v11108_v58 = vpop.f32.mrf.mxu0 }
 0x2a9   : > { %v7406_v11 = vadd.f32 %v11010_v1, %v17812_v48  ;;  %v8115_v47 = vsel %vm17814_vm5, %v11108_v58, 0.0 }
 0x2aa   : > { %v16249_v57 = vadd.f32 %v6694_v53, %v5985_v28  ;;  %v7086_v51 = vpop.f32.mrf.mxu1  ;;  %v7795_v30 = vpop.f32.mrf.mxu0 }
 0x2ab   : > { %v8179_v44 = vadd.f32 %v8115_v47, %v7406_v11  ;;  %v7405_v4 = vadd.f32 %v7086_v51, %v15711_v31  ;;  %v8114_v15 = vsel %vm17817_vm4, %v7795_v30, 0.0  ;;  %v17818_v11 = vld [vmem:[#allocation7_spill] sm:$0xff] }
 0x2ac   : > { %17815 = vst [vmem:[#allocation61_spill] sm:$0xff] %v16249_v57  ;;  %v11013_v1 = vpop.f32.mrf.mxu1  ;;  %v11111_v58 = vpop.f32.mrf.mxu0  ;;  %vm17819_vm11 = vcmp.ne.s32.totalorder %v17818_v11, 31  ;;  %v17822_v11 = vld [vmem:[#allocation11_spill] sm:$0xff] }
 0x2ad   : > { %v8250_v28 = vadd.f32 %v16254_v25, %v8179_v44  ;;  %v8178_v53 = vadd.f32 %v8114_v15, %v7405_v4  ;;  %v7408_v48 = vadd.f32 %v11013_v1, %v15715_v50  ;;  %v8117_v31 = vsel %vm17819_vm11, %v11111_v58, 0.0  ;;  %v17821_v1 = vld [vmem:[#allocation112_spill] sm:$0xff] }
 0x2ae   : > { %v7096_v29 = vpop.f32.mrf.mxu1  ;;  %v7805_v19 = vpop.f32.mrf.mxu0  ;;  %vm17823_vm8 = vcmp.ne.s32.totalorder %v17822_v11, 31  ;;  %v17828_v11 = vld [vmem:[#allocation15_spill] sm:$0xff] }
 0x2af   : > { %8315 = vst.msk [vmem:[%s16262_s10 + $0x8] sm:$0xff] %vm8313_vm9, %v8250_v28  ;;  %v8249_v47 = vadd.f32 %v16254_v25, %v8178_v53  ;;  %v8181_v51 = vadd.f32 %v8117_v31, %v7408_v48  ;;  %v7407_v30 = vadd.f32 %v7096_v29, %v15733_v13  ;;  %v8116_v57 = vsel %vm17820_vm0, %v7805_v19, 0.0  ;;  %v17824_v31 = vld [vmem:[#allocation64_spill] sm:$0xff]  ;;  %v17825_v19 = vld [vmem:[#allocation13_spill] sm:$0xff] }
 0x2b0   : > { %v11016_v44 = vpop.f32.mrf.mxu1  ;;  %v11114_v4 = vpop.f32.mrf.mxu0  ;;  %vm17826_vm13 = vcmp.ne.s32.totalorder %v17825_v19, 31  ;;  %vm17829_vm15 = vcmp.ne.s32.totalorder %v17828_v11, 31  ;;  %v17831_v19 = vld [vmem:[#allocation17_spill] sm:$0xff]  ;;  %v17834_v11 = vld [vmem:[#allocation19_spill] sm:$0xff] }
 0x2b1   : > { %8314 = vst.msk [vmem:[%s16262_s10] sm:$0xff] %vm8313_vm9, %v8249_v47  ;;  %v8252_v50 = vadd.f32 %v16254_v25, %v8181_v51  ;;  %v8180_v15 = vadd.f32 %v8116_v57, %v7407_v30  ;;  %v7410_v58 = vadd.f32 %v11016_v44, %v17821_v1  ;;  %v8119_v28 = vsel %vm17823_vm8, %v11114_v4, 0.0  ;;  %v17827_v4 = vld [vmem:[#allocation106_spill] sm:$0xff] }
 0x2b2   : > { %v7106_v53 = vpop.f32.mrf.mxu1  ;;  %v7815_v48 = vpop.f32.mrf.mxu0  ;;  %vm17832_vm12 = vcmp.ne.s32.totalorder %v17831_v19, 31  ;;  %vm17835_vm2 = vcmp.ne.s32.totalorder %v17834_v11, 31  ;;  %v17837_v19 = vld [vmem:[#allocation21_spill] sm:$0xff]  ;;  %v17840_v11 = vld [vmem:[#allocation23_spill] sm:$0xff] }
 0x2b3   : > { %8317 = vst.msk [vmem:[%s16262_s10 + $0x18] sm:$0xff] %vm8313_vm9, %v8252_v50  ;;  %v8251_v60 = vadd.f32 %v16254_v25, %v8180_v15  ;;  %v8183_v13 = vadd.f32 %v8119_v28, %v7410_v58  ;;  %v7409_v29 = vadd.f32 %v7106_v53, %v17824_v31  ;;  %v8118_v47 = vsel %vm17826_vm13, %v7815_v48, 0.0  ;;  %v17830_v48 = vld [vmem:[#allocation84_spill] sm:$0xff] }
 0x2b4   : > { %v11019_v51 = vpop.f32.mrf.mxu1  ;;  %v11117_v57 = vpop.f32.mrf.mxu0  ;;  %vm17838_vm6 = vcmp.ne.s32.totalorder %v17837_v19, 31  ;;  %vm17841_vm1 = vcmp.ne.s32.totalorder %v17840_v11, 31  ;;  %v17843_v19 = vld [vmem:[#allocation25_spill] sm:$0xff] }
 0x2b5   : > { %8316 = vst.msk [vmem:[%s16262_s10 + $0x10] sm:$0xff] %vm8313_vm9, %v8251_v60  ;;  %v8254_v30 = vadd.f32 %v16254_v25, %v8183_v13  ;;  %v8182_v44 = vadd.f32 %v8118_v47, %v7409_v29  ;;  %v7412_v1 = vadd.f32 %v11019_v51, %v17827_v4  ;;  %v8121_v50 = vsel %vm17829_vm15, %v11117_v57, 0.0  ;;  %v17833_v57 = vld [vmem:[#allocation113_spill] sm:$0xff] }
 0x2b6   : > { %v7116_v15 = vpop.f32.mrf.mxu1  ;;  %v7825_v58 = vpop.f32.mrf.mxu0  ;;  %vm17844_vm14 = vcmp.ne.s32.totalorder %v17843_v19, 31  ;;  %v17846_v11 = vld [vmem:[#allocation33_spill] sm:$0xff]  ;;  %v17849_v19 = vld [vmem:[#allocation35_spill] sm:$0xff] }
 0x2b7   : > { %8319 = vst.msk [vmem:[%s16262_s10 + $0x28] sm:$0xff] %vm8313_vm9, %v8254_v30  ;;  %v8253_v28 = vadd.f32 %v16254_v25, %v8182_v44  ;;  %v8185_v53 = vadd.f32 %v8121_v50, %v7412_v1  ;;  %v7411_v31 = vadd.f32 %v7116_v15, %v17830_v48  ;;  %v8120_v60 = vsel %vm17832_vm12, %v7825_v58, 0.0  ;;  %v17836_v58 = vld [vmem:[#allocation115_spill] sm:$0xff] }
 0x2b8   : > { %v11022_v13 = vpop.f32.mrf.mxu1  ;;  %v11120_v29 = vpop.f32.mrf.mxu0  ;;  %vm17847_vm3 = vcmp.ne.s32.totalorder %v17846_v11, 31  ;;  %vm17850_vm5 = vcmp.ne.s32.totalorder %v17849_v19, 31  ;;  %v17852_v11 = vld [vmem:[#allocation41_spill] sm:$0xff] }
 0x2b9   : > { %8318 = vst.msk [vmem:[%s16262_s10 + $0x20] sm:$0xff] %vm8313_vm9, %v8253_v28  ;;  %v8256_v47 = vadd.f32 %v16254_v25, %v8185_v53  ;;  %v8184_v51 = vadd.f32 %v8120_v60, %v7411_v31  ;;  %v7414_v4 = vadd.f32 %v11022_v13, %v17833_v57  ;;  %v8123_v30 = vsel %vm17835_vm2, %v11120_v29, 0.0  ;;  %v17839_v29 = vld [vmem:[#allocation38_spill] sm:$0xff]  ;;  %v17855_v19 = vld [vmem:[#allocation53_spill] sm:$0xff] }
 0x2ba   : > { %v7126_v44 = vpop.f32.mrf.mxu1  ;;  %v7835_v1 = vpop.f32.mrf.mxu0  ;;  %vm17853_vm4 = vcmp.ne.s32.totalorder %v17852_v11, 31  ;;  %vm17856_vm11 = vcmp.ne.s32.totalorder %v17855_v19, 31  ;;  %v17858_v11 = vld [vmem:[#allocation59_spill] sm:$0xff] }
 0x2bb   : > { %8321 = vst.msk [vmem:[%s16262_s10 + $0x38] sm:$0xff] %vm8313_vm9, %v8256_v47  ;;  %v8255_v50 = vadd.f32 %v16254_v25, %v8184_v51  ;;  %v8187_v15 = vadd.f32 %v8123_v30, %v7414_v4  ;;  %v7413_v48 = vadd.f32 %v7126_v44, %v17836_v58  ;;  %v8122_v28 = vsel %vm17838_vm6, %v7835_v1, 0.0  ;;  %v17842_v1 = vld [vmem:[#allocation116_spill] sm:$0xff]  ;;  %v17861_v19 = vld [vmem:[#allocation67_spill] sm:$0xff] }
 0x2bc   : > { %v11025_v53 = vpop.f32.mrf.mxu1  ;;  %v11123_v31 = vpop.f32.mrf.mxu0  ;;  %vm17859_vm0 = vcmp.ne.s32.totalorder %v17858_v11, 31  ;;  %vm17862_vm8 = vcmp.ne.s32.totalorder %v17861_v19, 31  ;;  %v17864_v11 = vld [vmem:[#allocation72_spill] sm:$0xff]  ;;  %v17867_v19 = vld [vmem:[#allocation82_spill] sm:$0xff] }
 0x2bd   : > { %8320 = vst.msk [vmem:[%s16262_s10 + $0x30] sm:$0xff] %vm8313_vm9, %v8255_v50  ;;  %v8258_v60 = vadd.f32 %v16254_v25, %v8187_v15  ;;  %v8186_v13 = vadd.f32 %v8122_v28, %v7413_v48  ;;  %v7416_v57 = vadd.f32 %v11025_v53, %v17839_v29  ;;  %v8125_v47 = vsel %vm17841_vm1, %v11123_v31, 0.0  ;;  %v17845_v31 = vld [vmem:[#allocation92_spill] sm:$0xff] }
 0x2be   : > { %v7136_v51 = vpop.f32.mrf.mxu1  ;;  %v7845_v4 = vpop.f32.mrf.mxu0  ;;  %vm17865_vm13 = vcmp.ne.s32.totalorder %v17864_v11, 31  ;;  %vm17868_vm15 = vcmp.ne.s32.totalorder %v17867_v19, 31  ;;  %v17870_v11 = vld [vmem:[#allocation87_spill] sm:$0xff] }
 0x2bf   : > { %8323 = vst.msk [vmem:[%s16262_s10 + $0x48] sm:$0xff] %vm8313_vm9, %v8258_v60  ;;  %v8257_v30 = vadd.f32 %v16254_v25, %v8186_v13  ;;  %v8189_v44 = vadd.f32 %v8125_v47, %v7416_v57  ;;  %v7415_v58 = vadd.f32 %v7136_v51, %v17842_v1  ;;  %v8124_v50 = vsel %vm17844_vm14, %v7845_v4, 0.0  ;;  %v17848_v4 = vld [vmem:[#allocation40_spill] sm:$0xff]  ;;  %v17873_v19 = vld [vmem:[#allocation95_spill] sm:$0xff] }
 0x2c0   : > { %v11028_v15 = vpop.f32.mrf.mxu1  ;;  %v11126_v48 = vpop.f32.mrf.mxu0  ;;  %vm17871_vm12 = vcmp.ne.s32.totalorder %v17870_v11, 31  ;;  %vm17874_vm2 = vcmp.ne.s32.totalorder %v17873_v19, 31  ;;  %v17876_v11 = vld [vmem:[#allocation104_spill] sm:$0xff] }
 0x2c1   : > { %8322 = vst.msk [vmem:[%s16262_s10 + $0x40] sm:$0xff] %vm8313_vm9, %v8257_v30  ;;  %v8260_v28 = vadd.f32 %v16254_v25, %v8189_v44  ;;  %v8188_v53 = vadd.f32 %v8124_v50, %v7415_v58  ;;  %v7418_v29 = vadd.f32 %v11028_v15, %v17845_v31  ;;  %v8127_v60 = vsel %vm17847_vm3, %v11126_v48, 0.0  ;;  %v17851_v48 = vld [vmem:[#allocation96_spill] sm:$0xff] }
 0x2c2   : > { %v7146_v13 = vpop.f32.mrf.mxu1  ;;  %v7855_v57 = vpop.f32.mrf.mxu0  ;;  %vm17877_vm6 = vcmp.ne.s32.totalorder %v17876_v11, 31  ;;  %v17879_v19 = vld [vmem:[#allocation44_spill] sm:$0xff]  ;;  %v17882_v11 = vld [vmem:[#allocation46_spill] sm:$0xff] }
 0x2c3   : > { %8325 = vst.msk [vmem:[%s16262_s10 + $0x58] sm:$0xff] %vm8313_vm9, %v8260_v28  ;;  %v8259_v47 = vadd.f32 %v16254_v25, %v8188_v53  ;;  %v8191_v51 = vadd.f32 %v8127_v60, %v7418_v29  ;;  %v7417_v1 = vadd.f32 %v7146_v13, %v17848_v4  ;;  %v8126_v30 = vsel %vm17850_vm5, %v7855_v57, 0.0  ;;  %v17854_v57 = vld [vmem:[#allocation48_spill] sm:$0xff] }
 0x2c4   : > { %v11031_v44 = vpop.f32.mrf.mxu1  ;;  %v11129_v58 = vpop.f32.mrf.mxu0  ;;  %vm17880_vm1 = vcmp.ne.s32.totalorder %v17879_v19, 31  ;;  %vm17883_vm14 = vcmp.ne.s32.totalorder %v17882_v11, 31  ;;  %v17885_v19 = vld [vmem:[#allocation68_spill] sm:$0xff]  ;;  %v17888_v11 = vld [vmem:[#allocation74_spill] sm:$0xff] }
 0x2c5   : > { %8324 = vst.msk [vmem:[%s16262_s10 + $0x50] sm:$0xff] %vm8313_vm9, %v8259_v47  ;;  %v8262_v50 = vadd.f32 %v16254_v25, %v8191_v51  ;;  %v8190_v15 = vadd.f32 %v8126_v30, %v7417_v1  ;;  %v7420_v31 = vadd.f32 %v11031_v44, %v17851_v48  ;;  %v8129_v28 = vsel %vm17853_vm4, %v11129_v58, 0.0  ;;  %v17857_v58 = vld [vmem:[#allocation99_spill] sm:$0xff] }
 0x2c6   : > { %v7156_v53 = vpop.f32.mrf.mxu1  ;;  %v7865_v29 = vpop.f32.mrf.mxu0  ;;  %vm17886_vm3 = vcmp.ne.s32.totalorder %v17885_v19, 31  ;;  %vm17889_vm5 = vcmp.ne.s32.totalorder %v17888_v11, 31 }
 0x2c7   : > { %8327 = vst.msk [vmem:[%s16262_s10 + $0x68] sm:$0xff] %vm8313_vm9, %v8262_v50  ;;  %v8261_v60 = vadd.f32 %v16254_v25, %v8190_v15  ;;  %v8193_v13 = vadd.f32 %v8129_v28, %v7420_v31  ;;  %v7419_v4 = vadd.f32 %v7156_v53, %v17854_v57  ;;  %v8128_v47 = vsel %vm17856_vm11, %v7865_v29, 0.0  ;;  %v17860_v29 = vld [vmem:[#allocation102_spill] sm:$0xff] }
 0x2c8   : > { %v11034_v51 = vpop.f32.mrf.mxu1  ;;  %v11132_v1 = vpop.f32.mrf.mxu0 }
 0x2c9   : > { %8326 = vst.msk [vmem:[%s16262_s10 + $0x60] sm:$0xff] %vm8313_vm9, %v8261_v60  ;;  %v8264_v30 = vadd.f32 %v16254_v25, %v8193_v13  ;;  %v8192_v44 = vadd.f32 %v8128_v47, %v7419_v4  ;;  %v7422_v48 = vadd.f32 %v11034_v51, %v17857_v58  ;;  %v8131_v50 = vsel %vm17859_vm0, %v11132_v1, 0.0  ;;  %v17863_v1 = vld [vmem:[#allocation105_spill] sm:$0xff] }
 0x2ca   : > { %v7166_v15 = vpop.f32.mrf.mxu1  ;;  %v7875_v31 = vpop.f32.mrf.mxu0 }
 0x2cb   : > { %8329 = vst.msk [vmem:[%s16262_s10 + $0x78] sm:$0xff] %vm8313_vm9, %v8264_v30  ;;  %v8263_v28 = vadd.f32 %v16254_v25, %v8192_v44  ;;  %v8195_v53 = vadd.f32 %v8131_v50, %v7422_v48  ;;  %v7421_v57 = vadd.f32 %v7166_v15, %v17860_v29  ;;  %v8130_v60 = vsel %vm17862_vm8, %v7875_v31, 0.0  ;;  %v17866_v31 = vld [vmem:[#allocation31_spill] sm:$0xff] }
 0x2cc   : > { %v11037_v13 = vpop.f32.mrf.mxu1  ;;  %v11135_v4 = vpop.f32.mrf.mxu0 }
 0x2cd   : > { %8328 = vst.msk [vmem:[%s16262_s10 + $0x70] sm:$0xff] %vm8313_vm9, %v8263_v28  ;;  %v8266_v47 = vadd.f32 %v16254_v25, %v8195_v53  ;;  %v8194_v51 = vadd.f32 %v8130_v60, %v7421_v57  ;;  %v7424_v58 = vadd.f32 %v11037_v13, %v17863_v1  ;;  %v8133_v30 = vsel %vm17865_vm13, %v11135_v4, 0.0  ;;  %v17869_v4 = vld [vmem:[#allocation66_spill] sm:$0xff] }
 0x2ce   : > { %v7176_v44 = vpop.f32.mrf.mxu1  ;;  %v7885_v48 = vpop.f32.mrf.mxu0 }
 0x2cf   : > { %8331 = vst.msk [vmem:[%s16262_s10 + $0x88] sm:$0xff] %vm8313_vm9, %v8266_v47  ;;  %v8265_v50 = vadd.f32 %v16254_v25, %v8194_v51  ;;  %v8197_v15 = vadd.f32 %v8133_v30, %v7424_v58  ;;  %v7423_v29 = vadd.f32 %v7176_v44, %v17866_v31  ;;  %v8132_v28 = vsel %vm17868_vm15, %v7885_v48, 0.0  ;;  %v17872_v48 = vld [vmem:[#allocation43_spill] sm:$0xff] }
 0x2d0   : > { %v11040_v53 = vpop.f32.mrf.mxu1  ;;  %v11138_v57 = vpop.f32.mrf.mxu0 }
 0x2d1   : > { %8330 = vst.msk [vmem:[%s16262_s10 + $0x80] sm:$0xff] %vm8313_vm9, %v8265_v50  ;;  %v8268_v60 = vadd.f32 %v16254_v25, %v8197_v15  ;;  %v8196_v13 = vadd.f32 %v8132_v28, %v7423_v29  ;;  %v7426_v1 = vadd.f32 %v11040_v53, %v17869_v4  ;;  %v8135_v47 = vsel %vm17871_vm12, %v11138_v57, 0.0  ;;  %v17875_v57 = vld [vmem:[#allocation2_spill] sm:$0xff] }
 0x2d2   : > { %v7186_v51 = vpop.f32.mrf.mxu1  ;;  %v7895_v58 = vpop.f32.mrf.mxu0 }
 0x2d3   : > { %8333 = vst.msk [vmem:[%s16262_s10 + $0x98] sm:$0xff] %vm8313_vm9, %v8268_v60  ;;  %v8267_v30 = vadd.f32 %v16254_v25, %v8196_v13  ;;  %v8199_v44 = vadd.f32 %v8135_v47, %v7426_v1  ;;  %v7425_v31 = vadd.f32 %v7186_v51, %v17872_v48  ;;  %v8134_v50 = vsel %vm17874_vm2, %v7895_v58, 0.0  ;;  %v17878_v58 = vld [vmem:[#allocation91_spill] sm:$0xff] }
 0x2d4   : > { %v11043_v15 = vpop.f32.mrf.mxu1  ;;  %v11141_v29 = vpop.f32.mrf.mxu0 }
 0x2d5   : > { %8332 = vst.msk [vmem:[%s16262_s10 + $0x90] sm:$0xff] %vm8313_vm9, %v8267_v30  ;;  %v8270_v28 = vadd.f32 %v16254_v25, %v8199_v44  ;;  %v8198_v53 = vadd.f32 %v8134_v50, %v7425_v31  ;;  %v7428_v4 = vadd.f32 %v11043_v15, %v17875_v57  ;;  %v8137_v60 = vsel %vm17877_vm6, %v11141_v29, 0.0  ;;  %v17881_v29 = vld [vmem:[#allocation45_spill] sm:$0xff] }
 0x2d6   : > { %v7196_v13 = vpop.f32.mrf.mxu1  ;;  %v7905_v1 = vpop.f32.mrf.mxu0 }
 0x2d7   : > { %8335 = vst.msk [vmem:[%s16262_s10 + $0xa8] sm:$0xff] %vm8313_vm9, %v8270_v28  ;;  %v8269_v47 = vadd.f32 %v16254_v25, %v8198_v53  ;;  %v8201_v51 = vadd.f32 %v8137_v60, %v7428_v4  ;;  %v7427_v48 = vadd.f32 %v7196_v13, %v17878_v58  ;;  %v8136_v30 = vsel %vm17880_vm1, %v7905_v1, 0.0  ;;  %v17884_v1 = vld [vmem:[#allocation47_spill] sm:$0xff] }
 0x2d8   : > { %v11046_v44 = vpop.f32.mrf.mxu1  ;;  %v11144_v31 = vpop.f32.mrf.mxu0 }
 0x2d9   : > { %8334 = vst.msk [vmem:[%s16262_s10 + $0xa0] sm:$0xff] %vm8313_vm9, %v8269_v47  ;;  %v8272_v50 = vadd.f32 %v16254_v25, %v8201_v51  ;;  %v8200_v15 = vadd.f32 %v8136_v30, %v7427_v48  ;;  %v7430_v57 = vadd.f32 %v11046_v44, %v17881_v29  ;;  %v8139_v28 = vsel %vm17883_vm14, %v11144_v31, 0.0  ;;  %v17887_v31 = vld [vmem:[#allocation20_spill] sm:$0xff] }
 0x2da   : > { %v7206_v53 = vpop.f32.mrf.mxu1  ;;  %v7915_v4 = vpop.f32.mrf.mxu0 }
 0x2db   : > { %8337 = vst.msk [vmem:[%s16262_s10 + $0xb8] sm:$0xff] %vm8313_vm9, %v8272_v50  ;;  %v8271_v60 = vadd.f32 %v16254_v25, %v8200_v15  ;;  %v8203_v13 = vadd.f32 %v8139_v28, %v7430_v57  ;;  %v7429_v58 = vadd.f32 %v7206_v53, %v17884_v1  ;;  %v8138_v47 = vsel %vm17886_vm3, %v7915_v4, 0.0  ;;  %v17890_v1 = vld [vmem:[#allocation86_spill] sm:$0xff] }
 0x2dc   : > { %v11049_v51 = vpop.f32.mrf.mxu1  ;;  %v11147_v48 = vpop.f32.mrf.mxu0  ;;  %vm17891_vm4 = vcmp.ne.s32.totalorder %v17890_v1, 31  ;;  %vm17918_vm3 = vcmp.ne.s32.totalorder %v17754_v35, 31 }
 0x2dd   : > { %8336 = vst.msk [vmem:[%s16262_s10 + $0xb0] sm:$0xff] %vm8313_vm9, %v8271_v60  ;;  %v8274_v30 = vadd.f32 %v16254_v25, %v8203_v13  ;;  %v8202_v44 = vadd.f32 %v8138_v47, %v7429_v58  ;;  %v7432_v29 = vadd.f32 %v11049_v51, %v17887_v31  ;;  %v8141_v50 = vsel %vm17889_vm5, %v11147_v48, 0.0  ;;  %v17892_v51 = vld [vmem:[#allocation71_spill] sm:$0xff]  ;;  %v17893_v31 = vld [vmem:[#allocation114_spill] sm:$0xff] }
 0x2de   : > { %v7216_v15 = vpop.f32.mrf.mxu1  ;;  %v7925_v57 = vpop.f32.mrf.mxu0  ;;  %vm17894_vm11 = vcmp.ne.s32.totalorder %v17893_v31, 31 }
 0x2df   : > { %8339 = vst.msk [vmem:[%s16262_s10 + $0xc8] sm:$0xff] %vm8313_vm9, %v8274_v30  ;;  %v8273_v28 = vadd.f32 %v16254_v25, %v8202_v44  ;;  %v8205_v53 = vadd.f32 %v8141_v50, %v7432_v29  ;;  %v7431_v4 = vadd.f32 %v7216_v15, %v15994_v36  ;;  %v8140_v60 = vsel %vm17891_vm4, %v7925_v57, 0.0  ;;  %v17895_v50 = vld [vmem:[#allocation94_spill] sm:$0xff]  ;;  %v17896_v57 = vld [vmem:[#allocation89_spill] sm:$0xff] }
 0x2e0   : > { %v11052_v13 = vpop.f32.mrf.mxu1  ;;  %v11150_v58 = vpop.f32.mrf.mxu0  ;;  %vm17897_vm0 = vcmp.ne.s32.totalorder %v17896_v57, 31  ;;  %vm17921_vm4 = vcmp.ne.s32.totalorder %v17554_v8, 31 }
 0x2e1   : > { %8338 = vst.msk [vmem:[%s16262_s10 + $0xc0] sm:$0xff] %vm8313_vm9, %v8273_v28  ;;  %v8276_v19 = vadd.f32 %v16254_v25, %v8205_v53  ;;  %v8204_v47 = vadd.f32 %v8140_v60, %v7431_v4  ;;  %v7434_v48 = vadd.f32 %v11052_v13, %v17892_v51  ;;  %v8143_v30 = vsel %vm17894_vm11, %v11150_v58, 0.0  ;;  %v17898_v13 = vld [vmem:[#allocation56_spill] sm:$0xff]  ;;  %v17899_v51 = vld [vmem:[#allocation57_spill] sm:$0xff] }
 0x2e2   : > { %v7226_v44 = vpop.f32.mrf.mxu1  ;;  %v7935_v29 = vpop.f32.mrf.mxu0  ;;  %vm17900_vm8 = vcmp.ne.s32.totalorder %v17899_v51, 31 }
 0x2e3   : > { %8341 = vst.msk [vmem:[%s16262_s10 + $0xd8] sm:$0xff] %vm8313_vm9, %v8276_v19  ;;  %v8275_v36 = vadd.f32 %v16254_v25, %v8204_v47  ;;  %v8207_v11 = vadd.f32 %v8143_v30, %v7434_v48  ;;  %v7433_v15 = vadd.f32 %v7226_v44, %v17895_v50  ;;  %v8142_v28 = vsel %vm17897_vm0, %v7935_v29, 0.0  ;;  %v17901_v44 = vld [vmem:[#allocation83_spill] sm:$0xff]  ;;  %v17902_v50 = vld [vmem:[#allocation101_spill] sm:$0xff] }
 0x2e4   : > { %v11055_v53 = vpop.f32.mrf.mxu1  ;;  %v11153_v4 = vpop.f32.mrf.mxu0  ;;  %vm17903_vm13 = vcmp.ne.s32.totalorder %v17902_v50, 31 }
 0x2e5   : > { %8340 = vst.msk [vmem:[%s16262_s10 + $0xd0] sm:$0xff] %vm8313_vm9, %v8275_v36  ;;  %v8278_v1 = vadd.f32 %v16254_v25, %v8207_v11  ;;  %v8206_v60 = vadd.f32 %v8142_v28, %v7433_v15  ;;  %v7436_v58 = vadd.f32 %v11055_v53, %v17898_v13  ;;  %v8145_v19 = vsel %vm17900_vm8, %v11153_v4, 0.0  ;;  %v17904_v53 = vld [vmem:[#allocation26_spill] sm:$0xff]  ;;  %v17905_v13 = vld [vmem:[#allocation4_spill] sm:$0xff] }
 0x2e6   : > { %v7236_v47 = vpop.f32.mrf.mxu1  ;;  %v7945_v48 = vpop.f32.mrf.mxu0  ;;  %vm17906_vm15 = vcmp.ne.s32.totalorder %v17905_v13, 31 }
 0x2e7   : > { %8343 = vst.msk [vmem:[%s16262_s10 + $0xe8] sm:$0xff] %vm8313_vm9, %v8278_v1  ;;  %v8277_v31 = vadd.f32 %v16254_v25, %v8206_v60  ;;  %v8209_v30 = vadd.f32 %v8145_v19, %v7436_v58  ;;  %v7435_v29 = vadd.f32 %v7236_v47, %v17901_v44  ;;  %v8144_v36 = vsel %vm17903_vm13, %v7945_v48, 0.0  ;;  %v17907_v48 = vld [vmem:[#allocation6_spill] sm:$0xff] }
 0x2e8   : > { %v11058_v11 = vpop.f32.mrf.mxu1  ;;  %v11156_v15 = vpop.f32.mrf.mxu0  ;;  %vm17908_vm12 = vcmp.ne.s32.totalorder %v17907_v48, 31 }
 0x2e9   : > { %8342 = vst.msk [vmem:[%s16262_s10 + $0xe0] sm:$0xff] %vm8313_vm9, %v8277_v31  ;;  %v8280_v57 = vadd.f32 %v16254_v25, %v8209_v30  ;;  %v8208_v28 = vadd.f32 %v8144_v36, %v7435_v29  ;;  %v7438_v4 = vadd.f32 %v11058_v11, %v17904_v53  ;;  %v8147_v1 = vsel %vm17906_vm15, %v11156_v15, 0.0  ;;  %v17909_v36 = vld [vmem:[#allocation88_spill] sm:$0xff] }
 0x2ea   : > { %v7246_v60 = vpop.f32.mrf.mxu1  ;;  %v7955_v58 = vpop.f32.mrf.mxu0  ;;  %v17910_v15 = vld [vmem:[#allocation8_spill] sm:$0xff]  ;;  %vm17931_vm15 = vcmp.ne.s32.totalorder %v17774_v56, 31 }
 0x2eb   : > { %8345 = vst.msk [vmem:[%s16262_s10 + $0xf8] sm:$0xff] %vm8313_vm9, %v8280_v57  ;;  %v8279_v51 = vadd.f32 %v16254_v25, %v8208_v28  ;;  %v8211_v19 = vadd.f32 %v8147_v1, %v7438_v4  ;;  %v7437_v47 = vadd.f32 %v7246_v60, %v16038_v7  ;;  %v8146_v31 = vsel %vm17908_vm12, %v7955_v58, 0.0  ;;  %v17912_v1 = vld [vmem:[#allocation10_spill] sm:$0xff] }
 0x2ec   : > { %v11061_v30 = vpop.f32.mrf.mxu1  ;;  %v11159_v44 = vpop.f32.mrf.mxu0  ;;  %vm17911_vm2 = vcmp.ne.s32.totalorder %v17910_v15, 31  ;;  %vm17913_vm6 = vcmp.ne.s32.totalorder %v17912_v1, 31  ;;  %vm17932_vm12 = vcmp.ne.s32.totalorder %v17777_v16, 31 }
 0x2ed   : > { %8344 = vst.msk [vmem:[%s16262_s10 + $0xf0] sm:$0xff] %vm8313_vm9, %v8279_v51  ;;  %v8282_v29 = vadd.f32 %v16254_v25, %v8211_v19  ;;  %v8210_v50 = vadd.f32 %v8146_v31, %v7437_v47  ;;  %v7440_v11 = vadd.f32 %v11061_v30, %v17909_v36  ;;  %v8149_v57 = vsel %vm17911_vm2, %v11159_v44, 0.0  ;;  %v17914_v31 = vld [vmem:[#allocation12_spill] sm:$0xff] }
 0x2ee   : > { %v7256_v28 = vpop.f32.mrf.mxu1  ;;  %v7965_v53 = vpop.f32.mrf.mxu0  ;;  %vm17915_vm1 = vcmp.ne.s32.totalorder %v17914_v31, 31  ;;  %vm17933_vm2 = vcmp.ne.s32.totalorder %v17567_v5, 31 }
 0x2ef   : > { %8347 = vst.msk [vmem:[%s16262_s10 + $0x108] sm:$0xff] %vm8313_vm9, %v8282_v29  ;;  %v8281_v7 = vadd.f32 %v16254_v25, %v8210_v50  ;;  %v8213_v4 = vadd.f32 %v8149_v57, %v7440_v11  ;;  %v7439_v13 = vadd.f32 %v7256_v28, %v16052_v20  ;;  %v8148_v60 = vsel %vm17913_vm6, %v7965_v53, 0.0  ;;  %v17916_v11 = vld [vmem:[#allocation14_spill] sm:$0xff] }
 0x2f0   : > { %v11064_v58 = vpop.f32.mrf.mxu1  ;;  %v11162_v51 = vpop.f32.mrf.mxu0  ;;  %vm17917_vm14 = vcmp.ne.s32.totalorder %v17916_v11, 31  ;;  %vm17934_vm6 = vcmp.ne.s32.totalorder %v17326_v59, 31 }
 0x2f1   : > { %8346 = vst.msk [vmem:[%s16262_s10 + $0x100] sm:$0xff] %vm8313_vm9, %v8281_v7  ;;  %v8284_v19 = vadd.f32 %v16254_v25, %v8213_v4  ;;  %v8212_v47 = vadd.f32 %v8148_v60, %v7439_v13  ;;  %v7442_v48 = vadd.f32 %v11064_v58, %v16057_v32  ;;  %v8151_v30 = vsel %vm17915_vm1, %v11162_v51, 0.0  ;;  %v17919_v51 = vld [vmem:[#allocation18_spill] sm:$0xff] }
 0x2f2   : > { %v7266_v44 = vpop.f32.mrf.mxu1  ;;  %v7975_v29 = vpop.f32.mrf.mxu0  ;;  %vm17920_vm5 = vcmp.ne.s32.totalorder %v17919_v51, 31  ;;  %vm17935_vm1 = vcmp.ne.s32.totalorder %v17337_v23, 31 }
 0x2f3   : > { %8349 = vst.msk [vmem:[%s16262_s10 + $0x118] sm:$0xff] %vm8313_vm9, %v8284_v19  ;;  %v8283_v20 = vadd.f32 %v16254_v25, %v8212_v47  ;;  %v8215_v50 = vadd.f32 %v8151_v30, %v7442_v48  ;;  %v7441_v36 = vadd.f32 %v7266_v44, %v16066_v6  ;;  %v8150_v15 = vsel %vm17917_vm14, %v7975_v29, 0.0 }
 0x2f4   : > { %v11067_v57 = vpop.f32.mrf.mxu1  ;;  %v11165_v28 = vpop.f32.mrf.mxu0  ;;  %vm17936_vm14 = vcmp.ne.s32.totalorder %v17343_v55, 31 }
 0x2f5   : > { %8348 = vst.msk [vmem:[%s16262_s10 + $0x110] sm:$0xff] %vm8313_vm9, %v8283_v20  ;;  %v8286_v32 = vadd.f32 %v16254_v25, %v8215_v50  ;;  %v8214_v53 = vadd.f32 %v8150_v15, %v7441_v36  ;;  %v7444_v7 = vadd.f32 %v11067_v57, %v16071_v0  ;;  %v8153_v4 = vsel %vm17918_vm3, %v11165_v28, 0.0  ;;  %v17922_v36 = vld [vmem:[#allocation22_spill] sm:$0xff]  ;;  %v17924_v28 = vld [vmem:[#allocation9_spill] sm:$0xff] }
 0x2f6   : > { %v7276_v13 = vpop.f32.mrf.mxu1  ;;  %v7985_v1 = vpop.f32.mrf.mxu0  ;;  %vm17923_vm11 = vcmp.ne.s32.totalorder %v17922_v36, 31  ;;  %vm17937_vm3 = vcmp.ne.s32.totalorder %v17351_v46, 31 }
 0x2f7   : > { %8351 = vst.msk [vmem:[%s16262_s10 + $0x128] sm:$0xff] %vm8313_vm9, %v8286_v32  ;;  %v8285_v6 = vadd.f32 %v16254_v25, %v8214_v53  ;;  %v8217_v60 = vadd.f32 %v8153_v4, %v7444_v7  ;;  %v7443_v58 = vadd.f32 %v7276_v13, %v16080_v26  ;;  %v8152_v19 = vsel %vm17920_vm5, %v7985_v1, 0.0  ;;  %v17925_v53 = vld [vmem:[#allocation24_spill] sm:$0xff] }
 0x2f8   : > { %v11070_v47 = vpop.f32.mrf.mxu1  ;;  %v11168_v48 = vpop.f32.mrf.mxu0  ;;  %vm17926_vm0 = vcmp.ne.s32.totalorder %v17925_v53, 31  ;;  %vm17938_vm5 = vcmp.ne.s32.totalorder %v17354_v61, 31 }
 0x2f9   : > { %8350 = vst.msk [vmem:[%s16262_s10 + $0x120] sm:$0xff] %vm8313_vm9, %v8285_v6  ;;  %v8288_v35 = vadd.f32 %v16254_v25, %v8217_v60  ;;  %v8216_v0 = vadd.f32 %v8152_v19, %v7443_v58  ;;  %v7446_v31 = vadd.f32 %v11070_v47, %v16085_v33  ;;  %v8155_v30 = vsel %vm17921_vm4, %v11168_v48, 0.0  ;;  %v17927_v60 = vld [vmem:[#allocation28_spill] sm:$0xff] }
 0x2fa   : > { %v7286_v44 = vpop.f32.mrf.mxu1  ;;  %v7995_v29 = vpop.f32.mrf.mxu0  ;;  %vm17928_vm8 = vcmp.ne.s32.totalorder %v17927_v60, 31  ;;  %vm17939_vm4 = vcmp.ne.s32.totalorder %v17365_v22, 31 }
 0x2fb   : > { %8353 = vst.msk [vmem:[%s16262_s10 + $0x138] sm:$0xff] %vm8313_vm9, %v8288_v35  ;;  %v8287_v26 = vadd.f32 %v16254_v25, %v8216_v0  ;;  %v8219_v20 = vadd.f32 %v8155_v30, %v7446_v31  ;;  %v7445_v50 = vadd.f32 %v7286_v44, %v16094_v27  ;;  %v8154_v11 = vsel %vm17923_vm11, %v7995_v29, 0.0  ;;  %v17929_v0 = vld [vmem:[#allocation34_spill] sm:$0xff] }
 0x2fc   : > { %v11073_v15 = vpop.f32.mrf.mxu1  ;;  %v11171_v57 = vpop.f32.mrf.mxu0  ;;  %vm17930_vm13 = vcmp.ne.s32.totalorder %v17929_v0, 31  ;;  %vm17940_vm11 = vcmp.ne.s32.totalorder %v14428_v45, 31 }
 0x2fd   : > { %8352 = vst.msk [vmem:[%s16262_s10 + $0x130] sm:$0xff] %vm8313_vm9, %v8287_v26  ;;  %v8290_v8 = vadd.f32 %v16254_v25, %v8219_v20  ;;  %v8218_v33 = vadd.f32 %v8154_v11, %v7445_v50  ;;  %v7448_v32 = vadd.f32 %v11073_v15, %v17924_v28  ;;  %v8157_v7 = vsel %vm17926_vm0, %v11171_v57, 0.0 }
 0x2fe   : > { %v7296_v4 = vpop.f32.mrf.mxu1  ;;  %v8005_v13 = vpop.f32.mrf.mxu0  ;;  %vm17941_vm0 = vcmp.ne.s32.totalorder %v14488_v2, 31 }
 0x2ff   : > { %8355 = vst.msk [vmem:[%s16262_s10 + $0x148] sm:$0xff] %vm8313_vm9, %v8290_v8  ;;  %v8289_v27 = vadd.f32 %v16254_v25, %v8218_v33  ;;  %v8221_v1 = vadd.f32 %v8157_v7, %v7448_v32  ;;  %v7447_v6 = vadd.f32 %v7296_v4, %v16108_v3  ;;  %v8156_v58 = vsel %vm17928_vm8, %v8005_v13, 0.0 }
 0x300   : > { %v11076_v51 = vpop.f32.mrf.mxu1  ;;  %v11174_v19 = vpop.f32.mrf.mxu0  ;;  %vm17942_vm8 = vcmp.ne.s32.totalorder %v14582_v14, 31 }
 0x301   : > { %8354 = vst.msk [vmem:[%s16262_s10 + $0x140] sm:$0xff] %vm8313_vm9, %v8289_v27  ;;  %v8292_v47 = vadd.f32 %v16254_v25, %v8221_v1  ;;  %v8220_v48 = vadd.f32 %v8156_v58, %v7447_v6  ;;  %v7450_v35 = vadd.f32 %v11076_v51, %v16113_v17  ;;  %v8159_v31 = vsel %vm17930_vm13, %v11174_v19, 0.0 }
 0x302   : > { %v7306_v30 = vpop.f32.mrf.mxu1  ;;  %v8015_v44 = vpop.f32.mrf.mxu0  ;;  %vm17943_vm13 = vcmp.ne.s32.totalorder %v14840_v34, 31 }
 0x303   : > { %8357 = vst.msk [vmem:[%s16262_s10 + $0x158] sm:$0xff] %vm8313_vm9, %v8292_v47  ;;  %v8291_v3 = vadd.f32 %v16254_v25, %v8220_v48  ;;  %v8223_v29 = vadd.f32 %v8159_v31, %v7450_v35  ;;  %v7449_v26 = vadd.f32 %v7306_v30, %v16122_v52  ;;  %v8158_v20 = vsel %vm17931_vm15, %v8015_v44, 0.0 }
 0x304   : > { %v11079_v50 = vpop.f32.mrf.mxu1  ;;  %v11177_v36 = vpop.f32.mrf.mxu0 }
 0x305   : > { %8356 = vst.msk [vmem:[%s16262_s10 + $0x150] sm:$0xff] %vm8313_vm9, %v8291_v3  ;;  %v8294_v17 = vadd.f32 %v16254_v25, %v8223_v29  ;;  %v8222_v11 = vadd.f32 %v8158_v20, %v7449_v26  ;;  %v7452_v15 = vadd.f32 %v11079_v50, %v16127_v63  ;;  %v8161_v57 = vsel %vm17932_vm12, %v11177_v36, 0.0 }
 0x306   : > { %v7316_v8 = vpop.f32.mrf.mxu1  ;;  %v8025_v33 = vpop.f32.mrf.mxu0  ;;  %vm17951_vm12 = vcmp.ne.s32.totalorder %v17805_v12, 31 }
 0x307   : > { %8359 = vst.msk [vmem:[%s16262_s10 + $0x168] sm:$0xff] %vm8313_vm9, %v8294_v17  ;;  %v8293_v56 = vadd.f32 %v16254_v25, %v8222_v11  ;;  %v8225_v52 = vadd.f32 %v8161_v57, %v7452_v15  ;;  %v7451_v28 = vadd.f32 %v7316_v8, %v16136_v18  ;;  %v8160_v32 = vsel %vm17933_vm2, %v8025_v33, 0.0 }
 0x308   : > { %v11082_v53 = vpop.f32.mrf.mxu1  ;;  %v11180_v7 = vpop.f32.mrf.mxu0 }
 0x309   : > { %8358 = vst.msk [vmem:[%s16262_s10 + $0x160] sm:$0xff] %vm8313_vm9, %v8293_v56  ;;  %v8296_v16 = vadd.f32 %v16254_v25, %v8225_v52  ;;  %v8224_v63 = vadd.f32 %v8160_v32, %v7451_v28  ;;  %v7454_v4 = vadd.f32 %v11082_v53, %v16141_v21  ;;  %v8163_v13 = vsel %vm17934_vm6, %v11180_v7, 0.0 }
 0x30a   : > { %v7326_v27 = vpop.f32.mrf.mxu1  ;;  %v8035_v1 = vpop.f32.mrf.mxu0 }
 0x30b   : > { %8361 = vst.msk [vmem:[%s16262_s10 + $0x178] sm:$0xff] %vm8313_vm9, %v8296_v16  ;;  %v8295_v5 = vadd.f32 %v16254_v25, %v8224_v63  ;;  %v8227_v18 = vadd.f32 %v8163_v13, %v7454_v4  ;;  %v7453_v6 = vadd.f32 %v7326_v27, %v16150_v62  ;;  %v8162_v60 = vsel %vm17935_vm1, %v8035_v1, 0.0 }
 0x30c   : > { %v11085_v58 = vpop.f32.mrf.mxu1  ;;  %v11183_v51 = vpop.f32.mrf.mxu0 }
 0x30d   : > { %8360 = vst.msk [vmem:[%s16262_s10 + $0x170] sm:$0xff] %vm8313_vm9, %v8295_v5  ;;  %v8298_v59 = vadd.f32 %v16254_v25, %v8227_v18  ;;  %v8226_v21 = vadd.f32 %v8162_v60, %v7453_v6  ;;  %v7456_v19 = vadd.f32 %v11085_v58, %v16155_v39  ;;  %v8165_v47 = vsel %vm17936_vm14, %v11183_v51, 0.0  ;;  %v17944_v58 = vld [vmem:[#allocation58_spill] sm:$0xff] }
 0x30e   : > { %v7336_v48 = vpop.f32.mrf.mxu1  ;;  %v8045_v35 = vpop.f32.mrf.mxu0 }
 0x30f   : > { %8363 = vst.msk [vmem:[%s16262_s10 + $0x188] sm:$0xff] %vm8313_vm9, %v8298_v59  ;;  %v8297_v23 = vadd.f32 %v16254_v25, %v8226_v21  ;;  %v8229_v62 = vadd.f32 %v8165_v47, %v7456_v19  ;;  %v7455_v0 = vadd.f32 %v7336_v48, %v16164_v38  ;;  %v8164_v31 = vsel %vm17937_vm3, %v8045_v35, 0.0  ;;  %v17945_v59 = vld [vmem:[#allocation49_spill] sm:$0xff] }
 0x310   : > { %v11088_v30 = vpop.f32.mrf.mxu1  ;;  %v11186_v44 = vpop.f32.mrf.mxu0  ;;  %v17947_v48 = vld [vmem:[#allocation29_spill] sm:$0xff] }
 0x311   : > { %8362 = vst.msk [vmem:[%s16262_s10 + $0x180] sm:$0xff] %vm8313_vm9, %v8297_v23  ;;  %v8300_v55 = vadd.f32 %v16254_v25, %v8229_v62  ;;  %v8228_v39 = vadd.f32 %v8164_v31, %v7455_v0  ;;  %v7458_v3 = vadd.f32 %v11088_v30, %v16169_v43  ;;  %v8167_v29 = vsel %vm17938_vm5, %v11186_v44, 0.0  ;;  %v17948_v23 = vld [vmem:[#allocation76_spill] sm:$0xff] }
 0x312   : > { %v7346_v26 = vpop.f32.mrf.mxu1  ;;  %v8055_v20 = vpop.f32.mrf.mxu0  ;;  %vm17949_vm15 = vcmp.ne.s32.totalorder %v17948_v23, 31 }
 0x313   : > { %8365 = vst.msk [vmem:[%s16262_s10 + $0x198] sm:$0xff] %vm8313_vm9, %v8300_v55  ;;  %v8299_v46 = vadd.f32 %v16254_v25, %v8228_v39  ;;  %v8231_v38 = vadd.f32 %v8167_v29, %v7458_v3  ;;  %v7457_v50 = vadd.f32 %v7346_v26, %v16178_v54  ;;  %v8166_v36 = vsel %vm17939_vm4, %v8055_v20, 0.0 }
 0x314   : > { %v11091_v17 = vpop.f32.mrf.mxu1  ;;  %v11189_v11 = vpop.f32.mrf.mxu0 }
 0x315   : > { %8364 = vst.msk [vmem:[%s16262_s10 + $0x190] sm:$0xff] %vm8313_vm9, %v8299_v46  ;;  %v8302_v61 = vadd.f32 %v16254_v25, %v8231_v38  ;;  %v8230_v43 = vadd.f32 %v8166_v36, %v7457_v50  ;;  %v7460_v15 = vadd.f32 %v11091_v17, %v16183_v42  ;;  %v8169_v57 = vsel %vm17940_vm11, %v11189_v11, 0.0 }
 0x316   : > { %v7356_v8 = vpop.f32.mrf.mxu1  ;;  %v8065_v33 = vpop.f32.mrf.mxu0 }
 0x317   : > { %8367 = vst.msk [vmem:[%s16262_s10 + $0x1a8] sm:$0xff] %vm8313_vm9, %v8302_v61  ;;  %v8301_v22 = vadd.f32 %v16254_v25, %v8230_v43  ;;  %v8233_v54 = vadd.f32 %v8169_v57, %v7460_v15  ;;  %v7459_v56 = vadd.f32 %v7356_v8, %v16192_v41  ;;  %v8168_v52 = vsel %vm17941_vm0, %v8065_v33, 0.0  ;;  %v17952_v61 = vld [vmem:[#allocation61_spill] sm:$0xff]  ;;  %v17953_v15 = vld [vmem:[#allocation55_spill] sm:$0xff] }
 0x318   : > { %v11094_v28 = vpop.f32.mrf.mxu1  ;;  %v11192_v32 = vpop.f32.mrf.mxu0 }
 0x319   : > { %8366 = vst.msk [vmem:[%s16262_s10 + $0x1a0] sm:$0xff] %vm8313_vm9, %v8301_v22  ;;  %v8304_v45 = vadd.f32 %v16254_v25, %v8233_v54  ;;  %v8232_v42 = vadd.f32 %v8168_v52, %v7459_v56  ;;  %v7462_v53 = vadd.f32 %v11094_v28, %v16198_v40  ;;  %v8171_v7 = vsel %vm17942_vm8, %v11192_v32, 0.0 }
 0x31a   : > { %v7366_v16 = vpop.f32.mrf.mxu1  ;;  %v8075_v63 = vpop.f32.mrf.mxu0 }
 0x31b   : > { %8369 = vst.msk [vmem:[%s16262_s10 + $0x1b8] sm:$0xff] %vm8313_vm9, %v8304_v45  ;;  %v8303_v2 = vadd.f32 %v16254_v25, %v8232_v42  ;;  %v8235_v41 = vadd.f32 %v8171_v7, %v7462_v53  ;;  %v7461_v4 = vadd.f32 %v7366_v16, %v16207_v24  ;;  %v8170_v13 = vsel %vm3468_vm10, %v8075_v63, 0.0 }
 0x31c   : > { %v11097_v27 = vpop.f32.mrf.mxu1  ;;  %v11195_v1 = vpop.f32.mrf.mxu0  ;;  %vm17946_vm10 = vcmp.ne.s32.totalorder %v17945_v59, 31 }
 0x31d   : > { %8368 = vst.msk [vmem:[%s16262_s10 + $0x1b0] sm:$0xff] %vm8313_vm9, %v8303_v2  ;;  %v8306_v14 = vadd.f32 %v16254_v25, %v8235_v41  ;;  %v8234_v40 = vadd.f32 %v8170_v13, %v7461_v4  ;;  %v7464_v5 = vadd.f32 %v11097_v27, %v16212_v49  ;;  %v8173_v18 = vsel %vm17943_vm13, %v11195_v1, 0.0 }
 0x31e   : > { %v7376_v6 = vpop.f32.mrf.mxu1  ;;  %v8085_v60 = vpop.f32.mrf.mxu0 }
 0x31f   : > { %8371 = vst.msk [vmem:[%s16262_s10 + $0x1c8] sm:$0xff] %vm8313_vm9, %v8306_v14  ;;  %v8305_v9 = vadd.f32 %v16254_v25, %v8234_v40  ;;  %v8237_v24 = vadd.f32 %v8173_v18, %v7464_v5  ;;  %v7463_v51 = vadd.f32 %v7376_v6, %v17944_v58  ;;  %v8172_v21 = vsel %vm17946_vm10, %v8085_v60, 0.0 }
 0x320   : > { %v11100_v19 = vpop.f32.mrf.mxu1  ;;  %v11198_v47 = vpop.f32.mrf.mxu0 }
 0x321   : > { %8370 = vst.msk [vmem:[%s16262_s10 + $0x1c0] sm:$0xff] %vm8313_vm9, %v8305_v9  ;;  %v8308_v34 = vadd.f32 %v16254_v25, %v8237_v24  ;;  %v8236_v49 = vadd.f32 %v8172_v21, %v7463_v51  ;;  %v7466_v35 = vadd.f32 %v11100_v19, %v17947_v48  ;;  %v8175_v62 = vsel %vm17949_vm15, %v11198_v47, 0.0 }
 0x322   : > { %v7386_v0 = vpop.f32.mrf.mxu1  ;;  %v8095_v31 = vpop.f32.mrf.mxu0 }
 0x323   : > { %8373 = vst.msk [vmem:[%s16262_s10 + $0x1d8] sm:$0xff] %vm8313_vm9, %v8308_v34  ;;  %v8307_v30 = vadd.f32 %v16254_v25, %v8236_v49  ;;  %v8239_v44 = vadd.f32 %v8175_v62, %v7466_v35  ;;  %v7465_v55 = vadd.f32 %v7386_v0, %v16236_v10  ;;  %v8174_v3 = vsel %vm3472_vm7, %v8095_v31, 0.0 }
 0x324   : > { %v11103_v29 = vpop.f32.mrf.mxu1  ;;  %v11201_v26 = vpop.f32.mrf.mxu0  ;;  %vm17954_vm7 = vcmp.ne.s32.totalorder %v17953_v15, 31 }
 0x325   : > { %8372 = vst.msk [vmem:[%s16262_s10 + $0x1d0] sm:$0xff] %vm8313_vm9, %v8307_v30  ;;  %v8310_v20 = vadd.f32 %v16254_v25, %v8239_v44  ;;  %v8238_v46 = vadd.f32 %v8174_v3, %v7465_v55  ;;  %v7468_v38 = vadd.f32 %v11103_v29, %v16241_v37  ;;  %v8177_v50 = vsel %vm17951_vm12, %v11201_v26, 0.0 }
 0x326   : > { %v7396_v36 = vpop.f32.mrf.mxu1  ;;  %v8105_v10 = vpop.f32.mrf.mxu0 }
 0x327   : > { %8375 = vst.msk [vmem:[%s16262_s10 + $0x1e8] sm:$0xff] %vm8313_vm9, %v8310_v20  ;;  %v8309_v17 = vadd.f32 %v16254_v25, %v8238_v46  ;;  %v8241_v11 = vadd.f32 %v8177_v50, %v7468_v38  ;;  %v7467_v43 = vadd.f32 %v7396_v36, %v17952_v61  ;;  %v8176_v57 = vsel %vm17954_vm7, %v8105_v10, 0.0 }
 0x329   : > { %8374 = vst.msk [vmem:[%s16262_s10 + $0x1e0] sm:$0xff] %vm8313_vm9, %v8309_v17  ;;  %v8312_v8 = vadd.f32 %v16254_v25, %v8241_v11  ;;  %v8240_v37 = vadd.f32 %v8176_v57, %v7467_v43 }
 0x32b   : > { %8377 = vst.msk [vmem:[%s16262_s10 + $0x1f8] sm:$0xff] %vm8313_vm9, %v8312_v8  ;;  %v8311_v12 = vadd.f32 %v16254_v25, %v8240_v37 }
 0x32d   : > { %8376 = vst.msk [vmem:[%s16262_s10 + $0x1f0] sm:$0xff] %vm8313_vm9, %v8311_v12 }
 0x32e PF: > { %s13_s16 = sadd.s32 1, %s11301_s16   ;;  %s17955_s12 = smov %s11293_s14 }
 0x32f   : > { %p10_p7 = scmp.ge.s32.totalorder %s13_s16, 6   ;;  %s17956_s13 = smov %s11297_s15 }
 0x330   : > { %s17957_s14 = smov %s17960_s17  ;;  %s17958_s15 = smov %s17964_s18 }
 0x331   :  { %12 = sbr.rel (!%p10_p7) target bundleno = 3 (0x3), region = 79 }

</bundles_post_ra>
